<compile_context>
chip_gen: v5e
topology: v5e:2x2
jax: 0.10.0
libtpu: 0.0.40
codegen_flags: <defaults>
</compile_context>

<pallas_src>
import functools

import numpy as np
import jax
import jax.numpy as jnp
from jax.experimental import pallas as pl
from jax.experimental.pallas import tpu as pltpu

BN_EPS = 1e-5

# Per-sample lane strides (all multiples of 128 -> per-sample slices are tile aligned).
S30 = 1024   # 30x30 canvas (28x28 data + zero ring): 900 lanes used, 124 zero
S16 = 256    # 16x16 canvas (14x14 data + zero ring): fully used
S7 = 128     # 7x7 tail map: 49 lanes used, 79 zero


# ----------------------------------------------------------------------------
# Host-side (trace-time) constants
# ----------------------------------------------------------------------------
@functools.lru_cache(maxsize=None)
def _pool_constants():
    """Batch-INDEPENDENT pooling / readout selection matrices (0/1/0.25 entries)."""
    # max-pool1 compaction: 30x30 canvas -> 16x16 canvas (interior 14x14).
    p1 = np.zeros((S30, S16), np.float32)
    for yo in range(1, 15):
        for xo in range(1, 15):
            p1[(2 * yo - 1) * 30 + (2 * xo - 1), yo * 16 + xo] = 1.0
    # max-pool2 compaction: 16x16 canvas -> 7x7 map (no ring needed for valid convs).
    p2 = np.zeros((S16, S7), np.float32)
    for yo in range(7):
        for xo in range(7):
            p2[(2 * yo + 1) * 16 + (2 * xo + 1), yo * 7 + xo] = 1.0
    # final AvgPool2d(2,2) on the 3x3 conv7 map: mean of (0,0),(0,1),(1,0),(1,1).
    pavg = np.zeros((S7, 1), np.float32)
    for k in (0, 1, 7, 8):
        pavg[k, 0] = 0.25
    return p1, p2, pavg


@functools.lru_cache(maxsize=None)
def _interior_masks(n):
    """Per-layer interior masks on the lane-padded canvases (tiny, O(n) bytes)."""
    def mask(wp, sp, y0, y1, x0, x1):
        m = np.zeros((sp,), np.float32)
        for y in range(y0, y1):
            m[y * wp + x0:y * wp + x1] = 1.0
        return np.tile(m.reshape(1, sp), (1, n))

    m30 = mask(30, S30, 1, 29, 1, 29)   # 28x28 real pixels on the 30x30 canvas
    m16 = mask(16, S16, 1, 15, 1, 15)   # 14x14 real pixels on the 16x16 canvas
    m7v = mask(7, S7, 0, 5, 0, 5)       # 5x5 valid region of conv6 on the 7x7 map
    return m30, m16, m7v


# ----------------------------------------------------------------------------
# The fused kernel
# ----------------------------------------------------------------------------
def _mnist_fused_kernel(x_ref, m30_ref, m16_ref, m7v_ref, p1_ref, p2_ref, pavg_ref,
                        w1_ref, a1_ref, w2_ref, a2_ref, wa1_ref, ba1_ref,
                        w4_ref, a4_ref, w5_ref, a5_ref, wa2_ref, ba2_ref,
                        w6_ref, a6_ref, w7_ref, b7_ref, o_ref, *, n_batch):
    f32 = jnp.float32

    def rolled(x, off):
        # rolled(x, off)[:, i] == x[:, (i + off) mod M]  (static lane rotation, XLU)
        m = x.shape[1]
        s = (-off) % m
        return x if s == 0 else pltpu.roll(x, s, axis=1)

    def conv3x3(x, w_ref, wp, pad):
        """3x3 conv on the lane-flattened canvas of row-width `wp`."""
        offs = [(dy - pad) * wp + (dx - pad) for dy in range(3) for dx in range(3)]
        if x.shape[0] == 1:
            # conv1 (Cin=1): 9 outer products on the VPU; MXU would be 1-deep.
            acc = None
            for t, off in enumerate(offs):
                term = w_ref[t] * rolled(x, off)                 # (Cout,1)*(1,M)
                acc = term if acc is None else acc + term
            return acc
        # Fused taps: (9*Cin, M) sublane-concat (tile aligned, Cin % 8 == 0) and
        # ONE deep-contraction MXU matmul against the (Cout, 9*Cin) weight.
        xcat = jnp.concatenate([rolled(x, off) for off in offs], axis=0)
        return jnp.dot(w_ref[...], xcat, preferred_element_type=f32)

    def conv_relu_bn(x, w_ref, aff_ref, mask, count, wp, pad):
        y = conv3x3(x, w_ref, wp, pad) + aff_ref[0]              # conv + bias
        rm = jnp.maximum(y, 0.0) * mask                          # ReLU + zero the ring
        # single-pass masked BatchNorm (batch stats over real pixels, biased var)
        inv_n = 1.0 / float(count)
        mean = jnp.sum(rm, axis=1, keepdims=True) * inv_n
        ex2 = jnp.sum(rm * rm, axis=1, keepdims=True) * inv_n
        var = jnp.maximum(ex2 - mean * mean, 0.0)
        y = (rm - mean) * jax.lax.rsqrt(var + BN_EPS) * aff_ref[1] + aff_ref[2]
        return y * mask                                          # re-zero the ring

    def per_sample_dot(x, p, sp_in):
        # Batch-independent selection matmul applied per sample.  The slices are
        # static and 128-lane aligned (sp_in % 128 == 0) -> free tile views.
        parts = [jnp.dot(x[:, s * sp_in:(s + 1) * sp_in], p,
                         preferred_element_type=f32) for s in range(n_batch)]
        return jnp.concatenate(parts, axis=1)

    def relu_maxpool(x, p, wp, sp_in):
        r = jnp.maximum(x, 0.0)
        m = jnp.maximum(jnp.maximum(r, rolled(r, 1)),
                        jnp.maximum(rolled(r, wp), rolled(r, wp + 1)))
        return per_sample_dot(m, p, sp_in)                       # compaction + ring zero

    m30 = m30_ref[...]
    m16 = m16_ref[...]
    m7v = m7v_ref[...]
    p1 = p1_ref[...].astype(f32)       # bf16 constants -> f32 once (hoisted)
    p2 = p2_ref[...].astype(f32)
    pavg = pavg_ref[...].astype(f32)

    x = x_ref[...]                                                     # (1,  n*1024)
    x = conv_relu_bn(x, w1_ref, a1_ref, m30, n_batch * 784, 30, 1)     # (8,  n*1024)
    x = conv_relu_bn(x, w2_ref, a2_ref, m30, n_batch * 784, 30, 1)     # (16, n*1024)
    x = relu_maxpool(x, p1, 30, S30)                                   # (16, n*256)

    x = (jnp.dot(wa1_ref[...], x, preferred_element_type=f32)
         + ba1_ref[...]) * m16                                         # ant1 -> (8, n*256)
    x = conv_relu_bn(x, w4_ref, a4_ref, m16, n_batch * 196, 16, 1)     # (16, n*256)
    x = conv_relu_bn(x, w5_ref, a5_ref, m16, n_batch * 196, 16, 1)     # (20, n*256)
    x = relu_maxpool(x, p2, 16, S16)                                   # (20, n*128)

    x = jnp.dot(wa2_ref[...], x, preferred_element_type=f32) + ba2_ref[...]  # (8, n*128)
    x = conv_relu_bn(x, w6_ref, a6_ref, m7v, n_batch * 25, 7, 0)       # (16, n*128) [12 real + 4 zero]
    x = conv3x3(x, w7_ref, 7, 0) + b7_ref[...]                         # (10, n*128)

    logits = per_sample_dot(x, pavg, S7)                               # (10, n)
    z = logits - jnp.max(logits, axis=0, keepdims=True)
    o_ref[...] = z - jnp.log(jnp.sum(jnp.exp(z), axis=0, keepdims=True))


# ----------------------------------------------------------------------------
# Wrapper: weight packing + single pallas_call
# ----------------------------------------------------------------------------
def _per_taps(w):
    """(Cout,Cin,3,3) -> (9, Cout, Cin) per-tap matrices (conv1 VPU path)."""
    w = jnp.asarray(w, jnp.float32)
    co, ci, kh, kw = w.shape
    return jnp.transpose(w, (2, 3, 0, 1)).reshape(kh * kw, co, ci)


def _fused_taps(w, cin_pad=0, cout_pad=0):
    """(Cout,Cin,3,3) -> (Cout', 9*Cin') fused-tap matrix.

    Column order is tap-major / input-channel-minor, matching the in-kernel
    sublane concat.  Channel padding (with zeros) keeps concat pieces 8-aligned.
    """
    w = jnp.asarray(w, jnp.float32)
    co, ci, kh, kw = w.shape
    cin_pad = max(cin_pad, ci)
    cout_pad = max(cout_pad, co)
    w = jnp.pad(w, ((0, cout_pad - co), (0, cin_pad - ci), (0, 0), (0, 0)))
    return jnp.transpose(w, (0, 2, 3, 1)).reshape(cout_pad, kh * kw * cin_pad)


def _affine(b, gamma, beta, cout_pad=0):
    """Pack bias/gamma/beta into one (3, Cout', 1) tensor (fewer tiny DMAs)."""
    c = b.shape[0]
    cout_pad = max(cout_pad, c)
    b = jnp.pad(jnp.asarray(b, jnp.float32), (0, cout_pad - c))
    gamma = jnp.pad(jnp.asarray(gamma, jnp.float32), (0, cout_pad - c),
                    constant_values=1.0)
    beta = jnp.pad(jnp.asarray(beta, jnp.float32), (0, cout_pad - c))
    return jnp.stack([b, gamma, beta], axis=0).reshape(3, cout_pad, 1)


def mnist_forward(params, x_nchw):
    p = params
    n = x_nchw.shape[0]

    p1_np, p2_np, pavg_np = _pool_constants()
    m30_np, m16_np, m7v_np = _interior_masks(n)
    # 0/1/0.25 selection constants are exact in bf16 -> half the DMA/VMEM.
    p1 = jnp.asarray(p1_np, jnp.bfloat16)
    p2 = jnp.asarray(p2_np, jnp.bfloat16)
    pavg = jnp.asarray(pavg_np, jnp.bfloat16)
    m30, m16, m7v = (jnp.asarray(m) for m in (m30_np, m16_np, m7v_np))

    # 28x28x1 input -> zero-padded 30x30 canvas, lane-padded to a 1024 stride.
    img = x_nchw.astype(jnp.float32)[:, 0]                             # (n, 28, 28)
    canv = jnp.pad(img, ((0, 0), (1, 1), (1, 1))).reshape(n, 900)
    x_canvas = jnp.pad(canv, ((0, 0), (0, S30 - 900))).reshape(1, n * S30)

    args = (
        x_canvas, m30, m16, m7v, p1, p2, pavg,
        _per_taps(p["conv1_w"]), _affine(p["conv1_b"], p["bn1_g"], p["bn1_be"]),
        _fused_taps(p["conv2_w"]), _affine(p["conv2_b"], p["bn2_g"], p["bn2_be"]),
        p["ant1_w"].reshape(8, 16).astype(jnp.float32),
        p["ant1_b"].reshape(8, 1).astype(jnp.float32),
        _fused_taps(p["conv4_w"]), _affine(p["conv4_b"], p["bn4_g"], p["bn4_be"]),
        _fused_taps(p["conv5_w"]), _affine(p["conv5_b"], p["bn5_g"], p["bn5_be"]),
        p["ant2_w"].reshape(8, 20).astype(jnp.float32),
        p["ant2_b"].reshape(8, 1).astype(jnp.float32),
        _fused_taps(p["conv6_w"], cout_pad=16),
        _affine(p["conv6_b"], p["bn6_g"], p["bn6_be"], cout_pad=16),
        _fused_taps(p["conv7_w"], cin_pad=16),
        p["conv7_b"].reshape(10, 1).astype(jnp.float32),
    )

    # Advisory cost estimate: 2 * MXU MACs, plus the bytes we actually move.
    macs = n * (8 * 9 * S30 + 16 * 72 * S30 + 16 * S30 * S16 + 8 * 16 * S16
                + 16 * 72 * S16 + 20 * 144 * S16 + 20 * S16 * S7 + 8 * 20 * S7
                + 16 * 72 * S7 + 10 * 144 * S7 + 10 * S7)
    bytes_accessed = int(sum(int(a.size) * jnp.dtype(a.dtype).itemsize for a in args)
                         + 10 * n * 4)
    cost = pl.CostEstimate(flops=2 * macs, transcendentals=16 * n,
                           bytes_accessed=bytes_accessed)

    out_cn = pl.pallas_call(
        functools.partial(_mnist_fused_kernel, n_batch=n),
        out_shape=jax.ShapeDtypeStruct((10, n), jnp.float32),
        in_specs=[pl.BlockSpec(memory_space=pltpu.MemorySpace.VMEM)] * len(args),
        out_specs=pl.BlockSpec(memory_space=pltpu.MemorySpace.VMEM),
        # Working set is a few MiB; 16 MiB leaves headroom without reserving the
        # full 32 MiB scoped default (matters most on v7x's 64 MiB VMEM).
        compiler_params=pltpu.CompilerParams(vmem_limit_bytes=16 * 1024 * 1024),
        cost_estimate=cost,
    )(*args)
    return out_cn.T                                                    # (n, 10) log-probs


# ----------------------------------------------------------------------------
# Pure-JAX reference (same semantics as the PyTorch module) for validation
# ----------------------------------------------------------------------------
def _reference_forward(params, x):
    p = params

    def conv(x, w, b, pad):
        y = jax.lax.conv_general_dilated(
            x, w, window_strides=(1, 1), padding=[(pad, pad), (pad, pad)],
            dimension_numbers=("NCHW", "OIHW", "NCHW"))
        return y + b.reshape(1, -1, 1, 1)

    def bn(x, gamma, beta):
        mean = jnp.mean(x, axis=(0, 2, 3), keepdims=True)
        var = jnp.mean((x - mean) ** 2, axis=(0, 2, 3), keepdims=True)
        return ((x - mean) * jax.lax.rsqrt(var + BN_EPS)
                * gamma.reshape(1, -1, 1, 1) + beta.reshape(1, -1, 1, 1))

    def maxpool(x):
        return jax.lax.reduce_window(x, -jnp.inf, jax.lax.max,
                                     (1, 1, 2, 2), (1, 1, 2, 2), "VALID")

    relu = jax.nn.relu
    x = bn(relu(conv(x, p["conv1_w"], p["conv1_b"], 1)), p["bn1_g"], p["bn1_be"])
    x = bn(relu(conv(x, p["conv2_w"], p["conv2_b"], 1)), p["bn2_g"], p["bn2_be"])
    x = maxpool(relu(x))
    x = conv(x, p["ant1_w"], p["ant1_b"], 0)
    x = bn(relu(conv(x, p["conv4_w"], p["conv4_b"], 1)), p["bn4_g"], p["bn4_be"])
    x = bn(relu(conv(x, p["conv5_w"], p["conv5_b"], 1)), p["bn5_g"], p["bn5_be"])
    x = maxpool(relu(x))
    x = conv(x, p["ant2_w"], p["ant2_b"], 0)
    x = bn(relu(conv(x, p["conv6_w"], p["conv6_b"], 0)), p["bn6_g"], p["bn6_be"])
    x = conv(x, p["conv7_w"], p["conv7_b"], 0)
    x = jax.lax.reduce_window(x, 0.0, jax.lax.add,
                              (1, 1, 2, 2), (1, 1, 2, 2), "VALID") / 4.0
    return jax.nn.log_softmax(x.reshape(x.shape[0], 10), axis=1)


# ----------------------------------------------------------------------------
# Parameters (deterministic synthetic init; PyTorch shapes & default BN init)
# ----------------------------------------------------------------------------
def init_params(key):
    conv_shapes = {
        "conv1": (8, 1, 3, 3),
        "conv2": (16, 8, 3, 3),
        "ant1": (8, 16, 1, 1),
        "conv4": (16, 8, 3, 3),
        "conv5": (20, 16, 3, 3),
        "ant2": (8, 20, 1, 1),
        "conv6": (12, 8, 3, 3),
        "conv7": (10, 12, 3, 3),
    }
    bn_channels = {"bn1": 8, "bn2": 16, "bn4": 16, "bn5": 20, "bn6": 12}
    params = {}
    keys = jax.random.split(key, 2 * len(conv_shapes))
    for i, (name, shp) in enumerate(conv_shapes.items()):
        params[name + "_w"] = 0.1 * jax.random.normal(keys[2 * i], shp, jnp.float32)
        params[name + "_b"] = 0.05 * jax.random.normal(keys[2 * i + 1], (shp[0],),
                                                       jnp.float32)
    for name, c in bn_channels.items():
        params[name + "_g"] = jnp.ones((c,), jnp.float32)    # gamma
        params[name + "_be"] = jnp.zeros((c,), jnp.float32)  # beta
    return params


if __name__ == "__main__":
    key = jax.random.PRNGKey(0)
    k_params, k_x = jax.random.split(key)
    params = init_params(k_params)
    # MNIST-style input: batch=2, 1 channel, 28x28.
    x = jax.random.normal(k_x, (2, 1, 28, 28), jnp.float32)

    out = jax.jit(mnist_forward)(params, x)
    out = jax.block_until_ready(out)

    assert out.shape == (2, 10), out.shape
    assert jnp.allclose(jnp.sum(jnp.exp(out), axis=1), 1.0, atol=1e-4)
    assert bool(jnp.all(jnp.isfinite(out)))

    # Validate against a pure-JAX reference of the PyTorch forward pass.
    ref = jax.block_until_ready(jax.jit(_reference_forward)(params, x))
    max_err = float(jnp.max(jnp.abs(out - ref)))
    assert max_err < 2e-3, f"mismatch vs reference: max abs err {max_err}"

    print("KERNEL_OK")
</pallas_src>

<mosaic_0001>
module attributes {stable_mosaic.version = 11 : i64} {
  func.func @_mnist_fused_kernel(%arg0: memref<1x2048xf32, #tpu.memory_space<vmem>>, %arg1: memref<1x2048xf32, #tpu.memory_space<vmem>>, %arg2: memref<1x512xf32, #tpu.memory_space<vmem>>, %arg3: memref<1x256xf32, #tpu.memory_space<vmem>>, %arg4: memref<1024x256xbf16, #tpu.memory_space<vmem>>, %arg5: memref<256x128xbf16, #tpu.memory_space<vmem>>, %arg6: memref<128x1xbf16, #tpu.memory_space<vmem>>, %arg7: memref<9x8x1xf32, #tpu.memory_space<vmem>>, %arg8: memref<3x8x1xf32, #tpu.memory_space<vmem>>, %arg9: memref<16x72xf32, #tpu.memory_space<vmem>>, %arg10: memref<3x16x1xf32, #tpu.memory_space<vmem>>, %arg11: memref<8x16xf32, #tpu.memory_space<vmem>>, %arg12: memref<8x1xf32, #tpu.memory_space<vmem>>, %arg13: memref<16x72xf32, #tpu.memory_space<vmem>>, %arg14: memref<3x16x1xf32, #tpu.memory_space<vmem>>, %arg15: memref<20x144xf32, #tpu.memory_space<vmem>>, %arg16: memref<3x20x1xf32, #tpu.memory_space<vmem>>, %arg17: memref<8x20xf32, #tpu.memory_space<vmem>>, %arg18: memref<8x1xf32, #tpu.memory_space<vmem>>, %arg19: memref<16x72xf32, #tpu.memory_space<vmem>>, %arg20: memref<3x16x1xf32, #tpu.memory_space<vmem>>, %arg21: memref<10x144xf32, #tpu.memory_space<vmem>>, %arg22: memref<10x1xf32, #tpu.memory_space<vmem>>, %arg23: memref<10x2xf32, #tpu.memory_space<vmem>>) attributes {dimension_semantics = [], scalar_prefetch = 0 : i64, scratch_operands = 0 : i64, tpu.core_type = #tpu.core_type<tc>} {
    %c0 = arith.constant 0 : index
    %c0_0 = arith.constant 0 : index
    %0 = vector.load %arg1[%c0, %c0_0] : memref<1x2048xf32, #tpu.memory_space<vmem>>, vector<1x2048xf32>
    %c0_1 = arith.constant 0 : index
    %c0_2 = arith.constant 0 : index
    %1 = vector.load %arg2[%c0_1, %c0_2] : memref<1x512xf32, #tpu.memory_space<vmem>>, vector<1x512xf32>
    %c0_3 = arith.constant 0 : index
    %c0_4 = arith.constant 0 : index
    %2 = vector.load %arg3[%c0_3, %c0_4] : memref<1x256xf32, #tpu.memory_space<vmem>>, vector<1x256xf32>
    %c0_5 = arith.constant 0 : index
    %c0_6 = arith.constant 0 : index
    %3 = vector.load %arg4[%c0_5, %c0_6] : memref<1024x256xbf16, #tpu.memory_space<vmem>>, vector<1024x256xbf16>
    %4 = arith.extf %3 : vector<1024x256xbf16> to vector<1024x256xf32>
    %c0_7 = arith.constant 0 : index
    %c0_8 = arith.constant 0 : index
    %5 = vector.load %arg5[%c0_7, %c0_8] : memref<256x128xbf16, #tpu.memory_space<vmem>>, vector<256x128xbf16>
    %6 = arith.extf %5 : vector<256x128xbf16> to vector<256x128xf32>
    %c0_9 = arith.constant 0 : index
    %c0_10 = arith.constant 0 : index
    %7 = vector.load %arg6[%c0_9, %c0_10] : memref<128x1xbf16, #tpu.memory_space<vmem>>, vector<128x1xbf16>
    %8 = arith.extf %7 : vector<128x1xbf16> to vector<128x1xf32>
    %c0_11 = arith.constant 0 : index
    %c0_12 = arith.constant 0 : index
    %9 = vector.load %arg0[%c0_11, %c0_12] : memref<1x2048xf32, #tpu.memory_space<vmem>>, vector<1x2048xf32>
    %c0_13 = arith.constant 0 : index
    %c0_14 = arith.constant 0 : index
    %c0_15 = arith.constant 0 : index
    %10 = vector.load %arg7[%c0_13, %c0_14, %c0_15] : memref<9x8x1xf32, #tpu.memory_space<vmem>>, vector<1x8x1xf32>
    %11 = vector.shape_cast %10 : vector<1x8x1xf32> to vector<8x1xf32>
    %c31_i32 = arith.constant 31 : i32
    %12 = tpu.dynamic_rotate %9 by %c31_i32 dim 1 : vector<1x2048xf32>, i32 -> vector<1x2048xf32>
    %13 = vector.broadcast %11 : vector<8x1xf32> to vector<8x2048xf32>
    %14 = vector.broadcast %12 : vector<1x2048xf32> to vector<8x2048xf32>
    %15 = arith.mulf %13, %14 : vector<8x2048xf32>
    %c1 = arith.constant 1 : index
    %c0_16 = arith.constant 0 : index
    %c0_17 = arith.constant 0 : index
    %16 = vector.load %arg7[%c1, %c0_16, %c0_17] : memref<9x8x1xf32, #tpu.memory_space<vmem>>, vector<1x8x1xf32>
    %17 = vector.shape_cast %16 : vector<1x8x1xf32> to vector<8x1xf32>
    %c30_i32 = arith.constant 30 : i32
    %18 = tpu.dynamic_rotate %9 by %c30_i32 dim 1 : vector<1x2048xf32>, i32 -> vector<1x2048xf32>
    %19 = vector.broadcast %17 : vector<8x1xf32> to vector<8x2048xf32>
    %20 = vector.broadcast %18 : vector<1x2048xf32> to vector<8x2048xf32>
    %21 = arith.mulf %19, %20 : vector<8x2048xf32>
    %22 = arith.addf %15, %21 : vector<8x2048xf32>
    %c2 = arith.constant 2 : index
    %c0_18 = arith.constant 0 : index
    %c0_19 = arith.constant 0 : index
    %23 = vector.load %arg7[%c2, %c0_18, %c0_19] : memref<9x8x1xf32, #tpu.memory_space<vmem>>, vector<1x8x1xf32>
    %24 = vector.shape_cast %23 : vector<1x8x1xf32> to vector<8x1xf32>
    %c29_i32 = arith.constant 29 : i32
    %25 = tpu.dynamic_rotate %9 by %c29_i32 dim 1 : vector<1x2048xf32>, i32 -> vector<1x2048xf32>
    %26 = vector.broadcast %24 : vector<8x1xf32> to vector<8x2048xf32>
    %27 = vector.broadcast %25 : vector<1x2048xf32> to vector<8x2048xf32>
    %28 = arith.mulf %26, %27 : vector<8x2048xf32>
    %29 = arith.addf %22, %28 : vector<8x2048xf32>
    %c3 = arith.constant 3 : index
    %c0_20 = arith.constant 0 : index
    %c0_21 = arith.constant 0 : index
    %30 = vector.load %arg7[%c3, %c0_20, %c0_21] : memref<9x8x1xf32, #tpu.memory_space<vmem>>, vector<1x8x1xf32>
    %31 = vector.shape_cast %30 : vector<1x8x1xf32> to vector<8x1xf32>
    %c1_i32 = arith.constant 1 : i32
    %32 = tpu.dynamic_rotate %9 by %c1_i32 dim 1 : vector<1x2048xf32>, i32 -> vector<1x2048xf32>
    %33 = vector.broadcast %31 : vector<8x1xf32> to vector<8x2048xf32>
    %34 = vector.broadcast %32 : vector<1x2048xf32> to vector<8x2048xf32>
    %35 = arith.mulf %33, %34 : vector<8x2048xf32>
    %36 = arith.addf %29, %35 : vector<8x2048xf32>
    %c4 = arith.constant 4 : index
    %c0_22 = arith.constant 0 : index
    %c0_23 = arith.constant 0 : index
    %37 = vector.load %arg7[%c4, %c0_22, %c0_23] : memref<9x8x1xf32, #tpu.memory_space<vmem>>, vector<1x8x1xf32>
    %38 = vector.shape_cast %37 : vector<1x8x1xf32> to vector<8x1xf32>
    %39 = vector.broadcast %38 : vector<8x1xf32> to vector<8x2048xf32>
    %40 = vector.broadcast %9 : vector<1x2048xf32> to vector<8x2048xf32>
    %41 = arith.mulf %39, %40 : vector<8x2048xf32>
    %42 = arith.addf %36, %41 : vector<8x2048xf32>
    %c5 = arith.constant 5 : index
    %c0_24 = arith.constant 0 : index
    %c0_25 = arith.constant 0 : index
    %43 = vector.load %arg7[%c5, %c0_24, %c0_25] : memref<9x8x1xf32, #tpu.memory_space<vmem>>, vector<1x8x1xf32>
    %44 = vector.shape_cast %43 : vector<1x8x1xf32> to vector<8x1xf32>
    %c2047_i32 = arith.constant 2047 : i32
    %45 = tpu.dynamic_rotate %9 by %c2047_i32 dim 1 : vector<1x2048xf32>, i32 -> vector<1x2048xf32>
    %46 = vector.broadcast %44 : vector<8x1xf32> to vector<8x2048xf32>
    %47 = vector.broadcast %45 : vector<1x2048xf32> to vector<8x2048xf32>
    %48 = arith.mulf %46, %47 : vector<8x2048xf32>
    %49 = arith.addf %42, %48 : vector<8x2048xf32>
    %c6 = arith.constant 6 : index
    %c0_26 = arith.constant 0 : index
    %c0_27 = arith.constant 0 : index
    %50 = vector.load %arg7[%c6, %c0_26, %c0_27] : memref<9x8x1xf32, #tpu.memory_space<vmem>>, vector<1x8x1xf32>
    %51 = vector.shape_cast %50 : vector<1x8x1xf32> to vector<8x1xf32>
    %c2019_i32 = arith.constant 2019 : i32
    %52 = tpu.dynamic_rotate %9 by %c2019_i32 dim 1 : vector<1x2048xf32>, i32 -> vector<1x2048xf32>
    %53 = vector.broadcast %51 : vector<8x1xf32> to vector<8x2048xf32>
    %54 = vector.broadcast %52 : vector<1x2048xf32> to vector<8x2048xf32>
    %55 = arith.mulf %53, %54 : vector<8x2048xf32>
    %56 = arith.addf %49, %55 : vector<8x2048xf32>
    %c7 = arith.constant 7 : index
    %c0_28 = arith.constant 0 : index
    %c0_29 = arith.constant 0 : index
    %57 = vector.load %arg7[%c7, %c0_28, %c0_29] : memref<9x8x1xf32, #tpu.memory_space<vmem>>, vector<1x8x1xf32>
    %58 = vector.shape_cast %57 : vector<1x8x1xf32> to vector<8x1xf32>
    %c2018_i32 = arith.constant 2018 : i32
    %59 = tpu.dynamic_rotate %9 by %c2018_i32 dim 1 : vector<1x2048xf32>, i32 -> vector<1x2048xf32>
    %60 = vector.broadcast %58 : vector<8x1xf32> to vector<8x2048xf32>
    %61 = vector.broadcast %59 : vector<1x2048xf32> to vector<8x2048xf32>
    %62 = arith.mulf %60, %61 : vector<8x2048xf32>
    %63 = arith.addf %56, %62 : vector<8x2048xf32>
    %c8 = arith.constant 8 : index
    %c0_30 = arith.constant 0 : index
    %c0_31 = arith.constant 0 : index
    %64 = vector.load %arg7[%c8, %c0_30, %c0_31] : memref<9x8x1xf32, #tpu.memory_space<vmem>>, vector<1x8x1xf32>
    %65 = vector.shape_cast %64 : vector<1x8x1xf32> to vector<8x1xf32>
    %c2017_i32 = arith.constant 2017 : i32
    %66 = tpu.dynamic_rotate %9 by %c2017_i32 dim 1 : vector<1x2048xf32>, i32 -> vector<1x2048xf32>
    %67 = vector.broadcast %65 : vector<8x1xf32> to vector<8x2048xf32>
    %68 = vector.broadcast %66 : vector<1x2048xf32> to vector<8x2048xf32>
    %69 = arith.mulf %67, %68 : vector<8x2048xf32>
    %70 = arith.addf %63, %69 : vector<8x2048xf32>
    %c0_32 = arith.constant 0 : index
    %c0_33 = arith.constant 0 : index
    %c0_34 = arith.constant 0 : index
    %71 = vector.load %arg8[%c0_32, %c0_33, %c0_34] : memref<3x8x1xf32, #tpu.memory_space<vmem>>, vector<1x8x1xf32>
    %72 = vector.shape_cast %71 : vector<1x8x1xf32> to vector<8x1xf32>
    %73 = vector.broadcast %72 : vector<8x1xf32> to vector<8x2048xf32>
    %74 = arith.addf %70, %73 : vector<8x2048xf32>
    %cst = arith.constant 0.000000e+00 : f32
    %75 = vector.broadcast %cst : f32 to vector<8x2048xf32>
    %76 = arith.maximumf %74, %75 : vector<8x2048xf32>
    %77 = vector.broadcast %0 : vector<1x2048xf32> to vector<8x2048xf32>
    %78 = arith.mulf %76, %77 : vector<8x2048xf32>
    %cst_35 = arith.constant dense<0.000000e+00> : vector<8xf32>
    %79 = vector.multi_reduction <add>, %78, %cst_35 [1] : vector<8x2048xf32> to vector<8xf32>
    %80 = vector.shape_cast %79 : vector<8xf32> to vector<8x1xf32>
    %cst_36 = arith.constant 6.37755089E-4 : f32
    %81 = vector.broadcast %cst_36 : f32 to vector<8x1xf32>
    %82 = arith.mulf %80, %81 : vector<8x1xf32>
    %83 = arith.mulf %78, %78 : vector<8x2048xf32>
    %cst_37 = arith.constant dense<0.000000e+00> : vector<8xf32>
    %84 = vector.multi_reduction <add>, %83, %cst_37 [1] : vector<8x2048xf32> to vector<8xf32>
    %85 = vector.shape_cast %84 : vector<8xf32> to vector<8x1xf32>
    %cst_38 = arith.constant 6.37755089E-4 : f32
    %86 = vector.broadcast %cst_38 : f32 to vector<8x1xf32>
    %87 = arith.mulf %85, %86 : vector<8x1xf32>
    %88 = arith.mulf %82, %82 : vector<8x1xf32>
    %89 = arith.subf %87, %88 : vector<8x1xf32>
    %cst_39 = arith.constant 0.000000e+00 : f32
    %90 = vector.broadcast %cst_39 : f32 to vector<8x1xf32>
    %91 = arith.maximumf %89, %90 : vector<8x1xf32>
    %92 = vector.broadcast %82 : vector<8x1xf32> to vector<8x2048xf32>
    %93 = arith.subf %78, %92 : vector<8x2048xf32>
    %cst_40 = arith.constant 9.99999974E-6 : f32
    %94 = vector.broadcast %cst_40 : f32 to vector<8x1xf32>
    %95 = arith.addf %91, %94 : vector<8x1xf32>
    %96 = math.rsqrt %95 : vector<8x1xf32>
    %97 = vector.broadcast %96 : vector<8x1xf32> to vector<8x2048xf32>
    %98 = arith.mulf %93, %97 : vector<8x2048xf32>
    %c1_41 = arith.constant 1 : index
    %c0_42 = arith.constant 0 : index
    %c0_43 = arith.constant 0 : index
    %99 = vector.load %arg8[%c1_41, %c0_42, %c0_43] : memref<3x8x1xf32, #tpu.memory_space<vmem>>, vector<1x8x1xf32>
    %100 = vector.shape_cast %99 : vector<1x8x1xf32> to vector<8x1xf32>
    %101 = vector.broadcast %100 : vector<8x1xf32> to vector<8x2048xf32>
    %102 = arith.mulf %98, %101 : vector<8x2048xf32>
    %c2_44 = arith.constant 2 : index
    %c0_45 = arith.constant 0 : index
    %c0_46 = arith.constant 0 : index
    %103 = vector.load %arg8[%c2_44, %c0_45, %c0_46] : memref<3x8x1xf32, #tpu.memory_space<vmem>>, vector<1x8x1xf32>
    %104 = vector.shape_cast %103 : vector<1x8x1xf32> to vector<8x1xf32>
    %105 = vector.broadcast %104 : vector<8x1xf32> to vector<8x2048xf32>
    %106 = arith.addf %102, %105 : vector<8x2048xf32>
    %107 = vector.broadcast %0 : vector<1x2048xf32> to vector<8x2048xf32>
    %108 = arith.mulf %106, %107 : vector<8x2048xf32>
    %c31_i32_47 = arith.constant 31 : i32
    %109 = tpu.dynamic_rotate %108 by %c31_i32_47 dim 1 : vector<8x2048xf32>, i32 -> vector<8x2048xf32>
    %c30_i32_48 = arith.constant 30 : i32
    %110 = tpu.dynamic_rotate %108 by %c30_i32_48 dim 1 : vector<8x2048xf32>, i32 -> vector<8x2048xf32>
    %c29_i32_49 = arith.constant 29 : i32
    %111 = tpu.dynamic_rotate %108 by %c29_i32_49 dim 1 : vector<8x2048xf32>, i32 -> vector<8x2048xf32>
    %c1_i32_50 = arith.constant 1 : i32
    %112 = tpu.dynamic_rotate %108 by %c1_i32_50 dim 1 : vector<8x2048xf32>, i32 -> vector<8x2048xf32>
    %c2047_i32_51 = arith.constant 2047 : i32
    %113 = tpu.dynamic_rotate %108 by %c2047_i32_51 dim 1 : vector<8x2048xf32>, i32 -> vector<8x2048xf32>
    %c2019_i32_52 = arith.constant 2019 : i32
    %114 = tpu.dynamic_rotate %108 by %c2019_i32_52 dim 1 : vector<8x2048xf32>, i32 -> vector<8x2048xf32>
    %c2018_i32_53 = arith.constant 2018 : i32
    %115 = tpu.dynamic_rotate %108 by %c2018_i32_53 dim 1 : vector<8x2048xf32>, i32 -> vector<8x2048xf32>
    %c2017_i32_54 = arith.constant 2017 : i32
    %116 = tpu.dynamic_rotate %108 by %c2017_i32_54 dim 1 : vector<8x2048xf32>, i32 -> vector<8x2048xf32>
    %117 = tpu.concatenate %109, %110, %111, %112, %108, %113, %114, %115, %116 in 0 : vector<8x2048xf32>, vector<8x2048xf32>, vector<8x2048xf32>, vector<8x2048xf32>, vector<8x2048xf32>, vector<8x2048xf32>, vector<8x2048xf32>, vector<8x2048xf32>, vector<8x2048xf32> -> vector<72x2048xf32>
    %c0_55 = arith.constant 0 : index
    %c0_56 = arith.constant 0 : index
    %118 = vector.load %arg9[%c0_55, %c0_56] : memref<16x72xf32, #tpu.memory_space<vmem>>, vector<16x72xf32>
    %cst_57 = arith.constant dense<0.000000e+00> : vector<16x2048xf32>
    %119 = tpu.matmul %118, %117, %cst_57 {dimension_numbers = #tpu.dot_dimension_numbers<[1], [0], [0], [1], [0, 0, 1, 1], [], []>} : vector<16x72xf32>, vector<72x2048xf32>, vector<16x2048xf32> -> vector<16x2048xf32>
    %c0_58 = arith.constant 0 : index
    %c0_59 = arith.constant 0 : index
    %c0_60 = arith.constant 0 : index
    %120 = vector.load %arg10[%c0_58, %c0_59, %c0_60] : memref<3x16x1xf32, #tpu.memory_space<vmem>>, vector<1x16x1xf32>
    %121 = vector.shape_cast %120 : vector<1x16x1xf32> to vector<16x1xf32>
    %122 = vector.broadcast %121 : vector<16x1xf32> to vector<16x2048xf32>
    %123 = arith.addf %119, %122 : vector<16x2048xf32>
    %cst_61 = arith.constant 0.000000e+00 : f32
    %124 = vector.broadcast %cst_61 : f32 to vector<16x2048xf32>
    %125 = arith.maximumf %123, %124 : vector<16x2048xf32>
    %126 = vector.broadcast %0 : vector<1x2048xf32> to vector<16x2048xf32>
    %127 = arith.mulf %125, %126 : vector<16x2048xf32>
    %cst_62 = arith.constant dense<0.000000e+00> : vector<16xf32>
    %128 = vector.multi_reduction <add>, %127, %cst_62 [1] : vector<16x2048xf32> to vector<16xf32>
    %129 = vector.shape_cast %128 : vector<16xf32> to vector<16x1xf32>
    %cst_63 = arith.constant 6.37755089E-4 : f32
    %130 = vector.broadcast %cst_63 : f32 to vector<16x1xf32>
    %131 = arith.mulf %129, %130 : vector<16x1xf32>
    %132 = arith.mulf %127, %127 : vector<16x2048xf32>
    %cst_64 = arith.constant dense<0.000000e+00> : vector<16xf32>
    %133 = vector.multi_reduction <add>, %132, %cst_64 [1] : vector<16x2048xf32> to vector<16xf32>
    %134 = vector.shape_cast %133 : vector<16xf32> to vector<16x1xf32>
    %cst_65 = arith.constant 6.37755089E-4 : f32
    %135 = vector.broadcast %cst_65 : f32 to vector<16x1xf32>
    %136 = arith.mulf %134, %135 : vector<16x1xf32>
    %137 = arith.mulf %131, %131 : vector<16x1xf32>
    %138 = arith.subf %136, %137 : vector<16x1xf32>
    %cst_66 = arith.constant 0.000000e+00 : f32
    %139 = vector.broadcast %cst_66 : f32 to vector<16x1xf32>
    %140 = arith.maximumf %138, %139 : vector<16x1xf32>
    %141 = vector.broadcast %131 : vector<16x1xf32> to vector<16x2048xf32>
    %142 = arith.subf %127, %141 : vector<16x2048xf32>
    %cst_67 = arith.constant 9.99999974E-6 : f32
    %143 = vector.broadcast %cst_67 : f32 to vector<16x1xf32>
    %144 = arith.addf %140, %143 : vector<16x1xf32>
    %145 = math.rsqrt %144 : vector<16x1xf32>
    %146 = vector.broadcast %145 : vector<16x1xf32> to vector<16x2048xf32>
    %147 = arith.mulf %142, %146 : vector<16x2048xf32>
    %c1_68 = arith.constant 1 : index
    %c0_69 = arith.constant 0 : index
    %c0_70 = arith.constant 0 : index
    %148 = vector.load %arg10[%c1_68, %c0_69, %c0_70] : memref<3x16x1xf32, #tpu.memory_space<vmem>>, vector<1x16x1xf32>
    %149 = vector.shape_cast %148 : vector<1x16x1xf32> to vector<16x1xf32>
    %150 = vector.broadcast %149 : vector<16x1xf32> to vector<16x2048xf32>
    %151 = arith.mulf %147, %150 : vector<16x2048xf32>
    %c2_71 = arith.constant 2 : index
    %c0_72 = arith.constant 0 : index
    %c0_73 = arith.constant 0 : index
    %152 = vector.load %arg10[%c2_71, %c0_72, %c0_73] : memref<3x16x1xf32, #tpu.memory_space<vmem>>, vector<1x16x1xf32>
    %153 = vector.shape_cast %152 : vector<1x16x1xf32> to vector<16x1xf32>
    %154 = vector.broadcast %153 : vector<16x1xf32> to vector<16x2048xf32>
    %155 = arith.addf %151, %154 : vector<16x2048xf32>
    %156 = vector.broadcast %0 : vector<1x2048xf32> to vector<16x2048xf32>
    %157 = arith.mulf %155, %156 : vector<16x2048xf32>
    %cst_74 = arith.constant 0.000000e+00 : f32
    %158 = vector.broadcast %cst_74 : f32 to vector<16x2048xf32>
    %159 = arith.maximumf %157, %158 : vector<16x2048xf32>
    %c2047_i32_75 = arith.constant 2047 : i32
    %160 = tpu.dynamic_rotate %159 by %c2047_i32_75 dim 1 : vector<16x2048xf32>, i32 -> vector<16x2048xf32>
    %161 = arith.maximumf %159, %160 : vector<16x2048xf32>
    %c2018_i32_76 = arith.constant 2018 : i32
    %162 = tpu.dynamic_rotate %159 by %c2018_i32_76 dim 1 : vector<16x2048xf32>, i32 -> vector<16x2048xf32>
    %c2017_i32_77 = arith.constant 2017 : i32
    %163 = tpu.dynamic_rotate %159 by %c2017_i32_77 dim 1 : vector<16x2048xf32>, i32 -> vector<16x2048xf32>
    %164 = arith.maximumf %162, %163 : vector<16x2048xf32>
    %165 = arith.maximumf %161, %164 : vector<16x2048xf32>
    %166 = vector.extract_strided_slice %165 {offsets = [0, 0], sizes = [16, 1024], strides = [1, 1]} : vector<16x2048xf32> to vector<16x1024xf32>
    %cst_78 = arith.constant dense<0.000000e+00> : vector<16x256xf32>
    %167 = tpu.matmul %166, %4, %cst_78 {dimension_numbers = #tpu.dot_dimension_numbers<[1], [0], [0], [1], [0, 0, 1, 1], [], []>} : vector<16x1024xf32>, vector<1024x256xf32>, vector<16x256xf32> -> vector<16x256xf32>
    %168 = vector.extract_strided_slice %165 {offsets = [0, 1024], sizes = [16, 1024], strides = [1, 1]} : vector<16x2048xf32> to vector<16x1024xf32>
    %cst_79 = arith.constant dense<0.000000e+00> : vector<16x256xf32>
    %169 = tpu.matmul %168, %4, %cst_79 {dimension_numbers = #tpu.dot_dimension_numbers<[1], [0], [0], [1], [0, 0, 1, 1], [], []>} : vector<16x1024xf32>, vector<1024x256xf32>, vector<16x256xf32> -> vector<16x256xf32>
    %170 = tpu.concatenate %167, %169 in 1 : vector<16x256xf32>, vector<16x256xf32> -> vector<16x512xf32>
    %c0_80 = arith.constant 0 : index
    %c0_81 = arith.constant 0 : index
    %171 = vector.load %arg11[%c0_80, %c0_81] : memref<8x16xf32, #tpu.memory_space<vmem>>, vector<8x16xf32>
    %cst_82 = arith.constant dense<0.000000e+00> : vector<8x512xf32>
    %172 = tpu.matmul %171, %170, %cst_82 {dimension_numbers = #tpu.dot_dimension_numbers<[1], [0], [0], [1], [0, 0, 1, 1], [], []>} : vector<8x16xf32>, vector<16x512xf32>, vector<8x512xf32> -> vector<8x512xf32>
    %c0_83 = arith.constant 0 : index
    %c0_84 = arith.constant 0 : index
    %173 = vector.load %arg12[%c0_83, %c0_84] : memref<8x1xf32, #tpu.memory_space<vmem>>, vector<8x1xf32>
    %174 = vector.broadcast %173 : vector<8x1xf32> to vector<8x512xf32>
    %175 = arith.addf %172, %174 : vector<8x512xf32>
    %176 = vector.broadcast %1 : vector<1x512xf32> to vector<8x512xf32>
    %177 = arith.mulf %175, %176 : vector<8x512xf32>
    %c17_i32 = arith.constant 17 : i32
    %178 = tpu.dynamic_rotate %177 by %c17_i32 dim 1 : vector<8x512xf32>, i32 -> vector<8x512xf32>
    %c16_i32 = arith.constant 16 : i32
    %179 = tpu.dynamic_rotate %177 by %c16_i32 dim 1 : vector<8x512xf32>, i32 -> vector<8x512xf32>
    %c15_i32 = arith.constant 15 : i32
    %180 = tpu.dynamic_rotate %177 by %c15_i32 dim 1 : vector<8x512xf32>, i32 -> vector<8x512xf32>
    %c1_i32_85 = arith.constant 1 : i32
    %181 = tpu.dynamic_rotate %177 by %c1_i32_85 dim 1 : vector<8x512xf32>, i32 -> vector<8x512xf32>
    %c511_i32 = arith.constant 511 : i32
    %182 = tpu.dynamic_rotate %177 by %c511_i32 dim 1 : vector<8x512xf32>, i32 -> vector<8x512xf32>
    %c497_i32 = arith.constant 497 : i32
    %183 = tpu.dynamic_rotate %177 by %c497_i32 dim 1 : vector<8x512xf32>, i32 -> vector<8x512xf32>
    %c496_i32 = arith.constant 496 : i32
    %184 = tpu.dynamic_rotate %177 by %c496_i32 dim 1 : vector<8x512xf32>, i32 -> vector<8x512xf32>
    %c495_i32 = arith.constant 495 : i32
    %185 = tpu.dynamic_rotate %177 by %c495_i32 dim 1 : vector<8x512xf32>, i32 -> vector<8x512xf32>
    %186 = tpu.concatenate %178, %179, %180, %181, %177, %182, %183, %184, %185 in 0 : vector<8x512xf32>, vector<8x512xf32>, vector<8x512xf32>, vector<8x512xf32>, vector<8x512xf32>, vector<8x512xf32>, vector<8x512xf32>, vector<8x512xf32>, vector<8x512xf32> -> vector<72x512xf32>
    %c0_86 = arith.constant 0 : index
    %c0_87 = arith.constant 0 : index
    %187 = vector.load %arg13[%c0_86, %c0_87] : memref<16x72xf32, #tpu.memory_space<vmem>>, vector<16x72xf32>
    %cst_88 = arith.constant dense<0.000000e+00> : vector<16x512xf32>
    %188 = tpu.matmul %187, %186, %cst_88 {dimension_numbers = #tpu.dot_dimension_numbers<[1], [0], [0], [1], [0, 0, 1, 1], [], []>} : vector<16x72xf32>, vector<72x512xf32>, vector<16x512xf32> -> vector<16x512xf32>
    %c0_89 = arith.constant 0 : index
    %c0_90 = arith.constant 0 : index
    %c0_91 = arith.constant 0 : index
    %189 = vector.load %arg14[%c0_89, %c0_90, %c0_91] : memref<3x16x1xf32, #tpu.memory_space<vmem>>, vector<1x16x1xf32>
    %190 = vector.shape_cast %189 : vector<1x16x1xf32> to vector<16x1xf32>
    %191 = vector.broadcast %190 : vector<16x1xf32> to vector<16x512xf32>
    %192 = arith.addf %188, %191 : vector<16x512xf32>
    %cst_92 = arith.constant 0.000000e+00 : f32
    %193 = vector.broadcast %cst_92 : f32 to vector<16x512xf32>
    %194 = arith.maximumf %192, %193 : vector<16x512xf32>
    %195 = vector.broadcast %1 : vector<1x512xf32> to vector<16x512xf32>
    %196 = arith.mulf %194, %195 : vector<16x512xf32>
    %cst_93 = arith.constant dense<0.000000e+00> : vector<16xf32>
    %197 = vector.multi_reduction <add>, %196, %cst_93 [1] : vector<16x512xf32> to vector<16xf32>
    %198 = vector.shape_cast %197 : vector<16xf32> to vector<16x1xf32>
    %cst_94 = arith.constant 0.00255102036 : f32
    %199 = vector.broadcast %cst_94 : f32 to vector<16x1xf32>
    %200 = arith.mulf %198, %199 : vector<16x1xf32>
    %201 = arith.mulf %196, %196 : vector<16x512xf32>
    %cst_95 = arith.constant dense<0.000000e+00> : vector<16xf32>
    %202 = vector.multi_reduction <add>, %201, %cst_95 [1] : vector<16x512xf32> to vector<16xf32>
    %203 = vector.shape_cast %202 : vector<16xf32> to vector<16x1xf32>
    %cst_96 = arith.constant 0.00255102036 : f32
    %204 = vector.broadcast %cst_96 : f32 to vector<16x1xf32>
    %205 = arith.mulf %203, %204 : vector<16x1xf32>
    %206 = arith.mulf %200, %200 : vector<16x1xf32>
    %207 = arith.subf %205, %206 : vector<16x1xf32>
    %cst_97 = arith.constant 0.000000e+00 : f32
    %208 = vector.broadcast %cst_97 : f32 to vector<16x1xf32>
    %209 = arith.maximumf %207, %208 : vector<16x1xf32>
    %210 = vector.broadcast %200 : vector<16x1xf32> to vector<16x512xf32>
    %211 = arith.subf %196, %210 : vector<16x512xf32>
    %cst_98 = arith.constant 9.99999974E-6 : f32
    %212 = vector.broadcast %cst_98 : f32 to vector<16x1xf32>
    %213 = arith.addf %209, %212 : vector<16x1xf32>
    %214 = math.rsqrt %213 : vector<16x1xf32>
    %215 = vector.broadcast %214 : vector<16x1xf32> to vector<16x512xf32>
    %216 = arith.mulf %211, %215 : vector<16x512xf32>
    %c1_99 = arith.constant 1 : index
    %c0_100 = arith.constant 0 : index
    %c0_101 = arith.constant 0 : index
    %217 = vector.load %arg14[%c1_99, %c0_100, %c0_101] : memref<3x16x1xf32, #tpu.memory_space<vmem>>, vector<1x16x1xf32>
    %218 = vector.shape_cast %217 : vector<1x16x1xf32> to vector<16x1xf32>
    %219 = vector.broadcast %218 : vector<16x1xf32> to vector<16x512xf32>
    %220 = arith.mulf %216, %219 : vector<16x512xf32>
    %c2_102 = arith.constant 2 : index
    %c0_103 = arith.constant 0 : index
    %c0_104 = arith.constant 0 : index
    %221 = vector.load %arg14[%c2_102, %c0_103, %c0_104] : memref<3x16x1xf32, #tpu.memory_space<vmem>>, vector<1x16x1xf32>
    %222 = vector.shape_cast %221 : vector<1x16x1xf32> to vector<16x1xf32>
    %223 = vector.broadcast %222 : vector<16x1xf32> to vector<16x512xf32>
    %224 = arith.addf %220, %223 : vector<16x512xf32>
    %225 = vector.broadcast %1 : vector<1x512xf32> to vector<16x512xf32>
    %226 = arith.mulf %224, %225 : vector<16x512xf32>
    %c17_i32_105 = arith.constant 17 : i32
    %227 = tpu.dynamic_rotate %226 by %c17_i32_105 dim 1 : vector<16x512xf32>, i32 -> vector<16x512xf32>
    %c16_i32_106 = arith.constant 16 : i32
    %228 = tpu.dynamic_rotate %226 by %c16_i32_106 dim 1 : vector<16x512xf32>, i32 -> vector<16x512xf32>
    %c15_i32_107 = arith.constant 15 : i32
    %229 = tpu.dynamic_rotate %226 by %c15_i32_107 dim 1 : vector<16x512xf32>, i32 -> vector<16x512xf32>
    %c1_i32_108 = arith.constant 1 : i32
    %230 = tpu.dynamic_rotate %226 by %c1_i32_108 dim 1 : vector<16x512xf32>, i32 -> vector<16x512xf32>
    %c511_i32_109 = arith.constant 511 : i32
    %231 = tpu.dynamic_rotate %226 by %c511_i32_109 dim 1 : vector<16x512xf32>, i32 -> vector<16x512xf32>
    %c497_i32_110 = arith.constant 497 : i32
    %232 = tpu.dynamic_rotate %226 by %c497_i32_110 dim 1 : vector<16x512xf32>, i32 -> vector<16x512xf32>
    %c496_i32_111 = arith.constant 496 : i32
    %233 = tpu.dynamic_rotate %226 by %c496_i32_111 dim 1 : vector<16x512xf32>, i32 -> vector<16x512xf32>
    %c495_i32_112 = arith.constant 495 : i32
    %234 = tpu.dynamic_rotate %226 by %c495_i32_112 dim 1 : vector<16x512xf32>, i32 -> vector<16x512xf32>
    %235 = tpu.concatenate %227, %228, %229, %230, %226, %231, %232, %233, %234 in 0 : vector<16x512xf32>, vector<16x512xf32>, vector<16x512xf32>, vector<16x512xf32>, vector<16x512xf32>, vector<16x512xf32>, vector<16x512xf32>, vector<16x512xf32>, vector<16x512xf32> -> vector<144x512xf32>
    %c0_113 = arith.constant 0 : index
    %c0_114 = arith.constant 0 : index
    %236 = vector.load %arg15[%c0_113, %c0_114] : memref<20x144xf32, #tpu.memory_space<vmem>>, vector<20x144xf32>
    %cst_115 = arith.constant dense<0.000000e+00> : vector<20x512xf32>
    %237 = tpu.matmul %236, %235, %cst_115 {dimension_numbers = #tpu.dot_dimension_numbers<[1], [0], [0], [1], [0, 0, 1, 1], [], []>} : vector<20x144xf32>, vector<144x512xf32>, vector<20x512xf32> -> vector<20x512xf32>
    %c0_116 = arith.constant 0 : index
    %c0_117 = arith.constant 0 : index
    %c0_118 = arith.constant 0 : index
    %238 = vector.load %arg16[%c0_116, %c0_117, %c0_118] : memref<3x20x1xf32, #tpu.memory_space<vmem>>, vector<1x20x1xf32>
    %239 = vector.shape_cast %238 : vector<1x20x1xf32> to vector<20x1xf32>
    %240 = vector.broadcast %239 : vector<20x1xf32> to vector<20x512xf32>
    %241 = arith.addf %237, %240 : vector<20x512xf32>
    %cst_119 = arith.constant 0.000000e+00 : f32
    %242 = vector.broadcast %cst_119 : f32 to vector<20x512xf32>
    %243 = arith.maximumf %241, %242 : vector<20x512xf32>
    %244 = vector.broadcast %1 : vector<1x512xf32> to vector<20x512xf32>
    %245 = arith.mulf %243, %244 : vector<20x512xf32>
    %cst_120 = arith.constant dense<0.000000e+00> : vector<20xf32>
    %246 = vector.multi_reduction <add>, %245, %cst_120 [1] : vector<20x512xf32> to vector<20xf32>
    %247 = vector.shape_cast %246 : vector<20xf32> to vector<20x1xf32>
    %cst_121 = arith.constant 0.00255102036 : f32
    %248 = vector.broadcast %cst_121 : f32 to vector<20x1xf32>
    %249 = arith.mulf %247, %248 : vector<20x1xf32>
    %250 = arith.mulf %245, %245 : vector<20x512xf32>
    %cst_122 = arith.constant dense<0.000000e+00> : vector<20xf32>
    %251 = vector.multi_reduction <add>, %250, %cst_122 [1] : vector<20x512xf32> to vector<20xf32>
    %252 = vector.shape_cast %251 : vector<20xf32> to vector<20x1xf32>
    %cst_123 = arith.constant 0.00255102036 : f32
    %253 = vector.broadcast %cst_123 : f32 to vector<20x1xf32>
    %254 = arith.mulf %252, %253 : vector<20x1xf32>
    %255 = arith.mulf %249, %249 : vector<20x1xf32>
    %256 = arith.subf %254, %255 : vector<20x1xf32>
    %cst_124 = arith.constant 0.000000e+00 : f32
    %257 = vector.broadcast %cst_124 : f32 to vector<20x1xf32>
    %258 = arith.maximumf %256, %257 : vector<20x1xf32>
    %259 = vector.broadcast %249 : vector<20x1xf32> to vector<20x512xf32>
    %260 = arith.subf %245, %259 : vector<20x512xf32>
    %cst_125 = arith.constant 9.99999974E-6 : f32
    %261 = vector.broadcast %cst_125 : f32 to vector<20x1xf32>
    %262 = arith.addf %258, %261 : vector<20x1xf32>
    %263 = math.rsqrt %262 : vector<20x1xf32>
    %264 = vector.broadcast %263 : vector<20x1xf32> to vector<20x512xf32>
    %265 = arith.mulf %260, %264 : vector<20x512xf32>
    %c1_126 = arith.constant 1 : index
    %c0_127 = arith.constant 0 : index
    %c0_128 = arith.constant 0 : index
    %266 = vector.load %arg16[%c1_126, %c0_127, %c0_128] : memref<3x20x1xf32, #tpu.memory_space<vmem>>, vector<1x20x1xf32>
    %267 = vector.shape_cast %266 : vector<1x20x1xf32> to vector<20x1xf32>
    %268 = vector.broadcast %267 : vector<20x1xf32> to vector<20x512xf32>
    %269 = arith.mulf %265, %268 : vector<20x512xf32>
    %c2_129 = arith.constant 2 : index
    %c0_130 = arith.constant 0 : index
    %c0_131 = arith.constant 0 : index
    %270 = vector.load %arg16[%c2_129, %c0_130, %c0_131] : memref<3x20x1xf32, #tpu.memory_space<vmem>>, vector<1x20x1xf32>
    %271 = vector.shape_cast %270 : vector<1x20x1xf32> to vector<20x1xf32>
    %272 = vector.broadcast %271 : vector<20x1xf32> to vector<20x512xf32>
    %273 = arith.addf %269, %272 : vector<20x512xf32>
    %274 = vector.broadcast %1 : vector<1x512xf32> to vector<20x512xf32>
    %275 = arith.mulf %273, %274 : vector<20x512xf32>
    %cst_132 = arith.constant 0.000000e+00 : f32
    %276 = vector.broadcast %cst_132 : f32 to vector<20x512xf32>
    %277 = arith.maximumf %275, %276 : vector<20x512xf32>
    %c511_i32_133 = arith.constant 511 : i32
    %278 = tpu.dynamic_rotate %277 by %c511_i32_133 dim 1 : vector<20x512xf32>, i32 -> vector<20x512xf32>
    %279 = arith.maximumf %277, %278 : vector<20x512xf32>
    %c496_i32_134 = arith.constant 496 : i32
    %280 = tpu.dynamic_rotate %277 by %c496_i32_134 dim 1 : vector<20x512xf32>, i32 -> vector<20x512xf32>
    %c495_i32_135 = arith.constant 495 : i32
    %281 = tpu.dynamic_rotate %277 by %c495_i32_135 dim 1 : vector<20x512xf32>, i32 -> vector<20x512xf32>
    %282 = arith.maximumf %280, %281 : vector<20x512xf32>
    %283 = arith.maximumf %279, %282 : vector<20x512xf32>
    %284 = vector.extract_strided_slice %283 {offsets = [0, 0], sizes = [20, 256], strides = [1, 1]} : vector<20x512xf32> to vector<20x256xf32>
    %cst_136 = arith.constant dense<0.000000e+00> : vector<20x128xf32>
    %285 = tpu.matmul %284, %6, %cst_136 {dimension_numbers = #tpu.dot_dimension_numbers<[1], [0], [0], [1], [0, 0, 1, 1], [], []>} : vector<20x256xf32>, vector<256x128xf32>, vector<20x128xf32> -> vector<20x128xf32>
    %286 = vector.extract_strided_slice %283 {offsets = [0, 256], sizes = [20, 256], strides = [1, 1]} : vector<20x512xf32> to vector<20x256xf32>
    %cst_137 = arith.constant dense<0.000000e+00> : vector<20x128xf32>
    %287 = tpu.matmul %286, %6, %cst_137 {dimension_numbers = #tpu.dot_dimension_numbers<[1], [0], [0], [1], [0, 0, 1, 1], [], []>} : vector<20x256xf32>, vector<256x128xf32>, vector<20x128xf32> -> vector<20x128xf32>
    %288 = tpu.concatenate %285, %287 in 1 : vector<20x128xf32>, vector<20x128xf32> -> vector<20x256xf32>
    %c0_138 = arith.constant 0 : index
    %c0_139 = arith.constant 0 : index
    %289 = vector.load %arg17[%c0_138, %c0_139] : memref<8x20xf32, #tpu.memory_space<vmem>>, vector<8x20xf32>
    %cst_140 = arith.constant dense<0.000000e+00> : vector<8x256xf32>
    %290 = tpu.matmul %289, %288, %cst_140 {dimension_numbers = #tpu.dot_dimension_numbers<[1], [0], [0], [1], [0, 0, 1, 1], [], []>} : vector<8x20xf32>, vector<20x256xf32>, vector<8x256xf32> -> vector<8x256xf32>
    %c0_141 = arith.constant 0 : index
    %c0_142 = arith.constant 0 : index
    %291 = vector.load %arg18[%c0_141, %c0_142] : memref<8x1xf32, #tpu.memory_space<vmem>>, vector<8x1xf32>
    %292 = vector.broadcast %291 : vector<8x1xf32> to vector<8x256xf32>
    %293 = arith.addf %290, %292 : vector<8x256xf32>
    %c255_i32 = arith.constant 255 : i32
    %294 = tpu.dynamic_rotate %293 by %c255_i32 dim 1 : vector<8x256xf32>, i32 -> vector<8x256xf32>
    %c254_i32 = arith.constant 254 : i32
    %295 = tpu.dynamic_rotate %293 by %c254_i32 dim 1 : vector<8x256xf32>, i32 -> vector<8x256xf32>
    %c249_i32 = arith.constant 249 : i32
    %296 = tpu.dynamic_rotate %293 by %c249_i32 dim 1 : vector<8x256xf32>, i32 -> vector<8x256xf32>
    %c248_i32 = arith.constant 248 : i32
    %297 = tpu.dynamic_rotate %293 by %c248_i32 dim 1 : vector<8x256xf32>, i32 -> vector<8x256xf32>
    %c247_i32 = arith.constant 247 : i32
    %298 = tpu.dynamic_rotate %293 by %c247_i32 dim 1 : vector<8x256xf32>, i32 -> vector<8x256xf32>
    %c242_i32 = arith.constant 242 : i32
    %299 = tpu.dynamic_rotate %293 by %c242_i32 dim 1 : vector<8x256xf32>, i32 -> vector<8x256xf32>
    %c241_i32 = arith.constant 241 : i32
    %300 = tpu.dynamic_rotate %293 by %c241_i32 dim 1 : vector<8x256xf32>, i32 -> vector<8x256xf32>
    %c240_i32 = arith.constant 240 : i32
    %301 = tpu.dynamic_rotate %293 by %c240_i32 dim 1 : vector<8x256xf32>, i32 -> vector<8x256xf32>
    %302 = tpu.concatenate %293, %294, %295, %296, %297, %298, %299, %300, %301 in 0 : vector<8x256xf32>, vector<8x256xf32>, vector<8x256xf32>, vector<8x256xf32>, vector<8x256xf32>, vector<8x256xf32>, vector<8x256xf32>, vector<8x256xf32>, vector<8x256xf32> -> vector<72x256xf32>
    %c0_143 = arith.constant 0 : index
    %c0_144 = arith.constant 0 : index
    %303 = vector.load %arg19[%c0_143, %c0_144] : memref<16x72xf32, #tpu.memory_space<vmem>>, vector<16x72xf32>
    %cst_145 = arith.constant dense<0.000000e+00> : vector<16x256xf32>
    %304 = tpu.matmul %303, %302, %cst_145 {dimension_numbers = #tpu.dot_dimension_numbers<[1], [0], [0], [1], [0, 0, 1, 1], [], []>} : vector<16x72xf32>, vector<72x256xf32>, vector<16x256xf32> -> vector<16x256xf32>
    %c0_146 = arith.constant 0 : index
    %c0_147 = arith.constant 0 : index
    %c0_148 = arith.constant 0 : index
    %305 = vector.load %arg20[%c0_146, %c0_147, %c0_148] : memref<3x16x1xf32, #tpu.memory_space<vmem>>, vector<1x16x1xf32>
    %306 = vector.shape_cast %305 : vector<1x16x1xf32> to vector<16x1xf32>
    %307 = vector.broadcast %306 : vector<16x1xf32> to vector<16x256xf32>
    %308 = arith.addf %304, %307 : vector<16x256xf32>
    %cst_149 = arith.constant 0.000000e+00 : f32
    %309 = vector.broadcast %cst_149 : f32 to vector<16x256xf32>
    %310 = arith.maximumf %308, %309 : vector<16x256xf32>
    %311 = vector.broadcast %2 : vector<1x256xf32> to vector<16x256xf32>
    %312 = arith.mulf %310, %311 : vector<16x256xf32>
    %cst_150 = arith.constant dense<0.000000e+00> : vector<16xf32>
    %313 = vector.multi_reduction <add>, %312, %cst_150 [1] : vector<16x256xf32> to vector<16xf32>
    %314 = vector.shape_cast %313 : vector<16xf32> to vector<16x1xf32>
    %cst_151 = arith.constant 2.000000e-02 : f32
    %315 = vector.broadcast %cst_151 : f32 to vector<16x1xf32>
    %316 = arith.mulf %314, %315 : vector<16x1xf32>
    %317 = arith.mulf %312, %312 : vector<16x256xf32>
    %cst_152 = arith.constant dense<0.000000e+00> : vector<16xf32>
    %318 = vector.multi_reduction <add>, %317, %cst_152 [1] : vector<16x256xf32> to vector<16xf32>
    %319 = vector.shape_cast %318 : vector<16xf32> to vector<16x1xf32>
    %cst_153 = arith.constant 2.000000e-02 : f32
    %320 = vector.broadcast %cst_153 : f32 to vector<16x1xf32>
    %321 = arith.mulf %319, %320 : vector<16x1xf32>
    %322 = arith.mulf %316, %316 : vector<16x1xf32>
    %323 = arith.subf %321, %322 : vector<16x1xf32>
    %cst_154 = arith.constant 0.000000e+00 : f32
    %324 = vector.broadcast %cst_154 : f32 to vector<16x1xf32>
    %325 = arith.maximumf %323, %324 : vector<16x1xf32>
    %326 = vector.broadcast %316 : vector<16x1xf32> to vector<16x256xf32>
    %327 = arith.subf %312, %326 : vector<16x256xf32>
    %cst_155 = arith.constant 9.99999974E-6 : f32
    %328 = vector.broadcast %cst_155 : f32 to vector<16x1xf32>
    %329 = arith.addf %325, %328 : vector<16x1xf32>
    %330 = math.rsqrt %329 : vector<16x1xf32>
    %331 = vector.broadcast %330 : vector<16x1xf32> to vector<16x256xf32>
    %332 = arith.mulf %327, %331 : vector<16x256xf32>
    %c1_156 = arith.constant 1 : index
    %c0_157 = arith.constant 0 : index
    %c0_158 = arith.constant 0 : index
    %333 = vector.load %arg20[%c1_156, %c0_157, %c0_158] : memref<3x16x1xf32, #tpu.memory_space<vmem>>, vector<1x16x1xf32>
    %334 = vector.shape_cast %333 : vector<1x16x1xf32> to vector<16x1xf32>
    %335 = vector.broadcast %334 : vector<16x1xf32> to vector<16x256xf32>
    %336 = arith.mulf %332, %335 : vector<16x256xf32>
    %c2_159 = arith.constant 2 : index
    %c0_160 = arith.constant 0 : index
    %c0_161 = arith.constant 0 : index
    %337 = vector.load %arg20[%c2_159, %c0_160, %c0_161] : memref<3x16x1xf32, #tpu.memory_space<vmem>>, vector<1x16x1xf32>
    %338 = vector.shape_cast %337 : vector<1x16x1xf32> to vector<16x1xf32>
    %339 = vector.broadcast %338 : vector<16x1xf32> to vector<16x256xf32>
    %340 = arith.addf %336, %339 : vector<16x256xf32>
    %341 = vector.broadcast %2 : vector<1x256xf32> to vector<16x256xf32>
    %342 = arith.mulf %340, %341 : vector<16x256xf32>
    %c255_i32_162 = arith.constant 255 : i32
    %343 = tpu.dynamic_rotate %342 by %c255_i32_162 dim 1 : vector<16x256xf32>, i32 -> vector<16x256xf32>
    %c254_i32_163 = arith.constant 254 : i32
    %344 = tpu.dynamic_rotate %342 by %c254_i32_163 dim 1 : vector<16x256xf32>, i32 -> vector<16x256xf32>
    %c249_i32_164 = arith.constant 249 : i32
    %345 = tpu.dynamic_rotate %342 by %c249_i32_164 dim 1 : vector<16x256xf32>, i32 -> vector<16x256xf32>
    %c248_i32_165 = arith.constant 248 : i32
    %346 = tpu.dynamic_rotate %342 by %c248_i32_165 dim 1 : vector<16x256xf32>, i32 -> vector<16x256xf32>
    %c247_i32_166 = arith.constant 247 : i32
    %347 = tpu.dynamic_rotate %342 by %c247_i32_166 dim 1 : vector<16x256xf32>, i32 -> vector<16x256xf32>
    %c242_i32_167 = arith.constant 242 : i32
    %348 = tpu.dynamic_rotate %342 by %c242_i32_167 dim 1 : vector<16x256xf32>, i32 -> vector<16x256xf32>
    %c241_i32_168 = arith.constant 241 : i32
    %349 = tpu.dynamic_rotate %342 by %c241_i32_168 dim 1 : vector<16x256xf32>, i32 -> vector<16x256xf32>
    %c240_i32_169 = arith.constant 240 : i32
    %350 = tpu.dynamic_rotate %342 by %c240_i32_169 dim 1 : vector<16x256xf32>, i32 -> vector<16x256xf32>
    %351 = tpu.concatenate %342, %343, %344, %345, %346, %347, %348, %349, %350 in 0 : vector<16x256xf32>, vector<16x256xf32>, vector<16x256xf32>, vector<16x256xf32>, vector<16x256xf32>, vector<16x256xf32>, vector<16x256xf32>, vector<16x256xf32>, vector<16x256xf32> -> vector<144x256xf32>
    %c0_170 = arith.constant 0 : index
    %c0_171 = arith.constant 0 : index
    %352 = vector.load %arg21[%c0_170, %c0_171] : memref<10x144xf32, #tpu.memory_space<vmem>>, vector<10x144xf32>
    %cst_172 = arith.constant dense<0.000000e+00> : vector<10x256xf32>
    %353 = tpu.matmul %352, %351, %cst_172 {dimension_numbers = #tpu.dot_dimension_numbers<[1], [0], [0], [1], [0, 0, 1, 1], [], []>} : vector<10x144xf32>, vector<144x256xf32>, vector<10x256xf32> -> vector<10x256xf32>
    %c0_173 = arith.constant 0 : index
    %c0_174 = arith.constant 0 : index
    %354 = vector.load %arg22[%c0_173, %c0_174] : memref<10x1xf32, #tpu.memory_space<vmem>>, vector<10x1xf32>
    %355 = vector.broadcast %354 : vector<10x1xf32> to vector<10x256xf32>
    %356 = arith.addf %353, %355 : vector<10x256xf32>
    %357 = vector.extract_strided_slice %356 {offsets = [0, 0], sizes = [10, 128], strides = [1, 1]} : vector<10x256xf32> to vector<10x128xf32>
    %cst_175 = arith.constant dense<0.000000e+00> : vector<10x1xf32>
    %358 = tpu.matmul %357, %8, %cst_175 {dimension_numbers = #tpu.dot_dimension_numbers<[1], [0], [0], [1], [0, 0, 1, 1], [], []>} : vector<10x128xf32>, vector<128x1xf32>, vector<10x1xf32> -> vector<10x1xf32>
    %359 = vector.extract_strided_slice %356 {offsets = [0, 128], sizes = [10, 128], strides = [1, 1]} : vector<10x256xf32> to vector<10x128xf32>
    %cst_176 = arith.constant dense<0.000000e+00> : vector<10x1xf32>
    %360 = tpu.matmul %359, %8, %cst_176 {dimension_numbers = #tpu.dot_dimension_numbers<[1], [0], [0], [1], [0, 0, 1, 1], [], []>} : vector<10x128xf32>, vector<128x1xf32>, vector<10x1xf32> -> vector<10x1xf32>
    %361 = tpu.concatenate %358, %360 in 1 : vector<10x1xf32>, vector<10x1xf32> -> vector<10x2xf32>
    %cst_177 = arith.constant dense<0xFF800000> : vector<2xf32>
    %362 = vector.multi_reduction <maximumf>, %361, %cst_177 [0] : vector<10x2xf32> to vector<2xf32>
    %363 = vector.shape_cast %362 : vector<2xf32> to vector<1x2xf32>
    %364 = vector.broadcast %363 : vector<1x2xf32> to vector<10x2xf32>
    %365 = arith.subf %361, %364 : vector<10x2xf32>
    %366 = math.exp %365 : vector<10x2xf32>
    %cst_178 = arith.constant dense<0.000000e+00> : vector<2xf32>
    %367 = vector.multi_reduction <add>, %366, %cst_178 [0] : vector<10x2xf32> to vector<2xf32>
    %368 = vector.shape_cast %367 : vector<2xf32> to vector<1x2xf32>
    %369 = math.log %368 : vector<1x2xf32>
    %370 = vector.broadcast %369 : vector<1x2xf32> to vector<10x2xf32>
    %371 = arith.subf %365, %370 : vector<10x2xf32>
    %c0_179 = arith.constant 0 : index
    %c0_180 = arith.constant 0 : index
    %372 = vector.load %arg23[%c0_179, %c0_180] : memref<10x2xf32, #tpu.memory_space<vmem>>, vector<10x2xf32>
    tpu.vector_store %arg23[%c0_179, %c0_180], %371 {strides = array<i32>} : memref<10x2xf32, #tpu.memory_space<vmem>>, vector<10x2xf32>,
    return
  }
}

</mosaic_0001>

<bundles_post_ra>
// kernel: mnist_forward.1
= control target key start
LH: loop header
LB: loop body
LE: loop exit
PB: predicated region body
PF: predicated region fallthrough
CT: control target
= control target key end

     0   :  { %v7305_v2 = vmov 0   ;;  %s7308_s26 = smov 29   ;;  %s7310_s25 = smov 127   ;;  %vm2096_vm11 = vcmask 588800   ;;  %s15306_s0 = inlined_call_operand.vmem [shape: f32[1,2048], index: 0, kind: input, shape index: {}]   ;;  %s15307_s7 = inlined_call_operand.vmem [shape: f32[9,8,1], index: 7, kind: input, shape index: {}]   ;;  %s15308_s8 = inlined_call_operand.vmem [shape: f32[3,8,1], index: 8, kind: input, shape index: {}]   ;;  %s15309_s1 = inlined_call_operand.vmem [shape: f32[1,2048], index: 1, kind: input, shape index: {}]   ;;  %s15310_s10 = inlined_call_operand.vmem [shape: f32[3,16,1], index: 10, kind: input, shape index: {}]   ;;  %s15311_s9 = inlined_call_operand.vmem [shape: f32[16,72], index: 9, kind: input, shape index: {}]   ;;  %s15312_s4 = inlined_call_operand.vmem [shape: bf16[1024,256], index: 4, kind: input, shape index: {}]   ;;  %s15313_s12 = inlined_call_operand.vmem [shape: f32[8,1], index: 12, kind: input, shape index: {}]   ;;  %s15314_s11 = inlined_call_operand.vmem [shape: f32[8,16], index: 11, kind: input, shape index: {}]   ;;  %s15315_s2 = inlined_call_operand.vmem [shape: f32[1,512], index: 2, kind: input, shape index: {}]   ;;  %s15316_s14 = inlined_call_operand.vmem [shape: f32[3,16,1], index: 14, kind: input, shape index: {}]   ;;  %s15317_s13 = inlined_call_operand.vmem [shape: f32[16,72], index: 13, kind: input, shape index: {}]   ;;  %s15318_s16 = inlined_call_operand.vmem [shape: f32[3,20,1], index: 16, kind: input, shape index: {}]   ;;  %s15319_s15 = inlined_call_operand.vmem [shape: f32[20,144], index: 15, kind: input, shape index: {}]   ;;  %s15320_s5 = inlined_call_operand.vmem [shape: bf16[256,128], index: 5, kind: input, shape index: {}]   ;;  %s15321_s18 = inlined_call_operand.vmem [shape: f32[8,1], index: 18, kind: input, shape index: {}]   ;;  %s15322_s17 = inlined_call_operand.vmem [shape: f32[8,20], index: 17, kind: input, shape index: {}]   ;;  %s15323_s20 = inlined_call_operand.vmem [shape: f32[3,16,1], index: 20, kind: input, shape index: {}]   ;;  %s15324_s19 = inlined_call_operand.vmem [shape: f32[16,72], index: 19, kind: input, shape index: {}]   ;;  %s15325_s3 = inlined_call_operand.vmem [shape: f32[1,256], index: 3, kind: input, shape index: {}]   ;;  %s15326_s22 = inlined_call_operand.vmem [shape: f32[10,1], index: 22, kind: input, shape index: {}]   ;;  %s15327_s21 = inlined_call_operand.vmem [shape: f32[10,144], index: 21, kind: input, shape index: {}]   ;;  %s15328_s6 = inlined_call_operand.vmem [shape: bf16[128,1], index: 6, kind: input, shape index: {}]   ;;  %s15329_s23 = inlined_call_operand.vmem [shape: f32[10,2], index: 23, kind: output, shape index: {}]  }
   0x1   :  { %15819 = sst [smem:[#allocation216_spill]] %s15306_s0  ;;  %6199 = vset.pattern.permute.xlu2 %v7305_v2  ;;  %6200 = vset.pattern.permute.xlu0 %v7305_v2  ;;  %s7311_s27 = smov 99  }
   0x2   :  { %15820 = sst [smem:[#allocation217_spill]] %s15307_s7  ;;  %6201 = vset.pattern.permute.xlu1 %v7305_v2  ;;  %s7306_s7 = smov 31  }
   0x3   :  { %15821 = sst [smem:[#allocation218_spill]] %s15308_s8  ;;  %s7312_s0 = smov 98  }
   0x4   :  { %15822 = sst [smem:[#allocation219_spill]] %s15309_s1  ;;  %s7309_s1 = smov 1  }
   0x5   :  { %15823 = sst [smem:[#allocation220_spill]] %s15310_s10 }
   0x6   :  { %15824 = sst [smem:[#allocation221_spill]] %s15311_s9 }
   0x7   :  { %15825 = sst [smem:[#allocation222_spill]] %s15312_s4  ;;  %s7307_s4 = smov 30  }
   0x8   :  { %15826 = sst [smem:[#allocation223_spill]] %s15313_s12 }
   0x9   :  { %s15827_s24 = sld [smem:[#allocation216_spill]] }
   0xa   :  { %s15828_s12 = sld [smem:[#allocation217_spill]] }
   0xb   :  { %s15846_s30 = sld [smem:[#allocation218_spill]] }
   0xc   :  { %s16025_s10 = sld [smem:[#allocation221_spill]] }
   0xd   :  { %s16049_s29 = sld [smem:[#allocation222_spill]] }
   0xf   :  { %v7448_v0 = vld [vmem:[%s15827_s24 + $0x8] sm:$0xff]  ;;  %v7453_v1 = vld [vmem:[%s15827_s24] sm:$0xff]  ;;  %s7313_s24 = smov 97  }
  0x10   :  { %v7456_v3 = vperm.slane %v7448_v0, 7  ;;  %v7459_v4 = vperm.slane %v7453_v1, 1  ;;  %v7462_v5 = vperm.slane %v7453_v1, 0  ;;  %v7477_v6 = vperm.slane %v7453_v1, 2  ;;  %v560_v7 = vld [vmem:[%s15828_s12] sm:$0xff]  ;;  %v5965_v9 = vld [vmem:[%s15828_s12 + $0x8] sm:$0xff] }
  0x11   :  { %v7493_v8 = vperm.slane %v7453_v1, 3  ;;  %v5966_v10 = vld [vmem:[%s15828_s12 + $0x10] sm:$0xff]  ;;  %v7512_v11 = vperm.slane %v7453_v1, 4  ;;  %v7525_v12 = vperm.slane %v7453_v1, 5  ;;  %v5967_v13 = vld [vmem:[%s15828_s12 + $0x18] sm:$0xff]  ;;  %v5968_v14 = vld [vmem:[%s15828_s12 + $0x20] sm:$0xff] }
  0x12   :  { %625 = vrot.lane.b32.xlu1 %v7456_v3, %s7306_s7  ;;  %687 = vrot.lane.b32.xlu2 %v7459_v4, %s7307_s4  ;;  %v7548_v15 = vperm.slane %v7453_v1, 6  ;;  %v5969_v18 = vld [vmem:[%s15828_s12 + $0x28] sm:$0xff]  ;;  %v7576_v20 = vperm.slane %v7453_v1, 7  ;;  %v7615_v30 = vperm.slane %v7448_v0, 0  ;;  %v5970_v31 = vld [vmem:[%s15828_s12 + $0x30] sm:$0xff]  ;;  %v7668_v45 = vperm.slane %v7448_v0, 1 }
  0x13   :  { %595 = vrot.lane.b32.xlu0 %v7462_v5, %s7306_s7  ;;  %v5971_v41 = vld [vmem:[%s15828_s12 + $0x38] sm:$0xff]  ;;  %v5972_v52 = vld [vmem:[%s15828_s12 + $0x40] sm:$0xff]  ;;  %v7708_v56 = vperm.slane %v7448_v0, 2  ;;  %v7735_v63 = vperm.slane %v7448_v0, 3  ;;  %s16024_s12 = sld [smem:[#allocation220_spill]] }
  0x14   :  { %15830 = vst [vmem:[#allocation3_spill] sm:$0xff] %v7576_v20 }
  0x15   :  { %15832 = vst [vmem:[#allocation5_spill] sm:$0xff] %v7615_v30 }
  0x16   :  { %15835 = vst [vmem:[#allocation8_spill] sm:$0xff] %v7668_v45 }
  0x1a   :  { %715 = vrot.lane.b32.xlu2 %v7456_v3, %s7307_s4  ;;  %685 = vrot.lane.b32.xlu1 %v7462_v5, %s7307_s4 }
  0x1b   :  { %597 = vrot.lane.b32.xlu0 %v7459_v4, %s7306_s7 }
  0x22   :  { %789 = vrot.lane.b32.xlu2 %v7462_v5, %s7308_s26  ;;  %689 = vrot.lane.b32.xlu1 %v7477_v6, %s7307_s4 }
  0x23   :  { %599 = vrot.lane.b32.xlu0 %v7477_v6, %s7306_s7 }
  0x2a   :  { %648 = vperm.xlu2 %6199, %v560_v7   ;;  %819 = vrot.lane.b32.xlu1 %v7456_v3, %s7308_s26 }
  0x2b   :  { %791 = vrot.lane.b32.xlu0 %v7459_v4, %s7308_s26 }
  0x32   :  { %691 = vrot.lane.b32.xlu2 %v7493_v8, %s7307_s4  ;;  %601 = vrot.lane.b32.xlu1 %v7493_v8, %s7306_s7 }
  0x33   :  { %736 = vperm.xlu0 %6200, %v5965_v9  }
  0x3a   :  { %893 = vrot.lane.b32.xlu2 %v7462_v5, %s7309_s1  ;;  %793 = vrot.lane.b32.xlu1 %v7477_v6, %s7308_s26 }
  0x3b   :  { %895 = vrot.lane.b32.xlu0 %v7459_v4, %s7309_s1 }
  0x42   :  { %840 = vperm.xlu2 %6199, %v5966_v10   ;;  %923 = vrot.lane.b32.xlu1 %v7456_v3, %s7309_s1 }
  0x43   :  { %603 = vrot.lane.b32.xlu0 %v7512_v11, %s7306_s7 }
  0x4a   :  { %795 = vrot.lane.b32.xlu2 %v7493_v8, %s7308_s26  ;;  %693 = vrot.lane.b32.xlu1 %v7512_v11, %s7307_s4 }
  0x4b   :  { %897 = vrot.lane.b32.xlu0 %v7477_v6, %s7309_s1 }
  0x52   :  { %605 = vrot.lane.b32.xlu2 %v7525_v12, %s7306_s7  ;;  %944 = vperm.xlu1 %6201, %v5967_v13  }
  0x53   :  { %695 = vrot.lane.b32.xlu0 %v7525_v12, %s7307_s4 }
  0x5a   :  { %899 = vrot.lane.b32.xlu2 %v7493_v8, %s7309_s1  ;;  %797 = vrot.lane.b32.xlu1 %v7512_v11, %s7308_s26 }
  0x5b   :  { %1036 = vrot.lane.b32.xlu0 %v7462_v5, %s7310_s25 }
  0x62   :  { %1040 = vrot.lane.b32.xlu2 %v7477_v6, %s7310_s25  ;;  %1038 = vrot.lane.b32.xlu1 %v7459_v4, %s7310_s25 }
  0x63   :  { %999 = vperm.xlu0 %6200, %v5968_v14  }
  0x6a   :  { %697 = vrot.lane.b32.xlu2 %v7548_v15, %s7307_s4  ;;  %607 = vrot.lane.b32.xlu1 %v7548_v15, %s7306_s7 }
  0x6b   :  { %799 = vrot.lane.b32.xlu0 %v7525_v12, %s7308_s26 }
  0x6c   :  { %v7556_v16 = vpop.permute.xlu2 %687 }
  0x72   :  { %1042 = vrot.lane.b32.xlu2 %v7493_v8, %s7310_s25  ;;  %901 = vrot.lane.b32.xlu1 %v7512_v11, %s7309_s1 }
  0x73   :  { %1140 = vrot.lane.b32.xlu0 %v7462_v5, %s7311_s27 }
  0x74   :  { %v7564_v17 = vpop.permute.xlu2 %715 }
  0x75   :  { %15829 = vst [vmem:[#allocation2_spill] sm:$0xff] %v7564_v17 }
  0x7a   :  { %1144 = vrot.lane.b32.xlu2 %v7477_v6, %s7311_s27  ;;  %1142 = vrot.lane.b32.xlu1 %v7459_v4, %s7311_s27 }
  0x7b   :  { %1087 = vperm.xlu0 %6200, %v5969_v18  }
  0x7c   :  { %v7573_v19 = vpop.permute.xlu2 %789 }
  0x82   :  { %699 = vrot.lane.b32.xlu2 %v7576_v20, %s7307_s4  ;;  %609 = vrot.lane.b32.xlu1 %v7576_v20, %s7306_s7 }
  0x83   :  { %801 = vrot.lane.b32.xlu0 %v7548_v15, %s7308_s26 }
  0x84   :  { %v7584_v21 = vpop.permute.xlu1 %625  ;;  %v7586_v22 = vpop.permute.xlu2 %648 }
  0x85   :  { %15831 = vst [vmem:[#allocation4_spill] sm:$0xff] %v7584_v21  ;;  %v7588_v23 = vpop.permute.xlu0 %595 }
  0x8a   :  { %1044 = vrot.lane.b32.xlu2 %v7512_v11, %s7310_s25  ;;  %903 = vrot.lane.b32.xlu1 %v7525_v12, %s7309_s1 }
  0x8b   :  { %1146 = vrot.lane.b32.xlu0 %v7493_v8, %s7311_s27 }
  0x8c   :  { %v7596_v24 = vpop.permute.xlu2 %691  ;;  %v7598_v25 = vpop.permute.xlu1 %685 }
  0x8d   :  { %v7600_v26 = vpop.permute.xlu0 %597 }
  0x92   :  { %1246 = vrot.lane.b32.xlu2 %v7459_v4, %s7312_s0  ;;  %1244 = vrot.lane.b32.xlu1 %v7462_v5, %s7312_s0 }
  0x93   :  { %1248 = vrot.lane.b32.xlu0 %v7477_v6, %s7312_s0 }
  0x94   :  { %v7608_v27 = vpop.permute.xlu2 %893  ;;  %v7610_v28 = vpop.permute.xlu1 %689 }
  0x95   :  { %v7612_v29 = vpop.permute.xlu0 %599 }
  0x9a   :  { %611 = vrot.lane.b32.xlu2 %v7615_v30, %s7306_s7  ;;  %1191 = vperm.xlu1 %6201, %v5970_v31  }
  0x9b   :  { %701 = vrot.lane.b32.xlu0 %v7615_v30, %s7307_s4 }
  0x9c   :  { %v7624_v32 = vpop.permute.xlu2 %840  ;;  %v7626_v33 = vpop.permute.xlu1 %819 }
  0x9d   :  { %15833 = vst [vmem:[#allocation6_spill] sm:$0xff] %v7626_v33  ;;  %v7628_v34 = vpop.permute.xlu0 %791 }
  0xa2   :  { %905 = vrot.lane.b32.xlu2 %v7548_v15, %s7309_s1  ;;  %803 = vrot.lane.b32.xlu1 %v7576_v20, %s7308_s26 }
  0xa3   :  { %1046 = vrot.lane.b32.xlu0 %v7525_v12, %s7310_s25 }
  0xa4   :  { %v7636_v35 = vpop.permute.xlu2 %795  ;;  %v7638_v36 = vpop.permute.xlu1 %601 }
  0xa5   :  { %v7640_v37 = vpop.permute.xlu0 %736 }
  0xaa   :  { %1250 = vrot.lane.b32.xlu2 %v7493_v8, %s7312_s0  ;;  %1148 = vrot.lane.b32.xlu1 %v7512_v11, %s7311_s27 }
  0xab   :  { %1348 = vrot.lane.b32.xlu0 %v7462_v5, %s7313_s24 }
  0xac   :  { %v7648_v38 = vpop.permute.xlu2 %605  ;;  %v7650_v39 = vpop.permute.xlu1 %793 }
  0xad   :  { %v7652_v40 = vpop.permute.xlu0 %895 }
  0xb2   :  { %1352 = vrot.lane.b32.xlu2 %v7477_v6, %s7313_s24  ;;  %1350 = vrot.lane.b32.xlu1 %v7459_v4, %s7313_s24 }
  0xb3   :  { %1295 = vperm.xlu0 %6200, %v5971_v41   ;;  %v1450_v41 = vld [vmem:[%s15846_s30] sm:$0xff] }
  0xb4   :  { %v7661_v42 = vpop.permute.xlu2 %899  ;;  %v7663_v43 = vpop.permute.xlu1 %923 }
  0xb5   :  { %15834 = vst [vmem:[#allocation7_spill] sm:$0xff] %v7663_v43  ;;  %v7665_v44 = vpop.permute.xlu0 %603 }
  0xba   :  { %703 = vrot.lane.b32.xlu2 %v7668_v45, %s7307_s4  ;;  %613 = vrot.lane.b32.xlu1 %v7668_v45, %s7306_s7 }
  0xbb   :  { %805 = vrot.lane.b32.xlu0 %v7615_v30, %s7308_s26 }
  0xbc   :  { %v7676_v46 = vpop.permute.xlu2 %1040  ;;  %v7678_v47 = vpop.permute.xlu1 %693 }
  0xbd   :  { %v7680_v48 = vpop.permute.xlu0 %897 }
  0xc2   :  { %1048 = vrot.lane.b32.xlu2 %v7548_v15, %s7310_s25  ;;  %907 = vrot.lane.b32.xlu1 %v7576_v20, %s7309_s1 }
  0xc3   :  { %1150 = vrot.lane.b32.xlu0 %v7525_v12, %s7311_s27 }
  0xc4   :  { %v7688_v49 = vpop.permute.xlu2 %697  ;;  %v7690_v50 = vpop.permute.xlu1 %944 }
  0xc5   :  { %v7692_v51 = vpop.permute.xlu0 %695 }
  0xca   :  { %1354 = vrot.lane.b32.xlu2 %v7493_v8, %s7313_s24  ;;  %1252 = vrot.lane.b32.xlu1 %v7512_v11, %s7312_s0 }
  0xcb   :  { %1399 = vperm.xlu0 %6200, %v5972_v52   ;;  %v7777_v52 = vperm.slane %v7448_v0, 4 }
  0xcc   :  { %v7701_v53 = vpop.permute.xlu2 %1042  ;;  %v7703_v54 = vpop.permute.xlu1 %797 }
  0xcd   :  { %v7705_v55 = vpop.permute.xlu0 %1036 }
  0xce   :  { %15836 = vst [vmem:[#allocation9_spill] sm:$0xff] %v7705_v55 }
  0xd2   :  { %705 = vrot.lane.b32.xlu2 %v7708_v56, %s7307_s4  ;;  %615 = vrot.lane.b32.xlu1 %v7708_v56, %s7306_s7 }
  0xd3   :  { %807 = vrot.lane.b32.xlu0 %v7668_v45, %s7308_s26 }
  0xd4   :  { %v7716_v57 = vpop.permute.xlu2 %1144  ;;  %v7718_v58 = vpop.permute.xlu1 %1038 }
  0xd5   :  { %15837 = vst [vmem:[#allocation10_spill] sm:$0xff] %v7716_v57  ;;  %v7720_v59 = vpop.permute.xlu0 %999 }
  0xda   :  { %1050 = vrot.lane.b32.xlu2 %v7576_v20, %s7310_s25  ;;  %909 = vrot.lane.b32.xlu1 %v7615_v30, %s7309_s1 }
  0xdb   :  { %1152 = vrot.lane.b32.xlu0 %v7548_v15, %s7311_s27 }
  0xdc   :  { %v7728_v60 = vpop.permute.xlu2 %699  ;;  %v7730_v61 = vpop.permute.xlu1 %607 }
  0xdd   :  { %v7732_v62 = vpop.permute.xlu0 %799 }
  0xe2   :  { %1356 = vrot.lane.b32.xlu2 %v7512_v11, %s7313_s24  ;;  %1254 = vrot.lane.b32.xlu1 %v7525_v12, %s7312_s0 }
  0xe3   :  { %617 = vrot.lane.b32.xlu0 %v7735_v63, %s7306_s7 }
  0xe4   :  { %v7743_v1 = vpop.permute.xlu2 %1044  ;;  %v7745_v2 = vpop.permute.xlu1 %901 }
  0xe5   :  { %15838 = vst [vmem:[#allocation11_spill] sm:$0xff] %v7743_v1  ;;  %v7747_v7 = vpop.permute.xlu0 %1140 }
  0xe6   :  { %15839 = vst [vmem:[#allocation12_spill] sm:$0xff] %v7747_v7 }
  0xea   :  { %809 = vrot.lane.b32.xlu2 %v7708_v56, %s7308_s26  ;;  %707 = vrot.lane.b32.xlu1 %v7735_v63, %s7307_s4 }
  0xeb   :  { %911 = vrot.lane.b32.xlu0 %v7668_v45, %s7309_s1 }
  0xec   :  { %v7755_v9 = vpop.permute.xlu2 %1246  ;;  %v7757_v10 = vpop.permute.xlu1 %1142 }
  0xed   :  { %15840 = vst [vmem:[#allocation13_spill] sm:$0xff] %v7755_v9  ;;  %v7759_v13 = vpop.permute.xlu0 %1087 }
  0xee   :  { %15841 = vst [vmem:[#allocation14_spill] sm:$0xff] %v7757_v10 }
  0xef   :  { %15842 = vst [vmem:[#allocation15_spill] sm:$0xff] %v7759_v13 }
  0xf2   :  { %1154 = vrot.lane.b32.xlu2 %v7576_v20, %s7311_s27  ;;  %1052 = vrot.lane.b32.xlu1 %v7615_v30, %s7310_s25 }
  0xf3   :  { %1256 = vrot.lane.b32.xlu0 %v7548_v15, %s7312_s0 }
  0xf4   :  { %v7767_v14 = vpop.permute.xlu2 %611  ;;  %v7769_v18 = vpop.permute.xlu1 %609 }
  0xf5   :  { %15843 = vst [vmem:[#allocation16_spill] sm:$0xff] %v7767_v14  ;;  %v7771_v31 = vpop.permute.xlu0 %801 }
  0xf6   :  { %15844 = vst [vmem:[#allocation17_spill] sm:$0xff] %v7769_v18 }
  0xf7   :  { %15845 = vst [vmem:[#allocation18_spill] sm:$0xff] %v7771_v31 }
  0xfa   :  { %1453 = vperm.xlu2 %6199, %v1450_v41   ;;  %1358 = vrot.lane.b32.xlu1 %v7525_v12, %s7313_s24 }
  0xfb   :  { %619 = vrot.lane.b32.xlu0 %v7777_v52, %s7306_s7 }
  0xfc   :  { %v7783_v9 = vpop.permute.xlu2 %905  ;;  %v7785_v13 = vpop.permute.xlu1 %903 }
  0xfd   :  { %15847 = vst [vmem:[#allocation19_spill] sm:$0xff] %v7783_v9  ;;  %v7787_v7 = vpop.permute.xlu0 %1146 }
  0xfe   :  { %15848 = vst [vmem:[#allocation20_spill] sm:$0xff] %v7785_v13 }
  0xff   :  { %15849 = vst [vmem:[#allocation21_spill] sm:$0xff] %v7787_v7 }
 0x102   :  { %811 = vrot.lane.b32.xlu2 %v7735_v63, %s7308_s26  ;;  %709 = vrot.lane.b32.xlu1 %v7777_v52, %s7307_s4 }
 0x103   :  { %913 = vrot.lane.b32.xlu0 %v7708_v56, %s7309_s1 }
 0x104   :  { %v7795_v41 = vpop.permute.xlu2 %1250  ;;  %v7797_v10 = vpop.permute.xlu1 %1244 }
 0x105   :  { %15850 = vst [vmem:[#allocation22_spill] sm:$0xff] %v7795_v41  ;;  %v7799_v57 = vpop.permute.xlu0 %1248  ;;  %v7814_v41 = vperm.slane %v7448_v0, 5 }
 0x106   :  { %15851 = vst [vmem:[#allocation23_spill] sm:$0xff] %v7797_v10 }
 0x107   :  { %15852 = vst [vmem:[#allocation24_spill] sm:$0xff] %v7799_v57 }
 0x10a   :  { %1156 = vrot.lane.b32.xlu2 %v7615_v30, %s7311_s27  ;;  %1054 = vrot.lane.b32.xlu1 %v7668_v45, %s7310_s25 }
 0x10b   :  { %1258 = vrot.lane.b32.xlu0 %v7576_v20, %s7312_s0 }
 0x10c   :  { %v7807_v7 = vpop.permute.xlu2 %1352  ;;  %v7809_v14 = vpop.permute.xlu1 %1191 }
 0x10d   :  { %15853 = vst [vmem:[#allocation25_spill] sm:$0xff] %v7807_v7  ;;  %v7811_v18 = vpop.permute.xlu0 %701 }
 0x10e   :  { %15854 = vst [vmem:[#allocation26_spill] sm:$0xff] %v7809_v14 }
 0x10f   :  { %15855 = vst [vmem:[#allocation27_spill] sm:$0xff] %v7811_v18 }
 0x112   :  { %621 = vrot.lane.b32.xlu2 %v7814_v41, %s7306_s7  ;;  %1360 = vrot.lane.b32.xlu1 %v7548_v15, %s7313_s24 }
 0x113   :  { %711 = vrot.lane.b32.xlu0 %v7814_v41, %s7307_s4 }
 0x114   :  { %v7822_v57 = vpop.permute.xlu2 %703  ;;  %v7824_v10 = vpop.permute.xlu1 %803 }
 0x115   :  { %15856 = vst [vmem:[#allocation28_spill] sm:$0xff] %v7822_v57  ;;  %v7826_v7 = vpop.permute.xlu0 %1046 }
 0x116   :  { %15857 = vst [vmem:[#allocation29_spill] sm:$0xff] %v7824_v10 }
 0x117   :  { %15858 = vst [vmem:[#allocation30_spill] sm:$0xff] %v7826_v7 }
 0x11a   :  { %915 = vrot.lane.b32.xlu2 %v7735_v63, %s7309_s1  ;;  %813 = vrot.lane.b32.xlu1 %v7777_v52, %s7308_s26 }
 0x11b   :  { %1056 = vrot.lane.b32.xlu0 %v7708_v56, %s7310_s25 }
 0x11c   :  { %v7834_v14 = vpop.permute.xlu2 %1048  ;;  %v7836_v18 = vpop.permute.xlu1 %1148 }
 0x11d   :  { %15859 = vst [vmem:[#allocation31_spill] sm:$0xff] %v7834_v14  ;;  %v7838_v13 = vpop.permute.xlu0 %1348  ;;  %v7853_v14 = vperm.slane %v7448_v0, 6 }
 0x11e   :  { %15860 = vst [vmem:[#allocation32_spill] sm:$0xff] %v7836_v18 }
 0x11f   :  { %15861 = vst [vmem:[#allocation33_spill] sm:$0xff] %v7838_v13 }
 0x122   :  { %1260 = vrot.lane.b32.xlu2 %v7615_v30, %s7312_s0  ;;  %1158 = vrot.lane.b32.xlu1 %v7668_v45, %s7311_s27 }
 0x123   :  { %1362 = vrot.lane.b32.xlu0 %v7576_v20, %s7313_s24 }
 0x124   :  { %v7846_v57 = vpop.permute.xlu2 %1354  ;;  %v7848_v7 = vpop.permute.xlu1 %1350 }
 0x125   :  { %15862 = vst [vmem:[#allocation34_spill] sm:$0xff] %v7846_v57  ;;  %v7850_v10 = vpop.permute.xlu0 %1295 }
 0x126   :  { %15863 = vst [vmem:[#allocation35_spill] sm:$0xff] %v7848_v7 }
 0x127   :  { %15864 = vst [vmem:[#allocation36_spill] sm:$0xff] %v7850_v10 }
 0x12a   :  { %713 = vrot.lane.b32.xlu2 %v7853_v14, %s7307_s4  ;;  %623 = vrot.lane.b32.xlu1 %v7853_v14, %s7306_s7 }
 0x12b   :  { %815 = vrot.lane.b32.xlu0 %v7814_v41, %s7308_s26 }
 0x12c   :  { %v7861_v13 = vpop.permute.xlu2 %705  ;;  %v7863_v18 = vpop.permute.xlu1 %613 }
 0x12d   :  { %15865 = vst [vmem:[#allocation37_spill] sm:$0xff] %v7861_v13  ;;  %v7865_v57 = vpop.permute.xlu0 %805 }
 0x12e   :  { %15866 = vst [vmem:[#allocation38_spill] sm:$0xff] %v7863_v18 }
 0x12f   :  { %15867 = vst [vmem:[#allocation39_spill] sm:$0xff] %v7865_v57 }
 0x132   :  { %1058 = vrot.lane.b32.xlu2 %v7735_v63, %s7310_s25  ;;  %917 = vrot.lane.b32.xlu1 %v7777_v52, %s7309_s1 }
 0x133   :  { %1160 = vrot.lane.b32.xlu0 %v7708_v56, %s7311_s27 }
 0x134   :  { %v7873_v0 = vpop.permute.xlu2 %1050  ;;  %v7875_v10 = vpop.permute.xlu1 %907 }
 0x135   :  { %15868 = vst [vmem:[#allocation40_spill] sm:$0xff] %v7873_v0  ;;  %v7877_v7 = vpop.permute.xlu0 %1150 }
 0x136   :  { %15869 = vst [vmem:[#allocation41_spill] sm:$0xff] %v7875_v10 }
 0x137   :  { %15870 = vst [vmem:[#allocation42_spill] sm:$0xff] %v7877_v7 }
 0x13a   :  { %1364 = vrot.lane.b32.xlu2 %v7615_v30, %s7313_s24  ;;  %1262 = vrot.lane.b32.xlu1 %v7668_v45, %s7312_s0 }
 0x13b   :  { %817 = vrot.lane.b32.xlu0 %v7853_v14, %s7308_s26 }
 0x13c   :  { %v7885_v13 = vpop.permute.xlu2 %1356  ;;  %v7887_v57 = vpop.permute.xlu1 %1252 }
 0x13d   :  { %15871 = vst [vmem:[#allocation43_spill] sm:$0xff] %v7885_v13  ;;  %v7889_v18 = vpop.permute.xlu0 %1399  ;;  %v627_v13 = vlaneseq }
 0x13e   :  { %15872 = vst [vmem:[#allocation44_spill] sm:$0xff] %v7887_v57 }
 0x13f   :  { %15873 = vst [vmem:[#allocation45_spill] sm:$0xff] %v7889_v18 }
 0x142   :  { %1060 = vrot.lane.b32.xlu2 %v7777_v52, %s7310_s25  ;;  %919 = vrot.lane.b32.xlu1 %v7814_v41, %s7309_s1 }
 0x143   :  { %1162 = vrot.lane.b32.xlu0 %v7735_v63, %s7311_s27 }
 0x144   :  { %v7897_v7 = vpop.permute.xlu2 %809  ;;  %v7899_v10 = vpop.permute.xlu1 %615 }
 0x145   :  { %15874 = vst [vmem:[#allocation46_spill] sm:$0xff] %v7897_v7  ;;  %v7901_v0 = vpop.permute.xlu0 %807  ;;  %v7915_v7 = vand.u32 127, %v627_v13 }
 0x146   :  { %15875 = vst [vmem:[#allocation47_spill] sm:$0xff] %v7899_v10 }
 0x147   :  { %15876 = vst [vmem:[#allocation48_spill] sm:$0xff] %v7901_v0  ;;  %vm629_vm0 = vcmp.lt.s32.totalorder %v7915_v7, 31  ;;  %vm717_vm1 = vcmp.lt.s32.totalorder %v7915_v7, 30  ;;  %vm821_vm2 = vcmp.lt.s32.totalorder %v7915_v7, 29  ;;  %vm925_vm3 = vcmp.lt.s32.totalorder %v7915_v7, 1 }
 0x148   :  { %15880 = vst [vmem:[#allocation52_spill] sm:$0xff] %v7915_v7  ;;  %v642_v0 = vsel %vm629_vm0, %v7612_v29, %v7638_v36  ;;  %v837_v10 = vsel %vm821_vm2, %v7626_v33, %v7573_v19  ;;  %vm1068_vm4 = vcmp.lt.s32.totalorder %v7915_v7, 127  ;;  %vm1172_vm5 = vcmp.lt.s32.totalorder %v7915_v7, 99 }
 0x149   :  { %v654_v31 = vperm.slane %v642_v0, 0  ;;  %v843_v33 = vperm.slane %v837_v10, 0  ;;  %vm1276_vm6 = vcmp.lt.s32.totalorder %v7915_v7, 98  ;;  %vm1380_vm7 = vcmp.lt.s32.totalorder %v7915_v7, 97 }
 0x14a   :  { %1366 = vrot.lane.b32.xlu2 %v7668_v45, %s7313_s24  ;;  %1264 = vrot.lane.b32.xlu1 %v7708_v56, %s7312_s0 }
 0x14b   :  { %921 = vrot.lane.b32.xlu0 %v7853_v14, %s7309_s1  ;;  %v670_v30 = vmul.f32 %v654_v31, %v7586_v22 }
 0x14c   :  { %v7909_v18 = vpop.permute.xlu2 %1154  ;;  %v7911_v57 = vpop.permute.xlu1 %909 }
 0x14d   :  { %15877 = vst [vmem:[#allocation49_spill] sm:$0xff] %v7909_v18  ;;  %v7913_v9 = vpop.permute.xlu0 %1152 }
 0x14e   :  { %15878 = vst [vmem:[#allocation50_spill] sm:$0xff] %v7911_v57 }
 0x14f   :  { %15879 = vst [vmem:[#allocation51_spill] sm:$0xff] %v7913_v9  ;;  %v645_v9 = vsel %vm629_vm0, %v7584_v21, %v7588_v23  ;;  %v643_v21 = vsel %vm629_vm0, %v7600_v26, %v7612_v29  ;;  %v836_v29 = vsel %vm821_vm2, %v7573_v19, %v7628_v34 }
 0x150   :  { %v651_v1 = vperm.slane %v645_v9, 0  ;;  %v844_v19 = vperm.slane %v836_v29, 0  ;;  %v834_v29 = vsel %vm821_vm2, %v7650_v39, %v7636_v35 }
 0x152   :  { %1164 = vrot.lane.b32.xlu2 %v7777_v52, %s7311_s27  ;;  %1062 = vrot.lane.b32.xlu1 %v7814_v41, %s7310_s25  ;;  %v860_v31 = vmul.f32 %v844_v19, %v7624_v32  ;;  %v940_v19 = vsel %vm925_vm3, %v7608_v27, %v7652_v40 }
 0x153   :  { %1266 = vrot.lane.b32.xlu0 %v7735_v63, %s7312_s0 }
 0x154   :  { %v7925_v18 = vpop.permute.xlu2 %1453  ;;  %v7927_v57 = vpop.permute.xlu1 %1254 }
 0x155   :  { %15881 = vst [vmem:[#allocation53_spill] sm:$0xff] %v7925_v18  ;;  %v7930_v13 = vpop.permute.xlu0 %617  ;;  %v733_v18 = vsel %vm717_vm1, %v7564_v17, %v7598_v25  ;;  %v644_v17 = vsel %vm629_vm0, %v7588_v23, %v7600_v26  ;;  %v653_v23 = vperm.slane %v643_v21, 0 }
 0x156   :  { %15882 = vst [vmem:[#allocation54_spill] sm:$0xff] %v7927_v57  ;;  %v732_v57 = vsel %vm717_vm1, %v7598_v25, %v7556_v16  ;;  %v739_v45 = vperm.slane %v733_v18, 0  ;;  %v652_v9 = vperm.slane %v644_v17, 0 }
 0x157   :  { %15883 = vst [vmem:[#allocation55_spill] sm:$0xff] %v7930_v13  ;;  %v731_v13 = vsel %vm717_vm1, %v7556_v16, %v7610_v28  ;;  %v730_v16 = vsel %vm717_vm1, %v7610_v28, %v7596_v24  ;;  %v740_v26 = vperm.slane %v732_v57, 0  ;;  %v667_v57 = vmul.f32 %v651_v1, %v7586_v22 }
 0x158   :  { %v741_v25 = vperm.slane %v731_v13, 0  ;;  %v755_v21 = vmul.f32 %v739_v45, %v7640_v37  ;;  %v742_v13 = vperm.slane %v730_v16, 0  ;;  %v669_v10 = vmul.f32 %v653_v23, %v7586_v22 }
 0x159   :  { %v756_v17 = vmul.f32 %v740_v26, %v7640_v37  ;;  %v859_v45 = vmul.f32 %v843_v33, %v7624_v32  ;;  %v835_v1 = vsel %vm821_vm2, %v7628_v34, %v7650_v39  ;;  %v729_v33 = vsel %vm717_vm1, %v7596_v24, %v7678_v47 }
 0x15a   :  { %1064 = vrot.lane.b32.xlu2 %v7853_v14, %s7310_s25  ;;  %1368 = vrot.lane.b32.xlu1 %v7708_v56, %s7313_s24  ;;  %v757_v18 = vmul.f32 %v741_v25, %v7640_v37  ;;  %v668_v25 = vmul.f32 %v652_v9, %v7586_v22  ;;  %v758_v16 = vmul.f32 %v742_v13, %v7640_v37  ;;  %v845_v24 = vperm.slane %v835_v1, 0 }
 0x15b   :  { %1166 = vrot.lane.b32.xlu0 %v7814_v41, %s7311_s27  ;;  %v771_v23 = vadd.f32 %v755_v21, %v667_v57  ;;  %v938_v34 = vsel %vm925_vm3, %v7680_v48, %v7661_v42  ;;  %v640_v39 = vsel %vm629_vm0, %v7665_v44, %v7648_v38  ;;  %v743_v21 = vperm.slane %v729_v33, 0 }
 0x15c   :  { %v7979_v0 = vpop.permute.xlu2 %811  ;;  %v7981_v28 = vpop.permute.xlu1 %707  ;;  %v773_v26 = vadd.f32 %v757_v18, %v669_v10  ;;  %v772_v9 = vadd.f32 %v756_v17, %v668_v25  ;;  %v941_v18 = vsel %vm925_vm3, %v7663_v43, %v7608_v27  ;;  %v728_v27 = vsel %vm717_vm1, %v7678_v47, %v7692_v51 }
 0x15d   :  { %15884 = vst [vmem:[#allocation56_spill] sm:$0xff] %v7979_v0  ;;  %v7985_v20 = vpop.permute.xlu0 %911  ;;  %v774_v0 = vadd.f32 %v758_v16, %v670_v30  ;;  %v641_v30 = vsel %vm629_vm0, %v7638_v36, %v7665_v44  ;;  %v833_v36 = vsel %vm821_vm2, %v7636_v35, %v7703_v54  ;;  %v939_v13 = vsel %vm925_vm3, %v7652_v40, %v7680_v48 }
 0x15e   :  { %15885 = vst [vmem:[#allocation57_spill] sm:$0xff] %v7985_v20  ;;  %v846_v20 = vperm.slane %v834_v29, 0  ;;  %v875_v57 = vadd.f32 %v859_v45, %v771_v23  ;;  %v948_v10 = vperm.slane %v940_v19, 0  ;;  %v947_v29 = vperm.slane %v941_v18, 0 }
 0x15f   :  { %v655_v25 = vperm.slane %v641_v30, 0  ;;  %v950_v1 = vperm.slane %v938_v34, 0  ;;  %v727_v44 = vsel %vm717_vm1, %v7692_v51, %v7688_v49  ;;  %v744_v33 = vperm.slane %v728_v27, 0 }
 0x160   :  { %v862_v35 = vmul.f32 %v846_v20, %v7624_v32  ;;  %v847_v40 = vperm.slane %v833_v36, 0  ;;  %v861_v48 = vmul.f32 %v845_v24, %v7624_v32  ;;  %v656_v43 = vperm.slane %v640_v39, 0 }
 0x161   :  { %v759_v20 = vmul.f32 %v743_v21, %v7640_v37  ;;  %v966_v45 = vmul.f32 %v950_v1, %v7690_v50  ;;  %v963_v23 = vmul.f32 %v947_v29, %v7690_v50  ;;  %v964_v19 = vmul.f32 %v948_v10, %v7690_v50 }
 0x162   :  { %1370 = vrot.lane.b32.xlu2 %v7735_v63, %s7313_s24  ;;  %1268 = vrot.lane.b32.xlu1 %v7777_v52, %s7312_s0  ;;  %v878_v18 = vadd.f32 %v862_v35, %v774_v0  ;;  %v745_v30 = vperm.slane %v727_v44, 0  ;;  %v876_v34 = vadd.f32 %v860_v31, %v772_v9  ;;  %v671_v27 = vmul.f32 %v655_v25, %v7586_v22 }
 0x163   :  { %1066 = vrot.lane.b32.xlu0 %v7456_v3, %s7310_s25  ;;  %v760_v24 = vmul.f32 %v744_v33, %v7640_v37  ;;  %v863_v36 = vmul.f32 %v847_v40, %v7624_v32  ;;  %v877_v39 = vadd.f32 %v861_v48, %v773_v26  ;;  %v672_v21 = vmul.f32 %v656_v43, %v7586_v22 }
 0x164   :  { %v8045_v47 = vpop.permute.xlu2 %1156  ;;  %v8047_v17 = vpop.permute.xlu1 %1052  ;;  %v8075_v0 = vsel %vm1068_vm4, %v7676_v46, %v7701_v53  ;;  %v775_v31 = vadd.f32 %v759_v20, %v671_v27  ;;  %v982_v9 = vadd.f32 %v966_v45, %v878_v18  ;;  %v979_v35 = vadd.f32 %v963_v23, %v875_v57 }
 0x165   :  { %15886 = vst [vmem:[#allocation58_spill] sm:$0xff] %v8045_v47  ;;  %v8050_v16 = vpop.permute.xlu0 %1256  ;;  %v949_v47 = vperm.slane %v939_v13, 0  ;;  %v980_v10 = vadd.f32 %v964_v19, %v876_v34  ;;  %v761_v26 = vmul.f32 %v745_v30, %v7640_v37  ;;  %v8088_v43 = vsel %vm1068_vm4, %v7718_v58, %v7676_v46 }
 0x166   :  { %v8094_v29 = vsel %vm1068_vm4, %v7705_v55, %v7718_v58  ;;  %v776_v44 = vadd.f32 %v760_v24, %v672_v21  ;;  %v879_v33 = vadd.f32 %v863_v36, %v775_v31  ;;  %v937_v40 = vsel %vm925_vm3, %v7661_v42, %v7745_v2  ;;  %v15893_v36 = vld [vmem:[#allocation18_spill] sm:$0xff] }
 0x167   :  { %v965_v51 = vmul.f32 %v949_v47, %v7690_v50  ;;  %v639_v46 = vsel %vm629_vm0, %v7648_v38, %v7730_v61  ;;  %v832_v58 = vsel %vm821_vm2, %v7703_v54, %v7732_v62  ;;  %v1005_v48 = vmul.f32 %v7720_v59, %v7493_v8 }
 0x168   :  { %v1002_v20 = vmul.f32 %v7720_v59, %v7462_v5  ;;  %v1090_v42 = vperm.slane %v8094_v29, 0  ;;  %v1091_v45 = vperm.slane %v8088_v43, 0  ;;  %v8120_v38 = vmul.f32 %v7720_v59, %v7512_v11  ;;  %v15898_v43 = vld [vmem:[#allocation11_spill] sm:$0xff] }
 0x169   :  { %v981_v25 = vadd.f32 %v965_v51, %v877_v39  ;;  %v8124_v23 = vmul.f32 %v7720_v59, %v7525_v12  ;;  %v726_v8 = vsel %vm717_vm1, %v7688_v49, %v7728_v60  ;;  %v951_v54 = vperm.slane %v937_v40, 0  ;;  %v15889_v12 = vld [vmem:[#allocation3_spill] sm:$0xff] }
 0x16a   :  { %1270 = vrot.lane.b32.xlu2 %v7814_v41, %s7312_s0  ;;  %1168 = vrot.lane.b32.xlu1 %v7853_v14, %s7311_s27  ;;  %v1003_v5 = vmul.f32 %v7720_v59, %v7459_v4  ;;  %v1004_v19 = vmul.f32 %v7720_v59, %v7477_v6  ;;  %v657_v18 = vperm.slane %v639_v46, 0  ;;  %v848_v30 = vperm.slane %v832_v58, 0  ;;  %v15890_v6 = vld [vmem:[#allocation5_spill] sm:$0xff] }
 0x16b   :  { %1372 = vrot.lane.b32.xlu0 %v7777_v52, %s7313_s24  ;;  %v8136_v11 = vmul.f32 %v7720_v59, %v7548_v15  ;;  %v8140_v34 = vmul.f32 %v7720_v59, %v15889_v12  ;;  %v1021_v4 = vadd.f32 %v1005_v48, %v982_v9  ;;  %v1018_v49 = vadd.f32 %v1002_v20, %v979_v35  ;;  %v15891_v15 = vld [vmem:[#allocation8_spill] sm:$0xff]  ;;  %v15899_v20 = vld [vmem:[#allocation19_spill] sm:$0xff]  ;;  %v15901_v12 = vld [vmem:[#allocation17_spill] sm:$0xff] }
 0x16c   :  { %v8079_v13 = vpop.permute.xlu2 %621  ;;  %v8081_v47 = vpop.permute.xlu1 %1358  ;;  %v8150_v51 = vmul.f32 %v7720_v59, %v15890_v6  ;;  %v8154_v27 = vmul.f32 %v7720_v59, %v15891_v15  ;;  %v746_v24 = vperm.slane %v726_v8, 0  ;;  %v831_v39 = vsel %vm821_vm2, %v7732_v62, %v15893_v36  ;;  %v15900_v8 = vld [vmem:[#allocation20_spill] sm:$0xff] }
 0x16d   :  { %15887 = vst [vmem:[#allocation59_spill] sm:$0xff] %v8079_v13  ;;  %v8096_v1 = vpop.permute.xlu0 %619  ;;  %v8166_v9 = vmul.f32 %v7720_v59, %v7708_v56  ;;  %v8170_v35 = vmul.f32 %v7720_v59, %v7735_v63  ;;  %v1080_v29 = vsel %vm1068_vm4, %v7701_v53, %v15898_v43  ;;  %v967_v40 = vmul.f32 %v951_v54, %v7690_v50  ;;  %v15906_v6 = vld [vmem:[#allocation16_spill] sm:$0xff] }
 0x16e   :  { %15888 = vst [vmem:[#allocation60_spill] sm:$0xff] %v8096_v1  ;;  %v1019_v62 = vadd.f32 %v1003_v5, %v980_v10  ;;  %v1020_v46 = vadd.f32 %v1004_v19, %v981_v25  ;;  %v673_v48 = vmul.f32 %v657_v18, %v7586_v22  ;;  %v864_v56 = vmul.f32 %v848_v30, %v7624_v32 }
 0x16f   :  { %15892 = vst [vmem:[#allocation3_spill] sm:$0xff] %v8154_v27  ;;  %v935_v63 = vsel %vm925_vm3, %v15900_v8, %v15899_v20  ;;  %v936_v53 = vsel %vm925_vm3, %v7745_v2, %v15900_v8  ;;  %v638_v10 = vsel %vm629_vm0, %v7730_v61, %v15901_v12  ;;  %v849_v25 = vperm.slane %v831_v39, 0 }
 0x170   :  { %15896 = vst [vmem:[#allocation18_spill] sm:$0xff] %v8166_v9  ;;  %v8195_v54 = vmul.f32 %v7720_v59, %v7777_v52  ;;  %v8199_v5 = vmul.f32 %v7720_v59, %v7814_v41  ;;  %v762_v19 = vmul.f32 %v746_v24, %v7640_v37  ;;  %v1093_v18 = vperm.slane %v1080_v29, 0  ;;  %v15907_v24 = vld [vmem:[#allocation10_spill] sm:$0xff]  ;;  %v15927_v9 = vld [vmem:[#allocation32_spill] sm:$0xff] }
 0x171   :  { %15897 = vst [vmem:[#allocation61_spill] sm:$0xff] %v8170_v35  ;;  %v8204_v2 = vmul.f32 %v7720_v59, %v7853_v14  ;;  %v8208_v30 = vmul.f32 %v7720_v59, %v7456_v3  ;;  %v983_v61 = vadd.f32 %v967_v40, %v879_v33  ;;  %v637_v52 = vsel %vm629_vm0, %v15901_v12, %v15906_v6  ;;  %v15908_v29 = vld [vmem:[#allocation14_spill] sm:$0xff]  ;;  %v15909_v59 = vld [vmem:[#allocation12_spill] sm:$0xff]  ;;  %v15926_v35 = vld [vmem:[#allocation31_spill] sm:$0xff] }
 0x172   :  { %1272 = vrot.lane.b32.xlu2 %v7853_v14, %s7312_s0  ;;  %1170 = vrot.lane.b32.xlu1 %v7456_v3, %s7311_s27  ;;  %15902 = vst [vmem:[#allocation11_spill] sm:$0xff] %v8195_v54  ;;  %v952_v15 = vperm.slane %v936_v53, 0  ;;  %v777_v39 = vadd.f32 %v761_v26, %v673_v48  ;;  %v880_v8 = vadd.f32 %v864_v56, %v776_v44  ;;  %v15910_v44 = vld [vmem:[#allocation15_spill] sm:$0xff]  ;;  %v659_v56 = vperm.slane %v637_v52, 0 }
 0x173   :  { %1374 = vrot.lane.b32.xlu0 %v7814_v41, %s7313_s24  ;;  %15903 = vst [vmem:[#allocation19_spill] sm:$0xff] %v8199_v5  ;;  %v953_v41 = vperm.slane %v935_v63, 0  ;;  %v1186_v57 = vsel %vm1172_vm5, %v15908_v29, %v15907_v24  ;;  %v1187_v33 = vsel %vm1172_vm5, %v15909_v59, %v15908_v29  ;;  %v865_v26 = vmul.f32 %v849_v25, %v7624_v32  ;;  %v15915_v59 = vld [vmem:[#allocation29_spill] sm:$0xff] }
 0x174   :  { %v8160_v21 = vpop.permute.xlu2 %915  ;;  %v8162_v31 = vpop.permute.xlu1 %709  ;;  %15904 = vst [vmem:[#allocation20_spill] sm:$0xff] %v8204_v2  ;;  %v658_v2 = vperm.slane %v638_v10, 0  ;;  %v1109_v40 = vmul.f32 %v1093_v18, %v15910_v44  ;;  %v1106_v48 = vmul.f32 %v1090_v42, %v15910_v44  ;;  %v1107_v63 = vmul.f32 %v1091_v45, %v15910_v44  ;;  %v15914_v18 = vld [vmem:[#allocation27_spill] sm:$0xff] }
 0x175   :  { %15894 = vst [vmem:[#allocation5_spill] sm:$0xff] %v8160_v21  ;;  %v8177_v58 = vpop.permute.xlu0 %913  ;;  %v968_v25 = vmul.f32 %v952_v15, %v7690_v50  ;;  %v969_v42 = vmul.f32 %v953_v41, %v7690_v50  ;;  %v8247_v52 = vadd.f32 %v8120_v38, %v983_v61  ;;  %v1195_v29 = vperm.slane %v1186_v57, 0 }
 0x176   :  { %15895 = vst [vmem:[#allocation8_spill] sm:$0xff] %v8162_v31  ;;  %v830_v15 = vsel %vm821_vm2, %v15893_v36, %v15915_v59  ;;  %v881_v41 = vadd.f32 %v865_v26, %v777_v39  ;;  %v8260_v55 = vadd.f32 %v1109_v40, %v1021_v4  ;;  %v1122_v38 = vadd.f32 %v1106_v48, %v1018_v49  ;;  %v15917_v26 = vld [vmem:[#allocation30_spill] sm:$0xff]  ;;  %v15918_v49 = vld [vmem:[#allocation28_spill] sm:$0xff] }
 0x177   :  { %15905 = vst [vmem:[#allocation17_spill] sm:$0xff] %v8208_v30  ;;  %v15916_v30 = vld [vmem:[#allocation21_spill] sm:$0xff]  ;;  %v675_v61 = vmul.f32 %v659_v56, %v7586_v22  ;;  %v1123_v57 = vadd.f32 %v1107_v63, %v1019_v62  ;;  %v984_v54 = vadd.f32 %v968_v25, %v880_v8  ;;  %v850_v39 = vperm.slane %v830_v15, 0  ;;  %v15921_v63 = vld [vmem:[#allocation23_spill] sm:$0xff]  ;;  %v15923_v25 = vld [vmem:[#allocation24_spill] sm:$0xff] }
 0x178   :  { %v985_v36 = vadd.f32 %v969_v42, %v881_v41  ;;  %v724_v62 = vsel %vm717_vm1, %v15914_v18, %v15918_v49  ;;  %v15920_v56 = vld [vmem:[#allocation13_spill] sm:$0xff] }
 0x179   :  { %v1291_v8 = vsel %vm1276_vm6, %v15921_v63, %v15920_v56  ;;  %v748_v41 = vperm.slane %v724_v62, 0  ;;  %v1023_v63 = vadd.f32 %v8124_v23, %v984_v54  ;;  %v15928_v23 = vld [vmem:[#allocation35_spill] sm:$0xff]  ;;  %v15929_v54 = vld [vmem:[#allocation33_spill] sm:$0xff] }
 0x17a   :  { %1274 = vrot.lane.b32.xlu1 %v7456_v3, %s7312_s0  ;;  %1376 = vrot.lane.b32.xlu2 %v7853_v14, %s7313_s24  ;;  %v15911_v14 = vperm.slane %v8075_v0, 0  ;;  %v1194_v0 = vperm.slane %v1187_v33, 0 }
 0x17b   :  { %1378 = vrot.lane.b32.xlu0 %v7456_v3, %s7313_s24  ;;  %v725_v3 = vsel %vm717_vm1, %v7728_v60, %v15914_v18  ;;  %v1185_v60 = vsel %vm1172_vm5, %v15907_v24, %v15916_v30  ;;  %v1079_v24 = vsel %vm1068_vm4, %v15898_v43, %v15917_v26  ;;  %v1290_v43 = vsel %vm1276_vm6, %v15920_v56, %v15923_v25 }
 0x17c   :  { %v1108_v53 = vmul.f32 %v15911_v14, %v15910_v44  ;;  %v8236_v12 = vpop.permute.xlu2 %1260  ;;  %v8238_v10 = vpop.permute.xlu1 %1054  ;;  %v674_v14 = vmul.f32 %v658_v2, %v7586_v22  ;;  %v747_v33 = vperm.slane %v725_v3, 0  ;;  %v5973_v2 = vld [vmem:[%s15846_s30 + $0x8] sm:$0xff]  ;;  %v1196_v40 = vperm.slane %v1185_v60, 0 }
 0x17d   :  { %15912 = vst [vmem:[#allocation16_spill] sm:$0xff] %v8236_v12  ;;  %v8249_v45 = vpop.permute.xlu0 %1258  ;;  %v1094_v3 = vperm.slane %v1079_v24, 0  ;;  %v866_v60 = vmul.f32 %v850_v39, %v7624_v32  ;;  %v8298_v56 = vadd.f32 %v8136_v11, %v985_v36  ;;  %v1184_v39 = vsel %vm1172_vm5, %v15916_v30, %v15927_v9 }
 0x17e   :  { %15913 = vst [vmem:[#allocation10_spill] sm:$0xff] %v8238_v10  ;;  %v1124_v5 = vadd.f32 %v1108_v53, %v1020_v46  ;;  %v778_v4 = vadd.f32 %v762_v19, %v674_v14  ;;  %v15919_v46 = vld [vmem:[#allocation26_spill] sm:$0xff]  ;;  %v763_v18 = vmul.f32 %v747_v33, %v7640_v37  ;;  %v1298_v33 = vperm.slane %v1291_v8, 0 }
 0x17f   :  { %v1210_v48 = vmul.f32 %v1194_v0, %v15919_v46  ;;  %v15922_v53 = vld [vmem:[#allocation22_spill] sm:$0xff]  ;;  %v1211_v19 = vmul.f32 %v1195_v29, %v15919_v46  ;;  %v1212_v0 = vmul.f32 %v1196_v40, %v15919_v46  ;;  %v1078_v40 = vsel %vm1068_vm4, %v15917_v26, %v15926_v35 }
 0x180   :  { %v1289_v42 = vsel %vm1276_vm6, %v15923_v25, %v15922_v53  ;;  %v1395_v11 = vsel %vm1380_vm7, %v15929_v54, %v15928_v23  ;;  %v779_v62 = vadd.f32 %v763_v18, %v675_v61  ;;  %v1110_v8 = vmul.f32 %v1094_v3, %v15910_v44  ;;  %v15933_v3 = vld [vmem:[#allocation34_spill] sm:$0xff] }
 0x181   :  { %v1300_v24 = vperm.slane %v1289_v42, 0  ;;  %v1226_v25 = vadd.f32 %v1210_v48, %v1122_v38  ;;  %v1227_v36 = vadd.f32 %v1211_v19, %v1123_v57  ;;  %v15930_v38 = vld [vmem:[#allocation25_spill] sm:$0xff]  ;;  %v1228_v26 = vadd.f32 %v1212_v0, %v1124_v5  ;;  %v5974_v42 = vld [vmem:[%s15846_s30 + $0x10] sm:$0xff]  ;;  %v15932_v57 = vld [vmem:[#allocation39_spill] sm:$0xff]  ;;  %s15945_s30 = sld [smem:[#allocation219_spill]] }
 0x182   :  { %v1394_v48 = vsel %vm1380_vm7, %v15928_v23, %v15930_v38  ;;  %v764_v30 = vmul.f32 %v748_v41, %v7640_v37  ;;  %v829_v19 = vsel %vm821_vm2, %v15915_v59, %v15932_v57  ;;  %v1095_v18 = vperm.slane %v1078_v40, 0  ;;  %v15936_v40 = vld [vmem:[#allocation37_spill] sm:$0xff] }
 0x183   :  { %1640 = vperm.xlu0 %6200, %v5973_v2   ;;  %v1299_v2 = vperm.slane %v1290_v43, 0  ;;  %v8323_v43 = vadd.f32 %v866_v60, %v778_v4  ;;  %v1197_v5 = vperm.slane %v1184_v39, 0  ;;  %v1393_v0 = vsel %vm1380_vm7, %v15930_v38, %v15933_v3  ;;  %v15934_v60 = vld [vmem:[#allocation44_spill] sm:$0xff] }
 0x184   :  { %v8291_v14 = vpop.permute.xlu2 %713  ;;  %v8293_v15 = vpop.permute.xlu1 %1360  ;;  %v1402_v41 = vperm.slane %v1395_v11, 0  ;;  %v1403_v4 = vperm.slane %v1394_v48, 0  ;;  %v1288_v23 = vsel %vm1276_vm6, %v15922_v53, %v15934_v60  ;;  %v8344_v59 = vadd.f32 %v1110_v8, %v8247_v52  ;;  %v15939_v53 = vld [vmem:[#allocation40_spill] sm:$0xff]  ;;  %v15941_v8 = vld [vmem:[#allocation45_spill] sm:$0xff] }
 0x185   :  { %15924 = vst [vmem:[#allocation14_spill] sm:$0xff] %v8291_v14  ;;  %v8300_v29 = vpop.permute.xlu0 %711  ;;  %v15931_v14 = vld [vmem:[#allocation38_spill] sm:$0xff]  ;;  %v723_v39 = vsel %vm717_vm1, %v15918_v49, %v15936_v40  ;;  %v851_v38 = vperm.slane %v829_v19, 0  ;;  %v1111_v19 = vmul.f32 %v1095_v18, %v15910_v44  ;;  %v1301_v13 = vperm.slane %v1288_v23, 0  ;;  %v15946_v23 = vld [vmem:[#allocation47_spill] sm:$0xff] }
 0x186   :  { %15925 = vst [vmem:[#allocation15_spill] sm:$0xff] %v8300_v29  ;;  %v636_v61 = vsel %vm629_vm0, %v15906_v6, %v15931_v14  ;;  %v15935_v6 = vld [vmem:[#allocation36_spill] sm:$0xff]  ;;  %v1419_v49 = vmul.f32 %v1403_v4, %v15941_v8  ;;  %v749_v12 = vperm.slane %v723_v39, 0  ;;  %v15943_v4 = vld [vmem:[#allocation42_spill] sm:$0xff] }
 0x187   :  { %v1314_v54 = vmul.f32 %v1298_v33, %v15935_v6  ;;  %v1315_v29 = vmul.f32 %v1299_v2, %v15935_v6  ;;  %v660_v11 = vperm.slane %v636_v61, 0  ;;  %v1077_v33 = vsel %vm1068_vm4, %v15926_v35, %v15939_v53  ;;  %v15940_v2 = vld [vmem:[#allocation41_spill] sm:$0xff] }
 0x188   :  { %v934_v52 = vsel %vm925_vm3, %v15899_v20, %v15940_v2  ;;  %v1316_v35 = vmul.f32 %v1300_v24, %v15935_v6  ;;  %v867_v20 = vmul.f32 %v851_v38, %v7624_v32  ;;  %v1183_v18 = vsel %vm1172_vm5, %v15927_v9, %v15943_v4 }
 0x189   :  { %v1330_v21 = vadd.f32 %v1314_v54, %v1226_v25  ;;  %v1331_v31 = vadd.f32 %v1315_v29, %v1227_v36  ;;  %v676_v1 = vmul.f32 %v660_v11, %v7586_v22  ;;  %v954_v27 = vperm.slane %v934_v52, 0  ;;  %v8386_v36 = vld [vmem:[%s15945_s30] sm:$0xff] }
 0x18a   :  { %v8379_v25 = vadd.f32 %v1111_v19, %v1023_v63  ;;  %v1317_v54 = vmul.f32 %v1301_v13, %v15935_v6  ;;  %v1198_v11 = vperm.slane %v1183_v18, 0  ;;  %v8401_v52 = vadd.f32 %v867_v20, %v779_v62  ;;  %v15954_v18 = vld [vmem:[#allocation48_spill] sm:$0xff] }
 0x18b   :  { %1663 = vperm.xlu0 %6200, %v5974_v42   ;;  %v1418_v42 = vmul.f32 %v1402_v41, %v15941_v8  ;;  %v1096_v41 = vperm.slane %v1077_v33, 0  ;;  %v1435_v24 = vadd.f32 %v1419_v49, %v1331_v31  ;;  %v15947_v31 = vld [vmem:[#allocation53_spill] sm:$0xff]  ;;  %v8410_v19 = vperm.slane %v8386_v36, 1 }
 0x18c   :  { %v8350_v48 = vpop.permute.xlu2 %1058  ;;  %v8352_v10 = vpop.permute.xlu1 %813 }
 0x18d   :  { %15937 = vst [vmem:[#allocation27_spill] sm:$0xff] %v8350_v48  ;;  %v8364_v61 = vpop.permute.xlu0 %1056  ;;  %v1213_v48 = vmul.f32 %v1197_v5, %v15919_v46  ;;  %v1457_v39 = vadd.f32 %v15947_v31, %v1435_v24  ;;  %v1112_v13 = vmul.f32 %v1096_v41, %v15910_v44  ;;  %v15953_v41 = vld [vmem:[#allocation46_spill] sm:$0xff] }
 0x18e   :  { %15938 = vst [vmem:[#allocation29_spill] sm:$0xff] %v8352_v10  ;;  %v1404_v10 = vperm.slane %v1393_v0, 0  ;;  %v1434_v0 = vadd.f32 %v1418_v42, %v1330_v21  ;;  %v1332_v21 = vadd.f32 %v1316_v35, %v1228_v26  ;;  %v8405_v26 = vperm.slane %v8386_v36, 0 }
 0x18f   :  { %15942 = vst [vmem:[#allocation21_spill] sm:$0xff] %v8364_v61  ;;  %v15944_v61 = vld [vmem:[#allocation43_spill] sm:$0xff]  ;;  %v1229_v29 = vadd.f32 %v1213_v48, %v8260_v55  ;;  %v765_v55 = vmul.f32 %v749_v12, %v7640_v37  ;;  %v8421_v20 = vadd.f32 %v1112_v13, %v8298_v56  ;;  %v15958_v13 = vld [vmem:[#allocation50_spill] sm:$0xff] }
 0x190   :  { %v1392_v5 = vsel %vm1380_vm7, %v15933_v3, %v15944_v61  ;;  %v1420_v9 = vmul.f32 %v1404_v10, %v15941_v8  ;;  %v635_v3 = vsel %vm629_vm0, %v15931_v14, %v15946_v23  ;;  %v1456_v63 = vadd.f32 %v15947_v31, %v1434_v0  ;;  %15950 = vst [vmem:[#allocation26_spill] sm:$0xff] %v8405_v26 }
 0x191   :  { %v1405_v38 = vperm.slane %v1392_v5, 0  ;;  %v780_v10 = vadd.f32 %v764_v30, %v676_v1  ;;  %v970_v14 = vmul.f32 %v954_v27, %v7690_v50  ;;  %v1333_v49 = vadd.f32 %v1317_v54, %v1229_v29  ;;  %15952 = vst [vmem:[#allocation22_spill] sm:$0xff] %v8410_v19  ;;  %v15956_v54 = vld [vmem:[#allocation54_spill] sm:$0xff] }
 0x192   :  { %v661_v12 = vperm.slane %v635_v3, 0  ;;  %v1436_v35 = vadd.f32 %v1420_v9, %v1332_v21  ;;  %v827_v1 = vsel %vm821_vm2, %v15954_v18, %v15953_v41  ;;  %v828_v27 = vsel %vm821_vm2, %v15932_v57, %v15954_v18 }
 0x193   :  { %v1472_v62 = vmax.f32 %v1456_v63, 0.0  ;;  %v1473_v30 = vmax.f32 %v1457_v39, 0.0  ;;  %v1214_v5 = vmul.f32 %v1198_v11, %v15919_v46  ;;  %v8425_v0 = vperm.slane %v8386_v36, 2 }
 0x194   :  { %v8397_v48 = vpop.permute.xlu2 %1364  ;;  %v8399_v33 = vpop.permute.xlu1 %1158  ;;  %v1421_v24 = vmul.f32 %v1405_v38, %v15941_v8  ;;  %v8429_v29 = vadd.f32 %v970_v14, %v8323_v43  ;;  %v1287_v57 = vsel %vm1276_vm6, %v15934_v60, %v15956_v54  ;;  %v8436_v9 = vperm.slane %v8386_v36, 3  ;;  %v15961_v14 = vld [vmem:[#allocation49_spill] sm:$0xff] }
 0x195   :  { %15948 = vst [vmem:[#allocation30_spill] sm:$0xff] %v8397_v48  ;;  %v8407_v42 = vpop.permute.xlu0 %1362  ;;  %v1458_v56 = vadd.f32 %v15947_v31, %v1436_v35  ;;  %v677_v3 = vmul.f32 %v661_v12, %v7586_v22  ;;  %v852_v21 = vperm.slane %v828_v27, 0  ;;  %v853_v63 = vperm.slane %v827_v1, 0  ;;  %v15962_v12 = vld [vmem:[#allocation51_spill] sm:$0xff] }
 0x196   :  { %15949 = vst [vmem:[#allocation28_spill] sm:$0xff] %v8399_v33  ;;  %v1437_v39 = vadd.f32 %v1421_v24, %v1333_v49  ;;  %v933_v43 = vsel %vm925_vm3, %v15940_v2, %v15958_v13  ;;  %v1391_v60 = vsel %vm1380_vm7, %v15944_v61, %v8081_v47  ;;  %v8449_v11 = vmul.f32 %v8405_v26, %v1472_v62  ;;  %v15964_v1 = vld [vmem:[#allocation55_spill] sm:$0xff]  ;;  %v15965_v62 = vld [vmem:[#allocation57_spill] sm:$0xff] }
 0x197   :  { %15951 = vst [vmem:[#allocation13_spill] sm:$0xff] %v8407_v42  ;;  %v8452_v38 = vmul.f32 %v8410_v19, %v1473_v30  ;;  %v1181_v49 = vsel %vm1172_vm5, %v15962_v12, %v15961_v14  ;;  %v1182_v2 = vsel %vm1172_vm5, %v15943_v4, %v15962_v12  ;;  %v1302_v35 = vperm.slane %v1287_v57, 0 }
 0x198   :  { %15955 = vst [vmem:[#allocation24_spill] sm:$0xff] %v8425_v0  ;;  %v722_v61 = vsel %vm717_vm1, %v15936_v40, %v7981_v28  ;;  %v634_v27 = vsel %vm629_vm0, %v15946_v23, %v15964_v1  ;;  %v932_v30 = vsel %vm925_vm3, %v15958_v13, %v15965_v62  ;;  %v1459_v4 = vadd.f32 %v15947_v31, %v1437_v39 }
 0x199   :  { %15957 = vst [vmem:[#allocation31_spill] sm:$0xff] %v8436_v9  ;;  %v1474_v24 = vmax.f32 %v1458_v56, 0.0  ;;  %v1230_v12 = vadd.f32 %v1214_v5, %v8344_v59  ;;  %v868_v40 = vmul.f32 %v852_v21, %v7624_v32  ;;  %v955_v19 = vperm.slane %v933_v43, 0 }
 0x19a   :  { %15959 = vst [vmem:[#allocation32_spill] sm:$0xff] %v8449_v11  ;;  %v1406_v26 = vperm.slane %v1391_v60, 0  ;;  %v1199_v33 = vperm.slane %v1182_v2, 0  ;;  %v750_v23 = vperm.slane %v722_v61, 0  ;;  %v1556_v48 = vmul.f32 %v8449_v11, %v8449_v11  ;;  %v15969_v2 = vld [vmem:[#allocation56_spill] sm:$0xff] }
 0x19b   :  { %15960 = vst [vmem:[#allocation35_spill] sm:$0xff] %v8452_v38  ;;  %v1557_v13 = vmul.f32 %v8452_v38, %v8452_v38  ;;  %v1200_v39 = vperm.slane %v1181_v49, 0  ;;  %v1318_v56 = vmul.f32 %v1302_v35, %v15935_v6  ;;  %v956_v42 = vperm.slane %v932_v30, 0 }
 0x19c   :  { %v8466_v18 = vpop.permute.xlu1 %623  ;;  %v781_v59 = vadd.f32 %v765_v55, %v677_v3  ;;  %v869_v5 = vmul.f32 %v853_v63, %v7624_v32  ;;  %v1475_v21 = vmax.f32 %v1459_v4, 0.0  ;;  %v8490_v43 = vmul.f32 %v8425_v0, %v1474_v24 }
 0x19d   :  { %15963 = vst [vmem:[#allocation25_spill] sm:$0xff] %v8466_v18  ;;  %v8477_v57 = vpop.permute.xlu0 %815  ;;  %v8481_v18 = vpop.permute.xlu2 %1060  ;;  %v971_v60 = vmul.f32 %v955_v19, %v7690_v50  ;;  %v826_v61 = vsel %vm821_vm2, %v15953_v41, %v15969_v2  ;;  %v1422_v49 = vmul.f32 %v1406_v26, %v15941_v8  ;;  %v1538_v35 = vadd.f32 %v8452_v38, %v8449_v11  ;;  %v15983_v11 = vld [vmem:[#allocation28_spill] sm:$0xff] }
 0x19e   :  { %15966 = vst [vmem:[#allocation38_spill] sm:$0xff] %v8477_v57  ;;  %v662_v57 = vperm.slane %v634_v27, 0  ;;  %v884_v27 = vadd.f32 %v868_v40, %v780_v10  ;;  %v1215_v55 = vmul.f32 %v1199_v33, %v15919_v46  ;;  %v766_v3 = vmul.f32 %v750_v23, %v7640_v37 }
 0x19f   :  { %15967 = vst [vmem:[#allocation39_spill] sm:$0xff] %v8481_v18  ;;  %v1572_v63 = vadd.f32 %v1557_v13, %v1556_v48  ;;  %v1216_v30 = vmul.f32 %v1200_v39, %v15919_v46  ;;  %v1334_v4 = vadd.f32 %v1318_v56, %v1230_v12  ;;  %v972_v24 = vmul.f32 %v956_v42, %v7690_v50  ;;  %v15971_v12 = vld [vmem:[#allocation58_spill] sm:$0xff] }
 0x1a0   :  { %15968 = vst [vmem:[#allocation34_spill] sm:$0xff] %v8490_v43  ;;  %v678_v19 = vmul.f32 %v662_v57, %v7586_v22  ;;  %v854_v41 = vperm.slane %v826_v61, 0  ;;  %v1076_v10 = vsel %vm1068_vm4, %v15939_v53, %v8047_v17  ;;  %v8512_v33 = vmul.f32 %v8436_v9, %v1475_v21  ;;  %v15981_v9 = vld [vmem:[#allocation10_spill] sm:$0xff] }
 0x1a1   :  { %v1558_v48 = vmul.f32 %v8490_v43, %v8490_v43  ;;  %v987_v57 = vadd.f32 %v971_v60, %v8401_v52  ;;  %v1180_v42 = vsel %vm1172_vm5, %v15961_v14, %v15971_v12  ;;  %v1438_v40 = vadd.f32 %v1422_v49, %v1334_v4 }
 0x1a2   :  { %15970 = vst [vmem:[#allocation44_spill] sm:$0xff] %v8512_v33  ;;  %v1539_v23 = vadd.f32 %v1538_v35, %v8490_v43  ;;  %v8524_v13 = vadd.f32 %v869_v5, %v781_v59  ;;  %v782_v53 = vadd.f32 %v766_v3, %v678_v19  ;;  %v1025_v39 = vadd.f32 %v8140_v34, %v8429_v29 }
 0x1a3   :  { %v1573_v56 = vadd.f32 %v1572_v63, %v1558_v48  ;;  %v988_v21 = vadd.f32 %v972_v24, %v884_v27  ;;  %v1097_v61 = vperm.slane %v1076_v10, 0  ;;  %v1286_v52 = vsel %vm1276_vm6, %v15956_v54, %v8050_v16  ;;  %v15975_v48 = vld [vmem:[#allocation8_spill] sm:$0xff] }
 0x1a4   :  { %v8505_v0 = vpop.permute.xlu1 %917  ;;  %v8533_v60 = vperm.slane %v8386_v36, 4  ;;  %v1231_v59 = vadd.f32 %v1215_v55, %v8379_v25  ;;  %v870_v5 = vmul.f32 %v854_v41, %v7624_v32  ;;  %v1201_v49 = vperm.slane %v1180_v42, 0 }
 0x1a5   :  { %v8516_v26 = vpop.permute.xlu0 %1160  ;;  %v8535_v14 = vpop.permute.xlu2 %1366  ;;  %v1559_v34 = vmul.f32 %v8512_v33, %v8512_v33  ;;  %v1232_v29 = vadd.f32 %v1216_v30, %v8421_v20  ;;  %v1460_v35 = vadd.f32 %v15947_v31, %v1438_v40  ;;  %v1540_v27 = vadd.f32 %v1539_v23, %v8512_v33  ;;  %v15973_v30 = vld [vmem:[#allocation3_spill] sm:$0xff]  ;;  %v15977_v23 = vld [vmem:[#allocation16_spill] sm:$0xff] }
 0x1a6   :  { %15972 = vst [vmem:[#allocation36_spill] sm:$0xff] %v8533_v60  ;;  %v8545_v54 = vadd.f32 %v8150_v51, %v987_v57  ;;  %v1303_v3 = vperm.slane %v1286_v52, 0  ;;  %v886_v4 = vadd.f32 %v870_v5, %v782_v53  ;;  %v1390_v25 = vsel %vm1380_vm7, %v8081_v47, %v8293_v15  ;;  %v15974_v47 = vld [vmem:[#allocation60_spill] sm:$0xff]  ;;  %v15976_v57 = vld [vmem:[#allocation5_spill] sm:$0xff] }
 0x1a7   :  { %v8547_v63 = vadd.f32 %v1573_v56, %v1559_v34  ;;  %v1113_v55 = vmul.f32 %v1097_v61, %v15910_v44  ;;  %v931_v20 = vsel %vm925_vm3, %v15965_v62, %v8177_v58  ;;  %v1285_v51 = vsel %vm1276_vm6, %v8050_v16, %v8249_v45  ;;  %v15979_v61 = vld [vmem:[#allocation59_spill] sm:$0xff] }
 0x1a8   :  { %v8563_v19 = vadd.f32 %v15973_v30, %v988_v21  ;;  %v1217_v41 = vmul.f32 %v1201_v49, %v15919_v46  ;;  %v633_v10 = vsel %vm629_vm0, %v15964_v1, %v15974_v47  ;;  %v721_v62 = vsel %vm717_vm1, %v7981_v28, %v15975_v48  ;;  %v15978_v1 = vld [vmem:[#allocation13_spill] sm:$0xff]  ;;  %v15980_v30 = vld [vmem:[#allocation30_spill] sm:$0xff] }
 0x1a9   :  { %v930_v16 = vsel %vm925_vm3, %v8177_v58, %v15976_v57  ;;  %v1476_v40 = vmax.f32 %v1460_v35, 0.0  ;;  %v1284_v53 = vsel %vm1276_vm6, %v8249_v45, %v15977_v23  ;;  %v1407_v56 = vperm.slane %v1390_v25, 0 }
 0x1aa   :  { %v1389_v21 = vsel %vm1380_vm7, %v8293_v15, %v15978_v1  ;;  %v1319_v28 = vmul.f32 %v1303_v3, %v15935_v6  ;;  %v632_v58 = vsel %vm629_vm0, %v15974_v47, %v15979_v61  ;;  %v957_v52 = vperm.slane %v931_v20, 0 }
 0x1ab   :  { %v1304_v5 = vperm.slane %v1285_v51, 0  ;;  %v1129_v49 = vadd.f32 %v1113_v55, %v1025_v39  ;;  %v663_v34 = vperm.slane %v633_v10, 0  ;;  %v958_v35 = vperm.slane %v930_v16, 0 }
 0x1ac   :  { %v8565_v24 = vpop.permute.xlu1 %1262  ;;  %v1388_v45 = vsel %vm1380_vm7, %v15978_v1, %v15980_v30  ;;  %v751_v25 = vperm.slane %v721_v62, 0  ;;  %v1075_v15 = vsel %vm1068_vm4, %v8047_v17, %v15981_v9  ;;  %v1305_v3 = vperm.slane %v1284_v53, 0 }
 0x1ad   :  { %v8580_v42 = vpop.permute.xlu0 %817  ;;  %v1408_v38 = vperm.slane %v1389_v21, 0  ;;  %v8604_v47 = vmul.f32 %v8533_v60, %v1476_v40  ;;  %v664_v20 = vperm.slane %v632_v58, 0  ;;  %v8607_v39 = vperm.slane %v8386_v36, 5  ;;  %v8610_v51 = vpop.permute.xlu2 %1164 }
 0x1ae   :  { %v1423_v55 = vmul.f32 %v1407_v56, %v15941_v8  ;;  %v1335_v10 = vadd.f32 %v1319_v28, %v1231_v59  ;;  %v973_v62 = vmul.f32 %v957_v52, %v7690_v50  ;;  %v1320_v16 = vmul.f32 %v1304_v5, %v15935_v6 }
 0x1af   :  { %15982 = vst [vmem:[#allocation37_spill] sm:$0xff] %v8604_v47  ;;  %v1409_v1 = vperm.slane %v1388_v45, 0  ;;  %v679_v17 = vmul.f32 %v663_v34, %v7586_v22  ;;  %v974_v53 = vmul.f32 %v958_v35, %v7690_v50  ;;  %v1098_v40 = vperm.slane %v1075_v15, 0 }
 0x1b0   :  { %v1233_v21 = vadd.f32 %v1217_v41, %v1129_v49  ;;  %v767_v60 = vmul.f32 %v751_v25, %v7640_v37  ;;  %v1321_v56 = vmul.f32 %v1305_v3, %v15935_v6  ;;  %v1179_v59 = vsel %vm1172_vm5, %v15971_v12, %v15983_v11  ;;  %v15984_v25 = vld [vmem:[#allocation15_spill] sm:$0xff] }
 0x1b1   :  { %v1424_v28 = vmul.f32 %v1408_v38, %v15941_v8  ;;  %v8628_v5 = vadd.f32 %v1540_v27, %v8604_v47  ;;  %v1560_v41 = vmul.f32 %v8604_v47, %v8604_v47  ;;  %v680_v49 = vmul.f32 %v664_v20, %v7586_v22 }
 0x1b2   :  { %v1439_v34 = vadd.f32 %v1423_v55, %v1335_v10  ;;  %v989_v35 = vadd.f32 %v973_v62, %v8524_v13  ;;  %v1336_v45 = vadd.f32 %v1320_v16, %v1232_v29  ;;  %v720_v12 = vsel %vm717_vm1, %v15975_v48, %v15984_v25  ;;  %v15985_v62 = vld [vmem:[#allocation2_spill] sm:$0xff] }
 0x1b3   :  { %v1425_v38 = vmul.f32 %v1409_v1, %v15941_v8  ;;  %v990_v15 = vadd.f32 %v974_v53, %v886_v4  ;;  %v1114_v27 = vmul.f32 %v1098_v40, %v15910_v44  ;;  %v1202_v3 = vperm.slane %v1179_v59, 0  ;;  %v15986_v48 = vld [vmem:[#allocation14_spill] sm:$0xff] }
 0x1b4   :  { %v8616_v58 = vpop.permute.xlu1 %919  ;;  %v1283_v20 = vsel %vm1276_vm6, %v15977_v23, %v8565_v24  ;;  %v8644_v55 = vadd.f32 %v767_v60, %v679_v17  ;;  %v1337_v13 = vadd.f32 %v1321_v56, %v1233_v21  ;;  %v8647_v29 = vperm.slane %v8386_v36, 6  ;;  %v15987_v56 = vld [vmem:[#allocation18_spill] sm:$0xff] }
 0x1b5   :  { %v8625_v52 = vpop.permute.xlu0 %1162  ;;  %v1440_v10 = vadd.f32 %v1424_v28, %v1336_v45  ;;  %v718_v4 = vsel %vm717_vm1, %v15986_v48, %v15985_v62  ;;  %v1461_v16 = vadd.f32 %v15947_v31, %v1439_v34  ;;  %v752_v1 = vperm.slane %v720_v12, 0  ;;  %v15988_v34 = vld [vmem:[#allocation61_spill] sm:$0xff]  ;;  %v8670_v45 = vpop.permute.xlu2 %1064  ;;  %v15992_v62 = vld [vmem:[#allocation27_spill] sm:$0xff] }
 0x1b6   :  { %v8655_v53 = vperm.slane %v8386_v36, 7  ;;  %v8658_v23 = vadd.f32 %v8547_v63, %v1560_v41  ;;  %v719_v60 = vsel %vm717_vm1, %v15984_v25, %v15986_v48  ;;  %v1441_v17 = vadd.f32 %v1425_v38, %v1337_v13  ;;  %15989 = vst [vmem:[#allocation40_spill] sm:$0xff] %v8670_v45  ;;  %v15990_v12 = vld [vmem:[#allocation29_spill] sm:$0xff] }
 0x1b7   :  { %v1306_v40 = vperm.slane %v1283_v20, 0  ;;  %v1130_v21 = vadd.f32 %v1114_v27, %v8545_v54  ;;  %v8666_v59 = vadd.f32 %v15987_v56, %v989_v35  ;;  %v1218_v28 = vmul.f32 %v1202_v3, %v15919_v46  ;;  %v15991_v38 = vld [vmem:[#allocation21_spill] sm:$0xff] }
 0x1b8   :  { %v1029_v36 = vadd.f32 %v15988_v34, %v990_v15  ;;  %v754_v41 = vperm.slane %v718_v4, 0  ;;  %v825_v25 = vsel %vm821_vm2, %v15969_v2, %v15990_v12  ;;  %v1074_v54 = vsel %vm1068_vm4, %v15981_v9, %v15991_v38  ;;  %v15994_v56 = vld [vmem:[#allocation25_spill] sm:$0xff] }
 0x1b9   :  { %v1462_v35 = vadd.f32 %v15947_v31, %v1440_v10  ;;  %v1477_v15 = vmax.f32 %v1461_v16, 0.0  ;;  %v753_v3 = vperm.slane %v719_v60, 0  ;;  %v768_v20 = vmul.f32 %v752_v1, %v7640_v37  ;;  %v15993_v60 = vld [vmem:[#allocation4_spill] sm:$0xff] }
 0x1ba   :  { %v1387_v13 = vsel %vm1380_vm7, %v15980_v30, %v8535_v14  ;;  %v1073_v2 = vsel %vm1068_vm4, %v15991_v38, %v15992_v62  ;;  %v1463_v9 = vadd.f32 %v15947_v31, %v1441_v17  ;;  %v1072_v10 = vsel %vm1068_vm4, %v15992_v62, %v8481_v18  ;;  %v15995_v38 = vld [vmem:[#allocation38_spill] sm:$0xff] }
 0x1bb   :  { %v1322_v48 = vmul.f32 %v1306_v40, %v15935_v6  ;;  %v855_v4 = vperm.slane %v825_v25, 0  ;;  %v1099_v16 = vperm.slane %v1074_v54, 0  ;;  %v1234_v1 = vadd.f32 %v1218_v28, %v1130_v21 }
 0x1bc   :  { %v8672_v63 = vpop.permute.xlu1 %1264  ;;  %v630_v30 = vsel %vm629_vm0, %v15994_v56, %v15993_v60  ;;  %v1478_v34 = vmax.f32 %v1462_v35, 0.0  ;;  %v631_v17 = vsel %vm629_vm0, %v15979_v61, %v15994_v56  ;;  %v824_v62 = vsel %vm821_vm2, %v15990_v12, %v15995_v38 }
 0x1bd   :  { %v8683_v27 = vpop.permute.xlu0 %921  ;;  %v1410_v40 = vperm.slane %v1387_v13, 0  ;;  %v770_v25 = vmul.f32 %v754_v41, %v7640_v37  ;;  %v8714_v21 = vmul.f32 %v8607_v39, %v1477_v15  ;;  %v1100_v28 = vperm.slane %v1073_v2, 0 }
 0x1be   :  { %v1101_v54 = vperm.slane %v1072_v10, 0  ;;  %v769_v35 = vmul.f32 %v753_v3, %v7640_v37  ;;  %v1479_v60 = vmax.f32 %v1463_v9, 0.0  ;;  %v666_v33 = vperm.slane %v630_v30, 0  ;;  %v8742_v10 = vpop.permute.xlu2 %1370 }
 0x1bf   :  { %v1338_v43 = vadd.f32 %v1322_v48, %v1234_v1  ;;  %v784_v47 = vadd.f32 %v768_v20, %v680_v49  ;;  %v871_v61 = vmul.f32 %v855_v4, %v7624_v32  ;;  %v665_v56 = vperm.slane %v631_v17, 0  ;;  %v8732_v49 = vld [vmem:[%s15945_s30 + $0x8] sm:$0xff]  ;;  %s7315_s30 = smov 112  }
 0x1c0   :  { %v856_v18 = vperm.slane %v824_v62, 0  ;;  %v1115_v12 = vmul.f32 %v1099_v16, %v15910_v44  ;;  %v8722_v41 = vmul.f32 %v8647_v29, %v1478_v34  ;;  %v1426_v15 = vmul.f32 %v1410_v40, %v15941_v8 }
 0x1c1   :  { %v929_v37 = vsel %vm925_vm3, %v15976_v57, %v8505_v0  ;;  %v1542_v20 = vadd.f32 %v8628_v5, %v8714_v21  ;;  %v1561_v13 = vmul.f32 %v8714_v21, %v8714_v21  ;;  %v1116_v2 = vmul.f32 %v1100_v28, %v15910_v44 }
 0x1c2   :  { %v1117_v9 = vmul.f32 %v1101_v54, %v15910_v44  ;;  %v8745_v57 = vmul.f32 %v8655_v53, %v1479_v60  ;;  %v682_v48 = vmul.f32 %v666_v33, %v7586_v22  ;;  %v1178_v4 = vsel %vm1172_vm5, %v15983_v11, %v8516_v26 }
 0x1c3   :  { %v1442_v5 = vadd.f32 %v1426_v15, %v1338_v43  ;;  %v681_v16 = vmul.f32 %v665_v56, %v7586_v22  ;;  %v872_v1 = vmul.f32 %v856_v18, %v7624_v32  ;;  %v959_v30 = vperm.slane %v929_v37, 0 }
 0x1c4   :  { %v8718_v45 = vpop.permute.xlu1 %1062  ;;  %v8755_v34 = vperm.slane %v8732_v49, 0  ;;  %v887_v17 = vadd.f32 %v871_v61, %v8644_v55  ;;  %v1131_v62 = vadd.f32 %v1115_v12, %v8563_v19  ;;  %v1543_v33 = vadd.f32 %v1542_v20, %v8722_v41 }
 0x1c5   :  { %v8734_v3 = vpop.permute.xlu0 %1266  ;;  %v1562_v40 = vmul.f32 %v8722_v41, %v8722_v41  ;;  %v1576_v11 = vadd.f32 %v8658_v23, %v1561_v13  ;;  %v1132_v43 = vadd.f32 %v1116_v2, %v8666_v59  ;;  %v8764_v22 = vadd.f32 %v1117_v9, %v1029_v36 }
 0x1c6   :  { %v1203_v18 = vperm.slane %v1178_v4, 0  ;;  %v1563_v28 = vmul.f32 %v8745_v57, %v8745_v57  ;;  %v8768_v54 = vadd.f32 %v770_v25, %v682_v48  ;;  %v1464_v55 = vadd.f32 %v15947_v31, %v1442_v5  ;;  %v1271_v4 = vpop.permute.xlu2 %1270 }
 0x1c7   :  { %v928_v19 = vsel %vm925_vm3, %v8505_v0, %v8616_v58  ;;  %v785_v60 = vadd.f32 %v769_v35, %v681_v16  ;;  %v888_v61 = vadd.f32 %v872_v1, %v784_v47  ;;  %v975_v23 = vmul.f32 %v959_v30, %v7690_v50  ;;  %v15997_v16 = vld [vmem:[#allocation7_spill] sm:$0xff] }
 0x1c8   :  { %v1177_v59 = vsel %vm1172_vm5, %v8516_v26, %v8625_v52  ;;  %v8781_v25 = vadd.f32 %v1543_v33, %v8745_v57  ;;  %v1577_v56 = vadd.f32 %v1576_v11, %v1562_v40  ;;  %v823_v12 = vsel %vm821_vm2, %v15995_v38, %v8580_v42  ;;  %v15996_v26 = vld [vmem:[#allocation6_spill] sm:$0xff] }
 0x1c9   :  { %v1282_v0 = vsel %vm1276_vm6, %v8565_v24, %v8672_v63  ;;  %v1219_v35 = vmul.f32 %v1203_v18, %v15919_v46  ;;  %v822_v15 = vsel %vm821_vm2, %v8580_v42, %v15996_v26  ;;  %v960_v37 = vperm.slane %v928_v19, 0 }
 0x1ca   :  { %v1281_v38 = vsel %vm1276_vm6, %v8672_v63, %v8734_v3  ;;  %v1480_v20 = vmax.f32 %v1464_v55, 0.0  ;;  %v1176_v24 = vsel %vm1172_vm5, %v8625_v52, %v8610_v51  ;;  %v1204_v13 = vperm.slane %v1177_v59, 0 }
 0x1cb   :  { %v991_v9 = vadd.f32 %v975_v23, %v887_v17  ;;  %v857_v48 = vperm.slane %v823_v12, 0  ;;  %v1307_v42 = vperm.slane %v1282_v0, 0  ;;  %v858_v63 = vperm.slane %v822_v15, 0  ;;  %v15998_v12 = vld [vmem:[#allocation11_spill] sm:$0xff] }
 0x1cc   :  { %v1369_v36 = vpop.permute.xlu1 %1368  ;;  %v926_v1 = vsel %vm925_vm3, %v8683_v27, %v15997_v16  ;;  %v927_v52 = vsel %vm925_vm3, %v8616_v58, %v8683_v27  ;;  %v976_v30 = vmul.f32 %v960_v37, %v7690_v50  ;;  %v1205_v17 = vperm.slane %v1176_v24, 0 }
 0x1cd   :  { %v8791_v47 = vpop.permute.xlu0 %1166  ;;  %v1386_v2 = vsel %vm1380_vm7, %v8535_v14, %v1369_v36  ;;  %v1385_v5 = vsel %vm1380_vm7, %v1369_v36, %v8742_v10  ;;  %v1308_v14 = vperm.slane %v1281_v38, 0  ;;  %v1578_v40 = vadd.f32 %v1577_v56, %v1563_v28 }
 0x1ce   :  { %v1411_v33 = vperm.slane %v1386_v2, 0  ;;  %v1235_v11 = vadd.f32 %v1219_v35, %v1131_v62  ;;  %v8822_v18 = vmul.f32 %v8755_v34, %v1480_v20  ;;  %v1220_v55 = vmul.f32 %v1204_v13, %v15919_v46 }
 0x1cf   :  { %v1412_v19 = vperm.slane %v1385_v5, 0  ;;  %v1323_v23 = vmul.f32 %v1307_v42, %v15935_v6  ;;  %v961_v59 = vperm.slane %v927_v52, 0  ;;  %v962_v36 = vperm.slane %v926_v1, 0 }
 0x1d0   :  { %v8827_v0 = vadd.f32 %v15998_v12, %v991_v9  ;;  %v873_v27 = vmul.f32 %v857_v48, %v7624_v32  ;;  %v874_v26 = vmul.f32 %v858_v63, %v7624_v32  ;;  %v1324_v62 = vmul.f32 %v1308_v14, %v15935_v6  ;;  %v16001_v48 = vld [vmem:[#allocation40_spill] sm:$0xff]  ;;  %v16003_v14 = vld [vmem:[#allocation19_spill] sm:$0xff] }
 0x1d1   :  { %v8833_v28 = vperm.slane %v8732_v49, 1  ;;  %v992_v35 = vadd.f32 %v976_v30, %v888_v61  ;;  %v1221_v15 = vmul.f32 %v1205_v17, %v15919_v46  ;;  %v1427_v37 = vmul.f32 %v1411_v33, %v15941_v8 }
 0x1d2   :  { %v1236_v20 = vadd.f32 %v1220_v55, %v1132_v43  ;;  %v8841_v24 = vperm.slane %v8732_v49, 2  ;;  %v1428_v32 = vmul.f32 %v1412_v19, %v15941_v8  ;;  %v1564_v13 = vmul.f32 %v8822_v18, %v8822_v18  ;;  %v16002_v43 = vld [vmem:[#allocation39_spill] sm:$0xff] }
 0x1d3   :  { %15999 = vst [vmem:[#allocation41_spill] sm:$0xff] %v8833_v28  ;;  %v1339_v2 = vadd.f32 %v1323_v23, %v1235_v11  ;;  %v977_v61 = vmul.f32 %v961_v59, %v7690_v50  ;;  %v978_v9 = vmul.f32 %v962_v36, %v7690_v50  ;;  %v1070_v42 = vsel %vm1068_vm4, %v8718_v45, %v16001_v48  ;;  %v8859_v50 = vpop.permute.xlu2 %1272 }
 0x1d4   :  { %v1269_v58 = vpop.permute.xlu1 %1268  ;;  %16000 = vst [vmem:[#allocation45_spill] sm:$0xff] %v8841_v24  ;;  %v1071_v5 = vsel %vm1068_vm4, %v16002_v43, %v8718_v45  ;;  %v1340_v63 = vadd.f32 %v1324_v62, %v1236_v20  ;;  %v890_v1 = vadd.f32 %v874_v26, %v8768_v54  ;;  %v1237_v52 = vadd.f32 %v1221_v15, %v8764_v22 }
 0x1d5   :  { %v1067_v56 = vpop.permute.xlu0 %1066  ;;  %v1280_v38 = vsel %vm1276_vm6, %v8734_v3, %v1269_v58  ;;  %v889_v3 = vadd.f32 %v873_v27, %v785_v60  ;;  %v1031_v30 = vadd.f32 %v16003_v14, %v992_v35  ;;  %v1443_v17 = vadd.f32 %v1427_v37, %v1339_v2 }
 0x1d6   :  { %v1309_v16 = vperm.slane %v1280_v38, 0  ;;  %v1103_v33 = vperm.slane %v1070_v42, 0  ;;  %v1444_v11 = vadd.f32 %v1428_v32, %v1340_v63  ;;  %v1175_v60 = vsel %vm1172_vm5, %v8610_v51, %v8791_v47 }
 0x1d7   :  { %v8867_v45 = vadd.f32 %v8781_v25, %v8822_v18  ;;  %v993_v55 = vadd.f32 %v977_v61, %v889_v3  ;;  %v994_v54 = vadd.f32 %v978_v9, %v890_v1  ;;  %v1102_v19 = vperm.slane %v1071_v5, 0  ;;  %v16006_v3 = vld [vmem:[#allocation20_spill] sm:$0xff]  ;;  %v16007_v5 = vld [vmem:[#allocation17_spill] sm:$0xff] }
 0x1d8   :  { %v8869_v23 = vadd.f32 %v1578_v40, %v1564_v13  ;;  %v1278_v59 = vsel %vm1276_vm6, %v1271_v4, %v8859_v50  ;;  %v1279_v36 = vsel %vm1276_vm6, %v1269_v58, %v1271_v4  ;;  %v1325_v12 = vmul.f32 %v1309_v16, %v15935_v6  ;;  %v16005_v13 = vld [vmem:[#allocation9_spill] sm:$0xff] }
 0x1d9   :  { %v1465_v27 = vadd.f32 %v15947_v31, %v1443_v17  ;;  %v1206_v26 = vperm.slane %v1175_v60, 0  ;;  %v1119_v35 = vmul.f32 %v1103_v33, %v15910_v44  ;;  %v1466_v15 = vadd.f32 %v15947_v31, %v1444_v11 }
 0x1da   :  { %v8887_v4 = vperm.slane %v8732_v49, 3  ;;  %v1118_v37 = vmul.f32 %v1102_v19, %v15910_v44  ;;  %v1310_v38 = vperm.slane %v1279_v36, 0  ;;  %v1069_v20 = vsel %vm1068_vm4, %v16001_v48, %v1067_v56 }
 0x1db   :  { %v1341_v32 = vadd.f32 %v1325_v12, %v1237_v52  ;;  %v1481_v9 = vmax.f32 %v1465_v27, 0.0  ;;  %v1222_v42 = vmul.f32 %v1206_v26, %v15919_v46  ;;  %v1032_v43 = vadd.f32 %v16006_v3, %v993_v55  ;;  %v1377_v52 = vpop.permute.xlu2 %1376 }
 0x1dc   :  { %v1169_v22 = vpop.permute.xlu1 %1168  ;;  %16004 = vst [vmem:[#allocation42_spill] sm:$0xff] %v8887_v4  ;;  %v1033_v63 = vadd.f32 %v16007_v5, %v994_v54  ;;  %v1135_v16 = vadd.f32 %v1119_v35, %v1031_v30  ;;  %v1482_v1 = vmax.f32 %v1466_v15, 0.0  ;;  %v1104_v14 = vperm.slane %v1069_v20, 0  ;;  %v16008_v54 = vld [vmem:[#allocation12_spill] sm:$0xff] }
 0x1dd   :  { %v1174_v51 = vsel %vm1172_vm5, %v8791_v47, %v1169_v22  ;;  %v1373_v25 = vpop.permute.xlu0 %1372  ;;  %v1311_v47 = vperm.slane %v1278_v59, 0  ;;  %v1134_v17 = vadd.f32 %v1118_v37, %v8827_v0  ;;  %v1326_v33 = vmul.f32 %v1310_v38, %v15935_v6 }
 0x1de   :  { %v1207_v62 = vperm.slane %v1174_v51, 0  ;;  %v1384_v40 = vsel %vm1380_vm7, %v8742_v10, %v1373_v25  ;;  %v1084_v10 = vsel %vm1068_vm4, %v1067_v56, %v16005_v13  ;;  %v8911_v12 = vmul.f32 %v8833_v28, %v1481_v9 }
 0x1df   :  { %v1413_v58 = vperm.slane %v1384_v40, 0  ;;  %v1327_v56 = vmul.f32 %v1311_v47, %v15935_v6  ;;  %v1105_v11 = vperm.slane %v1084_v10, 0  ;;  %v1238_v0 = vadd.f32 %v1222_v42, %v1134_v17  ;;  %v16010_v17 = vld [vmem:[#allocation23_spill] sm:$0xff] }
 0x1e0   :  { %v1223_v2 = vmul.f32 %v1207_v62, %v15919_v46  ;;  %v8918_v26 = vmul.f32 %v8841_v24, %v1482_v1  ;;  %v8928_v13 = vperm.slane %v8732_v49, 5  ;;  %v1546_v10 = vadd.f32 %v8867_v45, %v8911_v12 }
 0x1e1   :  { %v1429_v61 = vmul.f32 %v1413_v58, %v15941_v8  ;;  %v1121_v35 = vmul.f32 %v1105_v11, %v15910_v44  ;;  %v1342_v47 = vadd.f32 %v1326_v33, %v1238_v0 }
 0x1e2   :  { %v1239_v19 = vadd.f32 %v1223_v2, %v1135_v16  ;;  %16009 = vst [vmem:[#allocation43_spill] sm:$0xff] %v8928_v13  ;;  %v1566_v42 = vmul.f32 %v8918_v26, %v8918_v26 }
 0x1e3   :  { %v1445_v48 = vadd.f32 %v1429_v61, %v1341_v32  ;;  %v1137_v3 = vadd.f32 %v1121_v35, %v1033_v63 }
 0x1e4   :  { %v1171_v60 = vpop.permute.xlu1 %1170  ;;  %v1343_v38 = vadd.f32 %v1327_v56, %v1239_v19 }
 0x1e5   :  { %v1467_v59 = vadd.f32 %v15947_v31, %v1445_v48  ;;  %v1173_v55 = vsel %vm1172_vm5, %v1169_v22, %v1171_v60  ;;  %v1188_v30 = vsel %vm1172_vm5, %v1171_v60, %v16008_v54  ;;  %v1375_v36 = vpop.permute.xlu0 %1374  ;;  %v1120_v22 = vmul.f32 %v1104_v14, %v15910_v44 }
 0x1e6   :  { %v1382_v51 = vsel %vm1380_vm7, %v1375_v36, %v1377_v52  ;;  %v1383_v27 = vsel %vm1380_vm7, %v1373_v25, %v1375_v36  ;;  %v1208_v58 = vperm.slane %v1173_v55, 0  ;;  %v1209_v37 = vperm.slane %v1188_v30, 0 }
 0x1e7   :  { %v1414_v62 = vperm.slane %v1383_v27, 0  ;;  %v1415_v40 = vperm.slane %v1382_v51, 0  ;;  %v1483_v15 = vmax.f32 %v1467_v59, 0.0  ;;  %v8925_v25 = vperm.slane %v8732_v49, 4 }
 0x1e8   :  { %v1565_v44 = vmul.f32 %v8911_v12, %v8911_v12  ;;  %v1136_v2 = vadd.f32 %v1120_v22, %v1032_v43  ;;  %v1224_v16 = vmul.f32 %v1208_v58, %v15919_v46  ;;  %v1225_v1 = vmul.f32 %v1209_v37, %v15919_v46  ;;  %v16011_v46 = vld [vmem:[#allocation33_spill] sm:$0xff] }
 0x1e9   :  { %v1430_v20 = vmul.f32 %v1414_v62, %v15941_v8  ;;  %v1431_v32 = vmul.f32 %v1415_v40, %v15941_v8  ;;  %v8937_v5 = vmul.f32 %v8887_v4, %v1483_v15 }
 0x1ea   :  { %v1580_v30 = vadd.f32 %v8869_v23, %v1565_v44  ;;  %v1241_v36 = vadd.f32 %v1225_v1, %v1137_v3 }
 0x1eb   :  { %v1446_v61 = vadd.f32 %v1430_v20, %v1342_v47  ;;  %v1447_v9 = vadd.f32 %v1431_v32, %v1343_v38  ;;  %v1567_v62 = vmul.f32 %v8937_v5, %v8937_v5  ;;  %v8969_v20 = vperm.slane %v8732_v49, 6 }
 0x1ec   :  { %v1275_v14 = vpop.permute.xlu1 %1274  ;;  %v1581_v58 = vadd.f32 %v1580_v30, %v1566_v42  ;;  %v8972_v32 = vperm.slane %v8732_v49, 7 }
 0x1ed   :  { %v1468_v45 = vadd.f32 %v15947_v31, %v1446_v61  ;;  %v1469_v48 = vadd.f32 %v15947_v31, %v1447_v9  ;;  %v1277_v43 = vsel %vm1276_vm6, %v8859_v50, %v1275_v14  ;;  %v1292_v63 = vsel %vm1276_vm6, %v1275_v14, %v16010_v17  ;;  %v1379_v56 = vpop.permute.xlu0 %1378  ;;  %16012 = vst [vmem:[#allocation47_spill] sm:$0xff] %v8969_v20 }
 0x1ee   :  { %v1312_v33 = vperm.slane %v1277_v43, 0  ;;  %v1313_v11 = vperm.slane %v1292_v63, 0  ;;  %v1381_v60 = vsel %vm1380_vm7, %v1377_v52, %v1379_v56  ;;  %v1396_v19 = vsel %vm1380_vm7, %v1379_v56, %v16011_v46  ;;  %16013 = vst [vmem:[#allocation53_spill] sm:$0xff] %v8972_v32 }
 0x1ef   :  { %v1484_v59 = vmax.f32 %v1468_v45, 0.0  ;;  %v1416_v55 = vperm.slane %v1381_v60, 0  ;;  %v1417_v54 = vperm.slane %v1396_v19, 0  ;;  %v1240_v50 = vadd.f32 %v1224_v16, %v1136_v2 }
 0x1f0   :  { %v1328_v0 = vmul.f32 %v1312_v33, %v15935_v6  ;;  %v1329_v51 = vmul.f32 %v1313_v11, %v15935_v6  ;;  %v1485_v27 = vmax.f32 %v1469_v48, 0.0  ;;  %v1547_v52 = vadd.f32 %v1546_v10, %v8918_v26 }
 0x1f1   :  { %v8958_v22 = vmul.f32 %v8925_v25, %v1484_v59  ;;  %v1432_v15 = vmul.f32 %v1416_v55, %v15941_v8  ;;  %v1433_v23 = vmul.f32 %v1417_v54, %v15941_v8  ;;  %v1582_v10 = vadd.f32 %v1581_v58, %v1567_v62  ;;  %v16014_v62 = vld [vmem:[#allocation37_spill] sm:$0xff]  ;;  %v16016_v58 = vld [vmem:[#allocation44_spill] sm:$0xff] }
 0x1f2   :  { %v1344_v40 = vadd.f32 %v1328_v0, %v1240_v50  ;;  %v1345_v35 = vadd.f32 %v1329_v51, %v1241_v36  ;;  %v1548_v6 = vadd.f32 %v1547_v52, %v8937_v5  ;;  %v8977_v8 = vmul.f32 %v8928_v13, %v1485_v27 }
 0x1f3   :  { %v1568_v38 = vmul.f32 %v8958_v22, %v8958_v22 }
 0x1f4   :  { %v1448_v37 = vadd.f32 %v1432_v15, %v1344_v40  ;;  %v1449_v47 = vadd.f32 %v1433_v23, %v1345_v35  ;;  %v1549_v61 = vadd.f32 %v1548_v6, %v8958_v22  ;;  %v1569_v14 = vmul.f32 %v8977_v8, %v8977_v8  ;;  %v16015_v15 = vld [vmem:[#allocation34_spill] sm:$0xff]  ;;  %v16017_v6 = vld [vmem:[#allocation32_spill] sm:$0xff] }
 0x1f5   :  { %v1583_v3 = vadd.f32 %v1582_v10, %v1568_v38  ;;  %v8999_v0 = vpop.permute.xlu0 %1640  ;;  %v16018_v10 = vld [vmem:[#allocation35_spill] sm:$0xff] }
 0x1f6   :  { %v1470_v44 = vadd.f32 %v15947_v31, %v1448_v37  ;;  %v1471_v2 = vadd.f32 %v15947_v31, %v1449_v47  ;;  %v1550_v49 = vadd.f32 %v1549_v61, %v8977_v8 }
 0x1f7   :  { %v1584_v48 = vadd.f32 %v1583_v3, %v1569_v14 }
 0x1f8   :  { %v1486_v9 = vmax.f32 %v1470_v44, 0.0  ;;  %v1487_v42 = vmax.f32 %v1471_v2, 0.0 }
 0x1fa   :  { %v8981_v16 = vmul.f32 %v8969_v20, %v1486_v9  ;;  %v8984_v1 = vmul.f32 %v8972_v32, %v1487_v42 }
 0x1fc   :  { %v1551_v31 = vadd.f32 %v1550_v49, %v8981_v16  ;;  %v1570_v45 = vmul.f32 %v8981_v16, %v8981_v16  ;;  %v1571_v17 = vmul.f32 %v8984_v1, %v8984_v1 }
 0x1fe   :  { %v1552_v43 = vadd.f32 %v1551_v31, %v8984_v1  ;;  %v1585_v63 = vadd.f32 %v1584_v48, %v1570_v45  ;;  %v9025_v48 = vpop.permute.xlu0 %1663 }
 0x200   :  { %1553 = vadd.xlane.f32.xlu1 %v1552_v43  ;;  %v1586_v56 = vadd.f32 %v1585_v63, %v1571_v17 }
 0x202   :  { %1587 = vadd.xlane.f32.xlu2 %v1586_v56 }
 0x273   :  { %v1554_v33 = vpop.xlane.xlu1 %1553 }
 0x274   :  { %v8995_v11 = vmul.f32 0.0006377551, %v1554_v33 }
 0x275   :  { %v1588_v60 = vpop.xlane.xlu2 %1587 }
 0x276   :  { %v1589_v46 = vmul.f32 0.0006377551, %v1588_v60  ;;  %v1590_v19 = vmul.f32 %v8995_v11, %v8995_v11  ;;  %v1597_v40 = vsub.f32 %v16014_v62, %v8995_v11  ;;  %v1599_v35 = vsub.f32 %v8722_v41, %v8995_v11  ;;  %v16022_v62 = vld [vmem:[#allocation26_spill] sm:$0xff] }
 0x277   :  { %v1595_v23 = vsub.f32 %v16015_v15, %v8995_v11  ;;  %v1596_v37 = vsub.f32 %v16016_v58, %v8995_v11  ;;  %v1593_v38 = vsub.f32 %v16017_v6, %v8995_v11  ;;  %v1594_v44 = vsub.f32 %v16018_v10, %v8995_v11 }
 0x278   :  { %v1591_v59 = vsub.f32 %v1589_v46, %v1590_v19  ;;  %v16019_v46 = vld [vmem:[#allocation36_spill] sm:$0xff]  ;;  %v1608_v58 = vsub.f32 %v8984_v1, %v8995_v11  ;;  %v1604_v6 = vsub.f32 %v8937_v5, %v8995_v11 }
 0x27a   :  { %v1592_v55 = vmax.f32 %v1591_v59, 0.0 }
 0x27c   :  { %v1609_v54 = vadd.f32 1e-05, %v1592_v55  ;;  %v16020_v55 = vld [vmem:[#allocation24_spill] sm:$0xff] }
 0x27e   :  { %7207 = vrsqrt.f32 %v1609_v54  ;;  %vm1616_vm9 = vweird.f32 %v1609_v54 }
 0x284   :  { %v7208_v30 = vpop.eup %7207 }
 0x285   :  { %v1611_v50 = vmul.f32 %v7208_v30, %v1609_v54  ;;  %vm1617_vm8 = vweird.f32 %v7208_v30 }
 0x286   :  { %vm1618_vm10 = vmor %vm1616_vm9, %vm1617_vm8 }
 0x287   :  { %v1612_v36 = vmul.f32 %v7208_v30, %v1611_v50 }
 0x289   :  { %v1613_v51 = vmul.f32 0.5, %v1612_v36 }
 0x28b   :  { %v1614_v27 = vsub.f32 1.5, %v1613_v51 }
 0x28d   :  { %v1615_v52 = vmul.f32 %v7208_v30, %v1614_v27 }
 0x28f   :  { %v9009_v47 = vsel %vm1618_vm10, %v7208_v30, %v1615_v52  ;;  %v16021_v30 = vld [vmem:[#allocation31_spill] sm:$0xff] }
 0x290   :  { %v1624_v2 = vmul.f32 %v9009_v47, %v1597_v40  ;;  %v1626_v61 = vmul.f32 %v9009_v47, %v1599_v35  ;;  %v1622_v41 = vmul.f32 %v9009_v47, %v1595_v23  ;;  %v1623_v9 = vmul.f32 %v9009_v47, %v1596_v37  ;;  %v16023_v35 = vld [vmem:[#allocation22_spill] sm:$0xff] }
 0x291   :  { %v1620_v42 = vmul.f32 %v9009_v47, %v1593_v38  ;;  %v1621_v3 = vmul.f32 %v9009_v47, %v1594_v44  ;;  %v1598_v23 = vsub.f32 %v8714_v21, %v8995_v11  ;;  %v1602_v37 = vsub.f32 %v8911_v12, %v8995_v11 }
 0x292   :  { %v1647_v49 = vmul.f32 %v8999_v0, %v1624_v2  ;;  %v1649_v14 = vmul.f32 %v8999_v0, %v1626_v61  ;;  %v1645_v31 = vmul.f32 %v8999_v0, %v1622_v41  ;;  %v1646_v45 = vmul.f32 %v8999_v0, %v1623_v9 }
 0x293   :  { %v1643_v43 = vmul.f32 %v8999_v0, %v1620_v42  ;;  %v1644_v17 = vmul.f32 %v8999_v0, %v1621_v3  ;;  %v1625_v38 = vmul.f32 %v9009_v47, %v1598_v23  ;;  %v1635_v10 = vmul.f32 %v9009_v47, %v1608_v58 }
 0x294   :  { %v1670_v63 = vadd.f32 %v9025_v48, %v1647_v49  ;;  %v1672_v56 = vadd.f32 %v9025_v48, %v1649_v14  ;;  %v1668_v33 = vadd.f32 %v9025_v48, %v1645_v31  ;;  %v1669_v60 = vadd.f32 %v9025_v48, %v1646_v45 }
 0x295   :  { %v1666_v36 = vadd.f32 %v9025_v48, %v1643_v43  ;;  %v1667_v52 = vadd.f32 %v9025_v48, %v1644_v17  ;;  %v1605_v44 = vsub.f32 %v8958_v22, %v8995_v11  ;;  %v1607_v2 = vsub.f32 %v8981_v16, %v8995_v11 }
 0x296   :  { %v9034_v19 = vmul.f32 %v1670_v63, %v16019_v46  ;;  %v9037_v59 = vmul.f32 %v1672_v56, %v8647_v29  ;;  %v9040_v54 = vmul.f32 %v1668_v33, %v16020_v55  ;;  %v9043_v50 = vmul.f32 %v1669_v60, %v16021_v30 }
 0x297   :  { %v9055_v40 = vmul.f32 %v1666_v36, %v16022_v62  ;;  %v9058_v15 = vmul.f32 %v1667_v52, %v16023_v35  ;;  %v1629_v1 = vmul.f32 %v9009_v47, %v1602_v37  ;;  %v1631_v12 = vmul.f32 %v9009_v47, %v1604_v6 }
 0x298   :  { %v6217_v51 = vpack.i.bf16 %v9037_v59, %v9034_v19  ;;  %v6222_v27 = vpack.i.bf16 %v9043_v50, %v9040_v54  ;;  %v9079_v61 = vmul.f32 %v9009_v47, %v1605_v44  ;;  %v9082_v5 = vmul.f32 %v9009_v47, %v1607_v2 }
 0x299   :  { %v6242_v21 = vpack.i.bf16 %v9058_v15, %v9055_v40  ;;  %v1606_v22 = vsub.f32 %v8977_v8, %v8995_v11  ;;  %v1648_v16 = vmul.f32 %v8999_v0, %v1625_v38  ;;  %v1658_v41 = vmul.f32 %v8999_v0, %v1635_v10 }
 0x29a   :  { %6218 = vrot.lane.b32.xlu2 %v6217_v51, %s7313_s24  ;;  %6223 = vrot.lane.b32.xlu1 %v6222_v27, %s7311_s27  ;;  %v6262_v42 = vpack.i.bf16 %v9040_v54, %v9058_v15  ;;  %v6272_v45 = vpack.i.bf16 %v9043_v50, %v9055_v40  ;;  %v1600_v43 = vsub.f32 %v8745_v57, %v8995_v11 }
 0x29b   :  { %6203 = vrot.lane.b32.xlu0 %v6222_v27, %s7313_s24  ;;  %v9092_v9 = vmul.f32 %v9009_v47, %v1606_v22  ;;  %v1671_v3 = vadd.f32 %v9025_v48, %v1648_v16  ;;  %v1681_v49 = vadd.f32 %v9025_v48, %v1658_v41  ;;  %v1601_v17 = vsub.f32 %v8822_v18, %v8995_v11 }
 0x29c   :  { %v1603_v63 = vsub.f32 %v8918_v26, %v8995_v11  ;;  %v1627_v56 = vmul.f32 %v9009_v47, %v1600_v43  ;;  %v1652_v37 = vmul.f32 %v8999_v0, %v1629_v1  ;;  %v6367_v6 = vpack.i.bf16 %v9034_v19, %v9037_v59 }
 0x29d   :  { %v9102_v8 = vmul.f32 %v1671_v3, %v8607_v39  ;;  %v9105_v14 = vmul.f32 %v1681_v49, %v8972_v32  ;;  %v1628_v33 = vmul.f32 %v9009_v47, %v1601_v17  ;;  %v1654_v44 = vmul.f32 %v8999_v0, %v1631_v12 }
 0x29e   :  { %v1630_v60 = vmul.f32 %v9009_v47, %v1603_v63  ;;  %v1650_v57 = vmul.f32 %v8999_v0, %v1627_v56  ;;  %v1675_v38 = vadd.f32 %v9025_v48, %v1652_v37  ;;  %v1655_v22 = vmul.f32 %v8999_v0, %v9079_v61 }
 0x29f   :  { %v6277_v31 = vpack.i.bf16 %v9102_v8, %v9105_v14  ;;  %v1651_v36 = vmul.f32 %v8999_v0, %v1628_v33  ;;  %v1657_v12 = vmul.f32 %v8999_v0, %v9082_v5 }
 0x2a0   :  { %v1653_v18 = vmul.f32 %v8999_v0, %v1630_v60  ;;  %v1673_v26 = vadd.f32 %v9025_v48, %v1650_v57  ;;  %v9165_v10 = vmul.f32 %v1675_v38, %v8833_v28  ;;  %v1678_v41 = vadd.f32 %v9025_v48, %v1655_v22 }
 0x2a1   :  { %v1674_v11 = vadd.f32 %v9025_v48, %v1651_v36 }
 0x2a2   :  { %6248 = vrot.lane.b32.xlu1 %v6217_v51, %s7311_s27  ;;  %6243 = vrot.lane.b32.xlu2 %v6242_v21, %s7311_s27  ;;  %v9139_v47 = vmul.f32 %v1673_v26, %v8655_v53  ;;  %v9189_v3 = vmul.f32 %v1678_v41, %v8925_v25 }
 0x2a3   :  { %6208 = vrot.lane.b32.xlu0 %v6222_v27, %s7312_s0 }
 0x2a4   :  { %v6337_v23 = vpack.i.bf16 %v9102_v8, %v9139_v47  ;;  %v6382_v2 = vpack.i.bf16 %v9165_v10, %v9139_v47 }
 0x2aa   :  { %6263 = vrot.lane.b32.xlu1 %v6262_v42, %s7309_s1  ;;  %6258 = vrot.lane.b32.xlu2 %v6217_v51, %s7310_s25 }
 0x2ab   :  { %6213 = vrot.lane.b32.xlu0 %v6242_v21, %s7313_s24 }
 0x2b2   :  { %6278 = vrot.lane.b32.xlu1 %v6277_v31, %s7309_s1  ;;  %6273 = vrot.lane.b32.xlu2 %v6272_v45, %s7309_s1 }
 0x2b3   :  { %6228 = vrot.lane.b32.xlu0 %v6242_v21, %s7312_s0 }
 0x2ba   :  { %6293 = vrot.lane.b32.xlu1 %v6277_v31, %s7308_s26  ;;  %6288 = vrot.lane.b32.xlu2 %v6272_v45, %s7308_s26 }
 0x2bb   :  { %6233 = vrot.lane.b32.xlu0 %v6217_v51, %s7312_s0  ;;  %v1676_v51 = vadd.f32 %v9025_v48, %v1653_v18 }
 0x2bd   :  { %v9145_v52 = vmul.f32 %v1676_v51, %v8841_v24 }
 0x2c2   :  { %6308 = vrot.lane.b32.xlu1 %v6277_v31, %s7307_s4  ;;  %6303 = vrot.lane.b32.xlu2 %v6272_v45, %s7307_s4 }
 0x2c3   :  { %6238 = vrot.lane.b32.xlu0 %v6222_v27, %s7310_s25  ;;  %v9142_v27 = vmul.f32 %v1674_v11, %v8755_v34 }
 0x2c5   :  { %v6332_v58 = vpack.i.bf16 %v9145_v52, %v9142_v27 }
 0x2ca   :  { %6323 = vrot.lane.b32.xlu1 %v6277_v31, %s7306_s7  ;;  %6318 = vrot.lane.b32.xlu2 %v6272_v45, %s7306_s7  ;;  %v1656_v31 = vmul.f32 %v8999_v0, %v9092_v9  ;;  %v9212_v45 = vpack.i.bf16 %v9142_v27, %v9145_v52 }
 0x2cb   :  { %6253 = vrot.lane.b32.xlu0 %v6242_v21, %s7310_s25  ;;  %v1677_v21 = vadd.f32 %v9025_v48, %v1654_v44 }
 0x2cc   :  { %v1679_v43 = vadd.f32 %v9025_v48, %v1656_v31 }
 0x2cd   :  { %v9175_v1 = vmul.f32 %v1677_v21, %v8887_v4 }
 0x2ce   :  { %v9223_v63 = vmul.f32 %v1679_v43, %v8928_v13 }
 0x2cf   :  { %v6397_v16 = vpack.i.bf16 %v9165_v10, %v9175_v1 }
 0x2d0   :  { %v9236_v36 = vpack.i.bf16 %v9223_v63, %v9175_v1  ;;  %v9272_v31 = vpack.i.bf16 %v9223_v63, %v9105_v14 }
 0x2d2   :  { %6338 = vrot.lane.b32.xlu1 %v6337_v23, %s7311_s27  ;;  %6333 = vrot.lane.b32.xlu2 %v6332_v58, %s7313_s24 }
 0x2d3   :  { %6268 = vrot.lane.b32.xlu0 %v6262_v42, %s7308_s26 }
 0x2da   :  { %6353 = vrot.lane.b32.xlu1 %v6332_v58, %s7311_s27  ;;  %6348 = vrot.lane.b32.xlu2 %v6337_v23, %s7310_s25 }
 0x2db   :  { %6283 = vrot.lane.b32.xlu0 %v6262_v42, %s7307_s4 }
 0x2e2   :  { %6368 = vrot.lane.b32.xlu1 %v6367_v6, %s7308_s26  ;;  %6363 = vrot.lane.b32.xlu2 %v6367_v6, %s7309_s1 }
 0x2e3   :  { %6298 = vrot.lane.b32.xlu0 %v6262_v42, %s7306_s7  ;;  %v1680_v42 = vadd.f32 %v9025_v48, %v1657_v12 }
 0x2e5   :  { %v9192_v61 = vmul.f32 %v1680_v42, %v8969_v20 }
 0x2e7   :  { %v9196_v5 = vpack.i.bf16 %v9192_v61, %v9189_v3 }
 0x2ea   :  { %6383 = vrot.lane.b32.xlu1 %v6382_v2, %s7308_s26  ;;  %6378 = vrot.lane.b32.xlu2 %v6367_v6, %s7307_s4 }
 0x2eb   :  { %6313 = vrot.lane.b32.xlu0 %v6337_v23, %s7313_s24 }
 0x2f2   :  { %6398 = vrot.lane.b32.xlu1 %v6397_v16, %s7313_s24  ;;  %6393 = vrot.lane.b32.xlu2 %v6382_v2, %s7307_s4 }
 0x2f3   :  { %6328 = vrot.lane.b32.xlu0 %v6337_v23, %s7312_s0 }
 0x2f4   :  { %v9206_v49 = vpop.permute.xlu2 %6218 }
 0x2f5   :  { %v6220_v9 = vunpack.i.l.bf16 %v9206_v49 }
 0x2fa   :  { %6413 = vrot.lane.b32.xlu1 %v9196_v5, %s7313_s24  ;;  %6408 = vrot.lane.b32.xlu2 %v6397_v16, %s7312_s0 }
 0x2fb   :  { %6343 = vrot.lane.b32.xlu0 %v6332_v58, %s7312_s0 }
 0x2fc   :  { %v9226_v56 = vpop.permute.xlu2 %6243 }
 0x302   :  { %6428 = vrot.lane.b32.xlu1 %v6397_v16, %s7310_s25  ;;  %6423 = vrot.lane.b32.xlu2 %v9196_v5, %s7312_s0 }
 0x303   :  { %6358 = vrot.lane.b32.xlu0 %v6332_v58, %s7310_s25 }
 0x304   :  { %v9247_v37 = vpop.permute.xlu2 %6258 }
 0x30a   :  { %6443 = vrot.lane.b32.xlu1 %v9212_v45, %s7309_s1  ;;  %6438 = vrot.lane.b32.xlu2 %v9196_v5, %s7310_s25 }
 0x30b   :  { %6373 = vrot.lane.b32.xlu0 %v6382_v2, %s7309_s1 }
 0x30c   :  { %v9220_v17 = vpop.permute.xlu1 %6223 }
 0x30d   :  { %v6204_v0 = vpop.permute.xlu0 %6203  ;;  %v6226_v11 = vunpack.i.h.bf16 %v9220_v17  ;;  %v6225_v51 = vunpack.i.l.bf16 %v9220_v17 }
 0x30e   :  { %v6206_v33 = vunpack.i.h.bf16 %v6204_v0  ;;  %v6205_v48 = vunpack.i.l.bf16 %v6204_v0  ;;  %v6246_v0 = vunpack.i.h.bf16 %v9226_v56 }
 0x30f   :  { %v1982_v44 = vsel %vm1172_vm5, %v6225_v51, %v6226_v11 }
 0x310   :  { %v2078_v60 = vsel %vm1380_vm7, %v6205_v48, %v6206_v33  ;;  %v2077_v57 = vsel %vm1380_vm7, %v6206_v33, %v6220_v9  ;;  %v15426_v33 = vunpack.i.l.bf16 %v9226_v56 }
 0x311   :  { %2156 = vmatpush.msra.mxu2 %v2078_v60  ;;  %2179 = vmatpush.msra.mxu3 %v2077_v57 }
 0x312   :  { %6458 = vrot.lane.b32.xlu1 %v9212_v45, %s7307_s4  ;;  %6453 = vrot.lane.b32.xlu2 %v9236_v36, %s7309_s1 }
 0x313   :  { %6388 = vrot.lane.b32.xlu0 %v6367_v6, %s7306_s7 }
 0x314   :  { %v9243_v18 = vpop.permute.xlu1 %6248 }
 0x315   :  { %v6209_v26 = vpop.permute.xlu0 %6208  ;;  %v16026_v20 = vunpack.i.l.bf16 %v9243_v18 }
 0x316   :  { %v6211_v23 = vunpack.i.h.bf16 %v6209_v26  ;;  %v6210_v58 = vunpack.i.l.bf16 %v6209_v26  ;;  %v9297_v26 = vpack.i.bf16 %v9189_v3, %v9192_v61 }
 0x318   :  { %v2030_v38 = vsel %vm1276_vm6, %v6210_v58, %v6211_v23 }
 0x319   :  { %2157 = vmatpush.msra.mxu2 %v2030_v38  ;;  %v1984_v38 = vsel %vm1172_vm5, %v15426_v33, %v6246_v0 }
 0x31a   :  { %6473 = vrot.lane.b32.xlu1 %v9236_v36, %s7307_s4  ;;  %6468 = vrot.lane.b32.xlu2 %v9212_v45, %s7306_s7 }
 0x31b   :  { %2158 = vmatpush.msra.mxu2 %v1982_v44  ;;  %6403 = vrot.lane.b32.xlu0 %v6382_v2, %s7306_s7  ;;  %v9274_v2 = vpop.permute.xlu2 %6273 }
 0x31c   :  { %v9258_v6 = vpop.permute.xlu1 %6263 }
 0x31d   :  { %v9260_v21 = vpop.permute.xlu0 %6213 }
 0x31e   :  { %v6216_v22 = vunpack.i.h.bf16 %v9260_v21  ;;  %v15428_v12 = vunpack.i.l.bf16 %v9260_v21 }
 0x320   :  { %v2080_v41 = vsel %vm1380_vm7, %v15428_v12, %v6216_v22  ;;  %v2079_v42 = vsel %vm1380_vm7, %v6216_v22, %v6205_v48 }
 0x321   :  { %2110 = vmatpush.msra.mxu0 %v2080_v41  ;;  %2133 = vmatpush.msra.mxu1 %v2079_v42  ;;  %v15432_v41 = vunpack.i.l.bf16 %v9243_v18 }
 0x322   :  { %6483 = vrot.lane.b32.xlu1 %v9272_v31, %s7312_s0  ;;  %1720 = vrot.lane.b32.xlu2 %v9175_v1, %s7306_s7 }
 0x323   :  { %6418 = vrot.lane.b32.xlu0 %v6397_v16, %s7311_s27  ;;  %v9311_v44 = vpop.permute.xlu2 %6288 }
 0x324   :  { %v9281_v43 = vpop.permute.xlu1 %6278 }
 0x325   :  { %v9283_v17 = vpop.permute.xlu0 %6228 }
 0x326   :  { %v6231_v48 = vunpack.i.h.bf16 %v9283_v17  ;;  %v15427_v60 = vunpack.i.l.bf16 %v9283_v17 }
 0x328   :  { %v2032_v57 = vsel %vm1276_vm6, %v15427_v60, %v6231_v48  ;;  %v2031_v16 = vsel %vm1276_vm6, %v6231_v48, %v6210_v58  ;;  %v1983_v58 = vsel %vm1172_vm5, %v6246_v0, %v6225_v51  ;;  %v1981_v51 = vsel %vm1172_vm5, %v6226_v11, %v15432_v41 }
 0x329   :  { %2111 = vmatpush.msra.mxu0 %v2032_v57  ;;  %2134 = vmatpush.msra.mxu1 %v2031_v16  ;;  %v6512_v57 = vpack.i.bf16 %v9192_v61, %v9223_v63  ;;  %v6266_v11 = vunpack.i.h.bf16 %v9258_v6  ;;  %v15429_v60 = vunpack.i.h.bf16 %v9274_v2 }
 0x32a   :  { %6498 = vrot.lane.b32.xlu1 %v9297_v26, %s7309_s1  ;;  %6493 = vrot.lane.b32.xlu2 %v9272_v31, %s7310_s25 }
 0x32b   :  { %6433 = vrot.lane.b32.xlu0 %v9196_v5, %s7311_s27  ;;  %2112 = vmatpush.msra.mxu0 %v1984_v38  ;;  %v9335_v16 = vpop.permute.xlu2 %6303 }
 0x32c   :  { %2135 = vmatpush.msra.mxu1 %v1983_v58  ;;  %v9317_v48 = vpop.permute.xlu1 %6293 }
 0x32d   :  { %v9313_v22 = vpop.permute.xlu0 %6233 }
 0x32e   :  { %v6235_v42 = vunpack.i.l.bf16 %v9313_v22 }
 0x330   :  { %v2029_v5 = vsel %vm1276_vm6, %v6211_v23, %v6235_v42  ;;  %v15431_v23 = vunpack.i.l.bf16 %v9247_v37 }
 0x331   :  { %2180 = vmatpush.msra.mxu3 %v2029_v5  ;;  %v2085_v5 = vld [vmem:[%s16024_s12 + $0x8] sm:$0xff] }
 0x332   :  { %6513 = vrot.lane.b32.xlu1 %v6512_v57, %s7306_s7  ;;  %6508 = vrot.lane.b32.xlu2 %v9297_v26, %s7307_s4  ;;  %v2084_v57 = vld [vmem:[%s16024_s12] sm:$0xff] }
 0x333   :  { %6448 = vrot.lane.b32.xlu0 %v9212_v45, %s7308_s26  ;;  %2181 = vmatpush.msra.mxu3 %v1981_v51  ;;  %v6265_v45 = vunpack.i.l.bf16 %v9258_v6 }
 0x334   :  { %v9351_v33 = vpop.permute.xlu1 %6308 }
 0x335   :  { %v6239_v0 = vpop.permute.xlu0 %6238  ;;  %v1887_v6 = vsel %vm925_vm3, %v6265_v45, %v6266_v11 }
 0x336   :  { %v6241_v38 = vunpack.i.h.bf16 %v6239_v0  ;;  %v6240_v58 = vunpack.i.l.bf16 %v6239_v0 }
 0x338   :  { %v1934_v51 = vsel %vm1068_vm4, %v6240_v58, %v6241_v38  ;;  %v1933_v0 = vsel %vm1068_vm4, %v6241_v38, %v15431_v23  ;;  %v1886_v38 = vsel %vm925_vm3, %v6266_v11, %v15429_v60  ;;  %v15435_v23 = vunpack.i.l.bf16 %v9351_v33 }
 0x339   :  { %2159 = vmatpush.msra.mxu2 %v1934_v51  ;;  %2182 = vmatpush.msra.mxu3 %v1933_v0  ;;  %v9375_v51 = vpop.permute.xlu2 %6318 }
 0x33a   :  { %2093 = vperm.xlu1 %6201, %v2085_v5   ;;  %2088 = vperm.xlu2 %6199, %v2084_v57  }
 0x33b   :  { %6463 = vrot.lane.b32.xlu0 %v9236_v36, %s7308_s26  ;;  %2160 = vmatpush.msra.mxu2 %v9040_v54  ;;  %v6009_v54 = vld [vmem:[%s16024_s12 + $0x20] sm:$0xff]  ;;  %v15433_v36 = vunpack.i.l.bf16 %v9281_v43 }
 0x33c   :  { %2183 = vmatpush.msra.mxu3 %v9043_v50  ;;  %v6007_v50 = vld [vmem:[%s16024_s12 + $0x10] sm:$0xff]  ;;  %v9385_v60 = vpop.permute.xlu1 %6323 }
 0x33d   :  { %v9360_v12 = vpop.permute.xlu0 %6253  ;;  %2161 = vmatpush.msra.mxu2 %v1887_v6  ;;  %v6275_v6 = vunpack.i.l.bf16 %v9274_v2 }
 0x33e   :  { %v6256_v5 = vunpack.i.h.bf16 %v9360_v12  ;;  %v15430_v57 = vunpack.i.l.bf16 %v9360_v12  ;;  %2184 = vmatpush.msra.mxu3 %v1886_v38  ;;  %v15436_v38 = vunpack.i.l.bf16 %v9317_v48 }
 0x340   :  { %v1936_v11 = vsel %vm1068_vm4, %v15430_v57, %v6256_v5  ;;  %v1935_v0 = vsel %vm1068_vm4, %v6256_v5, %v6240_v58  ;;  %v6290_v57 = vunpack.i.l.bf16 %v9311_v44  ;;  %v1889_v58 = vsel %vm925_vm3, %v15433_v36, %v6275_v6 }
 0x341   :  { %2113 = vmatpush.msra.mxu0 %v1936_v11  ;;  %2136 = vmatpush.msra.mxu1 %v1935_v0  ;;  %v15440_v5 = vunpack.i.h.bf16 %v9311_v44  ;;  %v15434_v11 = vunpack.i.l.bf16 %v9385_v60  ;;  %v6320_v36 = vunpack.i.l.bf16 %v9375_v51 }
 0x342   :  { %2781 = vperm.xlu1 %6201, %v6009_v54   ;;  %2736 = vperm.xlu2 %6199, %v6007_v50   ;;  %v6305_v54 = vunpack.i.l.bf16 %v9335_v16 }
 0x343   :  { %6478 = vrot.lane.b32.xlu0 %v9272_v31, %s7313_s24  ;;  %2114 = vmatpush.msra.mxu0 %v9055_v40  ;;  %v1888_v40 = vsel %vm925_vm3, %v6275_v6, %v6265_v45 }
 0x344   :  { %2137 = vmatpush.msra.mxu1 %v9058_v15  ;;  %v1841_v15 = vsel %vm821_vm2, %v15436_v38, %v6290_v57 }
 0x345   :  { %v6269_v50 = vpop.permute.xlu0 %6268  ;;  %2115 = vmatpush.msra.mxu0 %v1889_v58  ;;  %v1793_v58 = vsel %vm717_vm1, %v15435_v23, %v6305_v54 }
 0x346   :  { %v6271_v0 = vunpack.i.h.bf16 %v6269_v50  ;;  %v6270_v41 = vunpack.i.l.bf16 %v6269_v50  ;;  %2138 = vmatpush.msra.mxu1 %v1888_v40  ;;  %v9422_v40 = vld [vmem:[%s16025_s10] sm:$0xff] }
 0x347   :  { %2116 = vmatpush.msra.mxu0 %v1841_v15  ;;  %v9424_v15 = vpop.permute.xlu2 %6333 }
 0x348   :  { %v1840_v45 = vsel %vm821_vm2, %v6290_v57, %v6270_v41  ;;  %v1839_v6 = vsel %vm821_vm2, %v6270_v41, %v6271_v0  ;;  %v1838_v50 = vsel %vm821_vm2, %v6271_v0, %v15440_v5  ;;  %v1745_v41 = vsel %vm629_vm0, %v15434_v11, %v6320_v36 }
 0x349   :  { %2117 = vmatpush.msra.mxu0 %v1793_v58  ;;  %2139 = vmatpush.msra.mxu1 %v1840_v45  ;;  %v15438_v0 = vunpack.i.h.bf16 %v9335_v16  ;;  %v9435_v58 = vpop.permute.xlu1 %6338 }
 0x34a   :  { %2162 = vmatpush.msra.mxu2 %v1839_v6  ;;  %2185 = vmatpush.msra.mxu3 %v1838_v50 }
 0x34b   :  { %6488 = vrot.lane.b32.xlu0 %v9272_v31, %s7311_s27  ;;  %2118 = vmatpush.msra.mxu0 %v1745_v41  ;;  %v9448_v41 = vld [vmem:[%s16025_s10 + $0x8] sm:$0xff]  ;;  %s7321_s10 = smov 121   ;;  %s7323_s27 = smov 119  }
 0x34c   :  { %5975 = vmatmul.msk.f32.vlgmr.msra.gmra.mxu0 %vm2096_vm11, %v9422_v40 }
 0x34d   :  { %v6284_v57 = vpop.permute.xlu0 %6283 }
 0x34e   :  { %v6286_v45 = vunpack.i.h.bf16 %v6284_v57  ;;  %v6285_v6 = vunpack.i.l.bf16 %v6284_v57 }
 0x350   :  { %v1792_v50 = vsel %vm717_vm1, %v6305_v54, %v6285_v6  ;;  %v1791_v11 = vsel %vm717_vm1, %v6285_v6, %v6286_v45  ;;  %v1790_v31 = vsel %vm717_vm1, %v6286_v45, %v15438_v0  ;;  %v9452_v54 = vpop.permute.xlu2 %6348  ;;  %v15437_v6 = vunpack.i.h.bf16 %v9375_v51 }
 0x351   :  { %2140 = vmatpush.msra.mxu1 %v1792_v50  ;;  %2163 = vmatpush.msra.mxu2 %v1791_v11  ;;  %v9457_v11 = vpop.permute.xlu1 %6353 }
 0x352   :  { %2186 = vmatpush.msra.mxu3 %v1790_v31 }
 0x353   :  { %6503 = vrot.lane.b32.xlu0 %v9297_v26, %s7308_s26  ;;  %s7319_s26 = smov 17  }
 0x354   :  { %5976 = vmatmul.msk.f32.gmra.mxu0 %vm2096_vm11, %v9448_v41 }
 0x355   :  { %v6299_v57 = vpop.permute.xlu0 %6298 }
 0x356   :  { %v6301_v45 = vunpack.i.h.bf16 %v6299_v57  ;;  %v6300_v50 = vunpack.i.l.bf16 %v6299_v57  ;;  %v6221_v57 = vunpack.i.h.bf16 %v9206_v49  ;;  %v6008_v49 = vld [vmem:[%s16024_s12 + $0x18] sm:$0xff] }
 0x358   :  { %v1744_v23 = vsel %vm629_vm0, %v6320_v36, %v6300_v50  ;;  %v1743_v31 = vsel %vm629_vm0, %v6300_v50, %v6301_v45  ;;  %v1742_v26 = vsel %vm629_vm0, %v6301_v45, %v15437_v6  ;;  %v15439_v45 = vunpack.i.l.bf16 %v9424_v15 }
 0x359   :  { %2141 = vmatpush.msra.mxu1 %v1744_v23  ;;  %2164 = vmatpush.msra.mxu2 %v1743_v31  ;;  %v9477_v23 = vpop.permute.xlu2 %6363 }
 0x35a   :  { %2187 = vmatpush.msra.mxu3 %v1742_v26  ;;  %5977 = vmatmul.msk.f32.vlgmr.msra.gmra.mxu1 %vm2096_vm11, %v9422_v40 }
 0x35b   :  { %5979 = vmatmul.msk.f32.vlgmr.msra.gmra.mxu2 %vm2096_vm11, %v9422_v40  ;;  %5981 = vmatmul.msk.f32.vlgmr.msra.gmra.mxu3 %vm2096_vm11, %v9422_v40 }
 0x35c   :  { %1722 = vrot.lane.b32.xlu0 %v9189_v3, %s7306_s7  ;;  %s7318_s7 = smov 16  }
 0x35d   :  { %v6314_v36 = vpop.permute.xlu0 %6313 }
 0x35e   :  { %v6316_v50 = vunpack.i.h.bf16 %v6314_v36  ;;  %v6315_v31 = vunpack.i.l.bf16 %v6314_v36  ;;  %v9494_v36 = vpop.permute.xlu1 %6368 }
 0x360   :  { %v2076_v26 = vsel %vm1380_vm7, %v6220_v9, %v6316_v50  ;;  %v2075_v38 = vsel %vm1380_vm7, %v6316_v50, %v6221_v57  ;;  %v2074_v6 = vsel %vm1380_vm7, %v6221_v57, %v6315_v31  ;;  %v2073_v0 = vsel %vm1380_vm7, %v6315_v31, %v15439_v45 }
 0x361   :  { %2202 = vmatpush.msrb.mxu0 %v2076_v26  ;;  %2225 = vmatpush.msrb.mxu1 %v2075_v38  ;;  %v6236_v38 = vunpack.i.h.bf16 %v9313_v22  ;;  %v6341_v57 = vunpack.i.h.bf16 %v9435_v58  ;;  %v6351_v26 = vunpack.i.h.bf16 %v9452_v54  ;;  %v9507_v45 = vpop.permute.xlu2 %6378 }
 0x362   :  { %2248 = vmatpush.msrb.mxu2 %v2074_v6  ;;  %2271 = vmatpush.msrb.mxu3 %v2073_v0  ;;  %v6251_v6 = vunpack.i.h.bf16 %v9243_v18  ;;  %v6340_v0 = vunpack.i.l.bf16 %v9435_v58  ;;  %v6261_v58 = vunpack.i.h.bf16 %v9247_v37 }
 0x363   :  { %5978 = vmatmul.msk.f32.gmra.mxu1 %vm2096_vm11, %v9448_v41  ;;  %5980 = vmatmul.msk.f32.gmra.mxu2 %vm2096_vm11, %v9448_v41  ;;  %v1980_v22 = vsel %vm1172_vm5, %v16026_v20, %v6341_v57 }
 0x364   :  { %5982 = vmatmul.msk.f32.gmra.mxu3 %vm2096_vm11, %v9448_v41  ;;  %2741 = vperm.xlu0 %6200, %v6008_v49   ;;  %v1931_v20 = vsel %vm1068_vm4, %v6351_v26, %v6261_v58 }
 0x365   :  { %v6329_v9 = vpop.permute.xlu0 %6328 }
 0x366   :  { %v6331_v50 = vunpack.i.h.bf16 %v6329_v9  ;;  %v6330_v31 = vunpack.i.l.bf16 %v6329_v9  ;;  %v6350_v9 = vunpack.i.l.bf16 %v9452_v54  ;;  %v6366_v54 = vunpack.i.h.bf16 %v9477_v23 }
 0x368   :  { %v2028_v49 = vsel %vm1276_vm6, %v6235_v42, %v6331_v50  ;;  %v2027_v5 = vsel %vm1276_vm6, %v6331_v50, %v6236_v38  ;;  %v2026_v32 = vsel %vm1276_vm6, %v6236_v38, %v6330_v31  ;;  %v1979_v42 = vsel %vm1172_vm5, %v6341_v57, %v6251_v6  ;;  %v9528_v50 = vpop.permute.xlu1 %6383 }
 0x369   :  { %2203 = vmatpush.msrb.mxu0 %v2028_v49  ;;  %2226 = vmatpush.msrb.mxu1 %v2027_v5  ;;  %v1978_v38 = vsel %vm1172_vm5, %v6251_v6, %v6340_v0  ;;  %v6365_v5 = vunpack.i.l.bf16 %v9477_v23  ;;  %v1930_v6 = vsel %vm1068_vm4, %v6261_v58, %v6350_v9  ;;  %v6281_v49 = vunpack.i.h.bf16 %v9281_v43 }
 0x36a   :  { %2249 = vmatpush.msrb.mxu2 %v2026_v32  ;;  %v16027_v32 = vunpack.i.l.bf16 %v9247_v37  ;;  %v6370_v23 = vunpack.i.l.bf16 %v9494_v36  ;;  %v16028_v58 = vunpack.i.h.bf16 %v9274_v2  ;;  %v9565_v2 = vpop.permute.xlu2 %6393 }
 0x36b   :  { %2204 = vmatpush.msrb.mxu0 %v1980_v22  ;;  %2227 = vmatpush.msrb.mxu1 %v1979_v42  ;;  %v6371_v22 = vunpack.i.h.bf16 %v9494_v36  ;;  %v6296_v42 = vunpack.i.h.bf16 %v9317_v48 }
 0x36c   :  { %2250 = vmatpush.msrb.mxu2 %v1978_v38  ;;  %v1932_v18 = vsel %vm1068_vm4, %v16027_v32, %v6351_v26  ;;  %v6355_v26 = vunpack.i.l.bf16 %v9457_v11  ;;  %v6381_v38 = vunpack.i.h.bf16 %v9507_v45  ;;  %v1885_v32 = vsel %vm925_vm3, %v16028_v58, %v6366_v54 }
 0x36d   :  { %v9537_v57 = vpop.permute.xlu0 %6343  ;;  %2205 = vmatpush.msrb.mxu0 %v1932_v18  ;;  %2228 = vmatpush.msrb.mxu1 %v1931_v20  ;;  %v1884_v18 = vsel %vm925_vm3, %v6366_v54, %v6281_v49  ;;  %v16029_v54 = vunpack.i.h.bf16 %v9311_v44  ;;  %v16030_v44 = vunpack.i.h.bf16 %v9335_v16 }
 0x36e   :  { %v6345_v37 = vunpack.i.l.bf16 %v9537_v57  ;;  %2251 = vmatpush.msrb.mxu2 %v1930_v6  ;;  %v1977_v6 = vsel %vm1172_vm5, %v6340_v0, %v6355_v26 }
 0x36f   :  { %2206 = vmatpush.msrb.mxu0 %v9034_v19  ;;  %2229 = vmatpush.msrb.mxu1 %v9102_v8  ;;  %v6380_v19 = vunpack.i.l.bf16 %v9507_v45  ;;  %v6311_v8 = vunpack.i.h.bf16 %v9351_v33  ;;  %v1837_v20 = vsel %vm821_vm2, %v16029_v54, %v6371_v22  ;;  %v1835_v45 = vsel %vm821_vm2, %v6296_v42, %v6370_v23 }
 0x370   :  { %2252 = vmatpush.msrb.mxu2 %v9037_v59  ;;  %v2025_v36 = vsel %vm1276_vm6, %v6330_v31, %v6345_v37  ;;  %v1883_v59 = vsel %vm925_vm3, %v6281_v49, %v6365_v5  ;;  %v1836_v31 = vsel %vm821_vm2, %v6371_v22, %v6296_v42  ;;  %v1789_v49 = vsel %vm717_vm1, %v16030_v44, %v6381_v38 }
 0x371   :  { %2207 = vmatpush.msrb.mxu0 %v1885_v32  ;;  %2230 = vmatpush.msrb.mxu1 %v1884_v18  ;;  %v1788_v22 = vsel %vm717_vm1, %v6381_v38, %v6311_v8  ;;  %v1787_v42 = vsel %vm717_vm1, %v6311_v8, %v6380_v19  ;;  %v9589_v32 = vpop.permute.xlu1 %6398  ;;  %v6395_v8 = vunpack.i.l.bf16 %v9565_v2 }
 0x372   :  { %2253 = vmatpush.msrb.mxu2 %v1883_v59  ;;  %2272 = vmatpush.msrb.mxu3 %v2025_v36  ;;  %v6409_v38 = vpop.permute.xlu2 %6408  ;;  %v6385_v36 = vunpack.i.l.bf16 %v9528_v50 }
 0x373   :  { %2208 = vmatpush.msrb.mxu0 %v1837_v20  ;;  %2231 = vmatpush.msrb.mxu1 %v1836_v31 }
 0x374   :  { %2254 = vmatpush.msrb.mxu2 %v1835_v45  ;;  %2273 = vmatpush.msrb.mxu3 %v1977_v6  ;;  %v6326_v45 = vunpack.i.h.bf16 %v9385_v60 }
 0x375   :  { %v9585_v58 = vpop.permute.xlu0 %6358  ;;  %2209 = vmatpush.msrb.mxu0 %v1789_v49  ;;  %2232 = vmatpush.msrb.mxu1 %v1788_v22  ;;  %v6401_v49 = vunpack.i.h.bf16 %v9589_v32  ;;  %v6400_v22 = vunpack.i.l.bf16 %v9589_v32  ;;  %v16032_v32 = vunpack.i.l.bf16 %v9424_v15 }
 0x376   :  { %v6360_v0 = vunpack.i.l.bf16 %v9585_v58  ;;  %2255 = vmatpush.msrb.mxu2 %v1787_v42 }
 0x378   :  { %v1929_v16 = vsel %vm1068_vm4, %v6350_v9, %v6360_v0  ;;  %v1786_v9 = vsel %vm717_vm1, %v6380_v19, %v6395_v8 }
 0x379   :  { %2274 = vmatpush.msrb.mxu3 %v1929_v16  ;;  %v9602_v54 = vpop.permute.xlu1 %6413 }
 0x37a   :  { %v9617_v6 = vpop.permute.xlu2 %6423 }
 0x37b   :  { %2275 = vmatpush.msrb.mxu3 %v9139_v47  ;;  %v1834_v47 = vsel %vm821_vm2, %v6370_v23, %v6385_v36  ;;  %v16031_v23 = vunpack.i.h.bf16 %v9375_v51  ;;  %v6411_v51 = vunpack.i.h.bf16 %v6409_v38 }
 0x37d   :  { %v9597_v18 = vpop.permute.xlu0 %6373 }
 0x37e   :  { %v6375_v59 = vunpack.i.l.bf16 %v9597_v18 }
 0x380   :  { %v1882_v20 = vsel %vm925_vm3, %v6365_v5, %v6375_v59 }
 0x381   :  { %2276 = vmatpush.msrb.mxu3 %v1882_v20  ;;  %v6336_v20 = vunpack.i.h.bf16 %v9424_v15 }
 0x383   :  { %2277 = vmatpush.msrb.mxu3 %v1834_v47  ;;  %v6346_v47 = vunpack.i.h.bf16 %v9537_v57 }
 0x385   :  { %v6389_v31 = vpop.permute.xlu0 %6388  ;;  %2278 = vmatpush.msrb.mxu3 %v1786_v9  ;;  %v9631_v9 = vpop.permute.xlu1 %6428  ;;  %v2023_v15 = vsel %vm1276_vm6, %v6411_v51, %v6346_v47 }
 0x386   :  { %v6391_v44 = vunpack.i.h.bf16 %v6389_v31  ;;  %v6390_v5 = vunpack.i.l.bf16 %v6389_v31  ;;  %v2072_v31 = vsel %vm1380_vm7, %v16032_v32, %v6401_v49 }
 0x388   :  { %v1741_v42 = vsel %vm629_vm0, %v16031_v23, %v6391_v44  ;;  %v1740_v19 = vsel %vm629_vm0, %v6391_v44, %v6326_v45  ;;  %v1739_v16 = vsel %vm629_vm0, %v6326_v45, %v6390_v5  ;;  %v2071_v45 = vsel %vm1380_vm7, %v6401_v49, %v6336_v20 }
 0x389   :  { %2210 = vmatpush.msrb.mxu0 %v1741_v42  ;;  %2233 = vmatpush.msrb.mxu1 %v1740_v19  ;;  %v6410_v44 = vunpack.i.l.bf16 %v6409_v38  ;;  %v2070_v23 = vsel %vm1380_vm7, %v6336_v20, %v6400_v22  ;;  %v2024_v42 = vsel %vm1276_vm6, %v6345_v37, %v6411_v51  ;;  %v9659_v20 = vpop.permute.xlu2 %6438  ;;  %v6425_v37 = vunpack.i.l.bf16 %v9617_v6 }
 0x38a   :  { %2256 = vmatpush.msrb.mxu2 %v1739_v16  ;;  %5983 = vmatmul.msk.f32.vlgmr.msrb.gmra.mxu0 %vm2096_vm11, %v9422_v40  ;;  %v6415_v16 = vunpack.i.l.bf16 %v9602_v54  ;;  %v6356_v51 = vunpack.i.h.bf16 %v9457_v11 }
 0x38b   :  { %5985 = vmatmul.msk.f32.vlgmr.msrb.gmra.mxu1 %vm2096_vm11, %v9422_v40  ;;  %5987 = vmatmul.msk.f32.vlgmr.msrb.gmra.mxu2 %vm2096_vm11, %v9422_v40  ;;  %v2022_v38 = vsel %vm1276_vm6, %v6346_v47, %v6410_v44  ;;  %v2021_v32 = vsel %vm1276_vm6, %v6410_v44, %v6425_v37 }
 0x38c   :  { %2294 = vmatpush.msra.mxu0 %v2072_v31  ;;  %2317 = vmatpush.msra.mxu1 %v2071_v45  ;;  %v6431_v45 = vunpack.i.h.bf16 %v9631_v9 }
 0x38d   :  { %2340 = vmatpush.msra.mxu2 %v2070_v23  ;;  %v9653_v19 = vpop.permute.xlu0 %6403  ;;  %v6444_v47 = vpop.permute.xlu1 %6443  ;;  %v6361_v23 = vunpack.i.h.bf16 %v9585_v58 }
 0x38e   :  { %2295 = vmatpush.msra.mxu0 %v2024_v42  ;;  %2318 = vmatpush.msra.mxu1 %v2023_v15  ;;  %v6405_v49 = vunpack.i.l.bf16 %v9653_v19  ;;  %v1928_v11 = vsel %vm1068_vm4, %v6360_v0, %v6431_v45 }
 0x38f   :  { %2341 = vmatpush.msra.mxu2 %v2022_v38  ;;  %v6430_v38 = vunpack.i.l.bf16 %v9631_v9  ;;  %v6445_v9 = vunpack.i.l.bf16 %v6444_v47 }
 0x390   :  { %v1738_v57 = vsel %vm629_vm0, %v6390_v5, %v6405_v49  ;;  %v2069_v5 = vsel %vm1380_vm7, %v6400_v22, %v6415_v16 }
 0x391   :  { %2279 = vmatpush.msrb.mxu3 %v1738_v57 }
 0x392   :  { %5984 = vmatmul.msk.f32.gmra.mxu0 %vm2096_vm11, %v9448_v41  ;;  %5989 = vmatmul.msk.f32.vlgmr.msrb.gmra.mxu3 %vm2096_vm11, %v9422_v40 }
 0x393   :  { %5986 = vmatmul.msk.f32.gmra.mxu1 %vm2096_vm11, %v9448_v41  ;;  %5988 = vmatmul.msk.f32.gmra.mxu2 %vm2096_vm11, %v9448_v41 }
 0x394   :  { %2363 = vmatpush.msra.mxu3 %v2069_v5  ;;  %v9694_v5 = vpop.permute.xlu2 %6453 }
 0x395   :  { %v6419_v31 = vpop.permute.xlu0 %6418  ;;  %v6459_v58 = vpop.permute.xlu1 %6458 }
 0x396   :  { %2364 = vmatpush.msra.mxu3 %v2021_v32  ;;  %v6421_v42 = vunpack.i.h.bf16 %v6419_v31  ;;  %v6420_v15 = vunpack.i.l.bf16 %v6419_v31  ;;  %v6446_v32 = vunpack.i.h.bf16 %v6444_v47  ;;  %v6376_v31 = vunpack.i.h.bf16 %v9597_v18 }
 0x398   :  { %v1976_v22 = vsel %vm1172_vm5, %v6355_v26, %v6421_v42  ;;  %v1975_v57 = vsel %vm1172_vm5, %v6421_v42, %v6356_v51  ;;  %v1974_v44 = vsel %vm1172_vm5, %v6356_v51, %v6420_v15  ;;  %v1927_v26 = vsel %vm1068_vm4, %v6431_v45, %v6361_v23 }
 0x399   :  { %2296 = vmatpush.msra.mxu0 %v1976_v22  ;;  %2319 = vmatpush.msra.mxu1 %v1975_v57  ;;  %v1926_v51 = vsel %vm1068_vm4, %v6361_v23, %v6430_v38  ;;  %v1881_v0 = vsel %vm925_vm3, %v6375_v59, %v6446_v32  ;;  %v1880_v47 = vsel %vm925_vm3, %v6446_v32, %v6376_v31  ;;  %v6455_v59 = vunpack.i.l.bf16 %v9694_v5 }
 0x39a   :  { %2342 = vmatpush.msra.mxu2 %v1974_v44  ;;  %5990 = vmatmul.msk.f32.gmra.mxu3 %vm2096_vm11, %v9448_v41  ;;  %v6386_v23 = vunpack.i.h.bf16 %v9528_v50  ;;  %v6461_v44 = vunpack.i.h.bf16 %v6459_v58 }
 0x39b   :  { %2297 = vmatpush.msra.mxu0 %v1928_v11  ;;  %2320 = vmatpush.msra.mxu1 %v1927_v26  ;;  %v6396_v11 = vunpack.i.h.bf16 %v9565_v2 }
 0x39c   :  { %2343 = vmatpush.msra.mxu2 %v1926_v51  ;;  %v6469_v45 = vpop.permute.xlu2 %6468  ;;  %v6406_v51 = vunpack.i.h.bf16 %v9653_v19 }
 0x39d   :  { %v9707_v42 = vpop.permute.xlu0 %6433  ;;  %2298 = vmatpush.msra.mxu0 %v9142_v27  ;;  %2321 = vmatpush.msra.mxu1 %v9165_v10  ;;  %v1879_v27 = vsel %vm925_vm3, %v6376_v31, %v6445_v9  ;;  %v6440_v10 = vunpack.i.l.bf16 %v9659_v20  ;;  %v9738_v26 = vpop.permute.xlu1 %6473  ;;  %v1784_v50 = vsel %vm717_vm1, %v6461_v44, %v6396_v11 }
 0x39e   :  { %v6435_v22 = vunpack.i.l.bf16 %v9707_v42  ;;  %2344 = vmatpush.msra.mxu2 %v9145_v52 }
 0x39f   :  { %2299 = vmatpush.msra.mxu0 %v1881_v0  ;;  %2322 = vmatpush.msra.mxu1 %v1880_v47  ;;  %v1925_v18 = vsel %vm1068_vm4, %v6430_v38, %v6440_v10  ;;  %v6460_v38 = vunpack.i.l.bf16 %v6459_v58  ;;  %v1785_v58 = vsel %vm717_vm1, %v6395_v8, %v6461_v44 }
 0x3a0   :  { %2345 = vmatpush.msra.mxu2 %v1879_v27  ;;  %v1973_v52 = vsel %vm1172_vm5, %v6420_v15, %v6435_v22  ;;  %v1878_v15 = vsel %vm925_vm3, %v6445_v9, %v6455_v59  ;;  %v6471_v9 = vunpack.i.h.bf16 %v6469_v45  ;;  %v6470_v27 = vunpack.i.l.bf16 %v6469_v45 }
 0x3a1   :  { %2365 = vmatpush.msra.mxu3 %v1973_v52 }
 0x3a2   :  { %v1737_v52 = vsel %vm629_vm0, %v6405_v49, %v6471_v9  ;;  %v1736_v2 = vsel %vm629_vm0, %v6471_v9, %v6406_v51  ;;  %v1735_v8 = vsel %vm629_vm0, %v6406_v51, %v6470_v27 }
 0x3a3   :  { %2366 = vmatpush.msra.mxu3 %v1925_v18 }
 0x3a4   :  { %v9767_v45 = vpop.permute.xlu2 %1720 }
 0x3a5   :  { %v6449_v57 = vpop.permute.xlu0 %6448  ;;  %2367 = vmatpush.msra.mxu3 %v9175_v1  ;;  %v6484_v49 = vpop.permute.xlu1 %6483 }
 0x3a6   :  { %v6451_v32 = vunpack.i.h.bf16 %v6449_v57  ;;  %v6450_v31 = vunpack.i.l.bf16 %v6449_v57  ;;  %v6486_v51 = vunpack.i.h.bf16 %v6484_v49 }
 0x3a7   :  { %2368 = vmatpush.msra.mxu3 %v1878_v15 }
 0x3a8   :  { %v1833_v1 = vsel %vm821_vm2, %v6385_v36, %v6451_v32  ;;  %v1832_v0 = vsel %vm821_vm2, %v6451_v32, %v6386_v23  ;;  %v1831_v47 = vsel %vm821_vm2, %v6386_v23, %v6450_v31  ;;  %v1783_v36 = vsel %vm717_vm1, %v6396_v11, %v6460_v38 }
 0x3a9   :  { %2300 = vmatpush.msra.mxu0 %v1833_v1  ;;  %2323 = vmatpush.msra.mxu1 %v1832_v0  ;;  %v6475_v23 = vunpack.i.l.bf16 %v9738_v26  ;;  %v1734_v32 = vsel %vm629_vm0, %v6470_v27, %v9767_v45  ;;  %v6416_v11 = vunpack.i.h.bf16 %v9602_v54  ;;  %v16033_v27 = vunpack.i.l.bf16 %v9260_v21 }
 0x3aa   :  { %2346 = vmatpush.msra.mxu2 %v1831_v47  ;;  %v2020_v54 = vsel %vm1276_vm6, %v6425_v37, %v6486_v51  ;;  %v6436_v37 = vunpack.i.h.bf16 %v9707_v42 }
 0x3ab   :  { %2301 = vmatpush.msra.mxu0 %v1785_v58  ;;  %2324 = vmatpush.msra.mxu1 %v1784_v50  ;;  %v1782_v44 = vsel %vm717_vm1, %v6460_v38, %v6475_v23  ;;  %v6485_v38 = vunpack.i.l.bf16 %v6484_v49 }
 0x3ac   :  { %2347 = vmatpush.msra.mxu2 %v1783_v36  ;;  %v6494_v47 = vpop.permute.xlu2 %6493 }
 0x3ad   :  { %v9763_v18 = vpop.permute.xlu0 %6463  ;;  %2302 = vmatpush.msra.mxu0 %v1737_v52  ;;  %2325 = vmatpush.msra.mxu1 %v1736_v2  ;;  %v16034_v52 = vunpack.i.l.bf16 %v9283_v17 }
 0x3ae   :  { %v6465_v57 = vunpack.i.l.bf16 %v9763_v18  ;;  %2348 = vmatpush.msra.mxu2 %v1735_v8  ;;  %5991 = vmatmul.msk.f32.vlgmr.msra.gmra.mxu0 %vm2096_vm11, %v9422_v40  ;;  %v6499_v8 = vpop.permute.xlu1 %6498 }
 0x3af   :  { %5993 = vmatmul.msk.f32.vlgmr.msra.gmra.mxu1 %vm2096_vm11, %v9422_v40  ;;  %5995 = vmatmul.msk.f32.vlgmr.msra.gmra.mxu2 %vm2096_vm11, %v9422_v40  ;;  %v2033_v2 = vsel %vm1276_vm6, %v6485_v38, %v16034_v52 }
 0x3b0   :  { %v1830_v19 = vsel %vm821_vm2, %v6450_v31, %v6465_v57  ;;  %v6426_v31 = vunpack.i.h.bf16 %v9617_v6 }
 0x3b1   :  { %2369 = vmatpush.msra.mxu3 %v1830_v19  ;;  %v6496_v19 = vunpack.i.h.bf16 %v6494_v47 }
 0x3b2   :  { %v2018_v21 = vsel %vm1276_vm6, %v6426_v31, %v6485_v38 }
 0x3b3   :  { %2370 = vmatpush.msra.mxu3 %v1782_v44  ;;  %v1924_v42 = vsel %vm1068_vm4, %v6440_v10, %v6496_v19 }
 0x3b4   :  { %v6509_v38 = vpop.permute.xlu2 %6508 }
 0x3b5   :  { %v6479_v15 = vpop.permute.xlu0 %6478  ;;  %2371 = vmatpush.msra.mxu3 %v1734_v32  ;;  %v6441_v32 = vunpack.i.h.bf16 %v9659_v20  ;;  %v6476_v20 = vunpack.i.h.bf16 %v9738_v26  ;;  %v6511_v10 = vunpack.i.h.bf16 %v6509_v38 }
 0x3b6   :  { %v6481_v1 = vunpack.i.h.bf16 %v6479_v15  ;;  %v6480_v0 = vunpack.i.l.bf16 %v6479_v15  ;;  %5992 = vmatmul.msk.f32.gmra.mxu0 %vm2096_vm11, %v9448_v41  ;;  %5997 = vmatmul.msk.f32.vlgmr.msra.gmra.mxu3 %vm2096_vm11, %v9422_v40  ;;  %v6495_v15 = vunpack.i.l.bf16 %v6494_v47  ;;  %v6500_v47 = vunpack.i.l.bf16 %v6499_v8 }
 0x3b7   :  { %5994 = vmatmul.msk.f32.gmra.mxu1 %vm2096_vm11, %v9448_v41  ;;  %5996 = vmatmul.msk.f32.gmra.mxu2 %vm2096_vm11, %v9448_v41 }
 0x3b8   :  { %v2068_v9 = vsel %vm1380_vm7, %v6415_v16, %v6481_v1  ;;  %v2067_v58 = vsel %vm1380_vm7, %v6481_v1, %v6416_v11  ;;  %v2066_v50 = vsel %vm1380_vm7, %v6416_v11, %v6480_v0  ;;  %v2081_v36 = vsel %vm1380_vm7, %v6480_v0, %v16033_v27 }
 0x3b9   :  { %2386 = vmatpush.msrb.mxu0 %v2068_v9  ;;  %2409 = vmatpush.msrb.mxu1 %v2067_v58  ;;  %v2019_v16 = vsel %vm1276_vm6, %v6486_v51, %v6426_v31  ;;  %v16035_v1 = vunpack.i.l.bf16 %v9226_v56  ;;  %v6501_v31 = vunpack.i.h.bf16 %v6499_v8  ;;  %v1922_v56 = vsel %vm1068_vm4, %v6441_v32, %v6495_v15 }
 0x3ba   :  { %2432 = vmatpush.msrb.mxu2 %v2066_v50  ;;  %2455 = vmatpush.msrb.mxu3 %v2081_v36  ;;  %v16036_v9 = vunpack.i.l.bf16 %v9360_v12  ;;  %v6456_v50 = vunpack.i.h.bf16 %v9694_v5  ;;  %v6514_v36 = vpop.permute.xlu1 %6513  ;;  %v16037_v5 = vunpack.i.l.bf16 %v9281_v43  ;;  %v16038_v43 = vunpack.i.l.bf16 %v9317_v48 }
 0x3bb   :  { %2387 = vmatpush.msrb.mxu0 %v2020_v54  ;;  %2410 = vmatpush.msrb.mxu1 %v2019_v16  ;;  %v1877_v12 = vsel %vm925_vm3, %v6455_v59, %v6501_v31  ;;  %v6466_v54 = vunpack.i.h.bf16 %v9763_v18  ;;  %v6516_v8 = vunpack.i.h.bf16 %v6514_v36  ;;  %v1781_v18 = vsel %vm717_vm1, %v6475_v23, %v6511_v10 }
 0x3bc   :  { %2433 = vmatpush.msrb.mxu2 %v2018_v21  ;;  %2456 = vmatpush.msrb.mxu3 %v2033_v2  ;;  %v1937_v58 = vsel %vm1068_vm4, %v6495_v15, %v16036_v9  ;;  %v1876_v52 = vsel %vm925_vm3, %v6501_v31, %v6456_v50  ;;  %v1874_v59 = vsel %vm925_vm3, %v6500_v47, %v16037_v5  ;;  %v16039_v48 = vunpack.i.l.bf16 %v9351_v33 }
 0x3bd   :  { %v6489_v6 = vpop.permute.xlu0 %6488  ;;  %v16040_v23 = vunpack.i.l.bf16 %v9385_v60 }
 0x3be   :  { %v6491_v49 = vunpack.i.h.bf16 %v6489_v6  ;;  %v6490_v44 = vunpack.i.l.bf16 %v6489_v6  ;;  %5998 = vmatmul.msk.f32.gmra.mxu3 %vm2096_vm11, %v9448_v41  ;;  %v6515_v6 = vunpack.i.l.bf16 %v6514_v36 }
 0x3c0   :  { %v1972_v17 = vsel %vm1172_vm5, %v6435_v22, %v6491_v49  ;;  %v1971_v11 = vsel %vm1172_vm5, %v6491_v49, %v6436_v37  ;;  %v1970_v51 = vsel %vm1172_vm5, %v6436_v37, %v6490_v44  ;;  %v1985_v0 = vsel %vm1172_vm5, %v6490_v44, %v16035_v1 }
 0x3c1   :  { %2388 = vmatpush.msrb.mxu0 %v1972_v17  ;;  %2411 = vmatpush.msrb.mxu1 %v1971_v11  ;;  %v1923_v22 = vsel %vm1068_vm4, %v6496_v19, %v6441_v32  ;;  %v1731_v26 = vsel %vm629_vm0, %v6515_v6, %v6516_v8  ;;  %v1730_v44 = vsel %vm629_vm0, %v6516_v8, %v16040_v23 }
 0x3c2   :  { %2434 = vmatpush.msrb.mxu2 %v1970_v51  ;;  %2457 = vmatpush.msrb.mxu3 %v1985_v0  ;;  %v9925_v9 = vpop.permute.xlu1 %2093 }
 0x3c3   :  { %2389 = vmatpush.msrb.mxu0 %v1924_v42  ;;  %2412 = vmatpush.msrb.mxu1 %v1923_v22 }
 0x3c4   :  { %2435 = vmatpush.msrb.mxu2 %v1922_v56  ;;  %2458 = vmatpush.msrb.mxu3 %v1937_v58 }
 0x3c5   :  { %v6504_v27 = vpop.permute.xlu0 %6503  ;;  %2390 = vmatpush.msrb.mxu0 %v9189_v3  ;;  %2413 = vmatpush.msrb.mxu1 %v9223_v63  ;;  %v6510_v3 = vunpack.i.l.bf16 %v6509_v38  ;;  %v1875_v63 = vsel %vm925_vm3, %v6456_v50, %v6500_v47  ;;  %v9920_v38 = vpop.permute.xlu2 %2088 }
 0x3c6   :  { %v6506_v16 = vunpack.i.h.bf16 %v6504_v27  ;;  %v6505_v21 = vunpack.i.l.bf16 %v6504_v27  ;;  %2436 = vmatpush.msrb.mxu2 %v9192_v61  ;;  %2459 = vmatpush.msrb.mxu3 %v9105_v14 }
 0x3c7   :  { %2391 = vmatpush.msrb.mxu0 %v1877_v12  ;;  %2414 = vmatpush.msrb.mxu1 %v1876_v52  ;;  %v1779_v37 = vsel %vm717_vm1, %v6476_v20, %v6510_v3  ;;  %v1778_v49 = vsel %vm717_vm1, %v6510_v3, %v16039_v48 }
 0x3c8   :  { %2437 = vmatpush.msrb.mxu2 %v1875_v63  ;;  %2460 = vmatpush.msrb.mxu3 %v1874_v59  ;;  %v1829_v14 = vsel %vm821_vm2, %v6465_v57, %v6506_v16  ;;  %v1828_v61 = vsel %vm821_vm2, %v6506_v16, %v6466_v54  ;;  %v1827_v2 = vsel %vm821_vm2, %v6466_v54, %v6505_v21 }
 0x3c9   :  { %2392 = vmatpush.msrb.mxu0 %v1829_v14  ;;  %2415 = vmatpush.msrb.mxu1 %v1828_v61  ;;  %v1826_v19 = vsel %vm821_vm2, %v6505_v21, %v16038_v43  ;;  %v1780_v57 = vsel %vm717_vm1, %v6511_v10, %v6476_v20  ;;  %v2120_v60 = vpop.f32.mrf.mxu0  ;;  %vm4012_vm2 = vcmask 130048  }
 0x3ca   :  { %2438 = vmatpush.msrb.mxu2 %v1827_v2  ;;  %2461 = vmatpush.msrb.mxu3 %v1826_v19  ;;  %v2121_v47 = vadd.f32 %v2120_v60, %v9920_v38 }
 0x3cb   :  { %2393 = vmatpush.msrb.mxu0 %v1781_v18  ;;  %2416 = vmatpush.msrb.mxu1 %v1780_v57 }
 0x3cc   :  { %2439 = vmatpush.msrb.mxu2 %v1779_v37  ;;  %2462 = vmatpush.msrb.mxu3 %v1778_v49  ;;  %v2471_v10 = vmax.f32 %v2121_v47, 0.0 }
 0x3ce   :  { %v1723_v32 = vpop.permute.xlu0 %1722  ;;  %2440 = vmatpush.msrb.mxu2 %v1731_v26  ;;  %2463 = vmatpush.msrb.mxu3 %v1730_v44  ;;  %v9935_v3 = vmul.f32 %v2471_v10, %v16022_v62 }
 0x3cf   :  { %6003 = vmatmul.msk.f32.vlgmr.msrb.gmra.mxu2 %vm2096_vm11, %v9422_v40  ;;  %6005 = vmatmul.msk.f32.vlgmr.msrb.gmra.mxu3 %vm2096_vm11, %v9422_v40  ;;  %v1733_v33 = vsel %vm629_vm0, %v9767_v45, %v1723_v32  ;;  %v1732_v15 = vsel %vm629_vm0, %v1723_v32, %v6515_v6 }
 0x3d0   :  { %2394 = vmatpush.msrb.mxu0 %v1733_v33  ;;  %2417 = vmatpush.msrb.mxu1 %v1732_v15  ;;  %v2571_v18 = vmul.f32 %v9935_v3, %v9935_v3 }
 0x3d1   :  { %5999 = vmatmul.msk.f32.vlgmr.msrb.gmra.mxu0 %vm2096_vm11, %v9422_v40  ;;  %6001 = vmatmul.msk.f32.vlgmr.msrb.gmra.mxu1 %vm2096_vm11, %v9422_v40  ;;  %v2123_v11 = vpop.f32.mrf.mxu0 }
 0x3d2   :  { %v2124_v36 = vadd.f32 %v2123_v11, %v9925_v9 }
 0x3d4   :  { %v2487_v14 = vmax.f32 %v2124_v36, 0.0 }
 0x3d6   :  { %v9952_v49 = vmul.f32 %v2487_v14, %v16022_v62 }
 0x3d7   :  { %6004 = vmatmul.msk.f32.gmra.mxu2 %vm2096_vm11, %v9448_v41  ;;  %6006 = vmatmul.msk.f32.gmra.mxu3 %vm2096_vm11, %v9448_v41  ;;  %v2143_v45 = vpop.f32.mrf.mxu1 }
 0x3d8   :  { %v2144_v42 = vadd.f32 %v2143_v45, %v9920_v38 }
 0x3d9   :  { %6000 = vmatmul.msk.f32.gmra.mxu0 %vm2096_vm11, %v9448_v41  ;;  %6002 = vmatmul.msk.f32.gmra.mxu1 %vm2096_vm11, %v9448_v41 }
 0x3da   :  { %v2472_v41 = vmax.f32 %v2144_v42, 0.0 }
 0x3dc   :  { %v9931_v16 = vmul.f32 %v2472_v41, %v16023_v35 }
 0x3de   :  { %v2166_v17 = vpop.f32.mrf.mxu2  ;;  %v2189_v51 = vpop.f32.mrf.mxu3  ;;  %v2572_v2 = vmul.f32 %v9931_v16, %v9931_v16  ;;  %v2535_v26 = vadd.f32 %v9931_v16, %v9935_v3 }
 0x3df   :  { %v2167_v56 = vadd.f32 %v2166_v17, %v9920_v38  ;;  %v2190_v21 = vadd.f32 %v2189_v51, %v9920_v38 }
 0x3e0   :  { %v2146_v1 = vpop.f32.mrf.mxu1  ;;  %v2603_v32 = vadd.f32 %v2572_v2, %v2571_v18 }
 0x3e1   :  { %v2147_v50 = vadd.f32 %v2146_v1, %v9925_v9  ;;  %v2473_v27 = vmax.f32 %v2167_v56, 0.0  ;;  %v2474_v8 = vmax.f32 %v2190_v21, 0.0 }
 0x3e3   :  { %v2488_v52 = vmax.f32 %v2147_v50, 0.0  ;;  %v9938_v63 = vmul.f32 %v2473_v27, %v16020_v55  ;;  %v9961_v33 = vmul.f32 %v2474_v8, %v16021_v30 }
 0x3e5   :  { %v9944_v6 = vmul.f32 %v2488_v52, %v16023_v35  ;;  %v2573_v57 = vmul.f32 %v9938_v63, %v9938_v63  ;;  %v2536_v51 = vadd.f32 %v2535_v26, %v9938_v63  ;;  %v2574_v47 = vmul.f32 %v9961_v33, %v9961_v33 }
 0x3e6   :  { %v2169_v40 = vpop.f32.mrf.mxu2 }
 0x3e7   :  { %v2192_v31 = vpop.f32.mrf.mxu3  ;;  %v2170_v54 = vadd.f32 %v2169_v40, %v9925_v9  ;;  %v2588_v17 = vmul.f32 %v9944_v6, %v9944_v6  ;;  %v2604_v1 = vadd.f32 %v2603_v32, %v2573_v57  ;;  %v2552_v56 = vadd.f32 %v9944_v6, %v9952_v49 }
 0x3e8   :  { %v2193_v43 = vadd.f32 %v2192_v31, %v9925_v9  ;;  %v2587_v31 = vmul.f32 %v9952_v49, %v9952_v49  ;;  %v2537_v36 = vadd.f32 %v2536_v51, %v9961_v33 }
 0x3e9   :  { %v2489_v61 = vmax.f32 %v2170_v54, 0.0  ;;  %v2605_v54 = vadd.f32 %v2604_v1, %v2574_v47 }
 0x3ea   :  { %v2490_v11 = vmax.f32 %v2193_v43, 0.0  ;;  %v2620_v50 = vadd.f32 %v2588_v17, %v2587_v31 }
 0x3eb   :  { %v9957_v23 = vmul.f32 %v2489_v61, %v16020_v55 }
 0x3ed   :  { %v2589_v42 = vmul.f32 %v9957_v23, %v9957_v23  ;;  %v2553_v14 = vadd.f32 %v2552_v56, %v9957_v23 }
 0x3ef   :  { %v2621_v61 = vadd.f32 %v2620_v50, %v2589_v42 }
 0x407   :  { %v2212_v0 = vpop.f32.mrf.mxu0 }
 0x408   :  { %v2235_v22 = vpop.f32.mrf.mxu1  ;;  %v2213_v5 = vadd.f32 %v2212_v0, %v9920_v38 }
 0x409   :  { %v2236_v44 = vadd.f32 %v2235_v22, %v9920_v38 }
 0x40a   :  { %v2475_v37 = vmax.f32 %v2213_v5, 0.0 }
 0x40b   :  { %v2476_v22 = vmax.f32 %v2236_v44, 0.0 }
 0x40c   :  { %v9969_v0 = vmul.f32 %v2475_v37, %v16019_v46 }
 0x40d   :  { %v9990_v2 = vmul.f32 %v2476_v22, %v8607_v39 }
 0x40e   :  { %v2258_v58 = vpop.f32.mrf.mxu2  ;;  %v2575_v21 = vmul.f32 %v9969_v0, %v9969_v0 }
 0x40f   :  { %v2215_v20 = vpop.f32.mrf.mxu0  ;;  %v2259_v15 = vadd.f32 %v2258_v58, %v9920_v38 }
 0x410   :  { %v2238_v59 = vpop.f32.mrf.mxu1  ;;  %v2216_v60 = vadd.f32 %v2215_v20, %v9925_v9  ;;  %v9980_v20 = vmul.f32 %v2490_v11, %v16021_v30  ;;  %v2606_v32 = vadd.f32 %v2605_v54, %v2575_v21  ;;  %v2576_v11 = vmul.f32 %v9990_v2, %v9990_v2 }
 0x411   :  { %v2477_v41 = vmax.f32 %v2259_v15, 0.0  ;;  %v2239_v10 = vadd.f32 %v2238_v59, %v9925_v9 }
 0x412   :  { %v2491_v58 = vmax.f32 %v2216_v60, 0.0  ;;  %v2554_v60 = vadd.f32 %v2553_v14, %v9980_v20  ;;  %v2607_v50 = vadd.f32 %v2606_v32, %v2576_v11 }
 0x413   :  { %v9995_v43 = vmul.f32 %v2477_v41, %v8647_v29  ;;  %v2492_v26 = vmax.f32 %v2239_v10, 0.0 }
 0x414   :  { %v9998_v18 = vmul.f32 %v2491_v58, %v16019_v46 }
 0x415   :  { %v2281_v12 = vpop.f32.mrf.mxu3  ;;  %v10013_v47 = vmul.f32 %v2492_v26, %v8607_v39 }
 0x416   :  { %v2261_v48 = vpop.f32.mrf.mxu2  ;;  %v2282_v27 = vadd.f32 %v2281_v12, %v9920_v38  ;;  %v2538_v12 = vadd.f32 %v2537_v36, %v9969_v0  ;;  %v2591_v31 = vmul.f32 %v9998_v18, %v9998_v18  ;;  %v2555_v10 = vadd.f32 %v2554_v60, %v9998_v18 }
 0x417   :  { %v2262_v52 = vadd.f32 %v2261_v48, %v9925_v9  ;;  %v2590_v48 = vmul.f32 %v9980_v20, %v9980_v20 }
 0x418   :  { %v2478_v44 = vmax.f32 %v2282_v27, 0.0  ;;  %v2539_v1 = vadd.f32 %v2538_v12, %v9990_v2  ;;  %v2556_v26 = vadd.f32 %v2555_v10, %v10013_v47 }
 0x419   :  { %v2493_v15 = vmax.f32 %v2262_v52, 0.0  ;;  %v2622_v17 = vadd.f32 %v2621_v61, %v2590_v48 }
 0x41a   :  { %v10016_v56 = vmul.f32 %v2478_v44, %v8655_v53  ;;  %v2540_v14 = vadd.f32 %v2539_v1, %v9995_v43 }
 0x41b   :  { %v10022_v27 = vmul.f32 %v2493_v15, %v8647_v29 }
 0x41c   :  { %v2578_v12 = vmul.f32 %v10016_v56, %v10016_v56  ;;  %v2541_v44 = vadd.f32 %v2540_v14, %v10016_v56 }
 0x41d   :  { %v2284_v45 = vpop.f32.mrf.mxu3  ;;  %v2557_v1 = vadd.f32 %v2556_v26, %v10022_v27 }
 0x41e   :  { %v2285_v57 = vadd.f32 %v2284_v45, %v9925_v9  ;;  %v2577_v45 = vmul.f32 %v9995_v43, %v9995_v43 }
 0x420   :  { %v2494_v42 = vmax.f32 %v2285_v57, 0.0  ;;  %v2608_v61 = vadd.f32 %v2607_v50, %v2577_v45 }
 0x42b   :  { %v2304_v19 = vpop.f32.mrf.mxu0 }
 0x42c   :  { %v2327_v40 = vpop.f32.mrf.mxu1  ;;  %v2305_v8 = vadd.f32 %v2304_v19, %v9920_v38 }
 0x42d   :  { %v2328_v41 = vadd.f32 %v2327_v40, %v9920_v38  ;;  %v2623_v40 = vadd.f32 %v2622_v17, %v2591_v31 }
 0x42e   :  { %v2479_v51 = vmax.f32 %v2305_v8, 0.0 }
 0x42f   :  { %v2480_v57 = vmax.f32 %v2328_v41, 0.0 }
 0x430   :  { %v10025_v54 = vmul.f32 %v2479_v51, %v8755_v34 }
 0x432   :  { %v2350_v5 = vpop.f32.mrf.mxu2  ;;  %v2542_v31 = vadd.f32 %v2541_v44, %v10025_v54 }
 0x433   :  { %v2307_v59 = vpop.f32.mrf.mxu0  ;;  %v2351_v58 = vadd.f32 %v2350_v5, %v9920_v38  ;;  %v10031_v5 = vmul.f32 %v2494_v42, %v8655_v53  ;;  %v2609_v42 = vadd.f32 %v2608_v61, %v2578_v12 }
 0x434   :  { %v2308_v19 = vadd.f32 %v2307_v59, %v9925_v9  ;;  %v2330_v22 = vpop.f32.mrf.mxu1  ;;  %v2592_v59 = vmul.f32 %v10013_v47, %v10013_v47 }
 0x435   :  { %v2331_v21 = vadd.f32 %v2330_v22, %v9925_v9  ;;  %v2481_v48 = vmax.f32 %v2351_v58, 0.0  ;;  %v2594_v45 = vmul.f32 %v10031_v5, %v10031_v5  ;;  %v10052_v22 = vmul.f32 %v2480_v57, %v8833_v28 }
 0x436   :  { %v2495_v36 = vmax.f32 %v2308_v19, 0.0  ;;  %v2579_v19 = vmul.f32 %v10025_v54, %v10025_v54  ;;  %v2624_v51 = vadd.f32 %v2623_v40, %v2592_v59  ;;  %v2558_v10 = vadd.f32 %v2557_v1, %v10031_v5 }
 0x437   :  { %v2496_v60 = vmax.f32 %v2331_v21, 0.0  ;;  %v10055_v41 = vmul.f32 %v2481_v48, %v8841_v24  ;;  %v2543_v12 = vadd.f32 %v2542_v31, %v10052_v22  ;;  %v2580_v26 = vmul.f32 %v10052_v22, %v10052_v22 }
 0x438   :  { %v10042_v32 = vmul.f32 %v2495_v36, %v8755_v34  ;;  %v2610_v21 = vadd.f32 %v2609_v42, %v2579_v19 }
 0x439   :  { %v2373_v37 = vpop.f32.mrf.mxu3  ;;  %v2544_v19 = vadd.f32 %v2543_v12, %v10055_v41 }
 0x43a   :  { %v2374_v52 = vadd.f32 %v2373_v37, %v9920_v38  ;;  %v2353_v8 = vpop.f32.mrf.mxu2  ;;  %v2593_v37 = vmul.f32 %v10022_v27, %v10022_v27  ;;  %v2595_v36 = vmul.f32 %v10042_v32, %v10042_v32  ;;  %v2559_v44 = vadd.f32 %v2558_v10, %v10042_v32 }
 0x43b   :  { %v2354_v17 = vadd.f32 %v2353_v8, %v9925_v9 }
 0x43c   :  { %v2482_v11 = vmax.f32 %v2374_v52, 0.0  ;;  %v2625_v50 = vadd.f32 %v2624_v51, %v2593_v37  ;;  %v10062_v52 = vmul.f32 %v2496_v60, %v8833_v28  ;;  %v2581_v37 = vmul.f32 %v10055_v41, %v10055_v41 }
 0x43d   :  { %v2497_v14 = vmax.f32 %v2354_v17, 0.0  ;;  %v2611_v51 = vadd.f32 %v2610_v21, %v2580_v26 }
 0x43e   :  { %v10065_v61 = vmul.f32 %v2482_v11, %v8887_v4  ;;  %v2626_v59 = vadd.f32 %v2625_v50, %v2594_v45  ;;  %v2596_v1 = vmul.f32 %v10062_v52, %v10062_v52 }
 0x43f   :  { %v10079_v45 = vmul.f32 %v2497_v14, %v8841_v24 }
 0x440   :  { %v2627_v60 = vadd.f32 %v2626_v59, %v2595_v36  ;;  %v2582_v31 = vmul.f32 %v10065_v61, %v10065_v61  ;;  %v2545_v10 = vadd.f32 %v2544_v19, %v10065_v61 }
 0x441   :  { %v2376_v15 = vpop.f32.mrf.mxu3 }
 0x442   :  { %v2377_v58 = vadd.f32 %v2376_v15, %v9925_v9  ;;  %v2628_v12 = vadd.f32 %v2627_v60, %v2596_v1 }
 0x444   :  { %v2498_v15 = vmax.f32 %v2377_v58, 0.0 }
 0x446   :  { %v10091_v14 = vmul.f32 %v2498_v15, %v8887_v4 }
 0x44e   :  { %v2396_v40 = vpop.f32.mrf.mxu0  ;;  %v2419_v8 = vpop.f32.mrf.mxu1 }
 0x44f   :  { %v2397_v57 = vadd.f32 %v2396_v40, %v9920_v38  ;;  %v2420_v48 = vadd.f32 %v2419_v8, %v9920_v38  ;;  %v2612_v40 = vadd.f32 %v2611_v51, %v2581_v37  ;;  %v2560_v8 = vadd.f32 %v2559_v44, %v10062_v52  ;;  %v16041_v51 = vld [vmem:[#allocation47_spill] sm:$0xff] }
 0x451   :  { %v2483_v17 = vmax.f32 %v2397_v57, 0.0  ;;  %v2484_v11 = vmax.f32 %v2420_v48, 0.0  ;;  %v2561_v19 = vadd.f32 %v2560_v8, %v10079_v45  ;;  %v2613_v37 = vadd.f32 %v2612_v40, %v2582_v31 }
 0x452   :  { %v2442_v42 = vpop.f32.mrf.mxu2  ;;  %v2465_v50 = vpop.f32.mrf.mxu3 }
 0x453   :  { %v10085_v58 = vmul.f32 %v2483_v17, %v8925_v25  ;;  %v2443_v36 = vadd.f32 %v2442_v42, %v9920_v38  ;;  %v2466_v21 = vadd.f32 %v2465_v50, %v9920_v38  ;;  %v10094_v59 = vmul.f32 %v2484_v11, %v8928_v13 }
 0x454   :  { %v2597_v38 = vmul.f32 %v10079_v45, %v10079_v45  ;;  %v2598_v50 = vmul.f32 %v10091_v14, %v10091_v14 }
 0x455   :  { %v2546_v57 = vadd.f32 %v2545_v10, %v10085_v58  ;;  %v2583_v48 = vmul.f32 %v10085_v58, %v10085_v58  ;;  %v2485_v26 = vmax.f32 %v2443_v36, 0.0  ;;  %v2486_v44 = vmax.f32 %v2466_v21, 0.0  ;;  %v16042_v36 = vld [vmem:[#allocation53_spill] sm:$0xff] }
 0x456   :  { %v2399_v17 = vpop.f32.mrf.mxu0  ;;  %v2422_v15 = vpop.f32.mrf.mxu1  ;;  %v2584_v10 = vmul.f32 %v10094_v59, %v10094_v59 }
 0x457   :  { %v10103_v42 = vmul.f32 %v2485_v26, %v16041_v51  ;;  %v2400_v60 = vadd.f32 %v2399_v17, %v9925_v9  ;;  %v2423_v11 = vadd.f32 %v2422_v15, %v9925_v9  ;;  %v2547_v1 = vadd.f32 %v2546_v57, %v10094_v59 }
 0x458   :  { %v10113_v31 = vmul.f32 %v2486_v44, %v16042_v36  ;;  %v2614_v21 = vadd.f32 %v2613_v37, %v2583_v48  ;;  %v2629_v15 = vadd.f32 %v2628_v12, %v2597_v38  ;;  %v2562_v57 = vadd.f32 %v2561_v19, %v10091_v14 }
 0x459   :  { %v2499_v40 = vmax.f32 %v2400_v60, 0.0  ;;  %v2500_v8 = vmax.f32 %v2423_v11, 0.0  ;;  %v2548_v26 = vadd.f32 %v2547_v1, %v10103_v42  ;;  %v2585_v17 = vmul.f32 %v10103_v42, %v10103_v42 }
 0x45a   :  { %v2445_v7 = vpop.f32.mrf.mxu2  ;;  %v2468_v28 = vpop.f32.mrf.mxu3  ;;  %v2615_v4 = vadd.f32 %v2614_v21, %v2584_v10  ;;  %v2586_v12 = vmul.f32 %v10113_v31, %v10113_v31  ;;  %v2630_v19 = vadd.f32 %v2629_v15, %v2598_v50 }
 0x45b   :  { %v10120_v24 = vmul.f32 %v2499_v40, %v8925_v25  ;;  %v10123_v44 = vmul.f32 %v2500_v8, %v8928_v13  ;;  %v2446_v48 = vadd.f32 %v2445_v7, %v9925_v9  ;;  %v2469_v37 = vadd.f32 %v2468_v28, %v9925_v9 }
 0x45c   :  { %v2549_v60 = vadd.f32 %v2548_v26, %v10113_v31  ;;  %v2616_v38 = vadd.f32 %v2615_v4, %v2585_v17 }
 0x45d   :  { %v2563_v11 = vadd.f32 %v2562_v57, %v10120_v24  ;;  %v2599_v1 = vmul.f32 %v10120_v24, %v10120_v24  ;;  %v2501_v10 = vmax.f32 %v2446_v48, 0.0  ;;  %v2502_v21 = vmax.f32 %v2469_v37, 0.0 }
 0x45e   :  { %2550 = vadd.xlane.f32.xlu0 %v2549_v60  ;;  %v2617_v40 = vadd.f32 %v2616_v38, %v2586_v12  ;;  %v2600_v7 = vmul.f32 %v10123_v44, %v10123_v44  ;;  %v6010_v60 = vld [vmem:[%s16024_s12 + $0x28] sm:$0xff]  ;;  %v10151_v12 = vpop.permute.xlu0 %2741  ;;  %v10153_v38 = vpop.permute.xlu2 %2736 }
 0x45f   :  { %v10136_v28 = vmul.f32 %v2501_v10, %v16041_v51  ;;  %v2564_v9 = vadd.f32 %v2563_v11, %v10123_v44  ;;  %v2631_v8 = vadd.f32 %v2630_v19, %v2599_v1  ;;  %v10140_v4 = vmul.f32 %v2502_v21, %v16042_v36  ;;  %v10155_v19 = vpop.permute.xlu1 %2781 }
 0x460   :  { %2618 = vadd.xlane.f32.xlu2 %v2617_v40 }
 0x461   :  { %v2565_v50 = vadd.f32 %v2564_v9, %v10136_v28  ;;  %v2601_v26 = vmul.f32 %v10136_v28, %v10136_v28  ;;  %v2632_v17 = vadd.f32 %v2631_v8, %v2600_v7  ;;  %v2602_v57 = vmul.f32 %v10140_v4, %v10140_v4 }
 0x463   :  { %v2566_v15 = vadd.f32 %v2565_v50, %v10140_v4  ;;  %v2633_v48 = vadd.f32 %v2632_v17, %v2601_v26 }
 0x465   :  { %2567 = vadd.xlane.f32.xlu1 %v2566_v15  ;;  %v2634_v37 = vadd.f32 %v2633_v48, %v2602_v57 }
 0x467   :  { %2635 = vadd.xlane.f32.xlu0 %v2634_v37 }
 0x478   :  { %2786 = vperm.xlu2 %6199, %v6010_v60  }
 0x4d1   :  { %v2551_v11 = vpop.xlane.xlu0 %2550 }
 0x4d2   :  { %v10157_v1 = vmul.f32 0.0006377551, %v2551_v11 }
 0x4d3   :  { %v2619_v10 = vpop.xlane.xlu2 %2618 }
 0x4d4   :  { %v2637_v21 = vmul.f32 0.0006377551, %v2619_v10  ;;  %v2639_v40 = vmul.f32 %v10157_v1, %v10157_v1 }
 0x4d6   :  { %v2641_v7 = vsub.f32 %v2637_v21, %v2639_v40 }
 0x4d8   :  { %v2643_v9 = vmax.f32 %v2641_v7, 0.0  ;;  %v2568_v8 = vpop.xlane.xlu1 %2567 }
 0x4d9   :  { %v10161_v50 = vmul.f32 0.0006377551, %v2568_v8  ;;  %v2648_v8 = vsub.f32 %v9961_v33, %v10157_v1 }
 0x4da   :  { %v2677_v26 = vadd.f32 1e-05, %v2643_v9  ;;  %v2636_v17 = vpop.xlane.xlu0 %2635  ;;  %v2647_v9 = vsub.f32 %v9938_v63, %v10157_v1 }
 0x4db   :  { %v2640_v15 = vmul.f32 %v10161_v50, %v10161_v50  ;;  %v2638_v57 = vmul.f32 0.0006377551, %v2636_v17  ;;  %v2645_v17 = vsub.f32 %v9935_v3, %v10157_v1 }
 0x4dc   :  { %7209 = vrsqrt.f32 %v2677_v26  ;;  %vm2685_vm13 = vweird.f32 %v2677_v26 }
 0x4dd   :  { %v2642_v48 = vsub.f32 %v2638_v57, %v2640_v15 }
 0x4df   :  { %v2644_v37 = vmax.f32 %v2642_v48, 0.0 }
 0x4e1   :  { %v2678_v60 = vadd.f32 1e-05, %v2644_v37 }
 0x4e2   :  { %v7210_v11 = vpop.eup %7209 }
 0x4e3   :  { %v2680_v10 = vmul.f32 %v7210_v11, %v2677_v26  ;;  %7211 = vrsqrt.f32 %v2678_v60  ;;  %vm2686_vm12 = vweird.f32 %v7210_v11  ;;  %vm2695_vm0 = vweird.f32 %v2678_v60 }
 0x4e4   :  { %vm2687_vm14 = vmor %vm2685_vm13, %vm2686_vm12 }
 0x4e5   :  { %v2681_v13 = vmul.f32 %v7210_v11, %v2680_v10 }
 0x4e7   :  { %v2682_v36 = vmul.f32 0.5, %v2681_v13  ;;  %v2646_v13 = vsub.f32 %v9931_v16, %v10157_v1  ;;  %v2651_v16 = vsub.f32 %v9995_v43, %v10157_v1 }
 0x4e9   :  { %v2683_v21 = vsub.f32 1.5, %v2682_v36  ;;  %v7212_v40 = vpop.eup %7211 }
 0x4ea   :  { %v2690_v57 = vmul.f32 %v7212_v40, %v2678_v60  ;;  %vm2696_vm15 = vweird.f32 %v7212_v40  ;;  %v2663_v60 = vsub.f32 %v9957_v23, %v10161_v50 }
 0x4eb   :  { %v2684_v7 = vmul.f32 %v7210_v11, %v2683_v21  ;;  %v2652_v21 = vsub.f32 %v10016_v56, %v10157_v1  ;;  %vm2697_vm1 = vmor %vm2695_vm0, %vm2696_vm15 }
 0x4ed   :  { %v10171_v15 = vsel %vm2687_vm14, %v7210_v11, %v2684_v7  ;;  %v2691_v11 = vmul.f32 %v7212_v40, %v2690_v57 }
 0x4ee   :  { %v2701_v36 = vmul.f32 %v10171_v15, %v2647_v9  ;;  %v2702_v26 = vmul.f32 %v10171_v15, %v2648_v8  ;;  %v2699_v48 = vmul.f32 %v10171_v15, %v2645_v17  ;;  %v2700_v63 = vmul.f32 %v10171_v15, %v2646_v13 }
 0x4ef   :  { %v2705_v17 = vmul.f32 %v10171_v15, %v2651_v16  ;;  %v2706_v13 = vmul.f32 %v10171_v15, %v2652_v21  ;;  %v2653_v21 = vsub.f32 %v10025_v54, %v10157_v1 }
 0x4f0   :  { %v2746_v37 = vmul.f32 %v10153_v38, %v2701_v36  ;;  %v2747_v33 = vmul.f32 %v10153_v38, %v2702_v26  ;;  %v2744_v3 = vmul.f32 %v10153_v38, %v2699_v48  ;;  %v2745_v10 = vmul.f32 %v10153_v38, %v2700_v63 }
 0x4f1   :  { %v2692_v26 = vmul.f32 0.5, %v2691_v11 }
 0x4f2   :  { %v2791_v7 = vadd.f32 %v10155_v19, %v2746_v37  ;;  %v2792_v9 = vadd.f32 %v10155_v19, %v2747_v33  ;;  %v2789_v8 = vadd.f32 %v10155_v19, %v2744_v3  ;;  %v2790_v43 = vadd.f32 %v10155_v19, %v2745_v10 }
 0x4f3   :  { %v2750_v37 = vmul.f32 %v10153_v38, %v2705_v17  ;;  %v2751_v33 = vmul.f32 %v10153_v38, %v2706_v13  ;;  %v2693_v11 = vsub.f32 1.5, %v2692_v26  ;;  %v2650_v10 = vsub.f32 %v9990_v2, %v10157_v1 }
 0x4f4   :  { %v10193_v57 = vmul.f32 %v2791_v7, %v16020_v55  ;;  %v10196_v36 = vmul.f32 %v2792_v9, %v16021_v30  ;;  %v10202_v63 = vmul.f32 %v2789_v8, %v16022_v62  ;;  %v10211_v16 = vmul.f32 %v2790_v43, %v16023_v35 }
 0x4f5   :  { %v2795_v7 = vadd.f32 %v10155_v19, %v2750_v37  ;;  %v2704_v9 = vmul.f32 %v10171_v15, %v2650_v10  ;;  %v2796_v13 = vadd.f32 %v10155_v19, %v2751_v33  ;;  %v2707_v2 = vmul.f32 %v10171_v15, %v2653_v21 }
 0x4f6   :  { %v15486_v56 = vmax.f32 %v10193_v57, 0.0  ;;  %v15458_v48 = vmax.f32 %v10196_v36, 0.0  ;;  %v15479_v8 = vmax.f32 %v10202_v63, 0.0  ;;  %v15478_v17 = vmax.f32 %v10211_v16, 0.0 }
 0x4f7   :  { %v2694_v43 = vmul.f32 %v7212_v40, %v2693_v11  ;;  %v10227_v26 = vmul.f32 %v2795_v7, %v8647_v29  ;;  %v2749_v54 = vmul.f32 %v10153_v38, %v2704_v9  ;;  %v2752_v33 = vmul.f32 %v10153_v38, %v2707_v2 }
 0x4f8   :  { %v6527_v3 = vpack.i.bf16 %v15458_v48, %v15486_v56  ;;  %v6542_v37 = vpack.i.bf16 %v15478_v17, %v15479_v8  ;;  %v2649_v21 = vsub.f32 %v9969_v0, %v10157_v1  ;;  %v2655_v2 = vsub.f32 %v10055_v41, %v10157_v1  ;;  %v16069_v17 = vld [vmem:[#allocation42_spill] sm:$0xff] }
 0x4f9   :  { %v10238_v10 = vsel %vm2697_vm1, %v7212_v40, %v2694_v43  ;;  %v2794_v11 = vadd.f32 %v10155_v19, %v2749_v54  ;;  %v15457_v7 = vmax.f32 %v10227_v26, 0.0  ;;  %v2797_v40 = vadd.f32 %v10155_v19, %v2752_v33 }
 0x4fa   :  { %6528 = vrot.lane.b32.xlu2 %v6527_v3, %s7313_s24  ;;  %6523 = vrot.lane.b32.xlu1 %v6527_v3, %s7312_s0  ;;  %v2703_v23 = vmul.f32 %v10171_v15, %v2649_v21  ;;  %v2656_v43 = vsub.f32 %v10065_v61, %v10157_v1  ;;  %v10261_v0 = vmul.f32 %v10171_v15, %v2655_v2  ;;  %v10291_v2 = vpop.permute.xlu2 %2786 }
 0x4fb   :  { %6518 = vrot.lane.b32.xlu0 %v6527_v3, %s7310_s25  ;;  %v10235_v3 = vmul.f32 %v2796_v13, %v8655_v53  ;;  %v2717_v13 = vmul.f32 %v10238_v10, %v2663_v60  ;;  %v10258_v54 = vmul.f32 %v2794_v11, %v8607_v39  ;;  %v2657_v33 = vsub.f32 %v10085_v58, %v10157_v1 }
 0x4fc   :  { %v10272_v60 = vmul.f32 %v2797_v40, %v8755_v34  ;;  %v2661_v11 = vsub.f32 %v9952_v49, %v10161_v50  ;;  %v2664_v21 = vsub.f32 %v9980_v20, %v10161_v50  ;;  %v2748_v58 = vmul.f32 %v10153_v38, %v2703_v23 }
 0x4fd   :  { %16043 = vst [vmem:[#allocation46_spill] sm:$0xff] %v10235_v3  ;;  %v15456_v9 = vmax.f32 %v10235_v3, 0.0  ;;  %v2762_v61 = vmul.f32 %v10151_v12, %v2717_v13  ;;  %v10289_v13 = vmul.f32 %v10171_v15, %v2657_v33  ;;  %v2659_v20 = vsub.f32 %v10103_v42, %v10157_v1  ;;  %v11079_v3 = vld [vmem:[%s16049_s29 + $0x190] sm:$0xff] }
 0x4fe   :  { %16044 = vst [vmem:[#allocation48_spill] sm:$0xff] %v10258_v54  ;;  %v2715_v49 = vmul.f32 %v10238_v10, %v2661_v11  ;;  %v15465_v23 = vmax.f32 %v10258_v54, 0.0  ;;  %v2718_v33 = vmul.f32 %v10238_v10, %v2664_v21  ;;  %v2793_v11 = vadd.f32 %v10155_v19, %v2748_v58 }
 0x4ff   :  { %v6552_v41 = vpack.i.bf16 %v15456_v9, %v15457_v7  ;;  %16045 = vst [vmem:[#allocation54_spill] sm:$0xff] %v10272_v60  ;;  %v2807_v9 = vadd.f32 %v10291_v2, %v2762_v61  ;;  %v10304_v7 = vmul.f32 %v10171_v15, %v2659_v20  ;;  %v2665_v48 = vsub.f32 %v9998_v18, %v10161_v50 }
 0x500   :  { %v2760_v42 = vmul.f32 %v10151_v12, %v2715_v49  ;;  %v2671_v61 = vsub.f32 %v10079_v45, %v10161_v50  ;;  %v2763_v58 = vmul.f32 %v10151_v12, %v2718_v33  ;;  %v2672_v49 = vsub.f32 %v10091_v14, %v10161_v50  ;;  %16179 = vst [vmem:[#allocation83_spill] sm:$0xff] %v11079_v3 }
 0x501   :  { %v10322_v20 = vmul.f32 %v2807_v9, %v16020_v55  ;;  %v10333_v18 = vmul.f32 %v2793_v11, %v16019_v46  ;;  %v2719_v55 = vmul.f32 %v10238_v10, %v2665_v48  ;;  %v2670_v9 = vsub.f32 %v10062_v52, %v10161_v50 }
 0x502   :  { %6543 = vrot.lane.b32.xlu1 %v6542_v37, %s7313_s24  ;;  %6538 = vrot.lane.b32.xlu2 %v6542_v37, %s7312_s0  ;;  %v2658_v14 = vsub.f32 %v10094_v59, %v10157_v1  ;;  %v2805_v33 = vadd.f32 %v10291_v2, %v2760_v42  ;;  %v10346_v11 = vmul.f32 %v10238_v10, %v2672_v49 }
 0x503   :  { %6533 = vrot.lane.b32.xlu0 %v6542_v37, %s7310_s25  ;;  %v2654_v37 = vsub.f32 %v10052_v22, %v10157_v1  ;;  %v10280_v22 = vmul.f32 %v10171_v15, %v2656_v43  ;;  %v2660_v43 = vsub.f32 %v10113_v31, %v10157_v1  ;;  %v2662_v31 = vsub.f32 %v9944_v6, %v10161_v50 }
 0x504   :  { %v10328_v6 = vmul.f32 %v10238_v10, %v2671_v61  ;;  %16046 = vst [vmem:[#allocation50_spill] sm:$0xff] %v10333_v18  ;;  %v2808_v61 = vadd.f32 %v10291_v2, %v2763_v58  ;;  %v2673_v48 = vsub.f32 %v10120_v24, %v10161_v50  ;;  %v2674_v52 = vsub.f32 %v10123_v44, %v10161_v50 }
 0x505   :  { %v10286_v40 = vmul.f32 %v10171_v15, %v2654_v37  ;;  %v15461_v37 = vmax.f32 %v10272_v60, 0.0  ;;  %v2716_v45 = vmul.f32 %v10238_v10, %v2662_v31  ;;  %v2675_v31 = vsub.f32 %v10136_v28, %v10161_v50 }
 0x506   :  { %v2676_v59 = vsub.f32 %v10140_v4, %v10161_v50  ;;  %v15463_v1 = vmax.f32 %v10333_v18, 0.0  ;;  %v10360_v58 = vmul.f32 %v10238_v10, %v2670_v9  ;;  %v10363_v24 = vmul.f32 %v10238_v10, %v2673_v48 }
 0x507   :  { %v6567_v21 = vpack.i.bf16 %v15461_v37, %v15465_v23  ;;  %v2761_v42 = vmul.f32 %v10151_v12, %v2716_v45  ;;  %v10366_v28 = vmul.f32 %v10171_v15, %v2658_v14  ;;  %v10369_v44 = vmul.f32 %v10238_v10, %v2675_v31 }
 0x508   :  { %v10372_v4 = vmul.f32 %v10238_v10, %v2674_v52  ;;  %v10379_v45 = vmul.f32 %v2805_v33, %v16022_v62  ;;  %v2668_v9 = vsub.f32 %v10031_v5, %v10161_v50  ;;  %v10391_v14 = vmul.f32 %v10238_v10, %v2676_v59 }
 0x509   :  { %v2806_v62 = vadd.f32 %v10291_v2, %v2761_v42 }
 0x50a   :  { %6553 = vrot.lane.b32.xlu1 %v6552_v41, %s7312_s0  ;;  %6558 = vrot.lane.b32.xlu2 %v6552_v41, %s7313_s24  ;;  %v15467_v33 = vmax.f32 %v10379_v45, 0.0  ;;  %v2722_v48 = vmul.f32 %v10238_v10, %v2668_v9 }
 0x50b   :  { %6548 = vrot.lane.b32.xlu0 %v6552_v41, %s7310_s25  ;;  %v10307_v41 = vmul.f32 %v10171_v15, %v2660_v43  ;;  %v15468_v43 = vmax.f32 %v10322_v20, 0.0  ;;  %v2667_v15 = vsub.f32 %v10022_v27, %v10161_v50  ;;  %v10401_v31 = vmul.f32 %v2806_v62, %v16023_v35 }
 0x50c   :  { %v2767_v42 = vmul.f32 %v10151_v12, %v2722_v48 }
 0x50d   :  { %v6587_v49 = vpack.i.bf16 %v15468_v43, %v15463_v1  ;;  %v15466_v35 = vmax.f32 %v10401_v31, 0.0  ;;  %v10498_v1 = vld [vmem:[%s16049_s29 + $0xf0] sm:$0xff] }
 0x50e   :  { %v2812_v62 = vadd.f32 %v10291_v2, %v2767_v42  ;;  %16060 = vst [vmem:[#allocation59_spill] sm:$0xff] %v10498_v1  ;;  %v15471_v23 = vunpack.c.l.bf16 %v10498_v1  ;;  %v16094_v1 = vld [vmem:[#allocation41_spill] sm:$0xff] }
 0x510   :  { %v10449_v42 = vmul.f32 %v2812_v62, %v8655_v53  ;;  %v10462_v53 = vld [vmem:[%s16049_s29 + $0x168] sm:$0xff] }
 0x511   :  { %16054 = vst [vmem:[#allocation3_spill] sm:$0xff] %v10462_v53  ;;  %v15470_v62 = vunpack.c.l.bf16 %v10462_v53 }
 0x512   :  { %6568 = vrot.lane.b32.xlu1 %v6567_v21, %s7312_s0  ;;  %6573 = vrot.lane.b32.xlu2 %v6567_v21, %s7313_s24  ;;  %16053 = vst [vmem:[#allocation58_spill] sm:$0xff] %v10449_v42 }
 0x513   :  { %6563 = vrot.lane.b32.xlu0 %v6567_v21, %s7310_s25  ;;  %v2764_v21 = vmul.f32 %v10151_v12, %v2719_v55  ;;  %v10382_v55 = vmul.f32 %v2808_v61, %v16021_v30  ;;  %v2721_v30 = vmul.f32 %v10238_v10, %v2667_v15 }
 0x515   :  { %16047 = vst [vmem:[#allocation49_spill] sm:$0xff] %v10382_v55  ;;  %v15464_v27 = vmax.f32 %v10382_v55, 0.0  ;;  %v2809_v61 = vadd.f32 %v10291_v2, %v2764_v21  ;;  %v2766_v5 = vmul.f32 %v10151_v12, %v2721_v30  ;;  %v2666_v21 = vsub.f32 %v10013_v47, %v10161_v50  ;;  %v10426_v47 = vld [vmem:[%s16049_s29 + $0x178] sm:$0xff] }
 0x516   :  { %16050 = vst [vmem:[#allocation55_spill] sm:$0xff] %v10426_v47  ;;  %v15460_v30 = vunpack.c.l.bf16 %v10426_v47 }
 0x517   :  { %v6602_v52 = vpack.i.bf16 %v15467_v33, %v15464_v27  ;;  %v10409_v59 = vmul.f32 %v2809_v61, %v16019_v46  ;;  %v2811_v15 = vadd.f32 %v10291_v2, %v2766_v5  ;;  %v2720_v46 = vmul.f32 %v10238_v10, %v2666_v21 }
 0x518   :  { %3315 = vmatpush.msra.mxu2 %v15460_v30  ;;  %v10491_v30 = vld [vmem:[%s16049_s29 + $0x70] sm:$0xff]  ;;  %v2754_v27 = vmul.f32 %v10153_v38, %v10261_v0  ;;  %v2755_v0 = vmul.f32 %v10153_v38, %v10280_v22 }
 0x519   :  { %16048 = vst [vmem:[#allocation51_spill] sm:$0xff] %v10409_v59  ;;  %v2765_v48 = vmul.f32 %v10151_v12, %v2720_v46  ;;  %v10472_v46 = vld [vmem:[%s16049_s29 + $0x78] sm:$0xff] }
 0x51a   :  { %6588 = vrot.lane.b32.xlu2 %v6587_v49, %s7313_s24  ;;  %6578 = vrot.lane.b32.xlu1 %v6587_v49, %s7310_s25  ;;  %16056 = vst [vmem:[#allocation8_spill] sm:$0xff] %v10472_v46 }
 0x51b   :  { %6583 = vrot.lane.b32.xlu0 %v6587_v49, %s7312_s0  ;;  %v2669_v49 = vsub.f32 %v10042_v32, %v10161_v50  ;;  %v10431_v32 = vld [vmem:[%s16049_s29 + $0x170] sm:$0xff]  ;;  %v15462_v50 = vmax.f32 %v10409_v59, 0.0  ;;  %v2810_v21 = vadd.f32 %v10291_v2, %v2765_v48  ;;  %16059 = vst [vmem:[#allocation13_spill] sm:$0xff] %v10491_v30  ;;  %v10995_v59 = vld [vmem:[%s16049_s29 + $0x88] sm:$0xff] }
 0x51c   :  { %16051 = vst [vmem:[#allocation57_spill] sm:$0xff] %v10431_v32  ;;  %v15459_v61 = vunpack.c.l.bf16 %v10431_v32 }
 0x51d   :  { %v2723_v9 = vmul.f32 %v10238_v10, %v2669_v49  ;;  %v10440_v10 = vmul.f32 %v2811_v15, %v8647_v29  ;;  %v10467_v15 = vld [vmem:[%s16049_s29 + $0x160] sm:$0xff]  ;;  %v10513_v33 = vmul.f32 %v2810_v21, %v8607_v39  ;;  %v2799_v21 = vadd.f32 %v10155_v19, %v2754_v27 }
 0x51e   :  { %3316 = vmatpush.msra.mxu2 %v15459_v61  ;;  %16055 = vst [vmem:[#allocation60_spill] sm:$0xff] %v10467_v15  ;;  %v15475_v48 = vunpack.c.l.bf16 %v10467_v15  ;;  %v10486_v61 = vld [vmem:[%s16049_s29 + $0x158] sm:$0xff] }
 0x51f   :  { %16052 = vst [vmem:[#allocation56_spill] sm:$0xff] %v10440_v10  ;;  %v2768_v5 = vmul.f32 %v10151_v12, %v2723_v9  ;;  %v15477_v29 = vmax.f32 %v10440_v10, 0.0  ;;  %v15476_v9 = vmax.f32 %v10449_v42, 0.0 }
 0x520   :  { %16058 = vst [vmem:[#allocation16_spill] sm:$0xff] %v10486_v61  ;;  %3317 = vmatpush.msra.mxu2 %v15470_v62 }
 0x521   :  { %v2813_v49 = vadd.f32 %v10291_v2, %v2768_v5  ;;  %v15469_v5 = vunpack.c.l.bf16 %v10472_v46  ;;  %16062 = vst [vmem:[#allocation10_spill] sm:$0xff] %v10513_v33  ;;  %v6632_v62 = vpack.i.bf16 %v15476_v9, %v15477_v29  ;;  %v16067_v9 = vld [vmem:[#allocation45_spill] sm:$0xff] }
 0x522   :  { %6603 = vrot.lane.b32.xlu2 %v6602_v52, %s7313_s24  ;;  %6598 = vrot.lane.b32.xlu1 %v6602_v52, %s7312_s0  ;;  %v10574_v29 = vmul.f32 %v2799_v21, %v16067_v9  ;;  %v10596_v21 = vld [vmem:[%s16049_s29 + $0x140] sm:$0xff] }
 0x523   :  { %6593 = vrot.lane.b32.xlu0 %v6602_v52, %s7310_s25  ;;  %v6617_v52 = vpack.i.bf16 %v15462_v50, %v15466_v35  ;;  %v15472_v50 = vunpack.c.l.bf16 %v10491_v30  ;;  %3269 = vmatpush.msra.mxu0 %v15469_v5  ;;  %v10510_v35 = vld [vmem:[%s16049_s29 + $0x150] sm:$0xff]  ;;  %v10516_v43 = vmul.f32 %v2813_v49, %v8755_v34  ;;  %v15473_v5 = vunpack.c.l.bf16 %v10486_v61  ;;  %16073 = vst [vmem:[#allocation27_spill] sm:$0xff] %v10596_v21  ;;  %v10657_v30 = vld [vmem:[%s16049_s29 + $0x1e8] sm:$0xff] }
 0x524   :  { %16061 = vst [vmem:[#allocation30_spill] sm:$0xff] %v10510_v35  ;;  %3318 = vmatpush.msra.mxu2 %v15475_v48  ;;  %v15484_v39 = vunpack.c.l.bf16 %v10510_v35  ;;  %v15485_v34 = vmax.f32 %v10513_v33, 0.0  ;;  %v2800_v49 = vadd.f32 %v10155_v19, %v2755_v0  ;;  %v16086_v56 = vunpack.c.l.bf16 %v10596_v21  ;;  %v10675_v61 = vld [vmem:[%s16049_s29 + $0xc8] sm:$0xff]  ;;  %v11016_v33 = vld [vmem:[%s16049_s29] sm:$0xff] }
 0x525   :  { %16063 = vst [vmem:[#allocation28_spill] sm:$0xff] %v10516_v43  ;;  %3270 = vmatpush.msra.mxu0 %v15472_v50  ;;  %v15481_v22 = vmax.f32 %v10516_v43, 0.0  ;;  %v10556_v50 = vld [vmem:[%s16049_s29 + $0x148] sm:$0xff]  ;;  %v10631_v43 = vld [vmem:[%s16049_s29 + $0x50] sm:$0xff] }
 0x526   :  { %3319 = vmatpush.msra.mxu2 %v15473_v5  ;;  %16066 = vst [vmem:[#allocation14_spill] sm:$0xff] %v10556_v50  ;;  %v15482_v5 = vunpack.c.l.bf16 %v10556_v50  ;;  %v10577_v8 = vmul.f32 %v2800_v49, %v16069_v17  ;;  %v10640_v50 = vld [vmem:[%s16049_s29 + $0xd0] sm:$0xff] }
 0x527   :  { %v6647_v48 = vpack.i.bf16 %v15481_v22, %v15485_v34  ;;  %16068 = vst [vmem:[#allocation18_spill] sm:$0xff] %v10574_v29  ;;  %v10591_v22 = vld [vmem:[%s16049_s29 + $0xe0] sm:$0xff]  ;;  %v10614_v34 = vld [vmem:[%s16049_s29 + $0xd8] sm:$0xff] }
 0x528   :  { %3320 = vmatpush.msra.mxu2 %v15484_v39  ;;  %16070 = vst [vmem:[#allocation61_spill] sm:$0xff] %v10577_v8  ;;  %v10609_v39 = vld [vmem:[%s16049_s29 + $0x58] sm:$0xff] }
 0x529   :  { %16072 = vst [vmem:[#allocation21_spill] sm:$0xff] %v10591_v22 }
 0x52a   :  { %6618 = vrot.lane.b32.xlu2 %v6617_v52, %s7313_s24  ;;  %6613 = vrot.lane.b32.xlu1 %v6617_v52, %s7312_s0  ;;  %16075 = vst [vmem:[#allocation25_spill] sm:$0xff] %v10609_v39 }
 0x52b   :  { %6608 = vrot.lane.b32.xlu0 %v6617_v52, %s7310_s25  ;;  %v10481_v52 = vld [vmem:[%s16049_s29 + $0xf8] sm:$0xff]  ;;  %3321 = vmatpush.msra.mxu2 %v15482_v5  ;;  %16076 = vst [vmem:[#allocation38_spill] sm:$0xff] %v10614_v34 }
 0x52c   :  { %16057 = vst [vmem:[#allocation5_spill] sm:$0xff] %v10481_v52  ;;  %v15474_v37 = vunpack.c.l.bf16 %v10481_v52  ;;  %v10621_v5 = vld [vmem:[%s16049_s29 + $0x138] sm:$0xff] }
 0x52d   :  { %16077 = vst [vmem:[#allocation6_spill] sm:$0xff] %v10621_v5  ;;  %3322 = vmatpush.msra.mxu2 %v16086_v56  ;;  %v10686_v56 = vld [vmem:[%s16049_s29 + $0x128] sm:$0xff] }
 0x52e   :  { %3292 = vmatpush.msra.mxu1 %v15474_v37  ;;  %v2753_v37 = vmul.f32 %v10153_v38, %v10286_v40  ;;  %v2756_v40 = vmul.f32 %v10153_v38, %v10289_v13  ;;  %v10626_v13 = vld [vmem:[%s16049_s29 + $0x1f0] sm:$0xff]  ;;  %16079 = vst [vmem:[#allocation11_spill] sm:$0xff] %v10631_v43 }
 0x52f   :  { %16078 = vst [vmem:[#allocation7_spill] sm:$0xff] %v10626_v13  ;;  %v16097_v21 = vunpack.c.l.bf16 %v10626_v13  ;;  %v10761_v13 = vld [vmem:[%s16049_s29 + $0x118] sm:$0xff] }
 0x530   :  { %3293 = vmatpush.msra.mxu1 %v15471_v23  ;;  %v10546_v23 = vld [vmem:[%s16049_s29 + $0x68] sm:$0xff]  ;;  %16080 = vst [vmem:[#allocation40_spill] sm:$0xff] %v10640_v50  ;;  %v2801_v35 = vadd.f32 %v10155_v19, %v2756_v40  ;;  %v16089_v40 = vunpack.c.l.bf16 %v10609_v39 }
 0x531   :  { %16064 = vst [vmem:[#allocation15_spill] sm:$0xff] %v10546_v23  ;;  %v15483_v27 = vunpack.c.l.bf16 %v10546_v23  ;;  %v2798_v23 = vadd.f32 %v10155_v19, %v2753_v37  ;;  %v16093_v37 = vunpack.c.l.bf16 %v10621_v5  ;;  %v16112_v5 = vunpack.c.l.bf16 %v10675_v61 }
 0x532   :  { %6633 = vrot.lane.b32.xlu2 %v6632_v62, %s7313_s24  ;;  %6628 = vrot.lane.b32.xlu1 %v6632_v62, %s7312_s0  ;;  %16083 = vst [vmem:[#allocation19_spill] sm:$0xff] %v10657_v30 }
 0x533   :  { %6623 = vrot.lane.b32.xlu0 %v6632_v62, %s7310_s25  ;;  %v10551_v62 = vld [vmem:[%s16049_s29 + $0xe8] sm:$0xff]  ;;  %3271 = vmatpush.msra.mxu0 %v15483_v27  ;;  %v10604_v27 = vld [vmem:[%s16049_s29 + $0x1f8] sm:$0xff]  ;;  %16087 = vst [vmem:[#allocation20_spill] sm:$0xff] %v10675_v61  ;;  %v10702_v39 = vmul.f32 %v2798_v23, %v16094_v1  ;;  %v10720_v23 = vld [vmem:[%s16049_s29 + $0xc0] sm:$0xff] }
 0x534   :  { %16065 = vst [vmem:[#allocation2_spill] sm:$0xff] %v10551_v62  ;;  %v15480_v0 = vunpack.c.l.bf16 %v10551_v62  ;;  %v10645_v62 = vld [vmem:[%s16049_s29 + $0x130] sm:$0xff]  ;;  %v16088_v52 = vunpack.c.l.bf16 %v10604_v27  ;;  %3323 = vmatpush.msra.mxu2 %v16093_v37  ;;  %v16103_v37 = vmax.f32 %v10577_v8, 0.0  ;;  %v10745_v8 = vld [vmem:[%s16049_s29 + $0x38] sm:$0xff] }
 0x535   :  { %16074 = vst [vmem:[#allocation4_spill] sm:$0xff] %v10604_v27  ;;  %v10705_v27 = vmul.f32 %v2801_v35, %v8925_v25  ;;  %v10725_v35 = vld [vmem:[%s16049_s29 + $0x120] sm:$0xff] }
 0x536   :  { %3294 = vmatpush.msra.mxu1 %v15480_v0  ;;  %v10586_v0 = vld [vmem:[%s16049_s29 + $0x60] sm:$0xff]  ;;  %16081 = vst [vmem:[#allocation39_spill] sm:$0xff] %v10645_v62  ;;  %3338 = vmatpush.msra.mxu3 %v16088_v52  ;;  %v2758_v52 = vmul.f32 %v10153_v38, %v10304_v7  ;;  %v16098_v7 = vunpack.c.l.bf16 %v10631_v43  ;;  %v16105_v43 = vunpack.c.l.bf16 %v10645_v62  ;;  %v16116_v62 = vunpack.c.l.bf16 %v10720_v23 }
 0x537   :  { %16071 = vst [vmem:[#allocation29_spill] sm:$0xff] %v10586_v0  ;;  %v16082_v49 = vunpack.c.l.bf16 %v10586_v0  ;;  %v10691_v0 = vld [vmem:[%s16049_s29 + $0x1e0] sm:$0xff] }
 0x538   :  { %16090 = vst [vmem:[#allocation17_spill] sm:$0xff] %v10686_v56  ;;  %3339 = vmatpush.msra.mxu3 %v16097_v21  ;;  %v16102_v21 = vmax.f32 %v10574_v29, 0.0  ;;  %3324 = vmatpush.msra.mxu2 %v16105_v43  ;;  %v16108_v43 = vunpack.c.l.bf16 %v10657_v30  ;;  %v10766_v29 = vld [vmem:[%s16049_s29 + $0x1d0] sm:$0xff] }
 0x539   :  { %3272 = vmatpush.msra.mxu0 %v16082_v49  ;;  %v16085_v49 = vunpack.c.l.bf16 %v10591_v22  ;;  %16091 = vst [vmem:[#allocation12_spill] sm:$0xff] %v10691_v0  ;;  %v10782_v30 = vld [vmem:[%s16049_s29 + $0xb0] sm:$0xff]  ;;  %v16114_v22 = vunpack.c.l.bf16 %v10691_v0 }
 0x53a   :  { %6648 = vrot.lane.b32.xlu2 %v6647_v48, %s7313_s24  ;;  %6643 = vrot.lane.b32.xlu1 %v6647_v48, %s7312_s0  ;;  %16095 = vst [vmem:[#allocation23_spill] sm:$0xff] %v10702_v39 }
 0x53b   :  { %6638 = vrot.lane.b32.xlu0 %v6647_v48, %s7310_s25  ;;  %v10662_v48 = vld [vmem:[%s16049_s29 + $0x48] sm:$0xff]  ;;  %3295 = vmatpush.msra.mxu1 %v16085_v49  ;;  %v16092_v49 = vunpack.c.l.bf16 %v10614_v34  ;;  %16096 = vst [vmem:[#allocation33_spill] sm:$0xff] %v10705_v27  ;;  %v10740_v34 = vld [vmem:[%s16049_s29 + $0x1d8] sm:$0xff] }
 0x53c   :  { %16084 = vst [vmem:[#allocation9_spill] sm:$0xff] %v10662_v48  ;;  %3273 = vmatpush.msra.mxu0 %v16089_v40  ;;  %v2759_v40 = vmul.f32 %v10153_v38, %v10307_v41  ;;  %v16104_v41 = vunpack.c.l.bf16 %v10640_v50  ;;  %3340 = vmatpush.msra.mxu3 %v16108_v43  ;;  %v2803_v43 = vadd.f32 %v10155_v19, %v2758_v52  ;;  %v16113_v50 = vunpack.c.l.bf16 %v10686_v56  ;;  %v10907_v56 = vld [vmem:[%s16049_s29 + $0x98] sm:$0xff] }
 0x53d   :  { %3296 = vmatpush.msra.mxu1 %v16092_v49  ;;  %v10715_v49 = vld [vmem:[%s16049_s29 + $0x40] sm:$0xff]  ;;  %16100 = vst [vmem:[#allocation34_spill] sm:$0xff] %v10720_v23  ;;  %v10836_v23 = vld [vmem:[%s16049_s29 + $0x108] sm:$0xff] }
 0x53e   :  { %3274 = vmatpush.msra.mxu0 %v16098_v7  ;;  %16099 = vst [vmem:[#allocation37_spill] sm:$0xff] %v10715_v49  ;;  %v6662_v7 = vpack.i.bf16 %v16103_v37, %v16102_v21  ;;  %v16109_v21 = vunpack.c.l.bf16 %v10662_v48  ;;  %v10777_v48 = vld [vmem:[%s16049_s29 + $0x30] sm:$0xff]  ;;  %3325 = vmatpush.msra.mxu2 %v16113_v50  ;;  %v10819_v46 = vmul.f32 %v2803_v43, %v16041_v51  ;;  %v16123_v37 = vunpack.c.l.bf16 %v10740_v34  ;;  %v10831_v50 = vld [vmem:[%s16049_s29 + $0xa8] sm:$0xff] }
 0x53f   :  { %16101 = vst [vmem:[#allocation44_spill] sm:$0xff] %v10725_v35  ;;  %3297 = vmatpush.msra.mxu1 %v16104_v41  ;;  %v10750_v41 = vld [vmem:[%s16049_s29 + $0xb8] sm:$0xff]  ;;  %3341 = vmatpush.msra.mxu3 %v16114_v22  ;;  %v10811_v22 = vld [vmem:[%s16049_s29 + $0x1c8] sm:$0xff]  ;;  %v16126_v43 = vmax.f32 %v10702_v39, 0.0  ;;  %v10855_v39 = vld [vmem:[%s16049_s29 + $0x20] sm:$0xff] }
 0x540   :  { %16106 = vst [vmem:[#allocation32_spill] sm:$0xff] %v10740_v34  ;;  %3275 = vmatpush.msra.mxu0 %v16109_v21  ;;  %v2804_v21 = vadd.f32 %v10155_v19, %v2759_v40  ;;  %v10800_v40 = vld [vmem:[%s16049_s29 + $0x110] sm:$0xff]  ;;  %v10886_v34 = vld [vmem:[%s16049_s29 + $0x1b8] sm:$0xff]  ;;  %v16143_v15 = vunpack.c.l.bf16 %v10811_v22  ;;  %v16150_v42 = vmax.f32 %v10819_v46, 0.0 }
 0x541   :  { %16107 = vst [vmem:[#allocation35_spill] sm:$0xff] %v10750_v41  ;;  %3298 = vmatpush.msra.mxu1 %v16112_v5  ;;  %v16115_v5 = vunpack.c.l.bf16 %v10715_v49  ;;  %3342 = vmatpush.msra.mxu3 %v16123_v37  ;;  %v16129_v37 = vunpack.c.l.bf16 %v10750_v41  ;;  %v10870_v41 = vld [vmem:[%s16049_s29 + $0xa0] sm:$0xff] }
 0x542   :  { %16110 = vst [vmem:[#allocation36_spill] sm:$0xff] %v10761_v13  ;;  %6663 = vrot.lane.b32.xlu2 %v6662_v7, %s7313_s24  ;;  %6658 = vrot.lane.b32.xlu1 %v6662_v7, %s7312_s0 }
 0x543   :  { %16111 = vst [vmem:[#allocation24_spill] sm:$0xff] %v10766_v29  ;;  %6653 = vrot.lane.b32.xlu0 %v6662_v7, %s7310_s25  ;;  %3276 = vmatpush.msra.mxu0 %v16115_v5  ;;  %v10816_v7 = vld [vmem:[%s16049_s29 + $0x28] sm:$0xff]  ;;  %v16120_v5 = vld [vmem:[#allocation53_spill] sm:$0xff] }
 0x544   :  { %3299 = vmatpush.msra.mxu1 %v16116_v62  ;;  %16117 = vst [vmem:[#allocation31_spill] sm:$0xff] %v10811_v22  ;;  %v10822_v52 = vmul.f32 %v2804_v21, %v16120_v5  ;;  %v16122_v62 = vunpack.c.l.bf16 %v10725_v35  ;;  %v16127_v21 = vmax.f32 %v10705_v27, 0.0  ;;  %v10850_v35 = vld [vmem:[%s16049_s29 + $0x1c0] sm:$0xff]  ;;  %v16144_v60 = vunpack.c.l.bf16 %v10816_v7  ;;  %v10959_v22 = vld [vmem:[%s16049_s29 + $0x1a8] sm:$0xff] }
 0x545   :  { %16118 = vst [vmem:[#allocation26_spill] sm:$0xff] %v10816_v7  ;;  %v16146_v27 = vunpack.c.l.bf16 %v10831_v50  ;;  %v16174_v55 = vunpack.c.l.bf16 %v10959_v22 }
 0x546   :  { %16119 = vst [vmem:[#allocation22_spill] sm:$0xff] %v10819_v46  ;;  %3326 = vmatpush.msra.mxu2 %v16122_v62  ;;  %v6677_v0 = vpack.i.bf16 %v16127_v21, %v16126_v43  ;;  %v16128_v62 = vunpack.c.l.bf16 %v10745_v8  ;;  %3300 = vmatpush.msra.mxu1 %v16129_v37  ;;  %v2770_v43 = vmul.f32 %v10151_v12, %v10328_v6  ;;  %v16133_v37 = vunpack.c.l.bf16 %v10766_v29  ;;  %v10875_v6 = vld [vmem:[%s16049_s29 + $0x100] sm:$0xff]  ;;  %v10891_v29 = vld [vmem:[%s16049_s29 + $0x378] sm:$0xff]  ;;  %v10973_v46 = vld [vmem:[%s16049_s29 + $0x368] sm:$0xff] }
 0x547   :  { %16121 = vst [vmem:[#allocation47_spill] sm:$0xff] %v10822_v52  ;;  %v2771_v21 = vmul.f32 %v10151_v12, %v10346_v11  ;;  %v16136_v11 = vunpack.c.l.bf16 %v10777_v48 }
 0x548   :  { %16124 = vst [vmem:[#allocation45_spill] sm:$0xff] %v10831_v50  ;;  %3277 = vmatpush.msra.mxu0 %v16128_v62  ;;  %v16132_v62 = vunpack.c.l.bf16 %v10761_v13  ;;  %3343 = vmatpush.msra.mxu3 %v16133_v37  ;;  %v10902_v13 = vld [vmem:[%s16049_s29 + $0x18] sm:$0xff]  ;;  %v2815_v37 = vadd.f32 %v10291_v2, %v2770_v43  ;;  %v16147_v43 = vunpack.c.l.bf16 %v10836_v23 }
 0x549   :  { %16125 = vst [vmem:[#allocation42_spill] sm:$0xff] %v10836_v23  ;;  %v2816_v61 = vadd.f32 %v10291_v2, %v2771_v21  ;;  %v16153_v21 = vunpack.c.l.bf16 %v10855_v39 }
 0x54a   :  { %16130 = vst [vmem:[#allocation41_spill] sm:$0xff] %v10850_v35  ;;  %3327 = vmatpush.msra.mxu2 %v16132_v62  ;;  %3278 = vmatpush.msra.mxu0 %v16136_v11  ;;  %v16137_v62 = vunpack.c.l.bf16 %v10782_v30  ;;  %v16142_v11 = vunpack.c.l.bf16 %v10800_v40 }
 0x54b   :  { %16131 = vst [vmem:[#allocation53_spill] sm:$0xff] %v10855_v39  ;;  %6678 = vrot.lane.b32.xlu2 %v6677_v0, %s7313_s24  ;;  %6673 = vrot.lane.b32.xlu1 %v6677_v0, %s7312_s0 }
 0x54c   :  { %16134 = vst [vmem:[#allocation62_spill] sm:$0xff] %v10870_v41  ;;  %3301 = vmatpush.msra.mxu1 %v16137_v62  ;;  %6668 = vrot.lane.b32.xlu0 %v6677_v0, %s7310_s25  ;;  %v10941_v0 = vld [vmem:[%s16049_s29 + $0x10] sm:$0xff] }
 0x54d   :  { %16135 = vst [vmem:[#allocation63_spill] sm:$0xff] %v10875_v6  ;;  %3328 = vmatpush.msra.mxu2 %v16142_v11  ;;  %3344 = vmatpush.msra.mxu3 %v16143_v15  ;;  %v10925_v11 = vld [vmem:[%s16049_s29 + $0x1b0] sm:$0xff] }
 0x54e   :  { %16138 = vst [vmem:[#allocation64_spill] sm:$0xff] %v10886_v34  ;;  %3279 = vmatpush.msra.mxu0 %v16144_v60  ;;  %3302 = vmatpush.msra.mxu1 %v16146_v27  ;;  %v10936_v60 = vld [vmem:[%s16049_s29 + $0x370] sm:$0xff]  ;;  %v16151_v27 = vmax.f32 %v10822_v52, 0.0  ;;  %v2769_v52 = vmul.f32 %v10151_v12, %v10360_v58  ;;  %v10978_v58 = vld [vmem:[%s16049_s29 + $0x8] sm:$0xff] }
 0x54f   :  { %16139 = vst [vmem:[#allocation65_spill] sm:$0xff] %v10891_v29  ;;  %3329 = vmatpush.msra.mxu2 %v16147_v43  ;;  %v16152_v43 = vunpack.c.l.bf16 %v10850_v35  ;;  %v10954_v15 = vld [vmem:[%s16049_s29 + $0x90] sm:$0xff]  ;;  %v16170_v54 = vunpack.c.l.bf16 %v10936_v60 }
 0x550   :  { %16140 = vst [vmem:[#allocation66_spill] sm:$0xff] %v10902_v13  ;;  %v6692_v62 = vpack.i.bf16 %v16151_v27, %v16150_v42  ;;  %3280 = vmatpush.msra.mxu0 %v16153_v21  ;;  %v2772_v42 = vmul.f32 %v10151_v12, %v10363_v24  ;;  %v16155_v27 = vunpack.c.l.bf16 %v10870_v41  ;;  %v16156_v21 = vunpack.c.l.bf16 %v10875_v6 }
 0x551   :  { %16141 = vst [vmem:[#allocation67_spill] sm:$0xff] %v10907_v56  ;;  %3345 = vmatpush.msra.mxu3 %v16152_v43  ;;  %v10981_v24 = vmul.f32 %v2815_v37, %v16067_v9  ;;  %v16161_v43 = vunpack.c.l.bf16 %v10891_v29  ;;  %v16164_v9 = vunpack.c.l.bf16 %v10907_v56  ;;  %v11030_v37 = vld [vmem:[%s16049_s29 + $0x198] sm:$0xff]  ;;  %v2814_v35 = vadd.f32 %v10291_v2, %v2769_v52 }
 0x552   :  { %16145 = vst [vmem:[#allocation68_spill] sm:$0xff] %v10925_v11  ;;  %3303 = vmatpush.msra.mxu1 %v16155_v27  ;;  %3330 = vmatpush.msra.mxu2 %v16156_v21  ;;  %v10984_v27 = vmul.f32 %v2816_v61, %v16069_v17  ;;  %v16160_v21 = vunpack.c.l.bf16 %v10886_v34  ;;  %v11000_v17 = vld [vmem:[%s16049_s29 + $0x1a0] sm:$0xff]  ;;  %v16163_v61 = vunpack.c.l.bf16 %v10902_v13  ;;  %v2817_v29 = vadd.f32 %v10291_v2, %v2772_v42  ;;  %v11068_v42 = vld [vmem:[%s16049_s29 + $0x358] sm:$0xff] }
 0x553   :  { %16148 = vst [vmem:[#allocation69_spill] sm:$0xff] %v10936_v60  ;;  %6693 = vrot.lane.b32.xlu2 %v6692_v62, %s7313_s24  ;;  %6688 = vrot.lane.b32.xlu1 %v6692_v62, %s7312_s0  ;;  %v16171_v52 = vunpack.c.l.bf16 %v10941_v0  ;;  %v16173_v10 = vunpack.c.l.bf16 %v10954_v15  ;;  %v11120_v60 = vld [vmem:[%s16049_s29 + $0x188] sm:$0xff] }
 0x554   :  { %16149 = vst [vmem:[#allocation70_spill] sm:$0xff] %v10941_v0  ;;  %3346 = vmatpush.msra.mxu3 %v16160_v21  ;;  %3407 = vmatpush.msrb.mxu2 %v16161_v43  ;;  %v11011_v21 = vld [vmem:[%s16049_s29 + $0x360] sm:$0xff]  ;;  %v11039_v18 = vpop.permute.xlu2 %6528 }
 0x555   :  { %16154 = vst [vmem:[#allocation71_spill] sm:$0xff] %v10959_v22  ;;  %3281 = vmatpush.msra.mxu0 %v16163_v61  ;;  %3304 = vmatpush.msra.mxu1 %v16164_v9  ;;  %v11025_v43 = vld [vmem:[%s16049_s29 + $0x80] sm:$0xff]  ;;  %v16169_v61 = vunpack.c.l.bf16 %v10925_v11  ;;  %v11087_v9 = vmul.f32 %v2814_v35, %v16094_v1  ;;  %v11100_v22 = vld [vmem:[%s16049_s29 + $0x2f0] sm:$0xff] }
 0x556   :  { %16157 = vst [vmem:[#allocation72_spill] sm:$0xff] %v10973_v46  ;;  %6683 = vrot.lane.b32.xlu0 %v6692_v62, %s7310_s25  ;;  %3408 = vmatpush.msrb.mxu2 %v16170_v54  ;;  %v16177_v62 = vunpack.c.l.bf16 %v10973_v46  ;;  %v11084_v54 = vld [vmem:[%s16049_s29 + $0x270] sm:$0xff]  ;;  %v11138_v46 = vld [vmem:[%s16049_s29 + $0x2e8] sm:$0xff] }
 0x557   :  { %16158 = vst [vmem:[#allocation73_spill] sm:$0xff] %v10981_v24  ;;  %3347 = vmatpush.msra.mxu3 %v16169_v61  ;;  %3282 = vmatpush.msra.mxu0 %v16171_v52  ;;  %v11052_v61 = vld [vmem:[%s16049_s29 + $0x278] sm:$0xff]  ;;  %v11105_v1 = vld [vmem:[%s16049_s29 + $0x350] sm:$0xff] }
 0x558   :  { %16159 = vst [vmem:[#allocation74_spill] sm:$0xff] %v10984_v27  ;;  %3305 = vmatpush.msra.mxu1 %v16173_v10  ;;  %v11063_v52 = vld [vmem:[%s16049_s29 + $0x2f8] sm:$0xff]  ;;  %3409 = vmatpush.msrb.mxu2 %v16177_v62  ;;  %v16178_v10 = vunpack.c.l.bf16 %v10978_v58  ;;  %v11090_v62 = vmul.f32 %v2817_v29, %v8925_v25  ;;  %v16187_v25 = vmax.f32 %v10981_v24, 0.0  ;;  %v16188_v29 = vmax.f32 %v10984_v27, 0.0  ;;  %v11125_v27 = vld [vmem:[%s16049_s29 + $0x268] sm:$0xff] }
 0x559   :  { %16162 = vst [vmem:[#allocation75_spill] sm:$0xff] %v11000_v17  ;;  %3348 = vmatpush.msra.mxu3 %v16174_v55  ;;  %v2774_v55 = vmul.f32 %v10151_v12, %v10369_v44  ;;  %v16183_v44 = vunpack.c.l.bf16 %v10995_v59  ;;  %v16200_v11 = vunpack.c.l.bf16 %v11063_v52  ;;  %v16204_v24 = vunpack.c.l.bf16 %v11084_v54 }
 0x55a   :  { %16165 = vst [vmem:[#allocation76_spill] sm:$0xff] %v11011_v21  ;;  %3283 = vmatpush.msra.mxu0 %v16178_v10  ;;  %v16184_v10 = vunpack.c.l.bf16 %v11000_v17  ;;  %v6707_v35 = vpack.i.bf16 %v16188_v29, %v16187_v25  ;;  %v2757_v25 = vmul.f32 %v10153_v38, %v10366_v28  ;;  %v16193_v29 = vunpack.c.l.bf16 %v11025_v43  ;;  %v11158_v17 = vld [vmem:[%s16049_s29 + $0x260] sm:$0xff] }
 0x55b   :  { %16166 = vst [vmem:[#allocation77_spill] sm:$0xff] %v11016_v33  ;;  %3306 = vmatpush.msra.mxu1 %v16183_v44  ;;  %v16189_v44 = vunpack.c.l.bf16 %v11011_v21  ;;  %v11143_v21 = vld [vmem:[%s16049_s29 + $0x348] sm:$0xff]  ;;  %v2819_v38 = vadd.f32 %v10291_v2, %v2774_v55  ;;  %v15550_v55 = vunpack.c.l.bf16 %v11120_v60  ;;  %v11192_v28 = vld [vmem:[%s16049_s29 + $0x340] sm:$0xff] }
 0x55c   :  { %16167 = vst [vmem:[#allocation78_spill] sm:$0xff] %v11025_v43  ;;  %3349 = vmatpush.msra.mxu3 %v16184_v10  ;;  %v16190_v10 = vunpack.c.l.bf16 %v11016_v33  ;;  %6708 = vrot.lane.b32.xlu2 %v6707_v35, %s7313_s24 }
 0x55d   :  { %16168 = vst [vmem:[#allocation79_spill] sm:$0xff] %v11030_v37  ;;  %3410 = vmatpush.msrb.mxu2 %v16189_v44  ;;  %3307 = vmatpush.msra.mxu1 %v16193_v29  ;;  %v16194_v44 = vunpack.c.l.bf16 %v11030_v37  ;;  %v2773_v29 = vmul.f32 %v10151_v12, %v10372_v4  ;;  %v2775_v37 = vmul.f32 %v10151_v12, %v10391_v14  ;;  %v11180_v4 = vld [vmem:[%s16049_s29 + $0x2e0] sm:$0xff]  ;;  %v16203_v14 = vunpack.c.l.bf16 %v11079_v3 }
 0x55e   :  { %16172 = vst [vmem:[#allocation80_spill] sm:$0xff] %v11052_v61  ;;  %3284 = vmatpush.msra.mxu0 %v16190_v10  ;;  %6703 = vrot.lane.b32.xlu1 %v6707_v35, %s7312_s0  ;;  %v16199_v10 = vunpack.c.l.bf16 %v11052_v61  ;;  %v2802_v12 = vadd.f32 %v10155_v19, %v2757_v25  ;;  %v11199_v19 = vpop.permute.xlu2 %6538  ;;  %v16208_v25 = vunpack.c.l.bf16 %v11100_v22  ;;  %v11485_v3 = vld [vmem:[%s16049_s29 + $0x3c0] sm:$0xff] }
 0x55f   :  { %16175 = vst [vmem:[#allocation81_spill] sm:$0xff] %v11063_v52  ;;  %3350 = vmatpush.msra.mxu3 %v16194_v44  ;;  %v11153_v44 = vld [vmem:[%s16049_s29 + $0x180] sm:$0xff]  ;;  %6698 = vrot.lane.b32.xlu0 %v6707_v35, %s7310_s25  ;;  %v16201_v35 = vunpack.c.l.bf16 %v11068_v42  ;;  %v2820_v43 = vadd.f32 %v10291_v2, %v2775_v37  ;;  %v11281_v37 = vld [vmem:[%s16049_s29 + $0x248] sm:$0xff] }
 0x560   :  { %16176 = vst [vmem:[#allocation82_spill] sm:$0xff] %v11068_v42  ;;  %3361 = vmatpush.msrb.mxu0 %v16199_v10  ;;  %3384 = vmatpush.msrb.mxu1 %v16200_v11  ;;  %v11197_v10 = vld [vmem:[%s16049_s29 + $0x3f8] sm:$0xff]  ;;  %v11216_v11 = vmul.f32 %v2819_v38, %v16041_v51  ;;  %v11233_v51 = vld [vmem:[%s16049_s29 + $0x3f0] sm:$0xff]  ;;  %v16216_v38 = vmax.f32 %v11087_v9, 0.0  ;;  %v11519_v52 = vld [vmem:[%s16049_s29 + $0x300] sm:$0xff] }
 0x561   :  { %16180 = vst [vmem:[#allocation84_spill] sm:$0xff] %v11084_v54  ;;  %3411 = vmatpush.msrb.mxu2 %v16201_v35  ;;  %3351 = vmatpush.msra.mxu3 %v16203_v14  ;;  %v11208_v14 = vld [vmem:[%s16049_s29 + $0x258] sm:$0xff]  ;;  %v6541_v54 = vunpack.i.h.bf16 %v11199_v19 }
 0x562   :  { %16181 = vst [vmem:[#allocation85_spill] sm:$0xff] %v11087_v9  ;;  %3362 = vmatpush.msrb.mxu0 %v16204_v24  ;;  %3385 = vmatpush.msrb.mxu1 %v16208_v25  ;;  %v16209_v24 = vunpack.c.l.bf16 %v11105_v1  ;;  %v11213_v35 = vld [vmem:[%s16049_s29 + $0x2d8] sm:$0xff]  ;;  %v16213_v25 = vunpack.c.l.bf16 %v11125_v27  ;;  %v11298_v9 = vmul.f32 %v2820_v43, %v16120_v5  ;;  %v16236_v5 = vunpack.c.l.bf16 %v11208_v14 }
 0x563   :  { %16182 = vst [vmem:[#allocation86_spill] sm:$0xff] %v11090_v62  ;;  %3352 = vmatpush.msra.mxu3 %v15550_v55  ;;  %v16237_v43 = vunpack.c.l.bf16 %v11213_v35 }
 0x564   :  { %16185 = vst [vmem:[#allocation87_spill] sm:$0xff] %v11100_v22  ;;  %3412 = vmatpush.msrb.mxu2 %v16209_v24  ;;  %3363 = vmatpush.msrb.mxu0 %v16213_v25  ;;  %v2818_v24 = vadd.f32 %v10291_v2, %v2773_v29  ;;  %v11228_v22 = vld [vmem:[%s16049_s29 + $0x338] sm:$0xff]  ;;  %v16217_v25 = vmax.f32 %v11090_v62, 0.0  ;;  %v16218_v29 = vunpack.c.l.bf16 %v11138_v46  ;;  %v16219_v2 = vunpack.c.l.bf16 %v11143_v21  ;;  %v11253_v62 = vld [vmem:[%s16049_s29 + $0x2d0] sm:$0xff] }
 0x565   :  { %16186 = vst [vmem:[#allocation88_spill] sm:$0xff] %v11105_v1  ;;  %v11286_v1 = vld [vmem:[%s16049_s29 + $0x2c8] sm:$0xff] }
 0x566   :  { %16191 = vst [vmem:[#allocation89_spill] sm:$0xff] %v11120_v60  ;;  %v6722_v55 = vpack.i.bf16 %v16217_v25, %v16216_v38  ;;  %3386 = vmatpush.msrb.mxu1 %v16218_v29  ;;  %3413 = vmatpush.msrb.mxu2 %v16219_v2  ;;  %v16222_v38 = vld [vmem:[#allocation43_spill] sm:$0xff]  ;;  %v16224_v29 = vunpack.c.l.bf16 %v11153_v44  ;;  %v16225_v2 = vunpack.c.l.bf16 %v11158_v17  ;;  %v16233_v60 = vunpack.c.l.bf16 %v11192_v28 }
 0x567   :  { %16192 = vst [vmem:[#allocation90_spill] sm:$0xff] %v11125_v27  ;;  %v11248_v27 = vld [vmem:[%s16049_s29 + $0x250] sm:$0xff]  ;;  %v11256_v25 = vmul.f32 %v2802_v12, %v16222_v38  ;;  %v11272_v12 = vld [vmem:[%s16049_s29 + $0x3e8] sm:$0xff] }
 0x568   :  { %16195 = vst [vmem:[#allocation91_spill] sm:$0xff] %v11138_v46  ;;  %3353 = vmatpush.msra.mxu3 %v16224_v29  ;;  %3364 = vmatpush.msrb.mxu0 %v16225_v2  ;;  %v16231_v29 = vunpack.c.l.bf16 %v11180_v4  ;;  %v16238_v46 = vunpack.c.l.bf16 %v11228_v22 }
 0x569   :  { %16196 = vst [vmem:[#allocation92_spill] sm:$0xff] %v11143_v21  ;;  %v11267_v21 = vld [vmem:[%s16049_s29 + $0x330] sm:$0xff]  ;;  %6723 = vrot.lane.b32.xlu2 %v6722_v55, %s7313_s24  ;;  %6718 = vrot.lane.b32.xlu1 %v6722_v55, %s7312_s0 }
 0x56a   :  { %16197 = vst [vmem:[#allocation93_spill] sm:$0xff] %v11153_v44  ;;  %6713 = vrot.lane.b32.xlu0 %v6722_v55, %s7310_s25  ;;  %v11291_v44 = vmul.f32 %v2818_v24, %v16222_v38  ;;  %3387 = vmatpush.msrb.mxu1 %v16231_v29  ;;  %v16234_v55 = vunpack.c.l.bf16 %v11197_v10  ;;  %v11309_v38 = vld [vmem:[%s16049_s29 + $0x328] sm:$0xff]  ;;  %v15563_v29 = vmax.f32 %v11256_v25, 0.0  ;;  %v11321_v24 = vld [vmem:[%s16049_s29 + $0x3e0] sm:$0xff] }
 0x56b   :  { %16198 = vst [vmem:[#allocation94_spill] sm:$0xff] %v11158_v17  ;;  %3414 = vmatpush.msrb.mxu2 %v16233_v60  ;;  %3365 = vmatpush.msrb.mxu0 %v16236_v5  ;;  %v11326_v17 = vld [vmem:[%s16049_s29 + $0x240] sm:$0xff]  ;;  %v16239_v5 = vunpack.c.l.bf16 %v11233_v51  ;;  %v16241_v60 = vmax.f32 %v11216_v11, 0.0 }
 0x56c   :  { %16202 = vst [vmem:[#allocation95_spill] sm:$0xff] %v11180_v4  ;;  %3430 = vmatpush.msrb.mxu3 %v16234_v55  ;;  %3388 = vmatpush.msrb.mxu1 %v16237_v43  ;;  %v11335_v43 = vld [vmem:[%s16049_s29 + $0x2c0] sm:$0xff]  ;;  %v11464_v4 = vld [vmem:[%s16049_s29 + $0x2a8] sm:$0xff] }
 0x56d   :  { %16205 = vst [vmem:[#allocation96_spill] sm:$0xff] %v11192_v28  ;;  %3415 = vmatpush.msrb.mxu2 %v16238_v46  ;;  %v11340_v55 = vld [vmem:[%s16049_s29 + $0x320] sm:$0xff]  ;;  %v6737_v2 = vpack.i.bf16 %v16241_v60, %v15563_v29  ;;  %v11362_v60 = vpop.permute.xlu2 %6558  ;;  %v16250_v29 = vunpack.c.l.bf16 %v11286_v1  ;;  %v16265_v46 = vunpack.i.h.bf16 %v11039_v18 }
 0x56e   :  { %16206 = vst [vmem:[#allocation97_spill] sm:$0xff] %v11197_v10  ;;  %3431 = vmatpush.msrb.mxu3 %v16239_v5  ;;  %v16243_v5 = vunpack.c.l.bf16 %v11253_v62 }
 0x56f   :  { %16207 = vst [vmem:[#allocation98_spill] sm:$0xff] %v11199_v19 }
 0x570   :  { %16210 = vst [vmem:[#allocation99_spill] sm:$0xff] %v11208_v14  ;;  %3389 = vmatpush.msrb.mxu1 %v16243_v5  ;;  %v16247_v5 = vunpack.c.l.bf16 %v11272_v12  ;;  %v16259_v14 = vunpack.c.l.bf16 %v11326_v17 }
 0x571   :  { %16211 = vst [vmem:[#allocation100_spill] sm:$0xff] %v11213_v35  ;;  %v11355_v35 = vld [vmem:[%s16049_s29 + $0x3d8] sm:$0xff]  ;;  %6738 = vrot.lane.b32.xlu2 %v6737_v2, %s7313_s24  ;;  %6733 = vrot.lane.b32.xlu1 %v6737_v2, %s7312_s0 }
 0x572   :  { %16212 = vst [vmem:[#allocation101_spill] sm:$0xff] %v11216_v11  ;;  %v11360_v11 = vld [vmem:[%s16049_s29 + $0x238] sm:$0xff]  ;;  %3432 = vmatpush.msrb.mxu3 %v16247_v5  ;;  %3390 = vmatpush.msrb.mxu1 %v16250_v29  ;;  %v11412_v29 = vpop.permute.xlu1 %6523  ;;  %v16268_v10 = vunpack.c.l.bf16 %v11355_v35 }
 0x573   :  { %16214 = vst [vmem:[#allocation102_spill] sm:$0xff] %v11228_v22  ;;  %v11385_v5 = vld [vmem:[%s16049_s29 + $0x318] sm:$0xff]  ;;  %v11390_v22 = vld [vmem:[%s16049_s29 + $0x3d0] sm:$0xff]  ;;  %6728 = vrot.lane.b32.xlu0 %v6737_v2, %s7310_s25  ;;  %v11442_v2 = vld [vmem:[%s16049_s29 + $0x3c8] sm:$0xff]  ;;  %v16269_v28 = vunpack.c.l.bf16 %v11360_v11 }
 0x574   :  { %16215 = vst [vmem:[#allocation103_spill] sm:$0xff] %v11233_v51  ;;  %v16242_v51 = vunpack.c.l.bf16 %v11248_v27 }
 0x575   :  { %16220 = vst [vmem:[#allocation104_spill] sm:$0xff] %v11248_v27  ;;  %v16258_v27 = vunpack.c.l.bf16 %v11321_v24 }
 0x576   :  { %16221 = vst [vmem:[#allocation105_spill] sm:$0xff] %v11253_v62  ;;  %3366 = vmatpush.msrb.mxu0 %v16242_v51  ;;  %v16246_v51 = vunpack.c.l.bf16 %v11267_v21  ;;  %v16249_v62 = vunpack.c.l.bf16 %v11281_v37 }
 0x577   :  { %16223 = vst [vmem:[#allocation43_spill] sm:$0xff] %v11256_v25  ;;  %v11374_v25 = vld [vmem:[%s16049_s29 + $0x2b8] sm:$0xff]  ;;  %3433 = vmatpush.msrb.mxu3 %v16258_v27  ;;  %v16261_v27 = vunpack.c.l.bf16 %v11335_v43 }
 0x578   :  { %16226 = vst [vmem:[#allocation106_spill] sm:$0xff] %v11267_v21  ;;  %3416 = vmatpush.msrb.mxu2 %v16246_v51  ;;  %3367 = vmatpush.msrb.mxu0 %v16249_v62  ;;  %v11401_v51 = vld [vmem:[%s16049_s29 + $0x230] sm:$0xff]  ;;  %v16255_v62 = vunpack.c.l.bf16 %v11309_v38 }
 0x579   :  { %16227 = vst [vmem:[#allocation107_spill] sm:$0xff] %v11272_v12  ;;  %v16256_v12 = vmax.f32 %v11298_v9, 0.0  ;;  %3391 = vmatpush.msrb.mxu1 %v16261_v27  ;;  %v16266_v27 = vunpack.i.l.bf16 %v11039_v18  ;;  %3434 = vmatpush.msrb.mxu3 %v16268_v10  ;;  %v16273_v10 = vunpack.c.l.bf16 %v11374_v25 }
 0x57a   :  { %16228 = vst [vmem:[#allocation108_spill] sm:$0xff] %v11281_v37  ;;  %3417 = vmatpush.msrb.mxu2 %v16255_v62  ;;  %v16257_v37 = vmax.f32 %v11291_v44, 0.0  ;;  %3368 = vmatpush.msrb.mxu0 %v16259_v14  ;;  %v11427_v62 = vld [vmem:[%s16049_s29 + $0x310] sm:$0xff]  ;;  %v16262_v14 = vunpack.c.l.bf16 %v11340_v55 }
 0x57b   :  { %16229 = vst [vmem:[#allocation109_spill] sm:$0xff] %v11286_v1  ;;  %v11406_v1 = vld [vmem:[%s16049_s29 + $0x2b0] sm:$0xff]  ;;  %3392 = vmatpush.msrb.mxu1 %v16273_v10  ;;  %v16278_v10 = vunpack.c.l.bf16 %v11385_v5 }
 0x57c   :  { %16230 = vst [vmem:[#allocation110_spill] sm:$0xff] %v11291_v44  ;;  %v6752_v21 = vpack.i.bf16 %v16257_v37, %v16256_v12  ;;  %v11431_v37 = vpop.permute.xlu0 %6518  ;;  %3418 = vmatpush.msrb.mxu2 %v16262_v14  ;;  %v16267_v44 = vld [vmem:[#allocation52_spill] sm:$0xff]  ;;  %v3197_v14 = vsel %vm1380_vm7, %v16266_v27, %v16265_v46  ;;  %3369 = vmatpush.msrb.mxu0 %v16269_v28  ;;  %v16271_v46 = vunpack.i.h.bf16 %v11412_v29  ;;  %v16272_v27 = vunpack.i.l.bf16 %v11412_v29  ;;  %v11480_v12 = vld [vmem:[%s16049_s29 + $0x308] sm:$0xff] }
 0x57d   :  { %16232 = vst [vmem:[#allocation111_spill] sm:$0xff] %v11298_v9  ;;  %v11447_v9 = vld [vmem:[%s16049_s29 + $0x228] sm:$0xff]  ;;  %v16276_v42 = vunpack.i.h.bf16 %v11431_v37  ;;  %v16279_v28 = vunpack.c.l.bf16 %v11390_v22  ;;  %vm4206_vm5 = vcmp.lt.s32.totalorder %v16267_v44, 111  ;;  %vm4143_vm8 = vcmp.lt.s32.totalorder %v16267_v44, 15 }
 0x57e   :  { %16235 = vst [vmem:[#allocation112_spill] sm:$0xff] %v11309_v38  ;;  %v3101_v38 = vsel %vm1276_vm6, %v16272_v27, %v16271_v46  ;;  %v16277_v46 = vunpack.i.l.bf16 %v11431_v37  ;;  %3419 = vmatpush.msrb.mxu2 %v16278_v10  ;;  %v11514_v10 = vld [vmem:[%s16049_s29 + $0x2a0] sm:$0xff]  ;;  %6753 = vrot.lane.b32.xlu2 %v6752_v21, %s7313_s24  ;;  %s16308_s24 = sld [smem:[#allocation223_spill]]  ;;  %vm4130_vm9 = vcmp.lt.s32.totalorder %v16267_v44, 16  ;;  %vm4117_vm10 = vcmp.lt.s32.totalorder %v16267_v44, 17 }
 0x57f   :  { %16240 = vst [vmem:[#allocation113_spill] sm:$0xff] %v11340_v55  ;;  %3435 = vmatpush.msrb.mxu3 %v16279_v28  ;;  %6748 = vrot.lane.b32.xlu1 %v6752_v21, %s7312_s0  ;;  %v16288_v28 = vunpack.c.l.bf16 %v11427_v62  ;;  %s7317_s0 = smov 15  }
 0x580   :  { %16244 = vst [vmem:[#allocation114_spill] sm:$0xff] %v11355_v35  ;;  %v2973_v27 = vsel %vm1068_vm4, %v16277_v46, %v16276_v42  ;;  %v16282_v42 = vunpack.c.l.bf16 %v11401_v51  ;;  %v16283_v46 = vunpack.c.l.bf16 %v11406_v1  ;;  %6743 = vrot.lane.b32.xlu0 %v6752_v21, %s7310_s25 }
 0x581   :  { %16245 = vst [vmem:[#allocation115_spill] sm:$0xff] %v11360_v11  ;;  %v3207_v11 = vmax.f32 %v3101_v38, %v3197_v14  ;;  %v11502_v38 = vld [vmem:[%s16049_s29 + $0x220] sm:$0xff]  ;;  %v16281_v14 = vmax.f32 %v10193_v57, 0.0  ;;  %v11521_v57 = vpop.permute.xlu2 %6573  ;;  %3420 = vmatpush.msrb.mxu2 %v16288_v28  ;;  %v16294_v28 = vunpack.c.l.bf16 %v11447_v9 }
 0x582   :  { %16248 = vst [vmem:[#allocation116_spill] sm:$0xff] %v11374_v25  ;;  %3370 = vmatpush.msrb.mxu0 %v16282_v42  ;;  %3393 = vmatpush.msrb.mxu1 %v16283_v46  ;;  %v11530_v42 = vld [vmem:[%s16049_s29 + $0x3b8] sm:$0xff] }
 0x583   :  { %16251 = vst [vmem:[#allocation117_spill] sm:$0xff] %v11385_v5  ;;  %v2983_v61 = vmax.f32 %v16281_v14, %v2973_v27  ;;  %v11541_v27 = vld [vmem:[%s16049_s29 + $0x218] sm:$0xff]  ;;  %v11601_v5 = vld [vmem:[%s16049_s29 + $0x210] sm:$0xff] }
 0x584   :  { %16252 = vst [vmem:[#allocation118_spill] sm:$0xff] %v11390_v22  ;;  %v11546_v14 = vld [vmem:[%s16049_s29 + $0x298] sm:$0xff]  ;;  %3371 = vmatpush.msrb.mxu0 %v16294_v28  ;;  %v16299_v22 = vunpack.c.l.bf16 %v11485_v3  ;;  %v4006_v35 = vld [vmem:[%s16308_s24] sm:$0xff]  ;;  %s7316_s24 = smov 111  }
 0x585   :  { %16253 = vst [vmem:[#allocation119_spill] sm:$0xff] %v11401_v51  ;;  %v11533_v46 = vmax.f32 %v2983_v61, %v3207_v11  ;;  %v11552_v61 = vpop.permute.xlu1 %6543  ;;  %v16293_v11 = vunpack.c.l.bf16 %v11442_v2  ;;  %v16301_v51 = vunpack.i.l.bf16 %v11039_v18 }
 0x586   :  { %16254 = vst [vmem:[#allocation120_spill] sm:$0xff] %v11406_v1  ;;  %v16291_v1 = vunpack.i.l.bf16 %v11199_v19  ;;  %v11564_v19 = vld [vmem:[%s16049_s29 + $0x3b0] sm:$0xff] }
 0x587   :  { %16260 = vst [vmem:[#allocation121_spill] sm:$0xff] %v11427_v62  ;;  %3436 = vmatpush.msrb.mxu3 %v16293_v11  ;;  %3331 = vmatmul.f32.vlgmr.msra.gmra.mxu2 %v11533_v46  ;;  %v16297_v11 = vunpack.c.l.bf16 %v11464_v4 }
 0x588   :  { %16263 = vst [vmem:[#allocation122_spill] sm:$0xff] %v11442_v2  ;;  %v3105_v21 = vsel %vm1276_vm6, %v16291_v1, %v6541_v54  ;;  %v6546_v1 = vunpack.i.h.bf16 %v11552_v61  ;;  %v11568_v2 = vpop.permute.xlu0 %6533  ;;  %4009 = vperm.xlu0 %6200, %v4006_v35   ;;  %v11671_v35 = vld [vmem:[%s16049_s29 + $0x280] sm:$0xff] }
 0x589   :  { %16264 = vst [vmem:[#allocation123_spill] sm:$0xff] %v11447_v9  ;;  %3394 = vmatpush.msrb.mxu1 %v16297_v11  ;;  %v6536_v62 = vunpack.i.h.bf16 %v11568_v2  ;;  %v16298_v9 = vunpack.c.l.bf16 %v11480_v12  ;;  %3437 = vmatpush.msrb.mxu3 %v16299_v22  ;;  %v16300_v11 = vunpack.i.l.bf16 %v11412_v29  ;;  %v16303_v22 = vunpack.c.l.bf16 %v11502_v38 }
 0x58a   :  { %16270 = vst [vmem:[#allocation52_spill] sm:$0xff] %v11464_v4  ;;  %v3199_v25 = vsel %vm1380_vm7, %v6546_v1, %v16301_v51 }
 0x58b   :  { %16274 = vst [vmem:[#allocation124_spill] sm:$0xff] %v11480_v12  ;;  %3421 = vmatpush.msrb.mxu2 %v16298_v9  ;;  %v3103_v28 = vsel %vm1276_vm6, %v6541_v54, %v16300_v11  ;;  %v16302_v12 = vunpack.i.l.bf16 %v11552_v61  ;;  %3372 = vmatpush.msrb.mxu0 %v16303_v22  ;;  %v11606_v54 = vld [vmem:[%s16049_s29 + $0x290] sm:$0xff] }
 0x58c   :  { %16275 = vst [vmem:[#allocation125_spill] sm:$0xff] %v11485_v3  ;;  %v3206_v11 = vmax.f32 %v3103_v28, %v3199_v25  ;;  %v11624_v25 = vld [vmem:[%s16049_s29 + $0x3a8] sm:$0xff]  ;;  %v16312_v28 = vmax.f32 %v10211_v16, 0.0  ;;  %v16318_v16 = vunpack.c.l.bf16 %v11541_v27 }
 0x58d   :  { %16280 = vst [vmem:[#allocation126_spill] sm:$0xff] %v11502_v38  ;;  %v3201_v9 = vsel %vm1380_vm7, %v16302_v12, %v6546_v1  ;;  %v16307_v1 = vunpack.i.l.bf16 %v11568_v2  ;;  %v16309_v38 = vunpack.c.l.bf16 %v11514_v10 }
 0x58e   :  { %16284 = vst [vmem:[#allocation127_spill] sm:$0xff] %v11514_v10  ;;  %v3205_v51 = vmax.f32 %v3105_v21, %v3201_v9  ;;  %v16311_v21 = vmax.f32 %v10202_v63, 0.0  ;;  %v16317_v63 = vunpack.c.h.bf16 %v10426_v47  ;;  %3373 = vmatpush.msrb.mxu0 %v16318_v16  ;;  %v16333_v16 = vunpack.c.h.bf16 %v10462_v53 }
 0x58f   :  { %16285 = vst [vmem:[#allocation128_spill] sm:$0xff] %v11519_v52  ;;  %v2977_v22 = vsel %vm1068_vm4, %v16307_v1, %v6536_v62  ;;  %3395 = vmatpush.msrb.mxu1 %v16309_v38  ;;  %v16314_v1 = vunpack.c.l.bf16 %v11530_v42  ;;  %v11637_v38 = vld [vmem:[%s16049_s29 + $0x208] sm:$0xff] }
 0x590   :  { %16286 = vst [vmem:[#allocation129_spill] sm:$0xff] %v11521_v57 }
 0x591   :  { %16287 = vst [vmem:[#allocation130_spill] sm:$0xff] %v11530_v42  ;;  %3438 = vmatpush.msrb.mxu3 %v16314_v1  ;;  %v16322_v1 = vunpack.c.l.bf16 %v11546_v14 }
 0x592   :  { %16289 = vst [vmem:[#allocation131_spill] sm:$0xff] %v11541_v27 }
 0x593   :  { %16290 = vst [vmem:[#allocation132_spill] sm:$0xff] %v11546_v14  ;;  %3396 = vmatpush.msrb.mxu1 %v16322_v1  ;;  %v16329_v1 = vunpack.c.l.bf16 %v11601_v5  ;;  %v16332_v14 = vunpack.c.l.bf16 %v11624_v25 }
 0x594   :  { %16292 = vst [vmem:[#allocation133_spill] sm:$0xff] %v11552_v61  ;;  %v16306_v61 = vunpack.i.l.bf16 %v11431_v37 }
 0x595   :  { %16295 = vst [vmem:[#allocation134_spill] sm:$0xff] %v11564_v19  ;;  %3374 = vmatpush.msrb.mxu0 %v16329_v1  ;;  %v11734_v1 = vld [vmem:[%s16049_s29 + $0x158] sm:$0xff] }
 0x596   :  { %16296 = vst [vmem:[#allocation135_spill] sm:$0xff] %v11568_v2  ;;  %v2975_v12 = vsel %vm1068_vm4, %v6536_v62, %v16306_v61  ;;  %v2981_v61 = vmax.f32 %v16311_v21, %v2977_v22  ;;  %v16313_v62 = vunpack.c.l.bf16 %v11519_v52  ;;  %v11642_v2 = vld [vmem:[%s16049_s29 + $0x288] sm:$0xff]  ;;  %v11653_v21 = vld [vmem:[%s16049_s29 + $0x3a0] sm:$0xff]  ;;  %v16376_v52 = vunpack.i.h.bf16 %v11039_v18  ;;  %v11923_v18 = vld [vmem:[%s16049_s29 + $0x1f8] sm:$0xff] }
 0x597   :  { %16304 = vst [vmem:[#allocation136_spill] sm:$0xff] %v11601_v5  ;;  %v2982_v9 = vmax.f32 %v16312_v28, %v2975_v12  ;;  %v11666_v22 = vld [vmem:[%s16049_s29 + $0x200] sm:$0xff]  ;;  %v11688_v12 = vpop.permute.xlu0 %6548 }
 0x598   :  { %16305 = vst [vmem:[#allocation137_spill] sm:$0xff] %v11606_v54  ;;  %3422 = vmatpush.msrb.mxu2 %v16313_v62  ;;  %v11655_v28 = vmax.f32 %v2981_v61, %v3205_v51  ;;  %v11673_v51 = vpop.permute.xlu2 %6588  ;;  %v16325_v61 = vunpack.c.l.bf16 %v11564_v19  ;;  %v16335_v19 = vunpack.c.l.bf16 %v11637_v38 }
 0x599   :  { %16310 = vst [vmem:[#allocation138_spill] sm:$0xff] %v11624_v25  ;;  %v11657_v62 = vmax.f32 %v2982_v9, %v3206_v11  ;;  %v11675_v11 = vpop.permute.xlu1 %6553  ;;  %v16326_v9 = vunpack.c.h.bf16 %v10431_v32  ;;  %v16330_v32 = vunpack.c.l.bf16 %v11606_v54  ;;  %v16336_v54 = vunpack.c.l.bf16 %v11642_v2 }
 0x59a   :  { %16315 = vst [vmem:[#allocation139_spill] sm:$0xff] %v11637_v38  ;;  %3499 = vmatpush.msra.mxu2 %v16317_v63  ;;  %3439 = vmatpush.msrb.mxu3 %v16325_v61  ;;  %v11686_v63 = vld [vmem:[%s16049_s29 + $0x398] sm:$0xff]  ;;  %v11708_v61 = vld [vmem:[%s16049_s29 + $0x390] sm:$0xff]  ;;  %v16343_v38 = vunpack.c.l.bf16 %v11666_v22  ;;  %v16344_v25 = vunpack.c.l.bf16 %v11671_v35  ;;  %v16389_v3 = vunpack.i.l.bf16 %v11675_v11 }
 0x59b   :  { %16316 = vst [vmem:[#allocation140_spill] sm:$0xff] %v11642_v2  ;;  %3285 = vmatmul.f32.vlgmr.msra.gmra.mxu0 %v11655_v28  ;;  %3308 = vmatmul.f32.vlgmr.msra.gmra.mxu1 %v11657_v62  ;;  %v11750_v2 = vld [vmem:[%s16049_s29 + $0x70] sm:$0xff]  ;;  %v16354_v27 = vunpack.c.l.bf16 %v11708_v61 }
 0x59c   :  { %16319 = vst [vmem:[#allocation141_spill] sm:$0xff] %v11653_v21  ;;  %3500 = vmatpush.msra.mxu2 %v16326_v9  ;;  %v11696_v9 = vld [vmem:[%s16049_s29 + $0x160] sm:$0xff]  ;;  %3397 = vmatpush.msrb.mxu1 %v16330_v32  ;;  %v11718_v32 = vld [vmem:[%s16049_s29 + $0x78] sm:$0xff] }
 0x59d   :  { %16320 = vst [vmem:[#allocation142_spill] sm:$0xff] %v11655_v28  ;;  %3440 = vmatpush.msrb.mxu3 %v16332_v14  ;;  %3375 = vmatpush.msrb.mxu0 %v16335_v19  ;;  %v11728_v14 = vld [vmem:[%s16049_s29 + $0xf8] sm:$0xff]  ;;  %v11740_v19 = vld [vmem:[%s16049_s29 + $0x388] sm:$0xff]  ;;  %v16341_v53 = vunpack.c.h.bf16 %v11696_v9  ;;  %v16392_v28 = vunpack.i.h.bf16 %v11688_v12 }
 0x59e   :  { %16321 = vst [vmem:[#allocation143_spill] sm:$0xff] %v11657_v62  ;;  %3501 = vmatpush.msra.mxu2 %v16333_v16  ;;  %3398 = vmatpush.msrb.mxu1 %v16336_v54  ;;  %v16340_v54 = vunpack.c.l.bf16 %v11653_v21  ;;  %v11766_v16 = vld [vmem:[%s16049_s29 + $0x150] sm:$0xff]  ;;  %v6560_v21 = vunpack.i.l.bf16 %v11362_v60 }
 0x59f   :  { %16323 = vst [vmem:[#allocation144_spill] sm:$0xff] %v11666_v22  ;;  %3376 = vmatpush.msrb.mxu0 %v16343_v38  ;;  %v11772_v38 = vld [vmem:[%s16049_s29 + $0x380] sm:$0xff]  ;;  %v6561_v22 = vunpack.i.h.bf16 %v11362_v60  ;;  %v6590_v60 = vunpack.i.l.bf16 %v11673_v51  ;;  %v11802_v5 = vpop.permute.xlu0 %6563 }
 0x5a0   :  { %16324 = vst [vmem:[#allocation145_spill] sm:$0xff] %v11671_v35  ;;  %3441 = vmatpush.msrb.mxu3 %v16340_v54  ;;  %3502 = vmatpush.msra.mxu2 %v16341_v53  ;;  %v11760_v54 = vld [vmem:[%s16049_s29 + $0xf0] sm:$0xff]  ;;  %v11782_v35 = vld [vmem:[%s16049_s29 + $0x68] sm:$0xff] }
 0x5a1   :  { %16327 = vst [vmem:[#allocation146_spill] sm:$0xff] %v11686_v63  ;;  %3399 = vmatpush.msrb.mxu1 %v16344_v25  ;;  %v16348_v25 = vunpack.c.l.bf16 %v11686_v63  ;;  %v11788_v63 = vpop.permute.xlu1 %6568  ;;  %v11797_v53 = vld [vmem:[%s16049_s29 + $0xe8] sm:$0xff]  ;;  %v16358_v42 = vunpack.c.h.bf16 %v11760_v54 }
 0x5a2   :  { %16328 = vst [vmem:[#allocation147_spill] sm:$0xff] %v11696_v9  ;;  %v16349_v9 = vunpack.c.h.bf16 %v11718_v32 }
 0x5a3   :  { %16331 = vst [vmem:[#allocation148_spill] sm:$0xff] %v11708_v61  ;;  %3442 = vmatpush.msrb.mxu3 %v16348_v25  ;;  %v16351_v25 = vunpack.c.h.bf16 %v11728_v14  ;;  %v16359_v61 = vunpack.c.h.bf16 %v11766_v16 }
 0x5a4   :  { %16334 = vst [vmem:[#allocation149_spill] sm:$0xff] %v11718_v32  ;;  %3453 = vmatpush.msra.mxu0 %v16349_v9  ;;  %v16352_v9 = vunpack.c.h.bf16 %v11734_v1  ;;  %v6575_v32 = vunpack.i.l.bf16 %v11521_v57 }
 0x5a5   :  { %16337 = vst [vmem:[#allocation150_spill] sm:$0xff] %v11728_v14  ;;  %3476 = vmatpush.msra.mxu1 %v16351_v25  ;;  %3443 = vmatpush.msrb.mxu3 %v16354_v27  ;;  %v16355_v25 = vunpack.c.h.bf16 %v11750_v2  ;;  %v11815_v14 = vpop.permute.xlu2 %6603  ;;  %v11824_v27 = vld [vmem:[%s16049_s29 + $0x60] sm:$0xff] }
 0x5a6   :  { %16338 = vst [vmem:[#allocation151_spill] sm:$0xff] %v11734_v1  ;;  %3503 = vmatpush.msra.mxu2 %v16352_v9  ;;  %v11811_v9 = vld [vmem:[%s16049_s29 + $0x148] sm:$0xff]  ;;  %v11830_v1 = vld [vmem:[%s16049_s29 + $0xe0] sm:$0xff] }
 0x5a7   :  { %16339 = vst [vmem:[#allocation152_spill] sm:$0xff] %v11740_v19  ;;  %3454 = vmatpush.msra.mxu0 %v16355_v25  ;;  %3477 = vmatpush.msra.mxu1 %v16358_v42  ;;  %v16363_v42 = vunpack.c.h.bf16 %v11782_v35  ;;  %v16370_v25 = vunpack.c.l.bf16 %v11772_v38 }
 0x5a8   :  { %16342 = vst [vmem:[#allocation153_spill] sm:$0xff] %v11750_v2  ;;  %3504 = vmatpush.msra.mxu2 %v16359_v61  ;;  %v11840_v61 = vld [vmem:[%s16049_s29 + $0x140] sm:$0xff]  ;;  %v16365_v2 = vunpack.i.h.bf16 %v11521_v57  ;;  %v16393_v57 = vunpack.i.l.bf16 %v11688_v12 }
 0x5a9   :  { %16345 = vst [vmem:[#allocation154_spill] sm:$0xff] %v11760_v54  ;;  %v16362_v54 = vunpack.c.l.bf16 %v11740_v19  ;;  %3455 = vmatpush.msra.mxu0 %v16363_v42  ;;  %v11858_v42 = vld [vmem:[%s16049_s29 + $0x58] sm:$0xff] }
 0x5aa   :  { %16346 = vst [vmem:[#allocation155_spill] sm:$0xff] %v11766_v16  ;;  %v11845_v16 = vsel %vm1380_vm7, %v6560_v21, %v6561_v22  ;;  %v11851_v47 = vsel %vm1380_vm7, %v6561_v22, %v16365_v2  ;;  %v11869_v2 = vsel %vm1380_vm7, %v6575_v32, %v6560_v21  ;;  %v11883_v19 = vld [vmem:[%s16049_s29 + $0x138] sm:$0xff]  ;;  %v11901_v21 = vld [vmem:[%s16049_s29 + $0xd0] sm:$0xff]  ;;  %v11918_v22 = vpop.permute.xlu1 %6578 }
 0x5ab   :  { %16347 = vst [vmem:[#allocation156_spill] sm:$0xff] %v11772_v38  ;;  %3444 = vmatpush.msrb.mxu3 %v16362_v54  ;;  %v16366_v54 = vunpack.c.h.bf16 %v11797_v53  ;;  %v16385_v38 = vunpack.c.h.bf16 %v11883_v19  ;;  %v16391_v62 = vunpack.c.h.bf16 %v11901_v21 }
 0x5ac   :  { %16350 = vst [vmem:[#allocation157_spill] sm:$0xff] %v11782_v35  ;;  %v11864_v35 = vld [vmem:[%s16049_s29 + $0xd8] sm:$0xff] }
 0x5ad   :  { %16353 = vst [vmem:[#allocation158_spill] sm:$0xff] %v11797_v53  ;;  %3478 = vmatpush.msra.mxu1 %v16366_v54  ;;  %v11874_v54 = vsel %vm1380_vm7, %v6590_v60, %v6575_v32  ;;  %v16369_v53 = vunpack.c.h.bf16 %v11811_v9  ;;  %3445 = vmatpush.msrb.mxu3 %v16370_v25  ;;  %v16372_v32 = vunpack.c.h.bf16 %v11824_v27  ;;  %v11915_v25 = vld [vmem:[%s16049_s29 + $0x130] sm:$0xff] }
 0x5ae   :  { %16356 = vst [vmem:[#allocation159_spill] sm:$0xff] %v11811_v9  ;;  %v16373_v9 = vunpack.c.h.bf16 %v11830_v1 }
 0x5af   :  { %16357 = vst [vmem:[#allocation160_spill] sm:$0xff] %v11815_v14  ;;  %3505 = vmatpush.msra.mxu2 %v16369_v53  ;;  %3456 = vmatpush.msra.mxu0 %v16372_v32  ;;  %v11895_v53 = vld [vmem:[%s16049_s29 + $0x50] sm:$0xff]  ;;  %v3195_v32 = vsel %vm1380_vm7, %v16376_v52, %v6590_v60  ;;  %v16380_v60 = vunpack.c.h.bf16 %v11858_v42  ;;  %v11957_v52 = vld [vmem:[%s16049_s29 + $0xc8] sm:$0xff] }
 0x5b0   :  { %16360 = vst [vmem:[#allocation161_spill] sm:$0xff] %v11824_v27  ;;  %3479 = vmatpush.msra.mxu1 %v16373_v9  ;;  %v16377_v27 = vunpack.c.h.bf16 %v11840_v61  ;;  %v11939_v9 = vld [vmem:[%s16049_s29 + $0x1e8] sm:$0xff]  ;;  %v16390_v10 = vunpack.c.h.bf16 %v11895_v53 }
 0x5b1   :  { %16361 = vst [vmem:[#allocation162_spill] sm:$0xff] %v11830_v1  ;;  %3457 = vmatpush.msra.mxu0 %v16380_v60  ;;  %v11933_v1 = vld [vmem:[%s16049_s29 + $0x1f0] sm:$0xff]  ;;  %v11945_v60 = vld [vmem:[%s16049_s29 + $0x48] sm:$0xff] }
 0x5b2   :  { %16364 = vst [vmem:[#allocation163_spill] sm:$0xff] %v11840_v61  ;;  %3506 = vmatpush.msra.mxu2 %v16377_v27  ;;  %v16381_v27 = vunpack.c.h.bf16 %v11864_v35  ;;  %v11950_v61 = vpop.permute.xlu0 %6583 }
 0x5b3   :  { %16367 = vst [vmem:[#allocation164_spill] sm:$0xff] %v11858_v42  ;;  %v16388_v42 = vunpack.i.h.bf16 %v11675_v11  ;;  %3458 = vmatpush.msra.mxu0 %v16390_v10  ;;  %v16396_v10 = vunpack.c.h.bf16 %v11915_v25 }
 0x5b4   :  { %16368 = vst [vmem:[#allocation165_spill] sm:$0xff] %v11864_v35  ;;  %3480 = vmatpush.msra.mxu1 %v16381_v27  ;;  %3507 = vmatpush.msra.mxu2 %v16385_v38  ;;  %v11963_v27 = vld [vmem:[%s16049_s29 + $0x128] sm:$0xff]  ;;  %v16402_v35 = vunpack.c.h.bf16 %v11945_v60 }
 0x5b5   :  { %16371 = vst [vmem:[#allocation166_spill] sm:$0xff] %v11883_v19  ;;  %v11972_v38 = vsel %vm1276_vm6, %v16389_v3, %v16388_v42  ;;  %v2965_v3 = vsel %vm1068_vm4, %v16393_v57, %v16392_v28  ;;  %v16394_v42 = vunpack.i.l.bf16 %v11918_v22  ;;  %v16395_v19 = vunpack.i.h.bf16 %v11431_v37  ;;  %v12004_v57 = vld [vmem:[%s16049_s29 + $0x120] sm:$0xff]  ;;  %v12007_v28 = vpop.permute.xlu2 %6618  ;;  %v12043_v37 = vld [vmem:[%s16049_s29 + $0xb8] sm:$0xff] }
 0x5b6   :  { %16374 = vst [vmem:[#allocation167_spill] sm:$0xff] %v11895_v53  ;;  %3481 = vmatpush.msra.mxu1 %v16391_v62  ;;  %3508 = vmatpush.msra.mxu2 %v16396_v10  ;;  %v11998_v62 = vld [vmem:[%s16049_s29 + $0xc0] sm:$0xff]  ;;  %v16400_v10 = vunpack.i.l.bf16 %v11950_v61 }
 0x5b7   :  { %16375 = vst [vmem:[#allocation168_spill] sm:$0xff] %v11901_v21  ;;  %v2971_v4 = vsel %vm1068_vm4, %v16395_v19, %v16394_v42  ;;  %v16399_v19 = vmax.f32 %v10196_v36, 0.0  ;;  %3459 = vmatpush.msra.mxu0 %v16402_v35  ;;  %v12022_v53 = vld [vmem:[%s16049_s29 + $0x1e0] sm:$0xff]  ;;  %v16406_v35 = vunpack.i.l.bf16 %v11815_v14  ;;  %v16420_v36 = vunpack.c.h.bf16 %v11923_v18 }
 0x5b8   :  { %16378 = vst [vmem:[#allocation169_spill] sm:$0xff] %v11915_v25  ;;  %v16401_v25 = vunpack.i.h.bf16 %v11412_v29  ;;  %v16404_v29 = vunpack.c.h.bf16 %v11957_v52 }
 0x5b9   :  { %16379 = vst [vmem:[#allocation170_spill] sm:$0xff] %v11923_v18  ;;  %v2984_v42 = vmax.f32 %v16399_v19, %v2971_v4  ;;  %v12055_v4 = vld [vmem:[%s16049_s29 + $0x1d8] sm:$0xff]  ;;  %v16444_v18 = vunpack.c.h.bf16 %v10855_v39 }
 0x5ba   :  { %16382 = vst [vmem:[#allocation171_spill] sm:$0xff] %v11933_v1  ;;  %v3099_v21 = vsel %vm1276_vm6, %v16401_v25, %v16400_v10  ;;  %3482 = vmatpush.msra.mxu1 %v16404_v29  ;;  %v16405_v25 = vunpack.c.h.bf16 %v11963_v27  ;;  %v16407_v10 = vunpack.i.h.bf16 %v11673_v51 }
 0x5bb   :  { %16383 = vst [vmem:[#allocation172_spill] sm:$0xff] %v11939_v9  ;;  %v3208_v19 = vmax.f32 %v3099_v21, %v3195_v32  ;;  %v16409_v32 = vmax.f32 %v10227_v26, 0.0  ;;  %v12067_v26 = vld [vmem:[%s16049_s29 + $0x1d0] sm:$0xff]  ;;  %v16419_v21 = vunpack.c.h.bf16 %v12043_v37 }
 0x5bc   :  { %16384 = vst [vmem:[#allocation173_spill] sm:$0xff] %v11945_v60  ;;  %3509 = vmatpush.msra.mxu2 %v16405_v25  ;;  %v12038_v60 = vsel %vm1380_vm7, %v16407_v10, %v16406_v35  ;;  %v16410_v25 = vunpack.c.h.bf16 %v10715_v49  ;;  %v12061_v10 = vld [vmem:[%s16049_s29 + $0x118] sm:$0xff]  ;;  %v16415_v35 = vunpack.c.h.bf16 %v12004_v57  ;;  %v12080_v49 = vpop.permute.xlu1 %6598 }
 0x5bd   :  { %16386 = vst [vmem:[#allocation174_spill] sm:$0xff] %v11957_v52  ;;  %v12048_v29 = vmax.f32 %v16409_v32, %v2965_v3  ;;  %v12070_v32 = vmax.f32 %v2984_v42, %v3208_v19  ;;  %v16417_v3 = vunpack.c.h.bf16 %v10745_v8  ;;  %v6620_v19 = vunpack.i.l.bf16 %v12007_v28 }
 0x5be   :  { %16387 = vst [vmem:[#allocation175_spill] sm:$0xff] %v11963_v27  ;;  %3460 = vmatpush.msra.mxu0 %v16410_v25  ;;  %v16414_v25 = vunpack.c.h.bf16 %v11998_v62  ;;  %3510 = vmatpush.msra.mxu2 %v16415_v35  ;;  %v12089_v27 = vpop.permute.xlu0 %6593  ;;  %v16423_v42 = vunpack.i.h.bf16 %v11950_v61  ;;  %v16425_v35 = vunpack.c.h.bf16 %v10782_v30 }
 0x5bf   :  { %16397 = vst [vmem:[#allocation176_spill] sm:$0xff] %v11998_v62  ;;  %3354 = vmatmul.f32.vlgmr.msra.gmra.mxu3 %v12070_v32  ;;  %v16431_v62 = vunpack.c.h.bf16 %v10800_v40 }
 0x5c0   :  { %16398 = vst [vmem:[#allocation177_spill] sm:$0xff] %v12004_v57  ;;  %3483 = vmatpush.msra.mxu1 %v16414_v25  ;;  %3461 = vmatpush.msra.mxu0 %v16417_v3  ;;  %v16421_v57 = vunpack.c.h.bf16 %v12061_v10  ;;  %v16422_v3 = vunpack.i.l.bf16 %v12080_v49  ;;  %v16424_v25 = vunpack.c.h.bf16 %v10777_v48 }
 0x5c1   :  { %16403 = vst [vmem:[#allocation178_spill] sm:$0xff] %v12022_v53  ;;  %3522 = vmatpush.msra.mxu3 %v16420_v36 }
 0x5c2   :  { %16408 = vst [vmem:[#allocation179_spill] sm:$0xff] %v12043_v37  ;;  %3484 = vmatpush.msra.mxu1 %v16419_v21  ;;  %3511 = vmatpush.msra.mxu2 %v16421_v57  ;;  %v3102_v37 = vsel %vm1276_vm6, %v16423_v42, %v16422_v3  ;;  %v16426_v57 = vunpack.i.l.bf16 %v11675_v11  ;;  %v16427_v21 = vunpack.i.l.bf16 %v11788_v63  ;;  %v16428_v42 = vunpack.c.h.bf16 %v11933_v1 }
 0x5c3   :  { %16411 = vst [vmem:[#allocation180_spill] sm:$0xff] %v12055_v4  ;;  %3462 = vmatpush.msra.mxu0 %v16424_v25  ;;  %v16429_v25 = vunpack.i.l.bf16 %v12089_v27  ;;  %v16430_v3 = vunpack.i.h.bf16 %v11918_v22  ;;  %v3223_v36 = vmax.f32 %v3102_v37, %v12038_v60  ;;  %v16434_v1 = vunpack.c.h.bf16 %v10816_v7  ;;  %v12152_v60 = vld [vmem:[%s16049_s29 + $0x1c0] sm:$0xff] }
 0x5c4   :  { %16412 = vst [vmem:[#allocation181_spill] sm:$0xff] %v12061_v10  ;;  %3485 = vmatpush.msra.mxu1 %v16425_v35  ;;  %v12123_v52 = vsel %vm1276_vm6, %v16427_v21, %v16426_v57  ;;  %3523 = vmatpush.msra.mxu3 %v16428_v42  ;;  %v16432_v21 = vmax.f32 %v10322_v20, 0.0  ;;  %v12142_v10 = vld [vmem:[%s16049_s29 + $0x1c8] sm:$0xff]  ;;  %v16437_v37 = vunpack.i.h.bf16 %v11788_v63  ;;  %v16441_v20 = vunpack.i.h.bf16 %v11815_v14 }
 0x5c5   :  { %16413 = vst [vmem:[#allocation182_spill] sm:$0xff] %v12067_v26  ;;  %v2974_v35 = vsel %vm1068_vm4, %v16430_v3, %v16429_v25  ;;  %3512 = vmatpush.msra.mxu2 %v16431_v62  ;;  %3463 = vmatpush.msra.mxu0 %v16434_v1  ;;  %v16435_v25 = vunpack.c.h.bf16 %v10831_v50  ;;  %v16438_v3 = vunpack.i.h.bf16 %v11675_v11  ;;  %v12164_v1 = vpop.permute.xlu2 %6633  ;;  %v16447_v11 = vunpack.i.l.bf16 %v11802_v5 }
 0x5c6   :  { %16416 = vst [vmem:[#allocation183_spill] sm:$0xff] %v12080_v49  ;;  %v2999_v57 = vmax.f32 %v16432_v21, %v2974_v35  ;;  %v16439_v21 = vunpack.c.h.bf16 %v11939_v9  ;;  %v3202_v42 = vsel %vm1380_vm7, %v16441_v20, %v6620_v19  ;;  %v16443_v9 = vunpack.i.h.bf16 %v11688_v12 }
 0x5c7   :  { %16418 = vst [vmem:[#allocation184_spill] sm:$0xff] %v12089_v27  ;;  %3486 = vmatpush.msra.mxu1 %v16435_v25  ;;  %v12162_v35 = vsel %vm1276_vm6, %v16438_v3, %v16437_v37  ;;  %v16440_v25 = vunpack.c.h.bf16 %v10836_v23  ;;  %v16442_v3 = vunpack.i.h.bf16 %v11802_v5  ;;  %3464 = vmatpush.msra.mxu0 %v16444_v18  ;;  %v16445_v20 = vunpack.c.h.bf16 %v10870_v41 }
 0x5c8   :  { %16433 = vst [vmem:[#allocation185_spill] sm:$0xff] %v12142_v10  ;;  %3524 = vmatpush.msra.mxu3 %v16439_v21  ;;  %v16446_v37 = vunpack.i.l.bf16 %v11688_v12  ;;  %v16450_v18 = vunpack.i.h.bf16 %v11673_v51  ;;  %v16451_v12 = vunpack.i.h.bf16 %v12007_v28  ;;  %v16453_v51 = vunpack.c.h.bf16 %v10902_v13 }
 0x5c9   :  { %16436 = vst [vmem:[#allocation186_spill] sm:$0xff] %v12152_v60  ;;  %3513 = vmatpush.msra.mxu2 %v16440_v25  ;;  %v12184_v21 = vsel %vm1068_vm4, %v16443_v9, %v16442_v3  ;;  %v12186_v25 = vmax.f32 %v2999_v57, %v3223_v36  ;;  %3487 = vmatpush.msra.mxu1 %v16445_v20  ;;  %v16448_v9 = vunpack.c.h.bf16 %v12022_v53  ;;  %v12201_v36 = vpop.permute.xlu1 %6613  ;;  %v16449_v57 = vunpack.c.h.bf16 %v10875_v6  ;;  %v12219_v53 = vpop.permute.xlu0 %6608  ;;  %v16469_v6 = vld [vmem:[#allocation48_spill] sm:$0xff] }
 0x5ca   :  { %v2967_v23 = vsel %vm1068_vm4, %v16447_v11, %v16446_v37  ;;  %v3200_v3 = vsel %vm1380_vm7, %v6620_v19, %v16450_v18  ;;  %v16452_v20 = vunpack.i.l.bf16 %v11815_v14  ;;  %3465 = vmatpush.msra.mxu0 %v16453_v51  ;;  %v16454_v37 = vunpack.c.h.bf16 %v12055_v4 }
 0x5cb   :  { %3525 = vmatpush.msra.mxu3 %v16448_v9  ;;  %3514 = vmatpush.msra.mxu2 %v16449_v57  ;;  %v6615_v57 = vunpack.i.l.bf16 %v12201_v36  ;;  %v16455_v62 = vunpack.c.h.bf16 %v10907_v56  ;;  %v16456_v14 = vunpack.i.h.bf16 %v12080_v49  ;;  %v16457_v19 = vunpack.i.h.bf16 %v11950_v61 }
 0x5cc   :  { %v3196_v11 = vsel %vm1380_vm7, %v16452_v20, %v16451_v12  ;;  %3334 = vmatmul.f32.gmra.mxu2 %v12186_v25  ;;  %v6610_v20 = vunpack.i.l.bf16 %v12219_v53  ;;  %v16458_v18 = vunpack.i.h.bf16 %v12201_v36  ;;  %v16459_v4 = vunpack.i.l.bf16 %v12080_v49 }
 0x5cd   :  { %3526 = vmatpush.msra.mxu3 %v16454_v37  ;;  %3488 = vmatpush.msra.mxu1 %v16455_v62  ;;  %v3106_v51 = vsel %vm1276_vm6, %v16456_v14, %v6615_v57  ;;  %v3104_v12 = vsel %vm1276_vm6, %v6615_v57, %v16457_v19  ;;  %v16460_v62 = vunpack.c.h.bf16 %v10941_v0  ;;  %v16461_v56 = vunpack.c.h.bf16 %v12067_v26 }
 0x5ce   :  { %v3100_v37 = vsel %vm1276_vm6, %v16459_v4, %v16458_v18  ;;  %v16462_v14 = vunpack.i.h.bf16 %v12089_v27  ;;  %v3221_v19 = vmax.f32 %v3106_v51, %v3202_v42  ;;  %v16463_v13 = vunpack.i.h.bf16 %v11918_v22 }
 0x5cf   :  { %3466 = vmatpush.msra.mxu0 %v16460_v62  ;;  %3527 = vmatpush.msra.mxu3 %v16461_v56  ;;  %v3222_v4 = vmax.f32 %v3104_v12, %v3200_v3  ;;  %v16464_v18 = vmax.f32 %v10379_v45, 0.0  ;;  %v16465_v9 = vmax.f32 %v10401_v31, 0.0  ;;  %v16466_v56 = vunpack.i.h.bf16 %v12219_v53  ;;  %v16472_v12 = vld [vmem:[#allocation49_spill] sm:$0xff] }
 0x5d0   :  { %v2978_v57 = vsel %vm1068_vm4, %v16462_v14, %v6610_v20  ;;  %v2976_v49 = vsel %vm1068_vm4, %v6610_v20, %v16463_v13  ;;  %v16467_v26 = vunpack.i.l.bf16 %v12089_v27  ;;  %v3224_v42 = vmax.f32 %v3100_v37, %v3196_v11 }
 0x5d1   :  { %v2997_v62 = vmax.f32 %v16464_v18, %v2978_v57  ;;  %v2998_v0 = vmax.f32 %v16465_v9, %v2976_v49  ;;  %v16468_v51 = vunpack.c.h.bf16 %v10954_v15  ;;  %v16470_v13 = vmax.f32 %v16469_v6, 0.0 }
 0x5d2   :  { %v2972_v14 = vsel %vm1068_vm4, %v16467_v26, %v16466_v56  ;;  %v16471_v45 = vunpack.c.h.bf16 %v12142_v10  ;;  %v16473_v31 = vmax.f32 %v16472_v12, 0.0  ;;  %v16474_v9 = vmax.f32 %v11972_v38, %v11845_v16  ;;  %v12287_v26 = vld [vmem:[%s16049_s29 + $0x378] sm:$0xff] }
 0x5d3   :  { %3489 = vmatpush.msra.mxu1 %v16468_v51  ;;  %v2986_v3 = vmax.f32 %v16470_v13, %v2967_v23  ;;  %16475 = vst [vmem:[#allocation48_spill] sm:$0xff] %v12287_v26  ;;  %v15704_v6 = vunpack.c.h.bf16 %v12287_v26  ;;  %v16476_v23 = vunpack.c.h.bf16 %v10978_v58  ;;  %v12294_v57 = vmax.f32 %v2997_v62, %v3221_v19  ;;  %v12312_v62 = vpop.permute.xlu2 %6648 }
 0x5d4   :  { %3528 = vmatpush.msra.mxu3 %v16471_v45  ;;  %v3000_v49 = vmax.f32 %v16473_v31, %v2972_v14  ;;  %v12282_v20 = vmax.f32 %v12048_v29, %v16474_v9  ;;  %v12296_v16 = vmax.f32 %v2998_v0, %v3222_v4  ;;  %v16477_v38 = vunpack.c.h.bf16 %v10995_v59  ;;  %v12316_v4 = vpop.permute.xlu1 %6628  ;;  %v12325_v45 = vld [vmem:[%s16049_s29 + $0x80] sm:$0xff]  ;;  %v12330_v9 = vpop.permute.xlu0 %6623 }
 0x5d5   :  { %3467 = vmatpush.msra.mxu0 %v16476_v23  ;;  %v16478_v29 = vunpack.i.l.bf16 %v11802_v5  ;;  %v16479_v18 = vunpack.i.l.bf16 %v11918_v22  ;;  %v16480_v14 = vunpack.i.l.bf16 %v11788_v63  ;;  %v16481_v51 = vunpack.i.l.bf16 %v11950_v61  ;;  %16484 = vst [vmem:[#allocation49_spill] sm:$0xff] %v12325_v45  ;;  %v12343_v23 = vld [vmem:[%s16049_s29 + $0x370] sm:$0xff] }
 0x5d6   :  { %3490 = vmatpush.msra.mxu1 %v16477_v38  ;;  %v16482_v0 = vunpack.c.h.bf16 %v12152_v60  ;;  %v12318_v13 = vmax.f32 %v3000_v49, %v3224_v42  ;;  %v16483_v22 = vunpack.c.h.bf16 %v11016_v33  ;;  %v15703_v61 = vunpack.c.h.bf16 %v12325_v45  ;;  %3288 = vmatmul.f32.gmra.mxu0 %v12294_v57  ;;  %v12337_v42 = vld [vmem:[%s16049_s29 + $0x1b0] sm:$0xff]  ;;  %16486 = vst [vmem:[#allocation188_spill] sm:$0xff] %v12343_v23  ;;  %v16489_v49 = vld [vmem:[#allocation50_spill] sm:$0xff] }
 0x5d7   :  { %v2969_v56 = vsel %vm1068_vm4, %v16479_v18, %v16478_v29  ;;  %v3097_v19 = vsel %vm1276_vm6, %v16481_v51, %v16480_v14  ;;  %v15706_v12 = vunpack.i.h.bf16 %v12316_v4  ;;  %3311 = vmatmul.f32.gmra.mxu1 %v12296_v16  ;;  %16485 = vst [vmem:[#allocation187_spill] sm:$0xff] %v12337_v42  ;;  %v3212_v29 = vmax.f32 %v12162_v35, %v11851_v47  ;;  %v16487_v18 = vld [vmem:[#allocation46_spill] sm:$0xff]  ;;  %v12365_v47 = vld [vmem:[%s16049_s29 + $0x1a8] sm:$0xff] }
 0x5d8   :  { %3529 = vmatpush.msra.mxu3 %v16482_v0  ;;  %3468 = vmatpush.msra.mxu0 %v16483_v22  ;;  %v16488_v14 = vmax.f32 %v16487_v18, 0.0  ;;  %v15705_v0 = vunpack.i.h.bf16 %v12330_v9  ;;  %v15707_v22 = vunpack.i.l.bf16 %v12330_v9  ;;  %v16490_v37 = vmax.f32 %v16489_v49, 0.0  ;;  %16492 = vst [vmem:[#allocation46_spill] sm:$0xff] %v12365_v47 }
 0x5d9   :  { %3357 = vmatmul.f32.gmra.mxu3 %v12318_v13  ;;  %3423 = vmatmul.f32.vlgmr.msrb.gmra.mxu2 %v12282_v20  ;;  %v3209_v38 = vmax.f32 %v3097_v19, %v11874_v54  ;;  %v16491_v31 = vunpack.c.h.bf16 %v10886_v34  ;;  %v16496_v18 = vunpack.i.h.bf16 %v12164_v1  ;;  %v16502_v54 = vld [vmem:[#allocation56_spill] sm:$0xff]  ;;  %v16522_v26 = vunpack.i.h.bf16 %v12312_v62 }
 0x5da   :  { %v2988_v51 = vmax.f32 %v16488_v14, %v12184_v21  ;;  %v2985_v11 = vmax.f32 %v16490_v37, %v2969_v56  ;;  %3591 = vmatpush.msrb.mxu2 %v15704_v6  ;;  %v12371_v21 = vld [vmem:[%s16049_s29 + $0x368] sm:$0xff]  ;;  %v12377_v37 = vld [vmem:[%s16049_s29 + $0x1a0] sm:$0xff]  ;;  %3491 = vmatpush.msra.mxu1 %v15703_v61  ;;  %v2966_v19 = vsel %vm1068_vm4, %v15707_v22, %v15705_v0  ;;  %v16497_v14 = vunpack.i.l.bf16 %v12164_v1 }
 0x5db   :  { %3530 = vmatpush.msra.mxu3 %v16491_v31  ;;  %16493 = vst [vmem:[#allocation50_spill] sm:$0xff] %v12371_v21  ;;  %v16495_v31 = vunpack.i.l.bf16 %v12316_v4  ;;  %v16498_v6 = vunpack.c.h.bf16 %v12337_v42  ;;  %v16499_v56 = vunpack.c.h.bf16 %v12343_v23  ;;  %v12407_v0 = vld [vmem:[%s16049_s29 + $0x360] sm:$0xff]  ;;  %v16523_v60 = vunpack.i.h.bf16 %v12164_v1 }
 0x5dc   :  { %16494 = vst [vmem:[#allocation189_spill] sm:$0xff] %v12377_v37  ;;  %v3190_v61 = vsel %vm1380_vm7, %v16497_v14, %v16496_v18  ;;  %v16503_v18 = vmax.f32 %v16502_v54, 0.0  ;;  %v12418_v45 = vmax.f32 %v2988_v51, %v3212_v29  ;;  %v12437_v29 = vmax.f32 %v2985_v11, %v3209_v38  ;;  %v12444_v54 = vld [vmem:[%s16049_s29 + $0x2f8] sm:$0xff]  ;;  %v12458_v11 = vld [vmem:[%s16049_s29 + $0x190] sm:$0xff] }
 0x5dd   :  { %v3094_v49 = vsel %vm1276_vm6, %v16495_v31, %v15706_v12  ;;  %3531 = vmatpush.msra.mxu3 %v16498_v6  ;;  %3592 = vmatpush.msrb.mxu2 %v16499_v56  ;;  %16500 = vst [vmem:[#allocation190_spill] sm:$0xff] %v12407_v0  ;;  %v16501_v12 = vmax.f32 %v12123_v52, %v11869_v2  ;;  %v6650_v6 = vunpack.i.l.bf16 %v12312_v62  ;;  %v12423_v56 = vld [vmem:[%s16049_s29 + $0x198] sm:$0xff]  ;;  %v16514_v52 = vunpack.c.h.bf16 %v12407_v0  ;;  %v12478_v31 = vpop.permute.xlu0 %6638  ;;  %v12514_v0 = vld [vmem:[%s16049_s29 + $0x2e8] sm:$0xff] }
 0x5de   :  { %v3003_v14 = vmax.f32 %v16503_v18, %v2966_v19  ;;  %v3227_v35 = vmax.f32 %v3094_v49, %v3190_v61  ;;  %16504 = vst [vmem:[#allocation56_spill] sm:$0xff] %v12423_v56  ;;  %v12429_v2 = vld [vmem:[%s16049_s29 + $0x278] sm:$0xff]  ;;  %v16506_v61 = vunpack.c.h.bf16 %v12365_v47  ;;  %v12447_v49 = vpop.permute.xlu1 %6643  ;;  %v16513_v19 = vunpack.c.h.bf16 %v12377_v37  ;;  %v12498_v37 = vpop.permute.xlu2 %6663  ;;  %3377 = vmatmul.f32.vlgmr.msrb.gmra.mxu0 %v12437_v29 }
 0x5df   :  { %v12413_v22 = vmax.f32 %v2986_v3, %v16501_v12  ;;  %16505 = vst [vmem:[#allocation191_spill] sm:$0xff] %v12429_v2  ;;  %v16507_v12 = vunpack.c.h.bf16 %v12371_v21  ;;  %v12452_v18 = vld [vmem:[%s16049_s29 + $0x358] sm:$0xff]  ;;  %v6645_v38 = vunpack.i.l.bf16 %v12447_v49  ;;  %v6640_v47 = vunpack.i.l.bf16 %v12478_v31 }
 0x5e0   :  { %3532 = vmatpush.msra.mxu3 %v16506_v61  ;;  %v12439_v51 = vmax.f32 %v3003_v14, %v3227_v35  ;;  %16508 = vst [vmem:[#allocation192_spill] sm:$0xff] %v12444_v54  ;;  %v12464_v35 = vld [vmem:[%s16049_s29 + $0x270] sm:$0xff]  ;;  %v12489_v61 = vld [vmem:[%s16049_s29 + $0x188] sm:$0xff]  ;;  %v16520_v3 = vunpack.i.h.bf16 %v12201_v36  ;;  %v3188_v10 = vsel %vm1380_vm7, %v16523_v60, %v16522_v26  ;;  %v16524_v27 = vunpack.c.h.bf16 %v12423_v56 }
 0x5e1   :  { %3593 = vmatpush.msrb.mxu2 %v16507_v12  ;;  %16509 = vst [vmem:[#allocation193_spill] sm:$0xff] %v12452_v18  ;;  %v12470_v12 = vld [vmem:[%s16049_s29 + $0x2f0] sm:$0xff]  ;;  %3400 = vmatmul.f32.vlgmr.msrb.gmra.mxu1 %v12413_v22  ;;  %v16525_v36 = vunpack.c.h.bf16 %v12429_v2  ;;  %v16528_v60 = vunpack.i.l.bf16 %v12330_v9  ;;  %v16529_v26 = vunpack.c.h.bf16 %v12444_v54  ;;  %v16534_v2 = vld [vmem:[#allocation10_spill] sm:$0xff] }
 0x5e2   :  { %16510 = vst [vmem:[#allocation194_spill] sm:$0xff] %v12458_v11  ;;  %3533 = vmatpush.msra.mxu3 %v16513_v19  ;;  %v12483_v14 = vld [vmem:[%s16049_s29 + $0x350] sm:$0xff]  ;;  %v16518_v19 = vunpack.i.h.bf16 %v12007_v28  ;;  %3426 = vmatmul.f32.gmra.mxu2 %v12439_v51  ;;  %v3098_v42 = vsel %vm1276_vm6, %v16520_v3, %v6645_v38  ;;  %v16521_v28 = vunpack.i.l.bf16 %v12164_v1  ;;  %v12538_v3 = vld [vmem:[%s16049_s29 + $0x348] sm:$0xff]  ;;  %v16535_v56 = vmax.f32 %v16534_v2, 0.0 }
 0x5e3   :  { %16511 = vst [vmem:[#allocation195_spill] sm:$0xff] %v12464_v35  ;;  %3594 = vmatpush.msrb.mxu2 %v16514_v52  ;;  %v12495_v52 = vld [vmem:[%s16049_s29 + $0x268] sm:$0xff]  ;;  %3446 = vmatmul.f32.vlgmr.msrb.gmra.mxu3 %v12418_v45 }
 0x5e4   :  { %16512 = vst [vmem:[#allocation196_spill] sm:$0xff] %v12470_v12  ;;  %v3194_v23 = vsel %vm1380_vm7, %v16518_v19, %v6650_v6  ;;  %v3192_v19 = vsel %vm1380_vm7, %v6650_v6, %v16521_v28  ;;  %3534 = vmatpush.msra.mxu3 %v16524_v27  ;;  %3545 = vmatpush.msrb.mxu0 %v16525_v36  ;;  %v16527_v28 = vunpack.i.h.bf16 %v12219_v53  ;;  %v16530_v36 = vunpack.c.h.bf16 %v12452_v18  ;;  %v12556_v6 = vld [vmem:[%s16049_s29 + $0x180] sm:$0xff] }
 0x5e5   :  { %16515 = vst [vmem:[#allocation197_spill] sm:$0xff] %v12483_v14  ;;  %v3225_v21 = vmax.f32 %v3098_v42, %v3194_v23  ;;  %v2968_v27 = vsel %vm1068_vm4, %v6640_v47, %v16528_v60  ;;  %3568 = vmatpush.msrb.mxu1 %v16529_v26  ;;  %v16537_v26 = vunpack.c.h.bf16 %v12458_v11  ;;  %v12574_v53 = vld [vmem:[%s16049_s29 + $0x260] sm:$0xff] }
 0x5e6   :  { %16516 = vst [vmem:[#allocation198_spill] sm:$0xff] %v12489_v61  ;;  %v2970_v1 = vsel %vm1068_vm4, %v16527_v28, %v6640_v47  ;;  %3595 = vmatpush.msrb.mxu2 %v16530_v36  ;;  %v16532_v28 = vld [vmem:[#allocation51_spill] sm:$0xff]  ;;  %v3002_v33 = vmax.f32 %v16535_v56, %v2968_v27  ;;  %v16536_v47 = vunpack.i.l.bf16 %v12316_v4  ;;  %v16538_v36 = vunpack.c.h.bf16 %v12464_v35  ;;  %v16613_v35 = vld [vmem:[#allocation126_spill] sm:$0xff] }
 0x5e7   :  { %16517 = vst [vmem:[#allocation199_spill] sm:$0xff] %v12495_v52  ;;  %v16533_v42 = vmax.f32 %v16532_v28, 0.0  ;;  %3535 = vmatpush.msra.mxu3 %v16537_v26  ;;  %v16540_v56 = vunpack.i.h.bf16 %v12478_v31  ;;  %v16541_v27 = vunpack.i.h.bf16 %v12330_v9  ;;  %v16542_v28 = vunpack.i.h.bf16 %v12447_v49  ;;  %v12596_v9 = vld [vmem:[%s16049_s29 + $0x2e0] sm:$0xff] }
 0x5e8   :  { %16519 = vst [vmem:[#allocation200_spill] sm:$0xff] %v12514_v0  ;;  %v3096_v60 = vsel %vm1276_vm6, %v6645_v38, %v16536_v47  ;;  %3546 = vmatpush.msrb.mxu0 %v16538_v36  ;;  %v16544_v26 = vunpack.c.h.bf16 %v12470_v12  ;;  %v16545_v36 = vunpack.c.h.bf16 %v12483_v14  ;;  %v12617_v14 = vpop.permute.xlu1 %6658 }
 0x5e9   :  { %16526 = vst [vmem:[#allocation201_spill] sm:$0xff] %v12538_v3  ;;  %v3001_v23 = vmax.f32 %v16533_v42, %v2970_v1  ;;  %v3226_v2 = vmax.f32 %v3096_v60, %v3192_v19  ;;  %v2964_v38 = vsel %vm1068_vm4, %v16541_v27, %v16540_v56  ;;  %v16543_v42 = vunpack.i.h.bf16 %v12316_v4  ;;  %v12602_v4 = vld [vmem:[%s16049_s29 + $0x340] sm:$0xff]  ;;  %v12614_v19 = vld [vmem:[%s16049_s29 + $0x3f8] sm:$0xff] }
 0x5ea   :  { %16531 = vst [vmem:[#allocation202_spill] sm:$0xff] %v12556_v6  ;;  %3569 = vmatpush.msrb.mxu1 %v16544_v26  ;;  %3596 = vmatpush.msrb.mxu2 %v16545_v36  ;;  %v16548_v56 = vld [vmem:[#allocation58_spill] sm:$0xff]  ;;  %v16550_v26 = vunpack.c.h.bf16 %v12489_v61  ;;  %v16551_v36 = vunpack.c.h.bf16 %v12495_v52  ;;  %v15724_v1 = vunpack.c.h.bf16 %v12614_v19 }
 0x5eb   :  { %16539 = vst [vmem:[#allocation51_spill] sm:$0xff] %v12574_v53  ;;  %v3092_v47 = vsel %vm1276_vm6, %v16543_v42, %v16542_v28  ;;  %v16549_v27 = vmax.f32 %v16548_v56, 0.0  ;;  %v12619_v60 = vmax.f32 %v3001_v23, %v3225_v21  ;;  %v12627_v56 = vmax.f32 %v3002_v33, %v3226_v2  ;;  %v12638_v21 = vld [vmem:[%s16049_s29 + $0x258] sm:$0xff]  ;;  %3515 = vmatmul.f32.vlgmr.msra.gmra.mxu2 %v11533_v46 }
 0x5ec   :  { %16546 = vst [vmem:[#allocation10_spill] sm:$0xff] %v12596_v9  ;;  %v3228_v42 = vmax.f32 %v3092_v47, %v3188_v10  ;;  %3536 = vmatpush.msra.mxu3 %v16550_v26  ;;  %3547 = vmatpush.msrb.mxu0 %v16551_v36  ;;  %v16554_v10 = vunpack.c.h.bf16 %v12538_v3  ;;  %v12625_v47 = vpop.permute.xlu0 %6653  ;;  %v16556_v26 = vunpack.c.h.bf16 %v12574_v53  ;;  %v16559_v33 = vunpack.c.h.bf16 %v12602_v4  ;;  %v12648_v2 = vld [vmem:[%s16049_s29 + $0x2d8] sm:$0xff]  ;;  %v12717_v53 = vld [vmem:[%s16049_s29 + $0x328] sm:$0xff] }
 0x5ed   :  { %16547 = vst [vmem:[#allocation203_spill] sm:$0xff] %v12602_v4  ;;  %v3004_v28 = vmax.f32 %v16549_v27, %v2964_v38  ;;  %v16553_v38 = vunpack.c.h.bf16 %v12514_v0  ;;  %v16555_v27 = vunpack.c.h.bf16 %v12556_v6  ;;  %3380 = vmatmul.f32.gmra.mxu0 %v12619_v60  ;;  %3403 = vmatmul.f32.gmra.mxu1 %v12627_v56  ;;  %v16569_v46 = vunpack.c.h.bf16 %v12648_v2  ;;  %v16600_v0 = vld [vmem:[#allocation121_spill] sm:$0xff] }
 0x5ee   :  { %16552 = vst [vmem:[#allocation58_spill] sm:$0xff] %v12614_v19  ;;  %3597 = vmatpush.msrb.mxu2 %v16554_v10  ;;  %3548 = vmatpush.msrb.mxu0 %v16556_v26  ;;  %v12665_v26 = vld [vmem:[%s16049_s29 + $0x3f0] sm:$0xff]  ;;  %v16566_v10 = vunpack.c.h.bf16 %v12638_v21  ;;  %v12694_v19 = vld [vmem:[%s16049_s29 + $0x3e8] sm:$0xff]  ;;  %v16615_v3 = vunpack.c.h.bf16 %v16600_v0 }
 0x5ef   :  { %3570 = vmatpush.msrb.mxu1 %v16553_v38  ;;  %3537 = vmatpush.msra.mxu3 %v16555_v27  ;;  %v12633_v36 = vmax.f32 %v3004_v28, %v3228_v42  ;;  %16557 = vst [vmem:[#allocation204_spill] sm:$0xff] %v12638_v21  ;;  %v16558_v38 = vunpack.c.h.bf16 %v12596_v9  ;;  %v12654_v42 = vld [vmem:[%s16049_s29 + $0x338] sm:$0xff]  ;;  %v12657_v27 = vpop.permute.xlu2 %6678  ;;  %v12700_v28 = vld [vmem:[%s16049_s29 + $0x248] sm:$0xff]  ;;  %v16573_v9 = vunpack.c.h.bf16 %v12665_v26 }
 0x5f0   :  { %3598 = vmatpush.msrb.mxu2 %v16559_v33  ;;  %16560 = vst [vmem:[#allocation205_spill] sm:$0xff] %v12648_v2  ;;  %v12671_v33 = vld [vmem:[%s16049_s29 + $0x250] sm:$0xff]  ;;  %3549 = vmatpush.msrb.mxu0 %v16566_v10  ;;  %v16570_v10 = vunpack.c.h.bf16 %v12654_v42  ;;  %v12711_v21 = vld [vmem:[%s16049_s29 + $0x2c8] sm:$0xff]  ;;  %v12726_v2 = vpop.permute.xlu1 %6673 }
 0x5f1   :  { %3571 = vmatpush.msrb.mxu1 %v16558_v38  ;;  %16561 = vst [vmem:[#allocation206_spill] sm:$0xff] %v12654_v42  ;;  %3614 = vmatpush.msrb.mxu3 %v15724_v1  ;;  %v12679_v1 = vld [vmem:[%s16049_s29 + $0x2d0] sm:$0xff]  ;;  %v16578_v42 = vunpack.c.h.bf16 %v12700_v28 }
 0x5f2   :  { %16562 = vst [vmem:[#allocation207_spill] sm:$0xff] %v12665_v26  ;;  %3449 = vmatmul.f32.gmra.mxu3 %v12633_v36  ;;  %v12685_v38 = vld [vmem:[%s16049_s29 + $0x330] sm:$0xff]  ;;  %3599 = vmatpush.msrb.mxu2 %v16570_v10  ;;  %v16575_v4 = vunpack.c.h.bf16 %v12679_v1  ;;  %v16579_v10 = vld [vmem:[#allocation114_spill] sm:$0xff]  ;;  %v16583_v26 = vunpack.c.h.bf16 %v12711_v21 }
 0x5f3   :  { %16563 = vst [vmem:[#allocation208_spill] sm:$0xff] %v12671_v33  ;;  %3572 = vmatpush.msrb.mxu1 %v16569_v46  ;;  %3615 = vmatpush.msrb.mxu3 %v16573_v9  ;;  %v16574_v46 = vunpack.c.h.bf16 %v12671_v33  ;;  %v16576_v6 = vunpack.c.h.bf16 %v12685_v38  ;;  %v16584_v9 = vunpack.c.h.bf16 %v12717_v53 }
 0x5f4   :  { %16564 = vst [vmem:[#allocation209_spill] sm:$0xff] %v12679_v1  ;;  %v12735_v33 = vpop.permute.xlu0 %6668  ;;  %v16587_v1 = vunpack.c.h.bf16 %v11321_v24  ;;  %3518 = vmatmul.f32.gmra.mxu2 %v12186_v25 }
 0x5f5   :  { %16565 = vst [vmem:[#allocation210_spill] sm:$0xff] %v12685_v38  ;;  %3550 = vmatpush.msrb.mxu0 %v16574_v46  ;;  %3573 = vmatpush.msrb.mxu1 %v16575_v4  ;;  %v16577_v46 = vunpack.c.h.bf16 %v12694_v19  ;;  %v16580_v4 = vunpack.i.l.bf16 %v12657_v27  ;;  %v16581_v38 = vld [vmem:[#allocation129_spill] sm:$0xff] }
 0x5f6   :  { %16567 = vst [vmem:[#allocation211_spill] sm:$0xff] %v12694_v19  ;;  %3600 = vmatpush.msrb.mxu2 %v16576_v6  ;;  %v16582_v6 = vunpack.i.h.bf16 %v16581_v38  ;;  %v16588_v38 = vunpack.c.h.bf16 %v11326_v17  ;;  %v16598_v19 = vld [vmem:[#allocation143_spill] sm:$0xff] }
 0x5f7   :  { %16568 = vst [vmem:[#allocation212_spill] sm:$0xff] %v12700_v28  ;;  %3616 = vmatpush.msrb.mxu3 %v16577_v46  ;;  %3551 = vmatpush.msrb.mxu0 %v16578_v42  ;;  %v16585_v46 = vunpack.i.l.bf16 %v12726_v2  ;;  %v16586_v28 = vunpack.i.h.bf16 %v11788_v63  ;;  %v16591_v63 = vunpack.c.h.bf16 %v11340_v55 }
 0x5f8   :  { %16571 = vst [vmem:[#allocation213_spill] sm:$0xff] %v12711_v21  ;;  %v3185_v23 = vsel %vm1380_vm7, %v16582_v6, %v16580_v4  ;;  %3574 = vmatpush.msrb.mxu1 %v16583_v26  ;;  %3601 = vmatpush.msrb.mxu2 %v16584_v9  ;;  %v12765_v26 = vld [vmem:[%s16049_s29 + $0x238] sm:$0xff]  ;;  %v16590_v6 = vunpack.c.h.bf16 %v11335_v43  ;;  %v16595_v9 = vld [vmem:[#allocation142_spill] sm:$0xff]  ;;  %v16597_v21 = vld [vmem:[#allocation119_spill] sm:$0xff]  ;;  %v12822_v18 = vpop.permute.xlu1 %6688 }
 0x5f9   :  { %16572 = vst [vmem:[#allocation214_spill] sm:$0xff] %v12717_v53  ;;  %v3089_v42 = vsel %vm1276_vm6, %v16586_v28, %v16585_v46  ;;  %3617 = vmatpush.msrb.mxu3 %v16587_v1  ;;  %3552 = vmatpush.msrb.mxu0 %v16588_v38  ;;  %v12776_v1 = vld [vmem:[%s16049_s29 + $0x2b8] sm:$0xff]  ;;  %v16594_v38 = vunpack.c.h.bf16 %v16579_v10  ;;  %v16599_v28 = vld [vmem:[#allocation120_spill] sm:$0xff]  ;;  %v16604_v53 = vunpack.i.l.bf16 %v12735_v33  ;;  %v16611_v61 = vunpack.c.h.bf16 %v16597_v21 }
 0x5fa   :  { %v3213_v4 = vmax.f32 %v3089_v42, %v3185_v23  ;;  %16589 = vst [vmem:[#allocation129_spill] sm:$0xff] %v12765_v26  ;;  %3575 = vmatpush.msrb.mxu1 %v16590_v6  ;;  %3602 = vmatpush.msrb.mxu2 %v16591_v63  ;;  %v16593_v46 = vld [vmem:[#allocation117_spill] sm:$0xff]  ;;  %v16596_v6 = vld [vmem:[#allocation118_spill] sm:$0xff]  ;;  %v16601_v42 = vunpack.c.h.bf16 %v12765_v26  ;;  %v16605_v63 = vunpack.i.h.bf16 %v11802_v5  ;;  %v16616_v26 = vld [vmem:[#allocation127_spill] sm:$0xff] }
 0x5fb   :  { %16592 = vst [vmem:[#allocation215_spill] sm:$0xff] %v12776_v1  ;;  %3618 = vmatpush.msrb.mxu3 %v16594_v38  ;;  %3469 = vmatmul.f32.vlgmr.msra.gmra.mxu0 %v16595_v9  ;;  %v16602_v38 = vld [vmem:[#allocation122_spill] sm:$0xff]  ;;  %v16603_v9 = vld [vmem:[#allocation123_spill] sm:$0xff]  ;;  %v16607_v52 = vunpack.c.h.bf16 %v16593_v46  ;;  %v16610_v23 = vunpack.c.h.bf16 %v16596_v6  ;;  %v16612_v5 = vld [vmem:[#allocation125_spill] sm:$0xff] }
 0x5fc   :  { %3492 = vmatmul.f32.vlgmr.msra.gmra.mxu1 %v16598_v19  ;;  %3538 = vmatmul.f32.vlgmr.msra.gmra.mxu3 %v12070_v32  ;;  %v2961_v25 = vsel %vm1068_vm4, %v16605_v63, %v16604_v53  ;;  %v16606_v19 = vunpack.c.h.bf16 %v12776_v1  ;;  %v16608_v32 = vld [vmem:[#allocation52_spill] sm:$0xff]  ;;  %v12812_v63 = vpop.permute.xlu0 %6683  ;;  %v15758_v1 = vunpack.c.h.bf16 %v16616_v26  ;;  %v16620_v53 = vunpack.c.h.bf16 %v16602_v38 }
 0x5fd   :  { %3553 = vmatpush.msrb.mxu0 %v16601_v42  ;;  %3603 = vmatpush.msrb.mxu2 %v16607_v52  ;;  %v16609_v42 = vld [vmem:[#allocation124_spill] sm:$0xff]  ;;  %v16614_v52 = vunpack.c.h.bf16 %v16599_v28  ;;  %v16621_v6 = vunpack.c.h.bf16 %v16603_v9  ;;  %v16622_v28 = vld [vmem:[#allocation130_spill] sm:$0xff]  ;;  %v16623_v0 = vunpack.c.h.bf16 %v16608_v32  ;;  %v16625_v11 = vunpack.c.h.bf16 %v16612_v5 }
 0x5fe   :  { %3576 = vmatpush.msrb.mxu1 %v16606_v19  ;;  %3619 = vmatpush.msrb.mxu3 %v16610_v23  ;;  %v12814_v19 = vpop.permute.xlu2 %6693  ;;  %v16617_v23 = vld [vmem:[#allocation128_spill] sm:$0xff] }
 0x5ff   :  { %3554 = vmatpush.msrb.mxu0 %v16611_v61  ;;  %3604 = vmatpush.msrb.mxu2 %v16615_v3  ;;  %v16618_v61 = vld [vmem:[#allocation54_spill] sm:$0xff]  ;;  %v16624_v3 = vunpack.c.h.bf16 %v16609_v42 }
 0x600   :  { %3577 = vmatpush.msrb.mxu1 %v16614_v52  ;;  %v16619_v12 = vmax.f32 %v16618_v61, 0.0  ;;  %3620 = vmatpush.msrb.mxu3 %v16620_v53  ;;  %v16626_v61 = vunpack.c.h.bf16 %v16613_v35  ;;  %v16629_v53 = vld [vmem:[#allocation132_spill] sm:$0xff] }
 0x601   :  { %3555 = vmatpush.msrb.mxu0 %v16621_v6  ;;  %3605 = vmatpush.msrb.mxu2 %v16624_v3  ;;  %v16628_v6 = vunpack.c.h.bf16 %v16617_v23  ;;  %v16631_v3 = vld [vmem:[#allocation55_spill] sm:$0xff] }
 0x602   :  { %v2989_v54 = vmax.f32 %v16619_v12, %v2961_v25  ;;  %3578 = vmatpush.msrb.mxu1 %v16623_v0  ;;  %3621 = vmatpush.msrb.mxu3 %v16625_v11  ;;  %v16627_v12 = vld [vmem:[#allocation131_spill] sm:$0xff]  ;;  %v16630_v0 = vunpack.c.h.bf16 %v16622_v28  ;;  %v16632_v42 = vunpack.c.l.bf16 %v16631_v3  ;;  %v16633_v11 = vld [vmem:[#allocation134_spill] sm:$0xff]  ;;  %v16635_v25 = vld [vmem:[#allocation137_spill] sm:$0xff] }
 0x603   :  { %3556 = vmatpush.msrb.mxu0 %v16626_v61  ;;  %3606 = vmatpush.msrb.mxu2 %v16628_v6  ;;  %v15762_v5 = vunpack.c.h.bf16 %v16633_v11  ;;  %v16634_v61 = vld [vmem:[#allocation136_spill] sm:$0xff]  ;;  %v16636_v52 = vunpack.c.h.bf16 %v16627_v12  ;;  %v16641_v6 = vld [vmem:[#allocation57_spill] sm:$0xff]  ;;  %v16649_v28 = vld [vmem:[#allocation3_spill] sm:$0xff] }
 0x604   :  { %3579 = vmatpush.msrb.mxu1 %v15758_v1  ;;  %3622 = vmatpush.msrb.mxu3 %v16630_v0  ;;  %v12850_v35 = vmax.f32 %v2989_v54, %v3213_v4  ;;  %v16637_v0 = vld [vmem:[#allocation138_spill] sm:$0xff]  ;;  %v16639_v54 = vld [vmem:[#allocation139_spill] sm:$0xff]  ;;  %v16640_v4 = vld [vmem:[#allocation140_spill] sm:$0xff]  ;;  %v16642_v1 = vunpack.c.l.bf16 %v16641_v6  ;;  %v16650_v6 = vunpack.c.l.bf16 %v16649_v28 }
 0x605   :  { %3683 = vmatpush.msra.mxu2 %v16632_v42  ;;  %3472 = vmatmul.f32.gmra.mxu0 %v12294_v57  ;;  %v16638_v42 = vunpack.c.h.bf16 %v16629_v53  ;;  %v16646_v57 = vld [vmem:[#allocation144_spill] sm:$0xff]  ;;  %v16647_v53 = vld [vmem:[#allocation145_spill] sm:$0xff]  ;;  %v16651_v12 = vld [vmem:[#allocation146_spill] sm:$0xff] }
 0x606   :  { %3495 = vmatmul.f32.gmra.mxu1 %v12296_v16  ;;  %3541 = vmatmul.f32.gmra.mxu3 %v12318_v13  ;;  %v16643_v13 = vld [vmem:[#allocation141_spill] sm:$0xff]  ;;  %v12872_v3 = vpop.permute.xlu2 %6708  ;;  %v16655_v11 = vld [vmem:[#allocation60_spill] sm:$0xff]  ;;  %v16660_v28 = vunpack.c.h.bf16 %v16651_v12 }
 0x607   :  { %3557 = vmatpush.msrb.mxu0 %v16636_v52  ;;  %3580 = vmatpush.msrb.mxu1 %v16638_v42  ;;  %v12870_v52 = vpop.permute.xlu0 %6698  ;;  %v16644_v42 = vunpack.c.h.bf16 %v16634_v61  ;;  %v16652_v61 = vunpack.c.h.bf16 %v16639_v54  ;;  %v16656_v16 = vunpack.c.l.bf16 %v16655_v11 }
 0x608   :  { %3607 = vmatmul.f32.vlgmr.msrb.gmra.mxu2 %v12282_v20  ;;  %3623 = vmatpush.msrb.mxu3 %v15762_v5  ;;  %v16645_v20 = vunpack.c.h.bf16 %v16635_v25  ;;  %v12880_v5 = vpop.permute.xlu1 %6703 }
 0x609   :  { %3684 = vmatpush.msra.mxu2 %v16642_v1  ;;  %3558 = vmatpush.msrb.mxu0 %v16644_v42  ;;  %v16648_v1 = vunpack.c.h.bf16 %v16637_v0  ;;  %v16653_v42 = vunpack.c.h.bf16 %v16640_v4  ;;  %v16657_v0 = vunpack.c.h.bf16 %v16646_v57 }
 0x60a   :  { %3581 = vmatpush.msrb.mxu1 %v16645_v20  ;;  %v16654_v20 = vunpack.c.h.bf16 %v16643_v13 }
 0x60b   :  { %3624 = vmatpush.msrb.mxu3 %v16648_v1  ;;  %3685 = vmatpush.msra.mxu2 %v16650_v6  ;;  %v16658_v1 = vunpack.c.h.bf16 %v16647_v53  ;;  %v16659_v6 = vld [vmem:[#allocation148_spill] sm:$0xff] }
 0x60c   :  { %3559 = vmatpush.msrb.mxu0 %v16652_v61  ;;  %3582 = vmatpush.msrb.mxu1 %v16653_v42  ;;  %v15770_v23 = vunpack.c.h.bf16 %v16659_v6  ;;  %v16661_v61 = vld [vmem:[#allocation8_spill] sm:$0xff]  ;;  %v16663_v42 = vld [vmem:[#allocation5_spill] sm:$0xff] }
 0x60d   :  { %3625 = vmatpush.msrb.mxu3 %v16654_v20  ;;  %3686 = vmatpush.msra.mxu2 %v16656_v16  ;;  %v16662_v4 = vunpack.c.l.bf16 %v16661_v61  ;;  %v16664_v13 = vunpack.c.l.bf16 %v16663_v42  ;;  %v16665_v20 = vld [vmem:[#allocation16_spill] sm:$0xff]  ;;  %v16683_v6 = vld [vmem:[#allocation21_spill] sm:$0xff] }
 0x60e   :  { %3560 = vmatpush.msrb.mxu0 %v16657_v0  ;;  %3583 = vmatpush.msrb.mxu1 %v16658_v1  ;;  %v16666_v11 = vunpack.c.l.bf16 %v16665_v20  ;;  %v16667_v16 = vld [vmem:[#allocation152_spill] sm:$0xff]  ;;  %v12921_v20 = vpop.permute.xlu2 %6723  ;;  %v16684_v12 = vunpack.c.l.bf16 %v16683_v6  ;;  %v16696_v6 = vunpack.i.h.bf16 %v12478_v31  ;;  %v16701_v31 = vunpack.i.h.bf16 %v12312_v62 }
 0x60f   :  { %3626 = vmatpush.msrb.mxu3 %v16660_v28  ;;  %v15772_v57 = vunpack.c.h.bf16 %v16667_v16  ;;  %3561 = vmatmul.f32.vlgmr.msrb.gmra.mxu0 %v12437_v29  ;;  %v16668_v28 = vld [vmem:[#allocation156_spill] sm:$0xff]  ;;  %v12919_v42 = vpop.permute.xlu0 %6713  ;;  %v16673_v29 = vld [vmem:[#allocation30_spill] sm:$0xff]  ;;  %v16681_v16 = vld [vmem:[#allocation29_spill] sm:$0xff]  ;;  %v6660_v62 = vunpack.i.l.bf16 %v12617_v14 }
 0x610   :  { %3637 = vmatpush.msra.mxu0 %v16662_v4  ;;  %3660 = vmatpush.msra.mxu1 %v16664_v13  ;;  %v15775_v0 = vunpack.c.h.bf16 %v16668_v28  ;;  %v16669_v4 = vld [vmem:[#allocation13_spill] sm:$0xff]  ;;  %v16671_v13 = vld [vmem:[#allocation59_spill] sm:$0xff] }
 0x611   :  { %3687 = vmatpush.msra.mxu2 %v16666_v11  ;;  %3584 = vmatmul.f32.vlgmr.msrb.gmra.mxu1 %v12413_v22  ;;  %v16670_v1 = vunpack.c.l.bf16 %v16669_v4  ;;  %v16672_v61 = vunpack.c.l.bf16 %v16671_v13  ;;  %v16674_v11 = vunpack.c.l.bf16 %v16673_v29  ;;  %v12927_v22 = vpop.permute.xlu1 %6718  ;;  %v16677_v4 = vld [vmem:[#allocation2_spill] sm:$0xff] }
 0x612   :  { %3610 = vmatmul.f32.gmra.mxu2 %v12439_v51  ;;  %3627 = vmatpush.msrb.mxu3 %v15770_v23  ;;  %v16675_v51 = vld [vmem:[#allocation15_spill] sm:$0xff]  ;;  %v16679_v13 = vld [vmem:[#allocation14_spill] sm:$0xff] }
 0x613   :  { %3638 = vmatpush.msra.mxu0 %v16670_v1  ;;  %3661 = vmatpush.msra.mxu1 %v16672_v61  ;;  %v16676_v23 = vunpack.c.l.bf16 %v16675_v51  ;;  %v16678_v1 = vunpack.c.l.bf16 %v16677_v4  ;;  %v16680_v61 = vunpack.c.l.bf16 %v16679_v13  ;;  %v16685_v51 = vld [vmem:[#allocation27_spill] sm:$0xff] }
 0x614   :  { %3688 = vmatpush.msra.mxu2 %v16674_v11  ;;  %3628 = vmatpush.msrb.mxu3 %v15772_v57  ;;  %v16682_v57 = vunpack.c.l.bf16 %v16681_v16  ;;  %v16686_v4 = vunpack.c.l.bf16 %v16685_v51  ;;  %v16691_v11 = vld [vmem:[#allocation38_spill] sm:$0xff] }
 0x615   :  { %3639 = vmatpush.msra.mxu0 %v16676_v23  ;;  %3662 = vmatpush.msra.mxu1 %v16678_v1  ;;  %v15776_v23 = vunpack.i.l.bf16 %v12927_v22  ;;  %v16687_v1 = vld [vmem:[#allocation4_spill] sm:$0xff]  ;;  %v16692_v29 = vunpack.c.l.bf16 %v16691_v11 }
 0x616   :  { %3689 = vmatpush.msra.mxu2 %v16680_v61  ;;  %3629 = vmatpush.msrb.mxu3 %v15775_v0  ;;  %v16688_v13 = vunpack.c.l.bf16 %v16687_v1  ;;  %v16689_v61 = vld [vmem:[#allocation25_spill] sm:$0xff]  ;;  %v16700_v1 = vunpack.i.l.bf16 %v12921_v20 }
 0x617   :  { %3640 = vmatpush.msra.mxu0 %v16682_v57  ;;  %3663 = vmatpush.msra.mxu1 %v16684_v12  ;;  %v16690_v0 = vunpack.c.l.bf16 %v16689_v61  ;;  %v16693_v57 = vld [vmem:[#allocation6_spill] sm:$0xff]  ;;  %v16695_v12 = vunpack.i.l.bf16 %v12919_v42 }
 0x618   :  { %3690 = vmatpush.msra.mxu2 %v16686_v4  ;;  %3630 = vmatmul.f32.vlgmr.msrb.gmra.mxu3 %v12418_v45  ;;  %v16694_v16 = vunpack.c.l.bf16 %v16693_v57  ;;  %v16697_v45 = vld [vmem:[#allocation28_spill] sm:$0xff] }
 0x619   :  { %3706 = vmatpush.msra.mxu3 %v16688_v13  ;;  %3641 = vmatpush.msra.mxu0 %v16690_v0  ;;  %v2962_v51 = vsel %vm1068_vm4, %v16696_v6, %v16695_v12  ;;  %v16698_v4 = vmax.f32 %v16697_v45, 0.0  ;;  %v3186_v13 = vsel %vm1380_vm7, %v16701_v31, %v16700_v1  ;;  %v15778_v12 = vunpack.i.h.bf16 %v12617_v14  ;;  %v16710_v1 = vld [vmem:[#allocation19_spill] sm:$0xff] }
 0x61a   :  { %3664 = vmatpush.msra.mxu1 %v16692_v29  ;;  %3691 = vmatpush.msra.mxu2 %v16694_v16  ;;  %v16699_v29 = vunpack.i.h.bf16 %v12447_v49  ;;  %v16706_v49 = vld [vmem:[#allocation40_spill] sm:$0xff]  ;;  %v16711_v31 = vunpack.c.l.bf16 %v16710_v1  ;;  %v16720_v1 = vld [vmem:[#allocation37_spill] sm:$0xff] }
 0x61b   :  { %3564 = vmatmul.f32.gmra.mxu0 %v12619_v60  ;;  %3587 = vmatmul.f32.gmra.mxu1 %v12627_v56  ;;  %v3005_v0 = vmax.f32 %v16698_v4, %v2962_v51  ;;  %v16702_v60 = vld [vmem:[#allocation7_spill] sm:$0xff]  ;;  %v16707_v6 = vunpack.c.l.bf16 %v16706_v49  ;;  %v15777_v4 = vunpack.i.h.bf16 %v12625_v47 }
 0x61c   :  { %v3090_v11 = vsel %vm1276_vm6, %v16699_v29, %v15776_v23  ;;  %v16703_v61 = vunpack.c.l.bf16 %v16702_v60  ;;  %v16704_v56 = vld [vmem:[#allocation11_spill] sm:$0xff]  ;;  %v6655_v29 = vunpack.i.l.bf16 %v12625_v47  ;;  %v16712_v60 = vld [vmem:[#allocation9_spill] sm:$0xff] }
 0x61d   :  { %v16705_v57 = vunpack.c.l.bf16 %v16704_v56  ;;  %v3229_v16 = vmax.f32 %v3090_v11, %v3186_v13  ;;  %3665 = vmatpush.msra.mxu1 %v16707_v6  ;;  %v16708_v51 = vld [vmem:[#allocation39_spill] sm:$0xff]  ;;  %v16714_v13 = vld [vmem:[#allocation20_spill] sm:$0xff]  ;;  %v15779_v6 = vunpack.i.h.bf16 %v12498_v37 }
 0x61e   :  { %3707 = vmatpush.msra.mxu3 %v16703_v61  ;;  %v16709_v45 = vunpack.c.l.bf16 %v16708_v51  ;;  %v16713_v61 = vunpack.c.l.bf16 %v16712_v60  ;;  %v16715_v56 = vunpack.c.l.bf16 %v16714_v13  ;;  %v6665_v51 = vunpack.i.l.bf16 %v12498_v37  ;;  %v16722_v60 = vld [vmem:[#allocation34_spill] sm:$0xff] }
 0x61f   :  { %3642 = vmatpush.msra.mxu0 %v16705_v57  ;;  %v12993_v11 = vmax.f32 %v3005_v0, %v3229_v16  ;;  %v16716_v57 = vld [vmem:[#allocation17_spill] sm:$0xff]  ;;  %v16724_v0 = vld [vmem:[#allocation44_spill] sm:$0xff]  ;;  %v3085_v13 = vsel %vm1276_vm6, %v6660_v62, %v15778_v12 }
 0x620   :  { %3692 = vmatpush.msra.mxu2 %v16709_v45  ;;  %3708 = vmatpush.msra.mxu3 %v16711_v31  ;;  %v16717_v49 = vunpack.c.l.bf16 %v16716_v57  ;;  %v16718_v45 = vld [vmem:[#allocation12_spill] sm:$0xff]  ;;  %v16721_v31 = vunpack.c.l.bf16 %v16720_v1  ;;  %v16725_v16 = vunpack.c.l.bf16 %v16724_v0 }
 0x621   :  { %3643 = vmatpush.msra.mxu0 %v16713_v61  ;;  %3666 = vmatpush.msra.mxu1 %v16715_v56  ;;  %v16719_v23 = vunpack.c.l.bf16 %v16718_v45  ;;  %v16723_v61 = vunpack.c.l.bf16 %v16722_v60  ;;  %v2957_v56 = vsel %vm1068_vm4, %v6655_v29, %v15777_v4  ;;  %v16727_v57 = vld [vmem:[#allocation32_spill] sm:$0xff]  ;;  %v16729_v45 = vld [vmem:[#allocation35_spill] sm:$0xff]  ;;  %v3181_v60 = vsel %vm1380_vm7, %v6665_v51, %v15779_v6  ;;  %v16734_v4 = vld [vmem:[#allocation18_spill] sm:$0xff] }
 0x622   :  { %3693 = vmatpush.msra.mxu2 %v16717_v49  ;;  %3633 = vmatmul.f32.gmra.mxu3 %v12633_v36  ;;  %v16728_v49 = vunpack.c.l.bf16 %v16727_v57  ;;  %v3215_v36 = vmax.f32 %v3085_v13, %v3181_v60  ;;  %v16736_v57 = vld [vmem:[#allocation24_spill] sm:$0xff]  ;;  %v16740_v6 = vunpack.c.l.bf16 %v10816_v7  ;;  %v16749_v13 = vunpack.c.l.bf16 %v10870_v41 }
 0x623   :  { %3709 = vmatpush.msra.mxu3 %v16719_v23  ;;  %3644 = vmatpush.msra.mxu0 %v16721_v31  ;;  %v16726_v23 = vunpack.c.l.bf16 %v10745_v8  ;;  %v16730_v31 = vunpack.c.l.bf16 %v16729_v45  ;;  %v16738_v45 = vunpack.c.l.bf16 %v10782_v30  ;;  %v16767_v41 = vld [vmem:[#allocation68_spill] sm:$0xff]  ;;  %v16771_v7 = vunpack.i.h.bf16 %v12872_v3 }
 0x624   :  { %3667 = vmatpush.msra.mxu1 %v16723_v61  ;;  %3694 = vmatpush.msra.mxu2 %v16725_v16  ;;  %v16731_v61 = vld [vmem:[#allocation36_spill] sm:$0xff]  ;;  %v16733_v16 = vunpack.c.l.bf16 %v10777_v48 }
 0x625   :  { %3645 = vmatpush.msra.mxu0 %v16726_v23  ;;  %3710 = vmatpush.msra.mxu3 %v16728_v49  ;;  %v16732_v0 = vunpack.c.l.bf16 %v16731_v61  ;;  %v16735_v23 = vmax.f32 %v16734_v4, 0.0  ;;  %v16737_v49 = vunpack.c.l.bf16 %v16736_v57  ;;  %v6700_v4 = vunpack.i.l.bf16 %v12870_v52 }
 0x626   :  { %3668 = vmatpush.msra.mxu1 %v16730_v31  ;;  %v16739_v31 = vunpack.c.l.bf16 %v10800_v40 }
 0x627   :  { %3695 = vmatpush.msra.mxu2 %v16732_v0  ;;  %3646 = vmatpush.msra.mxu0 %v16733_v16  ;;  %v2991_v12 = vmax.f32 %v16735_v23, %v2957_v56  ;;  %v6705_v0 = vunpack.i.l.bf16 %v12880_v5  ;;  %v16741_v56 = vld [vmem:[#allocation31_spill] sm:$0xff]  ;;  %v16743_v16 = vunpack.c.l.bf16 %v10831_v50  ;;  %v16744_v23 = vld [vmem:[#allocation42_spill] sm:$0xff] }
 0x628   :  { %3711 = vmatpush.msra.mxu3 %v16737_v49  ;;  %3669 = vmatpush.msra.mxu1 %v16738_v45  ;;  %v16742_v60 = vunpack.c.l.bf16 %v16741_v56  ;;  %v16745_v57 = vunpack.c.l.bf16 %v16744_v23  ;;  %v16746_v49 = vunpack.c.l.bf16 %v10855_v39  ;;  %v6710_v45 = vunpack.i.l.bf16 %v12872_v3  ;;  %v16769_v50 = vld [vmem:[#allocation70_spill] sm:$0xff] }
 0x629   :  { %3696 = vmatpush.msra.mxu2 %v16739_v31  ;;  %3647 = vmatpush.msra.mxu0 %v16740_v6  ;;  %v16747_v31 = vld [vmem:[#allocation41_spill] sm:$0xff]  ;;  %v13060_v56 = vmax.f32 %v2991_v12, %v3215_v36  ;;  %v16753_v6 = vld [vmem:[#allocation63_spill] sm:$0xff]  ;;  %v16757_v12 = vunpack.c.l.bf16 %v10886_v34  ;;  %v16758_v36 = vunpack.i.h.bf16 %v12870_v52  ;;  %v16768_v23 = vunpack.c.l.bf16 %v16767_v41 }
 0x62a   :  { %3712 = vmatpush.msra.mxu3 %v16742_v60  ;;  %3670 = vmatpush.msra.mxu1 %v16743_v16  ;;  %v16748_v61 = vunpack.c.l.bf16 %v16747_v31  ;;  %v16751_v60 = vunpack.i.l.bf16 %v12726_v2  ;;  %v16754_v39 = vunpack.c.l.bf16 %v16753_v6  ;;  %v16755_v31 = vld [vmem:[#allocation66_spill] sm:$0xff]  ;;  %v16763_v34 = vld [vmem:[#allocation67_spill] sm:$0xff]  ;;  %v15787_v41 = vunpack.i.h.bf16 %v12726_v2 }
 0x62b   :  { %3697 = vmatpush.msra.mxu2 %v16745_v57  ;;  %3648 = vmatpush.msra.mxu0 %v16746_v49  ;;  %16750 = vst [vmem:[#allocation142_spill] sm:$0xff] %v13060_v56  ;;  %v16752_v57 = vunpack.i.l.bf16 %v12735_v33 }
 0x62c   :  { %3713 = vmatpush.msra.mxu3 %v16748_v61  ;;  %3671 = vmatpush.msra.mxu1 %v16749_v13  ;;  %v3087_v16 = vsel %vm1276_vm6, %v16751_v60, %v6660_v62  ;;  %v16756_v61 = vunpack.c.l.bf16 %v16755_v31  ;;  %v2958_v62 = vsel %vm1068_vm4, %v6700_v4, %v16758_v36  ;;  %v16759_v13 = vunpack.i.h.bf16 %v12880_v5  ;;  %v16765_v31 = vld [vmem:[#allocation23_spill] sm:$0xff] }
 0x62d   :  { %v2959_v49 = vsel %vm1068_vm4, %v16752_v57, %v6655_v29  ;;  %3698 = vmatpush.msra.mxu2 %v16754_v39  ;;  %v16760_v39 = vunpack.i.l.bf16 %v12657_v27  ;;  %v16761_v57 = vld [vmem:[#allocation65_spill] sm:$0xff]  ;;  %v16766_v6 = vmax.f32 %v16765_v31, 0.0 }
 0x62e   :  { %3649 = vmatpush.msra.mxu0 %v16756_v61  ;;  %3699 = vmatmul.f32.vlgmr.msra.gmra.mxu2 %v13060_v56  ;;  %v3086_v29 = vsel %vm1276_vm6, %v6705_v0, %v16759_v13  ;;  %v16762_v61 = vunpack.c.l.bf16 %v16761_v57  ;;  %v16770_v13 = vunpack.c.l.bf16 %v16769_v50 }
 0x62f   :  { %3714 = vmatpush.msra.mxu3 %v16757_v12  ;;  %v3183_v60 = vsel %vm1380_vm7, %v16760_v39, %v6665_v51  ;;  %v16764_v12 = vunpack.c.l.bf16 %v16763_v34  ;;  %v2990_v36 = vmax.f32 %v16766_v6, %v2959_v49  ;;  %v3182_v51 = vsel %vm1380_vm7, %v6710_v45, %v16771_v7  ;;  %v16772_v39 = vld [vmem:[#allocation69_spill] sm:$0xff]  ;;  %v16780_v7 = vld [vmem:[#allocation72_spill] sm:$0xff] }
 0x630   :  { %3775 = vmatpush.msrb.mxu2 %v16762_v61  ;;  %v3214_v56 = vmax.f32 %v3087_v16, %v3183_v60  ;;  %3650 = vmatpush.msra.mxu0 %v16770_v13  ;;  %v16773_v57 = vunpack.c.l.bf16 %v16772_v39  ;;  %v16774_v61 = vunpack.c.l.bf16 %v10954_v15  ;;  %v16775_v16 = vld [vmem:[#allocation73_spill] sm:$0xff]  ;;  %v3231_v49 = vmax.f32 %v3086_v29, %v3182_v51  ;;  %v16777_v60 = vld [vmem:[#allocation71_spill] sm:$0xff] }
 0x631   :  { %3672 = vmatpush.msra.mxu1 %v16764_v12  ;;  %3715 = vmatpush.msra.mxu3 %v16768_v23  ;;  %v16776_v31 = vmax.f32 %v16775_v16, 0.0  ;;  %v16778_v12 = vunpack.c.l.bf16 %v16777_v60  ;;  %v16779_v13 = vunpack.c.l.bf16 %v10978_v58  ;;  %v16781_v39 = vunpack.c.l.bf16 %v16780_v7  ;;  %v16785_v51 = vld [vmem:[#allocation77_spill] sm:$0xff]  ;;  %v16787_v60 = vld [vmem:[#allocation76_spill] sm:$0xff] }
 0x632   :  { %3776 = vmatpush.msrb.mxu2 %v16773_v57  ;;  %v16782_v57 = vunpack.c.l.bf16 %v10995_v59  ;;  %v16786_v16 = vunpack.c.l.bf16 %v16785_v51 }
 0x633   :  { %3673 = vmatpush.msra.mxu1 %v16774_v61  ;;  %v3007_v6 = vmax.f32 %v16776_v31, %v2958_v62  ;;  %3716 = vmatpush.msra.mxu3 %v16778_v12  ;;  %v15786_v61 = vunpack.i.h.bf16 %v12657_v27  ;;  %v16783_v62 = vld [vmem:[#allocation75_spill] sm:$0xff]  ;;  %v13124_v31 = vmax.f32 %v2990_v36, %v3214_v56  ;;  %v16788_v12 = vunpack.c.l.bf16 %v16787_v60 }
 0x634   :  { %3651 = vmatpush.msra.mxu0 %v16779_v13  ;;  %3777 = vmatpush.msrb.mxu2 %v16781_v39  ;;  %v16784_v29 = vunpack.c.l.bf16 %v16783_v62  ;;  %v16789_v13 = vld [vmem:[#allocation78_spill] sm:$0xff]  ;;  %v16791_v39 = vunpack.i.h.bf16 %v12617_v14  ;;  %v16792_v62 = vunpack.i.h.bf16 %v12735_v33  ;;  %v16793_v56 = vunpack.i.h.bf16 %v12625_v47  ;;  %v16797_v47 = vld [vmem:[#allocation80_spill] sm:$0xff] }
 0x635   :  { %3674 = vmatpush.msra.mxu1 %v16782_v57  ;;  %v16790_v23 = vunpack.c.l.bf16 %v16789_v13  ;;  %v13130_v7 = vmax.f32 %v3007_v6, %v3231_v49  ;;  %v16794_v6 = vld [vmem:[#allocation79_spill] sm:$0xff]  ;;  %v16796_v14 = vunpack.i.h.bf16 %v12498_v37 }
 0x636   :  { %3717 = vmatpush.msra.mxu3 %v16784_v29  ;;  %3652 = vmatpush.msra.mxu0 %v16786_v16  ;;  %v3083_v57 = vsel %vm1276_vm6, %v16791_v39, %v15787_v41  ;;  %v2955_v36 = vsel %vm1068_vm4, %v16793_v56, %v16792_v62  ;;  %v16795_v49 = vunpack.c.l.bf16 %v16794_v6  ;;  %v16798_v29 = vunpack.c.l.bf16 %v16797_v47  ;;  %v16799_v16 = vld [vmem:[#allocation81_spill] sm:$0xff]  ;;  %v16811_v41 = vld [vmem:[#allocation87_spill] sm:$0xff] }
 0x637   :  { %3778 = vmatpush.msrb.mxu2 %v16788_v12  ;;  %3675 = vmatpush.msra.mxu1 %v16790_v23  ;;  %v3179_v23 = vsel %vm1380_vm7, %v16796_v14, %v15786_v61  ;;  %v16800_v60 = vunpack.c.l.bf16 %v16799_v16  ;;  %v16801_v12 = vunpack.i.l.bf16 %v12919_v42  ;;  %v16802_v39 = vunpack.i.l.bf16 %v12927_v22  ;;  %v16803_v56 = vld [vmem:[#allocation61_spill] sm:$0xff]  ;;  %v16805_v14 = vld [vmem:[#allocation82_spill] sm:$0xff] }
 0x638   :  { %3653 = vmatmul.f32.vlgmr.msra.gmra.mxu0 %v12850_v35  ;;  %3676 = vmatmul.f32.vlgmr.msra.gmra.mxu1 %v13124_v31  ;;  %v3216_v37 = vmax.f32 %v3083_v57, %v3179_v23  ;;  %v16804_v6 = vmax.f32 %v16803_v56, 0.0  ;;  %v16806_v47 = vunpack.c.l.bf16 %v16805_v14  ;;  %v16814_v57 = vld [vmem:[#allocation88_spill] sm:$0xff]  ;;  %v16818_v56 = vld [vmem:[#allocation85_spill] sm:$0xff] }
 0x639   :  { %3702 = vmatmul.f32.gmra.mxu2 %v13130_v7  ;;  %3718 = vmatpush.msra.mxu3 %v16795_v49  ;;  %v2960_v13 = vsel %vm1068_vm4, %v16801_v12, %v6700_v4  ;;  %v3088_v62 = vsel %vm1276_vm6, %v16802_v39, %v6705_v0  ;;  %v16812_v4 = vunpack.c.l.bf16 %v16811_v41  ;;  %v16813_v12 = vunpack.i.l.bf16 %v12921_v20 }
 0x63a   :  { %3729 = vmatpush.msrb.mxu0 %v16798_v29  ;;  %3752 = vmatpush.msrb.mxu1 %v16800_v60  ;;  %v2992_v49 = vmax.f32 %v16804_v6, %v2955_v36  ;;  %v16807_v29 = vld [vmem:[#allocation83_spill] sm:$0xff]  ;;  %v16809_v60 = vld [vmem:[#allocation84_spill] sm:$0xff]  ;;  %v16815_v23 = vunpack.c.l.bf16 %v16814_v57  ;;  %v16816_v36 = vld [vmem:[#allocation89_spill] sm:$0xff]  ;;  %v16819_v6 = vmax.f32 %v16818_v56, 0.0  ;;  %v15790_v41 = vunpack.i.h.bf16 %v12919_v42 }
 0x63b   :  { %3779 = vmatpush.msrb.mxu2 %v16806_v47  ;;  %v16808_v16 = vunpack.c.l.bf16 %v16807_v29  ;;  %v16810_v61 = vunpack.c.l.bf16 %v16809_v60  ;;  %v3184_v0 = vsel %vm1380_vm7, %v16813_v12, %v6710_v45  ;;  %v16817_v39 = vunpack.c.l.bf16 %v16816_v36  ;;  %v16820_v29 = vld [vmem:[#allocation90_spill] sm:$0xff]  ;;  %v16822_v60 = vld [vmem:[#allocation91_spill] sm:$0xff]  ;;  %v16824_v45 = vld [vmem:[#allocation92_spill] sm:$0xff] }
 0x63c   :  { %3753 = vmatpush.msrb.mxu1 %v16812_v4  ;;  %v3006_v14 = vmax.f32 %v16819_v6, %v2960_v13  ;;  %v3230_v47 = vmax.f32 %v3088_v62, %v3184_v0  ;;  %v16823_v4 = vunpack.c.l.bf16 %v16822_v60  ;;  %v16825_v12 = vunpack.c.l.bf16 %v16824_v45  ;;  %v16826_v57 = vld [vmem:[#allocation93_spill] sm:$0xff]  ;;  %v16828_v62 = vld [vmem:[#allocation94_spill] sm:$0xff]  ;;  %v16832_v6 = vld [vmem:[#allocation96_spill] sm:$0xff] }
 0x63d   :  { %3719 = vmatpush.msra.mxu3 %v16808_v16  ;;  %3730 = vmatpush.msrb.mxu0 %v16810_v61  ;;  %v15788_v61 = vunpack.i.h.bf16 %v12927_v22  ;;  %v16821_v16 = vunpack.c.l.bf16 %v16820_v29  ;;  %v13197_v36 = vmax.f32 %v2992_v49, %v3216_v37  ;;  %v15789_v13 = vunpack.i.h.bf16 %v12921_v20  ;;  %v16834_v60 = vld [vmem:[#allocation97_spill] sm:$0xff] }
 0x63e   :  { %3780 = vmatpush.msrb.mxu2 %v16815_v23  ;;  %3754 = vmatpush.msrb.mxu1 %v16823_v4  ;;  %v16827_v23 = vunpack.c.l.bf16 %v16826_v57  ;;  %v16829_v0 = vunpack.c.l.bf16 %v16828_v62  ;;  %v16833_v29 = vunpack.c.l.bf16 %v16832_v6  ;;  %v16835_v4 = vunpack.c.l.bf16 %v16834_v60  ;;  %v16838_v57 = vld [vmem:[#allocation99_spill] sm:$0xff]  ;;  %v16840_v62 = vld [vmem:[#allocation100_spill] sm:$0xff] }
 0x63f   :  { %3720 = vmatpush.msra.mxu3 %v16817_v39  ;;  %3731 = vmatpush.msrb.mxu0 %v16821_v16  ;;  %v16830_v39 = vld [vmem:[#allocation95_spill] sm:$0xff]  ;;  %v13207_v16 = vmax.f32 %v3006_v14, %v3230_v47  ;;  %v16836_v37 = vunpack.i.h.bf16 %v12870_v52  ;;  %v16837_v45 = vunpack.i.h.bf16 %v12880_v5  ;;  %v13224_v47 = vpop.permute.xlu1 %6733  ;;  %v13231_v52 = vpop.permute.xlu2 %6738  ;;  %v16844_v5 = vunpack.i.h.bf16 %v12872_v3 }
 0x640   :  { %3781 = vmatpush.msrb.mxu2 %v16825_v12  ;;  %v16831_v56 = vunpack.c.l.bf16 %v16830_v39  ;;  %3656 = vmatmul.f32.gmra.mxu0 %v12993_v11  ;;  %v13226_v12 = vpop.permute.xlu0 %6728  ;;  %v16842_v39 = vld [vmem:[#allocation102_spill] sm:$0xff]  ;;  %v15792_v3 = vunpack.i.h.bf16 %v12822_v18 }
 0x641   :  { %3721 = vmatpush.msra.mxu3 %v16827_v23  ;;  %3732 = vmatpush.msrb.mxu0 %v16829_v0  ;;  %v2956_v49 = vsel %vm1068_vm4, %v16836_v37, %v15790_v41  ;;  %v3084_v14 = vsel %vm1276_vm6, %v16837_v45, %v15788_v61  ;;  %v16839_v23 = vunpack.c.l.bf16 %v16838_v57  ;;  %v16841_v0 = vunpack.c.l.bf16 %v16840_v62  ;;  %v16849_v45 = vld [vmem:[#allocation74_spill] sm:$0xff] }
 0x642   :  { %3755 = vmatpush.msrb.mxu1 %v16831_v56  ;;  %3782 = vmatpush.msrb.mxu2 %v16833_v29  ;;  %v16843_v56 = vunpack.c.l.bf16 %v16842_v39  ;;  %v3180_v6 = vsel %vm1380_vm7, %v16844_v5, %v15789_v13  ;;  %v16845_v29 = vld [vmem:[#allocation103_spill] sm:$0xff]  ;;  %v16850_v57 = vmax.f32 %v16849_v45, 0.0  ;;  %v6690_v5 = vunpack.i.l.bf16 %v12822_v18  ;;  %v16857_v45 = vld [vmem:[#allocation108_spill] sm:$0xff] }
 0x643   :  { %3722 = vmatmul.f32.vlgmr.msra.gmra.mxu3 %v13197_v36  ;;  %3679 = vmatmul.f32.gmra.mxu1 %v13207_v16  ;;  %v16846_v60 = vunpack.c.l.bf16 %v16845_v29  ;;  %v3232_v62 = vmax.f32 %v3084_v14, %v3180_v6  ;;  %v15791_v29 = vunpack.i.h.bf16 %v12812_v63  ;;  %v16859_v14 = vld [vmem:[#allocation109_spill] sm:$0xff]  ;;  %v16864_v13 = vunpack.c.l.bf16 %v11326_v17 }
 0x644   :  { %3798 = vmatpush.msrb.mxu3 %v16835_v4  ;;  %3733 = vmatpush.msrb.mxu0 %v16839_v23  ;;  %v16847_v4 = vld [vmem:[#allocation104_spill] sm:$0xff]  ;;  %v3008_v23 = vmax.f32 %v16850_v57, %v2956_v49  ;;  %v16858_v49 = vunpack.c.l.bf16 %v16857_v45  ;;  %v16860_v6 = vunpack.c.l.bf16 %v16859_v14  ;;  %v16867_v45 = vunpack.c.l.bf16 %v11340_v55 }
 0x645   :  { %3756 = vmatpush.msrb.mxu1 %v16841_v0  ;;  %3783 = vmatpush.msrb.mxu2 %v16843_v56  ;;  %v16848_v37 = vunpack.c.l.bf16 %v16847_v4  ;;  %v16851_v0 = vld [vmem:[#allocation105_spill] sm:$0xff]  ;;  %v16853_v56 = vld [vmem:[#allocation106_spill] sm:$0xff]  ;;  %v16855_v4 = vld [vmem:[#allocation107_spill] sm:$0xff] }
 0x646   :  { %3799 = vmatpush.msrb.mxu3 %v16846_v60  ;;  %v16852_v39 = vunpack.c.l.bf16 %v16851_v0  ;;  %v16854_v61 = vunpack.c.l.bf16 %v16853_v56  ;;  %v6685_v60 = vunpack.i.l.bf16 %v12812_v63  ;;  %v16861_v57 = vld [vmem:[#allocation112_spill] sm:$0xff]  ;;  %v16863_v56 = vunpack.c.l.bf16 %v11321_v24 }
 0x647   :  { %3734 = vmatpush.msrb.mxu0 %v16848_v37  ;;  %v16856_v37 = vunpack.c.l.bf16 %v16855_v4  ;;  %v16862_v0 = vunpack.c.l.bf16 %v16861_v57  ;;  %v13271_v4 = vmax.f32 %v3008_v23, %v3232_v62  ;;  %v16870_v62 = vunpack.c.l.bf16 %v16579_v10  ;;  %v16879_v10 = vld [vmem:[#allocation120_spill] sm:$0xff] }
 0x648   :  { %3757 = vmatpush.msrb.mxu1 %v16852_v39  ;;  %3784 = vmatpush.msrb.mxu2 %v16854_v61  ;;  %v15793_v61 = vunpack.i.h.bf16 %v12814_v19  ;;  %v6695_v39 = vunpack.i.l.bf16 %v12814_v19  ;;  %v2949_v14 = vsel %vm1068_vm4, %v6685_v60, %v15791_v29  ;;  %v6735_v29 = vunpack.i.l.bf16 %v13224_v47 }
 0x649   :  { %3800 = vmatpush.msrb.mxu3 %v16856_v37  ;;  %3735 = vmatpush.msrb.mxu0 %v16858_v49  ;;  %16865 = vst [vmem:[#allocation119_spill] sm:$0xff] %v13271_v4  ;;  %v16866_v37 = vunpack.c.l.bf16 %v11335_v43  ;;  %v3077_v49 = vsel %vm1276_vm6, %v6690_v5, %v15792_v3  ;;  %v16877_v3 = vld [vmem:[#allocation118_spill] sm:$0xff] }
 0x64a   :  { %3758 = vmatpush.msrb.mxu1 %v16860_v6  ;;  %3785 = vmatpush.msrb.mxu2 %v16862_v0  ;;  %v16871_v6 = vld [vmem:[#allocation116_spill] sm:$0xff]  ;;  %v3173_v0 = vsel %vm1380_vm7, %v6695_v39, %v15793_v61  ;;  %v16878_v61 = vunpack.c.l.bf16 %v16877_v3 }
 0x64b   :  { %3801 = vmatpush.msrb.mxu3 %v16863_v56  ;;  %3736 = vmatpush.msrb.mxu0 %v16864_v13  ;;  %v16868_v13 = vld [vmem:[#allocation115_spill] sm:$0xff]  ;;  %v16872_v57 = vunpack.c.l.bf16 %v16871_v6  ;;  %v13296_v56 = vpop.permute.xlu1 %6748 }
 0x64c   :  { %3759 = vmatpush.msrb.mxu1 %v16866_v37  ;;  %3786 = vmatpush.msrb.mxu2 %v16867_v45  ;;  %v16869_v23 = vunpack.c.l.bf16 %v16868_v13  ;;  %v13298_v37 = vpop.permute.xlu0 %6743  ;;  %v16873_v45 = vunpack.c.l.bf16 %v16593_v46  ;;  %v16874_v13 = vunpack.c.l.bf16 %v16597_v21  ;;  %v6730_v46 = vunpack.i.l.bf16 %v13226_v12 }
 0x64d   :  { %3725 = vmatmul.f32.gmra.mxu3 %v13271_v4  ;;  %v16880_v4 = vunpack.c.l.bf16 %v16879_v10 }
 0x64e   :  { %3737 = vmatpush.msrb.mxu0 %v16869_v23  ;;  %3802 = vmatpush.msrb.mxu3 %v16870_v62  ;;  %v3219_v23 = vmax.f32 %v3077_v49, %v3173_v0  ;;  %v16875_v62 = vld [vmem:[#allocation22_spill] sm:$0xff]  ;;  %v16883_v49 = vunpack.c.l.bf16 %v16603_v9 }
 0x64f   :  { %3760 = vmatpush.msrb.mxu1 %v16872_v57  ;;  %3787 = vmatpush.msrb.mxu2 %v16873_v45  ;;  %v16876_v41 = vmax.f32 %v16875_v62, 0.0  ;;  %v13306_v57 = vpop.permute.xlu2 %6753  ;;  %v16881_v45 = vld [vmem:[#allocation121_spill] sm:$0xff]  ;;  %v16886_v62 = vld [vmem:[#allocation124_spill] sm:$0xff] }
 0x650   :  { %3738 = vmatpush.msrb.mxu0 %v16874_v13  ;;  %3803 = vmatpush.msrb.mxu3 %v16878_v61  ;;  %v16882_v55 = vunpack.c.l.bf16 %v16881_v45  ;;  %v16884_v13 = vunpack.c.l.bf16 %v16602_v38  ;;  %v16885_v61 = vunpack.c.l.bf16 %v16608_v32  ;;  %v16887_v45 = vunpack.c.l.bf16 %v16886_v62  ;;  %v16891_v38 = vld [vmem:[#allocation125_spill] sm:$0xff] }
 0x651   :  { %v2995_v6 = vmax.f32 %v16876_v41, %v2949_v14  ;;  %3761 = vmatpush.msrb.mxu1 %v16880_v4  ;;  %v6740_v41 = vunpack.i.l.bf16 %v13231_v52  ;;  %v16890_v14 = vunpack.i.h.bf16 %v12726_v2  ;;  %v16892_v32 = vunpack.c.l.bf16 %v16891_v38 }
 0x652   :  { %3788 = vmatpush.msrb.mxu2 %v16882_v55  ;;  %3739 = vmatpush.msrb.mxu0 %v16883_v49  ;;  %v16888_v55 = vld [vmem:[#allocation126_spill] sm:$0xff]  ;;  %v6736_v49 = vunpack.i.h.bf16 %v13224_v47  ;;  %v2951_v2 = vsel %vm1068_vm4, %v6730_v46, %v6685_v60  ;;  %v16895_v47 = vunpack.i.h.bf16 %v12735_v33  ;;  %v16903_v33 = vunpack.i.l.bf16 %v13298_v37 }
 0x653   :  { %3804 = vmatpush.msrb.mxu3 %v16884_v13  ;;  %3762 = vmatpush.msrb.mxu1 %v16885_v61  ;;  %v16889_v9 = vunpack.c.l.bf16 %v16888_v55  ;;  %v3081_v0 = vsel %vm1276_vm6, %v16890_v14, %v6735_v29  ;;  %v6731_v13 = vunpack.i.h.bf16 %v13226_v12  ;;  %v16893_v61 = vunpack.c.l.bf16 %v16616_v26  ;;  %v16896_v14 = vld [vmem:[#allocation128_spill] sm:$0xff]  ;;  %v16898_v26 = vld [vmem:[#allocation131_spill] sm:$0xff] }
 0x654   :  { %3789 = vmatpush.msrb.mxu2 %v16887_v45  ;;  %v13340_v4 = vmax.f32 %v2995_v6, %v3219_v23  ;;  %v2953_v12 = vsel %vm1068_vm4, %v16895_v47, %v6730_v46  ;;  %v16900_v23 = vunpack.i.h.bf16 %v12657_v27  ;;  %v16904_v60 = vunpack.i.l.bf16 %v13296_v56  ;;  %v16907_v45 = vld [vmem:[#allocation132_spill] sm:$0xff]  ;;  %v16913_v55 = vld [vmem:[#allocation43_spill] sm:$0xff] }
 0x655   :  { %3740 = vmatpush.msrb.mxu0 %v16889_v9  ;;  %3805 = vmatpush.msrb.mxu3 %v16892_v32  ;;  %v3079_v9 = vsel %vm1276_vm6, %v6735_v29, %v6690_v5  ;;  %v16897_v32 = vunpack.c.l.bf16 %v16896_v14  ;;  %v16901_v5 = vld [vmem:[#allocation130_spill] sm:$0xff]  ;;  %v2950_v46 = vsel %vm1068_vm4, %v6731_v13, %v16903_v33  ;;  %v3175_v27 = vsel %vm1380_vm7, %v6740_v41, %v6695_v39  ;;  %v16911_v14 = vld [vmem:[#allocation33_spill] sm:$0xff] }
 0x656   :  { %3763 = vmatpush.msrb.mxu1 %v16893_v61  ;;  %16894 = vst [vmem:[#allocation143_spill] sm:$0xff] %v13340_v4  ;;  %v16899_v61 = vunpack.c.l.bf16 %v16898_v26  ;;  %v3177_v6 = vsel %vm1380_vm7, %v16900_v23, %v6740_v41  ;;  %v16902_v29 = vunpack.c.l.bf16 %v16901_v5  ;;  %v3078_v47 = vsel %vm1276_vm6, %v6736_v49, %v16904_v60 }
 0x657   :  { %3790 = vmatpush.msrb.mxu2 %v16897_v32  ;;  %v3217_v32 = vmax.f32 %v3081_v0, %v3177_v6  ;;  %v16908_v5 = vunpack.c.l.bf16 %v16907_v45  ;;  %v3218_v26 = vmax.f32 %v3079_v9, %v3175_v27  ;;  %v16912_v60 = vmax.f32 %v16911_v14, 0.0  ;;  %v16915_v0 = vld [vmem:[#allocation134_spill] sm:$0xff] }
 0x658   :  { %3741 = vmatpush.msrb.mxu0 %v16899_v61  ;;  %3791 = vmatmul.f32.vlgmr.msrb.gmra.mxu2 %v13340_v4  ;;  %v16905_v61 = vld [vmem:[#allocation55_spill] sm:$0xff]  ;;  %v16910_v4 = vunpack.i.h.bf16 %v13231_v52  ;;  %v16914_v39 = vmax.f32 %v16913_v55, 0.0  ;;  %v16916_v6 = vunpack.c.l.bf16 %v16915_v0  ;;  %v16921_v62 = vunpack.c.l.bf16 %v16635_v25 }
 0x659   :  { %3806 = vmatpush.msrb.mxu3 %v16902_v29  ;;  %v16906_v23 = vunpack.c.h.bf16 %v16905_v61  ;;  %3764 = vmatpush.msrb.mxu1 %v16908_v5  ;;  %v16909_v29 = vunpack.i.l.bf16 %v13306_v57  ;;  %v2993_v38 = vmax.f32 %v16912_v60, %v2953_v12  ;;  %v16917_v61 = vld [vmem:[#allocation136_spill] sm:$0xff]  ;;  %v16919_v5 = vld [vmem:[#allocation57_spill] sm:$0xff]  ;;  %v16924_v12 = vld [vmem:[#allocation138_spill] sm:$0xff]  ;;  %v16926_v55 = vunpack.c.l.bf16 %v16639_v54 }
 0x65a   :  { %v2994_v41 = vmax.f32 %v16914_v39, %v2951_v2  ;;  %v16920_v45 = vunpack.c.h.bf16 %v16919_v5  ;;  %v6751_v2 = vunpack.i.h.bf16 %v13296_v56  ;;  %v6746_v60 = vunpack.i.h.bf16 %v13298_v37  ;;  %v16927_v39 = vld [vmem:[#allocation3_spill] sm:$0xff] }
 0x65b   :  { %3867 = vmatpush.msra.mxu2 %v16906_v23  ;;  %v3174_v33 = vsel %vm1380_vm7, %v16910_v4, %v16909_v29  ;;  %3807 = vmatpush.msrb.mxu3 %v16916_v6  ;;  %v16918_v23 = vunpack.c.l.bf16 %v16917_v61  ;;  %v16922_v4 = vld [vmem:[#allocation101_spill] sm:$0xff]  ;;  %v16925_v29 = vunpack.c.l.bf16 %v16924_v12  ;;  %v16928_v6 = vunpack.c.h.bf16 %v16927_v39 }
 0x65c   :  { %3765 = vmatpush.msrb.mxu1 %v16921_v62  ;;  %v16923_v9 = vmax.f32 %v16922_v4, 0.0  ;;  %v3235_v14 = vmax.f32 %v3078_v47, %v3174_v33  ;;  %v13406_v62 = vpop.f32.mrf.mxu0  ;;  %v16933_v33 = vld [vmem:[#allocation144_spill] sm:$0xff]  ;;  %v13412_v4 = vmax.f32 %v2993_v38, %v3217_v32  ;;  %v16942_v32 = vld [vmem:[#allocation135_spill] sm:$0xff] }
 0x65d   :  { %3742 = vmatpush.msrb.mxu0 %v16918_v23  ;;  %3868 = vmatpush.msra.mxu2 %v16920_v45  ;;  %v16929_v45 = vld [vmem:[#allocation140_spill] sm:$0xff]  ;;  %v16934_v5 = vunpack.c.l.bf16 %v16933_v33 }
 0x65e   :  { %v3011_v27 = vmax.f32 %v16923_v9, %v2950_v46  ;;  %3808 = vmatpush.msrb.mxu3 %v16925_v29  ;;  %v16930_v23 = vunpack.c.l.bf16 %v16929_v45  ;;  %v16931_v46 = vld [vmem:[#allocation141_spill] sm:$0xff]  ;;  %v13414_v9 = vmax.f32 %v2994_v41, %v3218_v26  ;;  %v6756_v29 = vunpack.i.h.bf16 %v13306_v57  ;;  %v16939_v45 = vld [vmem:[#allocation98_spill] sm:$0xff] }
 0x65f   :  { %3743 = vmatpush.msrb.mxu0 %v16926_v55  ;;  %3869 = vmatpush.msra.mxu2 %v16928_v6  ;;  %v16932_v47 = vunpack.c.l.bf16 %v16931_v46  ;;  %v16935_v55 = vld [vmem:[#allocation147_spill] sm:$0xff]  ;;  %v16937_v6 = vunpack.c.l.bf16 %v16647_v53  ;;  %v16940_v46 = vunpack.i.l.bf16 %v16939_v45  ;;  %v16943_v26 = vunpack.i.l.bf16 %v16942_v32  ;;  %v16952_v32 = vld [vmem:[#allocation149_spill] sm:$0xff] }
 0x660   :  { %3766 = vmatpush.msrb.mxu1 %v16930_v23  ;;  %v16936_v39 = vunpack.c.h.bf16 %v16935_v55  ;;  %v13421_v23 = vmax.f32 %v3011_v27, %v3235_v14  ;;  %v16944_v41 = vunpack.i.h.bf16 %v12812_v63  ;;  %v16945_v27 = vld [vmem:[#allocation146_spill] sm:$0xff]  ;;  %v16949_v55 = vld [vmem:[#allocation133_spill] sm:$0xff] }
 0x661   :  { %3809 = vmatpush.msrb.mxu3 %v16932_v47  ;;  %3744 = vmatpush.msrb.mxu0 %v16934_v5  ;;  %v16941_v47 = vunpack.i.h.bf16 %v12822_v18  ;;  %v16946_v14 = vunpack.c.l.bf16 %v16945_v27  ;;  %v16947_v18 = vunpack.i.h.bf16 %v12919_v42 }
 0x662   :  { %3870 = vmatpush.msra.mxu2 %v16936_v39  ;;  %3767 = vmatpush.msrb.mxu1 %v16937_v6  ;;  %16938 = vst [vmem:[#allocation54_spill] sm:$0xff] %v13421_v23  ;;  %v2979_v5 = vsel %vm1068_vm4, %v16944_v41, %v16943_v26  ;;  %v16950_v39 = vunpack.i.l.bf16 %v16949_v55  ;;  %v16951_v6 = vunpack.i.h.bf16 %v12814_v19  ;;  %v16953_v26 = vunpack.c.h.bf16 %v16952_v32  ;;  %v16954_v41 = vld [vmem:[#allocation150_spill] sm:$0xff]  ;;  %v16958_v19 = vld [vmem:[#allocation151_spill] sm:$0xff] }
 0x663   :  { %v3107_v38 = vsel %vm1276_vm6, %v16941_v47, %v16940_v46  ;;  %3745 = vmatmul.f32.vlgmr.msrb.gmra.mxu0 %v13412_v4  ;;  %3768 = vmatmul.f32.vlgmr.msrb.gmra.mxu1 %v13414_v9  ;;  %v2954_v45 = vsel %vm1068_vm4, %v16947_v18, %v6746_v60  ;;  %v16948_v46 = vunpack.i.h.bf16 %v12927_v22  ;;  %v16955_v42 = vunpack.c.h.bf16 %v16954_v41  ;;  %v13472_v41 = vpop.f32.mrf.mxu1 }
 0x664   :  { %3794 = vmatmul.f32.gmra.mxu2 %v13421_v23  ;;  %3810 = vmatpush.msrb.mxu3 %v16946_v14  ;;  %v3203_v47 = vsel %vm1380_vm7, %v16951_v6, %v16950_v39  ;;  %v2952_v14 = vsel %vm1068_vm4, %v6746_v60, %v6731_v13  ;;  %v3080_v22 = vsel %vm1276_vm6, %v6751_v2, %v6736_v49  ;;  %v16959_v23 = vunpack.c.h.bf16 %v16958_v19  ;;  %v16960_v39 = vld [vmem:[#allocation148_spill] sm:$0xff]  ;;  %v16963_v13 = vld [vmem:[#allocation153_spill] sm:$0xff]  ;;  %v16965_v49 = vld [vmem:[#allocation154_spill] sm:$0xff] }
 0x665   :  { %v3082_v63 = vsel %vm1276_vm6, %v16948_v46, %v6751_v2  ;;  %3821 = vmatpush.msra.mxu0 %v16953_v26  ;;  %3844 = vmatpush.msra.mxu1 %v16955_v42  ;;  %v3220_v18 = vmax.f32 %v3107_v38, %v3203_v47  ;;  %v16956_v46 = vld [vmem:[#allocation47_spill] sm:$0xff]  ;;  %v16961_v6 = vunpack.c.l.bf16 %v16960_v39  ;;  %v16962_v32 = vunpack.i.h.bf16 %v12921_v20  ;;  %v16967_v38 = vld [vmem:[#allocation86_spill] sm:$0xff]  ;;  %v16972_v19 = vld [vmem:[#allocation152_spill] sm:$0xff] }
 0x666   :  { %v16957_v55 = vmax.f32 %v16956_v46, 0.0  ;;  %3871 = vmatpush.msra.mxu2 %v16959_v23  ;;  %v16964_v60 = vunpack.c.h.bf16 %v16963_v13  ;;  %v16966_v2 = vunpack.c.h.bf16 %v16965_v49  ;;  %v16969_v42 = vunpack.i.h.bf16 %v13231_v52  ;;  %v16970_v46 = vld [vmem:[#allocation155_spill] sm:$0xff]  ;;  %v13494_v52 = vpop.f32.mrf.mxu0 }
 0x667   :  { %3811 = vmatpush.msrb.mxu3 %v16961_v6  ;;  %v3178_v26 = vsel %vm1380_vm7, %v16962_v32, %v6756_v29  ;;  %v16973_v6 = vunpack.c.l.bf16 %v16972_v19  ;;  %v16974_v32 = vld [vmem:[#allocation110_spill] sm:$0xff] }
 0x668   :  { %v2996_v27 = vmax.f32 %v16957_v55, %v2979_v5  ;;  %3822 = vmatpush.msra.mxu0 %v16964_v60  ;;  %3845 = vmatpush.msra.mxu1 %v16966_v2  ;;  %v16968_v5 = vmax.f32 %v16967_v38, 0.0  ;;  %v3233_v23 = vmax.f32 %v3082_v63, %v3178_v26  ;;  %v3176_v20 = vsel %vm1380_vm7, %v6756_v29, %v16969_v42  ;;  %v16976_v2 = vld [vmem:[#allocation157_spill] sm:$0xff]  ;;  %v16980_v26 = vld [vmem:[#allocation159_spill] sm:$0xff]  ;;  %v13502_v42 = vpop.f32.mrf.mxu2 }
 0x669   :  { %v16971_v55 = vunpack.c.h.bf16 %v16970_v46  ;;  %3812 = vmatpush.msrb.mxu3 %v16973_v6  ;;  %v16975_v13 = vmax.f32 %v16974_v32, 0.0  ;;  %v3234_v49 = vmax.f32 %v3080_v22, %v3176_v20  ;;  %v16977_v39 = vunpack.c.h.bf16 %v16976_v2  ;;  %v16985_v20 = vld [vmem:[#allocation162_spill] sm:$0xff] }
 0x66a   :  { %v3009_v47 = vmax.f32 %v16968_v5, %v2954_v45  ;;  %v16978_v45 = vld [vmem:[#allocation158_spill] sm:$0xff]  ;;  %v16981_v29 = vunpack.c.h.bf16 %v16980_v26  ;;  %v16982_v38 = vunpack.c.l.bf16 %v16668_v28  ;;  %v13500_v5 = vmax.f32 %v2996_v27, %v3220_v18  ;;  %v16991_v18 = vld [vmem:[#allocation184_spill] sm:$0xff] }
 0x66b   :  { %3872 = vmatpush.msra.mxu2 %v16971_v55  ;;  %v3010_v60 = vmax.f32 %v16975_v13, %v2952_v14  ;;  %3823 = vmatpush.msra.mxu0 %v16977_v39  ;;  %v16979_v63 = vunpack.c.h.bf16 %v16978_v45  ;;  %v16983_v14 = vld [vmem:[#allocation161_spill] sm:$0xff]  ;;  %v16986_v39 = vunpack.c.h.bf16 %v16985_v20  ;;  %v16987_v55 = vld [vmem:[#allocation163_spill] sm:$0xff]  ;;  %v16989_v13 = vld [vmem:[#allocation170_spill] sm:$0xff]  ;;  %v16992_v2 = vunpack.i.h.bf16 %v16991_v18  ;;  %v13537_v20 = vpop.f32.mrf.mxu3 }
 0x66c   :  { %3813 = vmatpush.msrb.mxu3 %v16982_v38  ;;  %v16984_v22 = vunpack.c.h.bf16 %v16983_v14  ;;  %v13508_v46 = vmax.f32 %v3009_v47, %v3233_v23  ;;  %v16988_v6 = vunpack.c.h.bf16 %v16987_v55  ;;  %v16990_v27 = vunpack.c.h.bf16 %v16989_v13  ;;  %v16994_v23 = vld [vmem:[#allocation183_spill] sm:$0xff]  ;;  %v16999_v38 = vld [vmem:[#allocation165_spill] sm:$0xff]  ;;  %v13545_v13 = vpop.f32.mrf.mxu1 }
 0x66d   :  { %3846 = vmatpush.msra.mxu1 %v16979_v63  ;;  %3873 = vmatpush.msra.mxu2 %v16981_v29  ;;  %v13513_v32 = vmax.f32 %v3010_v60, %v3234_v49  ;;  %v16993_v45 = vunpack.i.l.bf16 %v13298_v37  ;;  %v16995_v63 = vunpack.i.h.bf16 %v16994_v23  ;;  %v16996_v26 = vunpack.i.l.bf16 %v13296_v56  ;;  %v16997_v49 = vld [vmem:[#allocation164_spill] sm:$0xff]  ;;  %v17010_v23 = vld [vmem:[#allocation111_spill] sm:$0xff] }
 0x66e   :  { %3824 = vmatpush.msra.mxu0 %v16984_v22  ;;  %3814 = vmatmul.f32.vlgmr.msrb.gmra.mxu3 %v13500_v5  ;;  %v16998_v29 = vunpack.c.h.bf16 %v16997_v49  ;;  %v17000_v14 = vunpack.c.h.bf16 %v16999_v38  ;;  %v17001_v22 = vld [vmem:[#allocation166_spill] sm:$0xff]  ;;  %v17005_v56 = vunpack.i.l.bf16 %v13306_v57 }
 0x66f   :  { %3847 = vmatpush.msra.mxu1 %v16986_v39  ;;  %3874 = vmatpush.msra.mxu2 %v16988_v6  ;;  %v2980_v47 = vsel %vm1068_vm4, %v16993_v45, %v16992_v2  ;;  %v3108_v60 = vsel %vm1276_vm6, %v16996_v26, %v16995_v63  ;;  %v17002_v37 = vunpack.c.h.bf16 %v17001_v22  ;;  %v17003_v39 = vld [vmem:[#allocation160_spill] sm:$0xff]  ;;  %v17008_v2 = vld [vmem:[#allocation167_spill] sm:$0xff]  ;;  %v17011_v63 = vmax.f32 %v17010_v23, 0.0 }
 0x670   :  { %3890 = vmatpush.msra.mxu3 %v16990_v27  ;;  %3748 = vmatmul.f32.gmra.mxu0 %v13508_v46  ;;  %v17004_v55 = vunpack.i.h.bf16 %v17003_v39  ;;  %v17006_v27 = vld [vmem:[#allocation171_spill] sm:$0xff]  ;;  %v17009_v45 = vunpack.c.h.bf16 %v17008_v2  ;;  %v17016_v22 = vld [vmem:[#allocation172_spill] sm:$0xff]  ;;  %v17018_v39 = vld [vmem:[#allocation173_spill] sm:$0xff]  ;;  %v17026_v23 = vunpack.c.h.bf16 %v16720_v1  ;;  %vm4193_vm6 = vcmp.lt.s32.totalorder %v16267_v44, 112 }
 0x671   :  { %3771 = vmatmul.f32.gmra.mxu1 %v13513_v32  ;;  %3825 = vmatpush.msra.mxu0 %v16998_v29  ;;  %v17007_v18 = vunpack.c.h.bf16 %v17006_v27  ;;  %v3012_v26 = vmax.f32 %v17011_v63, %v2980_v47  ;;  %v17012_v29 = vld [vmem:[#allocation168_spill] sm:$0xff]  ;;  %v13565_v47 = vpop.f32.mrf.mxu2 }
 0x672   :  { %3848 = vmatpush.msra.mxu1 %v17000_v14  ;;  %3875 = vmatpush.msra.mxu2 %v17002_v37  ;;  %v3204_v6 = vsel %vm1380_vm7, %v17005_v56, %v17004_v55  ;;  %v17013_v38 = vunpack.c.h.bf16 %v17012_v29  ;;  %v17014_v14 = vld [vmem:[#allocation169_spill] sm:$0xff]  ;;  %v17017_v37 = vunpack.c.h.bf16 %v17016_v22  ;;  %v17019_v55 = vunpack.c.h.bf16 %v17018_v39  ;;  %v17020_v56 = vld [vmem:[#allocation174_spill] sm:$0xff]  ;;  %v17027_v29 = vld [vmem:[#allocation176_spill] sm:$0xff] }
 0x673   :  { %3891 = vmatpush.msra.mxu3 %v17007_v18  ;;  %3826 = vmatpush.msra.mxu0 %v17009_v45  ;;  %v3236_v49 = vmax.f32 %v3108_v60, %v3204_v6  ;;  %v17015_v57 = vunpack.c.h.bf16 %v17014_v14  ;;  %v17021_v27 = vunpack.c.h.bf16 %v17020_v56  ;;  %v17022_v18 = vld [vmem:[#allocation175_spill] sm:$0xff]  ;;  %v13567_v60 = vpop.f32.mrf.mxu0  ;;  %v17024_v6 = vld [vmem:[#allocation178_spill] sm:$0xff]  ;;  %v17029_v14 = vld [vmem:[#allocation177_spill] sm:$0xff]  ;;  %v17031_v22 = vunpack.c.h.bf16 %v10745_v8  ;;  %v13586_v1 = vpop.f32.mrf.mxu3 }
 0x674   :  { %3849 = vmatpush.msra.mxu1 %v17013_v38  ;;  %v17023_v2 = vunpack.c.h.bf16 %v17022_v18  ;;  %v17025_v45 = vunpack.c.h.bf16 %v17024_v6  ;;  %v17028_v38 = vunpack.c.h.bf16 %v17027_v29  ;;  %v17039_v18 = vld [vmem:[#allocation182_spill] sm:$0xff]  ;;  %v17041_v8 = vunpack.c.h.bf16 %v10782_v30  ;;  %v13596_v6 = vpop.f32.mrf.mxu1 }
 0x675   :  { %3876 = vmatpush.msra.mxu2 %v17015_v57  ;;  %3892 = vmatpush.msra.mxu3 %v17017_v37  ;;  %v13573_v63 = vmax.f32 %v3012_v26, %v3236_v49  ;;  %v17030_v57 = vunpack.c.h.bf16 %v17029_v14  ;;  %v17032_v37 = vld [vmem:[#allocation180_spill] sm:$0xff]  ;;  %v17036_v26 = vld [vmem:[#allocation181_spill] sm:$0xff]  ;;  %vm4180_vm7 = vcmp.lt.s32.totalorder %v16267_v44, 113 }
 0x676   :  { %3827 = vmatpush.msra.mxu0 %v17019_v55  ;;  %3850 = vmatpush.msra.mxu1 %v17021_v27  ;;  %v17033_v39 = vunpack.c.h.bf16 %v17032_v37  ;;  %v17034_v55 = vld [vmem:[#allocation179_spill] sm:$0xff]  ;;  %v17037_v49 = vunpack.c.h.bf16 %v17036_v26  ;;  %v17038_v27 = vunpack.c.h.bf16 %v10777_v48 }
 0x677   :  { %3877 = vmatpush.msra.mxu2 %v17023_v2  ;;  %3893 = vmatpush.msra.mxu3 %v17025_v45  ;;  %v17035_v56 = vunpack.c.h.bf16 %v17034_v55  ;;  %v17040_v2 = vunpack.c.h.bf16 %v17039_v18  ;;  %v17042_v45 = vunpack.c.h.bf16 %v10800_v40  ;;  %v17053_v55 = vld [vmem:[#allocation186_spill] sm:$0xff]  ;;  %v17057_v18 = vld [vmem:[#allocation63_spill] sm:$0xff] }
 0x678   :  { %3828 = vmatpush.msra.mxu0 %v17026_v23  ;;  %3851 = vmatpush.msra.mxu1 %v17028_v38  ;;  %v17043_v23 = vld [vmem:[#allocation26_spill] sm:$0xff]  ;;  %v17045_v38 = vld [vmem:[#allocation185_spill] sm:$0xff] }
 0x679   :  { %3878 = vmatpush.msra.mxu2 %v17030_v57  ;;  %3817 = vmatmul.f32.gmra.mxu3 %v13573_v63  ;;  %v17044_v29 = vunpack.c.h.bf16 %v17043_v23  ;;  %v17046_v14 = vunpack.c.h.bf16 %v17045_v38  ;;  %v17047_v57 = vld [vmem:[#allocation45_spill] sm:$0xff]  ;;  %v17055_v40 = vld [vmem:[#allocation62_spill] sm:$0xff] }
 0x67a   :  { %3829 = vmatpush.msra.mxu0 %v17031_v22  ;;  %3894 = vmatpush.msra.mxu3 %v17033_v39  ;;  %v17048_v48 = vunpack.c.h.bf16 %v17047_v57  ;;  %v17049_v22 = vld [vmem:[#allocation42_spill] sm:$0xff]  ;;  %v17051_v39 = vld [vmem:[#allocation53_spill] sm:$0xff]  ;;  %v17056_v26 = vunpack.c.h.bf16 %v17055_v40  ;;  %v17072_v40 = vunpack.c.h.bf16 %v10954_v15 }
 0x67b   :  { %3852 = vmatpush.msra.mxu1 %v17035_v56  ;;  %3879 = vmatpush.msra.mxu2 %v17037_v49  ;;  %v17050_v37 = vunpack.c.h.bf16 %v17049_v22  ;;  %v17052_v30 = vunpack.c.h.bf16 %v17051_v39  ;;  %v17054_v56 = vunpack.c.h.bf16 %v17053_v55  ;;  %v13614_v49 = vpop.f32.mrf.mxu2  ;;  %v17061_v23 = vld [vmem:[#allocation142_spill] sm:$0xff]  ;;  %v17067_v22 = vld [vmem:[#allocation187_spill] sm:$0xff]  ;;  %v17069_v39 = vunpack.c.h.bf16 %v16769_v50  ;;  %v17070_v55 = vld [vmem:[#allocation188_spill] sm:$0xff] }
 0x67c   :  { %3830 = vmatpush.msra.mxu0 %v17038_v27  ;;  %3895 = vmatpush.msra.mxu3 %v17040_v2  ;;  %v13616_v27 = vpop.f32.mrf.mxu0  ;;  %v17058_v2 = vunpack.c.h.bf16 %v17057_v18  ;;  %v17078_v50 = vunpack.c.h.bf16 %v10995_v59  ;;  %v17082_v15 = vld [vmem:[#allocation190_spill] sm:$0xff] }
 0x67d   :  { %3853 = vmatpush.msra.mxu1 %v17041_v8  ;;  %3880 = vmatpush.msra.mxu2 %v17042_v45  ;;  %v17059_v8 = vld [vmem:[#allocation66_spill] sm:$0xff] }
 0x67e   :  { %3831 = vmatpush.msra.mxu0 %v17044_v29  ;;  %3896 = vmatpush.msra.mxu3 %v17046_v14  ;;  %v17060_v45 = vunpack.c.h.bf16 %v17059_v8  ;;  %v17062_v29 = vld [vmem:[#allocation64_spill] sm:$0xff]  ;;  %v17076_v8 = vld [vmem:[#allocation50_spill] sm:$0xff] }
 0x67f   :  { %3854 = vmatpush.msra.mxu1 %v17048_v48  ;;  %3881 = vmatpush.msra.mxu2 %v17050_v37  ;;  %v17063_v38 = vunpack.c.h.bf16 %v17062_v29  ;;  %v17064_v14 = vld [vmem:[#allocation48_spill] sm:$0xff]  ;;  %v17066_v48 = vunpack.c.h.bf16 %v16763_v34  ;;  %v17068_v37 = vunpack.c.h.bf16 %v17067_v22  ;;  %v17075_v34 = vunpack.c.h.bf16 %v10978_v58 }
 0x680   :  { %3832 = vmatpush.msra.mxu0 %v17052_v30  ;;  %3897 = vmatpush.msra.mxu3 %v17054_v56  ;;  %v17065_v57 = vunpack.c.h.bf16 %v17064_v14  ;;  %v13633_v30 = vpop.f32.mrf.mxu3  ;;  %v17071_v56 = vunpack.c.h.bf16 %v17070_v55  ;;  %v17083_v14 = vunpack.c.h.bf16 %v17082_v15  ;;  %v17086_v22 = vld [vmem:[#allocation56_spill] sm:$0xff]  ;;  %v17104_v15 = vld [vmem:[#allocation199_spill] sm:$0xff] }
 0x681   :  { %3855 = vmatpush.msra.mxu1 %v17056_v26  ;;  %3882 = vmatpush.msra.mxu2 %v17058_v2  ;;  %v17073_v26 = vld [vmem:[#allocation46_spill] sm:$0xff]  ;;  %v3404_v2 = vpop.f32.mrf.mxu1  ;;  %v17090_v55 = vld [vmem:[#allocation192_spill] sm:$0xff] }
 0x682   :  { %3833 = vmatpush.msra.mxu0 %v17060_v45  ;;  %3883 = vmatmul.f32.vlgmr.msra.gmra.mxu2 %v17061_v23  ;;  %v17074_v18 = vunpack.c.h.bf16 %v17073_v26  ;;  %v17077_v45 = vunpack.c.h.bf16 %v17076_v8  ;;  %v17079_v23 = vld [vmem:[#allocation189_spill] sm:$0xff]  ;;  %v17098_v8 = vld [vmem:[#allocation196_spill] sm:$0xff] }
 0x683   :  { %3898 = vmatpush.msra.mxu3 %v17063_v38  ;;  %3959 = vmatpush.msrb.mxu2 %v17065_v57  ;;  %v17080_v29 = vunpack.c.h.bf16 %v17079_v23  ;;  %v17081_v38 = vunpack.c.h.bf16 %v16785_v51  ;;  %v17084_v57 = vld [vmem:[#allocation49_spill] sm:$0xff]  ;;  %v13657_v58 = vpop.f32.mrf.mxu2  ;;  %v17088_v51 = vld [vmem:[#allocation191_spill] sm:$0xff] }
 0x684   :  { %3856 = vmatpush.msra.mxu1 %v17066_v48  ;;  %3834 = vmatpush.msra.mxu0 %v17069_v39  ;;  %v17085_v48 = vunpack.c.h.bf16 %v17084_v57  ;;  %v13659_v59 = vpop.f32.mrf.mxu0  ;;  %v17089_v39 = vunpack.c.h.bf16 %v17088_v51  ;;  %v17106_v57 = vld [vmem:[#allocation200_spill] sm:$0xff]  ;;  %v17108_v51 = vld [vmem:[#allocation201_spill] sm:$0xff] }
 0x685   :  { %3899 = vmatpush.msra.mxu3 %v17068_v37  ;;  %3960 = vmatpush.msrb.mxu2 %v17071_v56  ;;  %v17087_v37 = vunpack.c.h.bf16 %v17086_v22  ;;  %v17091_v56 = vunpack.c.h.bf16 %v17090_v55  ;;  %v17110_v55 = vld [vmem:[#allocation202_spill] sm:$0xff] }
 0x686   :  { %3857 = vmatpush.msra.mxu1 %v17072_v40  ;;  %3835 = vmatpush.msra.mxu0 %v17075_v34  ;;  %v17092_v40 = vld [vmem:[#allocation193_spill] sm:$0xff] }
 0x687   :  { %3900 = vmatpush.msra.mxu3 %v17074_v18  ;;  %3961 = vmatpush.msrb.mxu2 %v17077_v45  ;;  %v17093_v26 = vunpack.c.h.bf16 %v17092_v40  ;;  %v17096_v18 = vld [vmem:[#allocation195_spill] sm:$0xff] }
 0x688   :  { %3858 = vmatpush.msra.mxu1 %v17078_v50  ;;  %3836 = vmatpush.msra.mxu0 %v17081_v38  ;;  %v17097_v34 = vunpack.c.h.bf16 %v17096_v18  ;;  %v13676_v45 = vpop.f32.mrf.mxu3  ;;  %v17100_v50 = vld [vmem:[#allocation197_spill] sm:$0xff]  ;;  %v17112_v40 = vld [vmem:[#allocation51_spill] sm:$0xff]  ;;  %v3310_v18 = vadd.f32 %v13472_v41, %v13406_v62 }
 0x689   :  { %3901 = vmatpush.msra.mxu3 %v17080_v29  ;;  %3962 = vmatpush.msrb.mxu2 %v17083_v14  ;;  %v17101_v23 = vunpack.c.h.bf16 %v17100_v50  ;;  %v17102_v29 = vld [vmem:[#allocation198_spill] sm:$0xff]  ;;  %v17105_v14 = vunpack.c.h.bf16 %v17104_v15  ;;  %v13686_v22 = vpop.f32.mrf.mxu1  ;;  %v17122_v62 = vld [vmem:[#allocation205_spill] sm:$0xff] }
 0x68a   :  { %3859 = vmatpush.msra.mxu1 %v17085_v48  ;;  %3837 = vmatmul.f32.vlgmr.msra.gmra.mxu0 %v12850_v35  ;;  %v17094_v35 = vld [vmem:[#allocation194_spill] sm:$0xff]  ;;  %v17103_v38 = vunpack.c.h.bf16 %v17102_v29  ;;  %v17107_v48 = vunpack.c.h.bf16 %v17106_v57  ;;  %v17120_v29 = vld [vmem:[#allocation204_spill] sm:$0xff]  ;;  %v17123_v41 = vunpack.c.h.bf16 %v17122_v62  ;;  %v17126_v57 = vld [vmem:[#allocation207_spill] sm:$0xff] }
 0x68b   :  { %3860 = vmatmul.f32.vlgmr.msra.gmra.mxu1 %v13124_v31  ;;  %3886 = vmatmul.f32.gmra.mxu2 %v13130_v7  ;;  %v17095_v31 = vunpack.c.h.bf16 %v17094_v35  ;;  %v17099_v7 = vunpack.c.h.bf16 %v17098_v8  ;;  %v17114_v35 = vld [vmem:[#allocation10_spill] sm:$0xff] }
 0x68c   :  { %3902 = vmatpush.msra.mxu3 %v17087_v37  ;;  %3913 = vmatpush.msrb.mxu0 %v17089_v39  ;;  %v3313_v37 = vadd.f32 %v13545_v13, %v13494_v52  ;;  %v17109_v39 = vunpack.c.h.bf16 %v17108_v51  ;;  %v17118_v52 = vld [vmem:[#allocation58_spill] sm:$0xff]  ;;  %v3473_v50 = vpop.f32.mrf.mxu0  ;;  %v17128_v51 = vld [vmem:[#allocation208_spill] sm:$0xff] }
 0x68d   :  { %3936 = vmatpush.msrb.mxu1 %v17091_v56  ;;  %3963 = vmatpush.msrb.mxu2 %v17093_v26  ;;  %v17111_v56 = vunpack.c.h.bf16 %v17110_v55  ;;  %v17113_v26 = vunpack.c.h.bf16 %v17112_v40  ;;  %v17119_v13 = vunpack.c.h.bf16 %v17118_v52  ;;  %v17124_v15 = vld [vmem:[#allocation206_spill] sm:$0xff] }
 0x68e   :  { %3903 = vmatpush.msra.mxu3 %v17095_v31  ;;  %3914 = vmatpush.msrb.mxu0 %v17097_v34  ;;  %v17115_v31 = vunpack.c.h.bf16 %v17114_v35  ;;  %v17116_v34 = vld [vmem:[#allocation203_spill] sm:$0xff] }
 0x68f   :  { %3937 = vmatpush.msrb.mxu1 %v17099_v7  ;;  %3964 = vmatpush.msrb.mxu2 %v17101_v23  ;;  %v17117_v8 = vunpack.c.h.bf16 %v17116_v34  ;;  %v13706_v7 = vpop.f32.mrf.mxu2  ;;  %v3336_v23 = vadd.f32 %v13565_v47, %v3313_v37  ;;  %v17129_v47 = vunpack.c.h.bf16 %v17128_v51  ;;  %v17154_v51 = vld [vmem:[#allocation117_spill] sm:$0xff] }
 0x690   :  { %3904 = vmatpush.msra.mxu3 %v17103_v38  ;;  %3915 = vmatpush.msrb.mxu0 %v17105_v14  ;;  %v17121_v38 = vunpack.c.h.bf16 %v17120_v29  ;;  %v3333_v14 = vadd.f32 %v13502_v42, %v3310_v18  ;;  %v17134_v42 = vld [vmem:[#allocation211_spill] sm:$0xff]  ;;  %v17138_v18 = vld [vmem:[#allocation213_spill] sm:$0xff]  ;;  %v17142_v29 = vunpack.c.h.bf16 %v11321_v24 }
 0x691   :  { %3938 = vmatpush.msrb.mxu1 %v17107_v48  ;;  %3965 = vmatpush.msrb.mxu2 %v17109_v39  ;;  %v17127_v48 = vunpack.c.h.bf16 %v17126_v57  ;;  %v17132_v39 = vld [vmem:[#allocation210_spill] sm:$0xff]  ;;  %v17135_v35 = vunpack.c.h.bf16 %v17134_v42  ;;  %v17139_v34 = vunpack.c.h.bf16 %v17138_v18  ;;  %v17152_v24 = vld [vmem:[#allocation215_spill] sm:$0xff]  ;;  %v17167_v18 = vld [vmem:[#allocation124_spill] sm:$0xff] }
 0x692   :  { %3905 = vmatpush.msra.mxu3 %v17111_v56  ;;  %3916 = vmatpush.msrb.mxu0 %v17113_v26  ;;  %v17133_v55 = vunpack.c.h.bf16 %v17132_v39  ;;  %v3539_v56 = vpop.f32.mrf.mxu3  ;;  %v3356_v40 = vadd.f32 %v13537_v20, %v3333_v14  ;;  %v17143_v20 = vunpack.c.h.bf16 %v11326_v17  ;;  %v17153_v57 = vunpack.c.h.bf16 %v17152_v24 }
 0x693   :  { %3939 = vmatpush.msrb.mxu1 %v17115_v31  ;;  %3966 = vmatpush.msrb.mxu2 %v17117_v8  ;;  %v17140_v8 = vld [vmem:[#allocation214_spill] sm:$0xff] }
 0x694   :  { %3906 = vmatmul.f32.vlgmr.msra.gmra.mxu3 %v13197_v36  ;;  %3840 = vmatmul.f32.gmra.mxu0 %v12993_v11  ;;  %v17125_v36 = vunpack.c.h.bf16 %v17124_v15  ;;  %v3359_v11 = vadd.f32 %v13586_v1, %v3336_v23  ;;  %v17136_v1 = vld [vmem:[#allocation212_spill] sm:$0xff]  ;;  %v17141_v52 = vunpack.c.h.bf16 %v17140_v8  ;;  %v3379_v23 = vadd.f32 %v13567_v60, %v3356_v40  ;;  %v17147_v15 = vld [vmem:[#allocation119_spill] sm:$0xff] }
 0x695   :  { %3982 = vmatpush.msrb.mxu3 %v17119_v13  ;;  %3863 = vmatmul.f32.gmra.mxu1 %v13207_v16  ;;  %v17130_v16 = vld [vmem:[#allocation209_spill] sm:$0xff]  ;;  %v17137_v31 = vunpack.c.h.bf16 %v17136_v1  ;;  %v3496_v13 = vpop.f32.mrf.mxu1  ;;  %v17165_v1 = vld [vmem:[#allocation52_spill] sm:$0xff] }
 0x696   :  { %3917 = vmatpush.msrb.mxu0 %v17121_v38  ;;  %3940 = vmatpush.msrb.mxu1 %v17123_v41  ;;  %v17131_v37 = vunpack.c.h.bf16 %v17130_v16  ;;  %v3382_v26 = vadd.f32 %v13616_v27, %v3359_v11  ;;  %v17144_v27 = vunpack.c.h.bf16 %v11335_v43  ;;  %v17145_v38 = vld [vmem:[#allocation113_spill] sm:$0xff]  ;;  %v17150_v11 = vld [vmem:[#allocation114_spill] sm:$0xff]  ;;  %v3402_v43 = vadd.f32 %v13596_v6, %v3379_v23 }
 0x697   :  { %3967 = vmatpush.msrb.mxu2 %v17125_v36  ;;  %3983 = vmatpush.msrb.mxu3 %v17127_v48  ;;  %v17146_v62 = vunpack.c.h.bf16 %v17145_v38  ;;  %v17148_v36 = vld [vmem:[#allocation129_spill] sm:$0xff]  ;;  %v17151_v60 = vunpack.c.h.bf16 %v17150_v11  ;;  %v3519_v17 = vpop.f32.mrf.mxu2  ;;  %v3562_v48 = vpop.f32.mrf.mxu0  ;;  %v17157_v16 = vunpack.c.h.bf16 %v16877_v3  ;;  %v17163_v6 = vld [vmem:[#allocation122_spill] sm:$0xff]  ;;  %v3497_v8 = vadd.f32 %v3496_v13, %v3473_v50 }
 0x698   :  { %3918 = vmatpush.msrb.mxu0 %v17129_v47  ;;  %3941 = vmatpush.msrb.mxu1 %v17131_v37  ;;  %v3405_v41 = vadd.f32 %v3404_v2, %v3382_v26  ;;  %v17149_v14 = vunpack.c.h.bf16 %v17148_v36  ;;  %v17155_v47 = vunpack.c.h.bf16 %v17154_v51  ;;  %v17156_v2 = vunpack.c.h.bf16 %v16597_v21  ;;  %v17161_v26 = vld [vmem:[#allocation123_spill] sm:$0xff]  ;;  %v17180_v50 = vld [vmem:[#allocation130_spill] sm:$0xff] }
 0x699   :  { %3968 = vmatpush.msrb.mxu2 %v17133_v55  ;;  %3984 = vmatpush.msrb.mxu3 %v17135_v35  ;;  %v17158_v37 = vunpack.c.h.bf16 %v16879_v10  ;;  %v17159_v55 = vld [vmem:[#allocation121_spill] sm:$0xff]  ;;  %v17162_v42 = vunpack.c.h.bf16 %v17161_v26  ;;  %v17164_v35 = vunpack.c.h.bf16 %v17163_v6  ;;  %v17166_v21 = vunpack.c.h.bf16 %v17165_v1  ;;  %v17196_v26 = vld [vmem:[#allocation146_spill] sm:$0xff]  ;;  %v17198_v1 = vld [vmem:[#allocation148_spill] sm:$0xff] }
 0x69a   :  { %3919 = vmatpush.msrb.mxu0 %v17137_v31  ;;  %3942 = vmatpush.msrb.mxu1 %v17139_v34  ;;  %v3428_v39 = vadd.f32 %v13657_v58, %v3405_v41  ;;  %v17160_v40 = vunpack.c.h.bf16 %v17159_v55  ;;  %v3542_v31 = vpop.f32.mrf.mxu3  ;;  %v3425_v3 = vadd.f32 %v13614_v49, %v3402_v43  ;;  %v17168_v10 = vunpack.c.h.bf16 %v17167_v18  ;;  %v17169_v34 = vld [vmem:[#allocation126_spill] sm:$0xff]  ;;  %v17175_v49 = vld [vmem:[#allocation128_spill] sm:$0xff]  ;;  %v17191_v55 = vld [vmem:[#allocation141_spill] sm:$0xff] }
 0x69b   :  { %3969 = vmatpush.msrb.mxu2 %v17141_v52  ;;  %3985 = vmatpush.msrb.mxu3 %v17142_v29  ;;  %v17170_v58 = vunpack.c.h.bf16 %v17169_v34  ;;  %v17171_v52 = vld [vmem:[#allocation125_spill] sm:$0xff]  ;;  %v17173_v29 = vld [vmem:[#allocation127_spill] sm:$0xff]  ;;  %v17176_v41 = vunpack.c.h.bf16 %v17175_v49  ;;  %v17181_v13 = vunpack.c.h.bf16 %v17180_v50 }
 0x69c   :  { %3920 = vmatpush.msrb.mxu0 %v17143_v20  ;;  %3943 = vmatpush.msrb.mxu1 %v17144_v27  ;;  %v17172_v23 = vunpack.c.h.bf16 %v17171_v52  ;;  %v17174_v20 = vunpack.c.h.bf16 %v17173_v29  ;;  %v3451_v38 = vadd.f32 %v13676_v45, %v3428_v39  ;;  %v3448_v11 = vadd.f32 %v13633_v30, %v3425_v3 }
 0x69d   :  { %3970 = vmatpush.msrb.mxu2 %v17146_v62  ;;  %3909 = vmatmul.f32.gmra.mxu3 %v17147_v15  ;;  %v3585_v27 = vpop.f32.mrf.mxu1  ;;  %v3494_v62 = vadd.f32 %v13686_v22, %v13659_v59  ;;  %v17177_v15 = vld [vmem:[#allocation131_spill] sm:$0xff]  ;;  %v3520_v45 = vadd.f32 %v3519_v17, %v3497_v8  ;;  %v17184_v59 = vunpack.c.h.bf16 %v16915_v0  ;;  %v17185_v22 = vunpack.c.h.bf16 %v16917_v61 }
 0x69e   :  { %3921 = vmatpush.msrb.mxu0 %v17149_v14  ;;  %3986 = vmatpush.msrb.mxu3 %v17151_v60  ;;  %v17178_v36 = vunpack.c.h.bf16 %v17177_v15  ;;  %v17179_v14 = vld [vmem:[#allocation143_spill] sm:$0xff]  ;;  %v17182_v60 = vld [vmem:[#allocation132_spill] sm:$0xff]  ;;  %v17188_v17 = vunpack.c.h.bf16 %v16639_v54  ;;  %v17195_v54 = vld [vmem:[#allocation54_spill] sm:$0xff] }
 0x69f   :  { %3944 = vmatpush.msrb.mxu1 %v17153_v57  ;;  %3971 = vmatpush.msrb.mxu2 %v17155_v47  ;;  %v17183_v24 = vunpack.c.h.bf16 %v17182_v60  ;;  %v3608_v57 = vpop.f32.mrf.mxu2  ;;  %v3565_v43 = vpop.f32.mrf.mxu0  ;;  %v3517_v51 = vadd.f32 %v13706_v7, %v3494_v62  ;;  %v17186_v47 = vunpack.c.h.bf16 %v16635_v25  ;;  %v3543_v30 = vadd.f32 %v3542_v31, %v3520_v45 }
 0x6a0   :  { %3922 = vmatpush.msrb.mxu0 %v17156_v2  ;;  %3987 = vmatpush.msrb.mxu3 %v17157_v16  ;;  %v17187_v2 = vunpack.c.h.bf16 %v16924_v12  ;;  %v17193_v7 = vunpack.c.h.bf16 %v16933_v33  ;;  %v17194_v25 = vunpack.c.h.bf16 %v16647_v53  ;;  %v17200_v53 = vunpack.c.h.bf16 %v16972_v19 }
 0x6a1   :  { %3945 = vmatpush.msrb.mxu1 %v17158_v37  ;;  %3972 = vmatpush.msrb.mxu2 %v17160_v40  ;;  %v3540_v16 = vadd.f32 %v3539_v56, %v3517_v51  ;;  %v17189_v37 = vld [vmem:[#allocation140_spill] sm:$0xff]  ;;  %v3566_v39 = vadd.f32 %v3565_v43, %v3543_v30  ;;  %v17192_v40 = vunpack.c.h.bf16 %v17191_v55 }
 0x6a2   :  { %3923 = vmatpush.msrb.mxu0 %v17162_v42  ;;  %3988 = vmatpush.msrb.mxu3 %v17164_v35  ;;  %v3631_v0 = vpop.f32.mrf.mxu3  ;;  %v17190_v61 = vunpack.c.h.bf16 %v17189_v37  ;;  %v17197_v42 = vunpack.c.h.bf16 %v17196_v26 }
 0x6a3   :  { %3946 = vmatpush.msrb.mxu1 %v17166_v21  ;;  %3973 = vmatpush.msrb.mxu2 %v17168_v10  ;;  %v3563_v12 = vadd.f32 %v3562_v48, %v3540_v16  ;;  %v17199_v21 = vunpack.c.h.bf16 %v17198_v1  ;;  %v17201_v48 = vunpack.c.h.bf16 %v16668_v28 }
 0x6a4   :  { %3924 = vmatpush.msrb.mxu0 %v17170_v58  ;;  %3989 = vmatpush.msrb.mxu3 %v17172_v23 }
 0x6a5   :  { %3947 = vmatpush.msrb.mxu1 %v17174_v20  ;;  %3974 = vmatpush.msrb.mxu2 %v17176_v41  ;;  %v3588_v56 = vpop.f32.mrf.mxu1  ;;  %v3586_v35 = vadd.f32 %v3585_v27, %v3563_v12 }
 0x6a6   :  { %3925 = vmatpush.msrb.mxu0 %v17178_v36  ;;  %3975 = vmatmul.f32.vlgmr.msrb.gmra.mxu2 %v17179_v14  ;;  %v3589_v6 = vadd.f32 %v3588_v56, %v3566_v39 }
 0x6a7   :  { %3990 = vmatpush.msrb.mxu3 %v17181_v13  ;;  %4030 = vmatpush.msra.mxu2 %v3451_v38  ;;  %v3611_v33 = vpop.f32.mrf.mxu2  ;;  %v3609_v3 = vadd.f32 %v3608_v57, %v3586_v35 }
 0x6a8   :  { %3948 = vmatpush.msrb.mxu1 %v17183_v24  ;;  %3926 = vmatpush.msrb.mxu0 %v17185_v22  ;;  %v3612_v31 = vadd.f32 %v3611_v33, %v3589_v6 }
 0x6a9   :  { %3991 = vmatpush.msrb.mxu3 %v17184_v59  ;;  %4031 = vmatpush.msra.mxu2 %v3448_v11  ;;  %v3632_v19 = vadd.f32 %v3631_v0, %v3609_v3 }
 0x6aa   :  { %3949 = vmatpush.msrb.mxu1 %v17186_v47  ;;  %3927 = vmatpush.msrb.mxu0 %v17188_v17 }
 0x6ab   :  { %3992 = vmatpush.msrb.mxu3 %v17187_v2 }
 0x6ac   :  { %3950 = vmatpush.msrb.mxu1 %v17190_v61  ;;  %3928 = vmatpush.msrb.mxu0 %v17193_v7 }
 0x6ad   :  { %3993 = vmatpush.msrb.mxu3 %v17192_v40  ;;  %3929 = vmatmul.f32.vlgmr.msrb.gmra.mxu0 %v13412_v4  ;;  %v13823_v4 = vld [vmem:[%s15314_s11] sm:$0xff]  ;;  %s7322_s11 = smov 120  }
 0x6ae   :  { %3951 = vmatpush.msrb.mxu1 %v17194_v25  ;;  %3978 = vmatmul.f32.gmra.mxu2 %v17195_v54 }
 0x6af   :  { %3952 = vmatmul.f32.vlgmr.msrb.gmra.mxu1 %v13414_v9  ;;  %3994 = vmatpush.msrb.mxu3 %v17197_v42  ;;  %v3634_v9 = vpop.f32.mrf.mxu3  ;;  %v13840_v42 = vld [vmem:[%s15315_s2] sm:$0xf]  ;;  %s7314_s2 = smov 113  }
 0x6b0   :  { %v3635_v18 = vadd.f32 %v3634_v9, %v3612_v31  ;;  %v13843_v31 = vperm.slane %v13840_v42, 0  ;;  %v13846_v9 = vperm.slane %v13840_v42, 1 }
 0x6b1   :  { %3995 = vmatpush.msrb.mxu3 %v17199_v21  ;;  %v4010_v21 = vpop.permute.xlu0 %4009 }
 0x6b2   :  { %4050 = vmatpush.msra.mxu1 %v3635_v18 }
 0x6b3   :  { %3996 = vmatpush.msrb.mxu3 %v17200_v53 }
 0x6b4   :  { %4051 = vmatpush.msra.mxu1 %v3632_v19 }
 0x6b5   :  { %3997 = vmatpush.msrb.mxu3 %v17201_v48  ;;  %3932 = vmatmul.f32.gmra.mxu0 %v13508_v46  ;;  %v3654_v28 = vpop.f32.mrf.mxu0  ;;  %v3677_v10 = vpop.f32.mrf.mxu1 }
 0x6b6   :  { %3998 = vmatmul.f32.vlgmr.msrb.gmra.mxu3 %v13500_v5  ;;  %6011 = vmatmul.msk.f32.vlgmr.msra.gmra.mxu2 %vm4012_vm2, %v13823_v4  ;;  %v3700_v46 = vpop.f32.mrf.mxu2  ;;  %v3678_v20 = vadd.f32 %v3677_v10, %v3654_v28 }
 0x6b7   :  { %3955 = vmatmul.f32.gmra.mxu1 %v13513_v32 }
 0x6b8   :  { %v3701_v49 = vadd.f32 %v3700_v46, %v3678_v20 }
 0x6bd   :  { %v3657_v34 = vpop.f32.mrf.mxu0 }
 0x6be   :  { %4001 = vmatmul.f32.gmra.mxu3 %v13573_v63  ;;  %v3703_v52 = vpop.f32.mrf.mxu2 }
 0x6bf   :  { %6012 = vmatmul.msk.f32.vlgmr.msra.gmra.mxu1 %vm4012_vm2, %v13823_v4 }
 0x6c0   :  { %v3680_v8 = vpop.f32.mrf.mxu1 }
 0x6c1   :  { %v3681_v23 = vadd.f32 %v3680_v8, %v3657_v34 }
 0x6c3   :  { %v3704_v27 = vadd.f32 %v3703_v52, %v3681_v23  ;;  %v13860_v23 = vperm.slane %v13840_v42, 2 }
 0x6c6   :  { %v3723_v58 = vpop.f32.mrf.mxu3 }
 0x6c7   :  { %v3724_v15 = vadd.f32 %v3723_v58, %v3701_v49 }
 0x6d0   :  { %v3726_v32 = vpop.f32.mrf.mxu3 }
 0x6d1   :  { %v3727_v63 = vadd.f32 %v3726_v32, %v3704_v27 }
 0x6db   :  { %v3792_v38 = vpop.f32.mrf.mxu2 }
 0x6e0   :  { %v3746_v5 = vpop.f32.mrf.mxu0  ;;  %v3769_v29 = vpop.f32.mrf.mxu1 }
 0x6e1   :  { %v3747_v14 = vadd.f32 %v3746_v5, %v3724_v15 }
 0x6e3   :  { %v3770_v11 = vadd.f32 %v3769_v29, %v3747_v14 }
 0x6e5   :  { %v3793_v59 = vadd.f32 %v3792_v38, %v3770_v11 }
 0x6e7   :  { %v3795_v60 = vpop.f32.mrf.mxu2 }
 0x6ed   :  { %v3749_v62 = vpop.f32.mrf.mxu0 }
 0x6ee   :  { %v3750_v36 = vadd.f32 %v3749_v62, %v3727_v63  ;;  %v3772_v50 = vpop.f32.mrf.mxu1 }
 0x6f0   :  { %v3773_v13 = vadd.f32 %v3772_v50, %v3750_v36 }
 0x6f1   :  { %v3815_v41 = vpop.f32.mrf.mxu3 }
 0x6f2   :  { %v3796_v24 = vadd.f32 %v3795_v60, %v3773_v13  ;;  %v3816_v57 = vadd.f32 %v3815_v41, %v3793_v59 }
 0x6fc   :  { %v3818_v45 = vpop.f32.mrf.mxu3 }
 0x6fd   :  { %v3819_v22 = vadd.f32 %v3818_v45, %v3796_v24 }
 0x6ff   :  { %4070 = vmatpush.msrb.mxu2 %v3819_v22 }
 0x701   :  { %4071 = vmatpush.msrb.mxu2 %v3816_v57  ;;  %v13909_v57 = vperm.slane %v13840_v42, 3 }
 0x702   :  { %6013 = vmatmul.msk.f32.vlgmr.msrb.gmra.mxu2 %vm4012_vm2, %v13823_v4 }
 0x705   :  { %v3884_v43 = vpop.f32.mrf.mxu2 }
 0x707   :  { %v3838_v51 = vpop.f32.mrf.mxu0 }
 0x708   :  { %v3861_v47 = vpop.f32.mrf.mxu1 }
 0x709   :  { %v3862_v7 = vadd.f32 %v3861_v47, %v3838_v51 }
 0x70b   :  { %v3885_v56 = vadd.f32 %v3884_v43, %v3862_v7 }
 0x70e   :  { %v3887_v30 = vpop.f32.mrf.mxu2 }
 0x711   :  { %v3841_v2 = vpop.f32.mrf.mxu0 }
 0x712   :  { %v3864_v17 = vpop.f32.mrf.mxu1 }
 0x713   :  { %v3865_v39 = vadd.f32 %v3864_v17, %v3841_v2  ;;  %v4214_v17 = vld [vmem:[%s15316_s14 + $0x8] sm:$0xff] }
 0x715   :  { %v3888_v12 = vadd.f32 %v3887_v30, %v3865_v39 }
 0x717   :  { %v3907_v0 = vpop.f32.mrf.mxu3 }
 0x718   :  { %v3908_v6 = vadd.f32 %v3907_v0, %v3885_v56  ;;  %v4213_v0 = vld [vmem:[%s15316_s14] sm:$0xff] }
 0x720   :  { %v3910_v55 = vpop.f32.mrf.mxu3 }
 0x721   :  { %v3911_v26 = vadd.f32 %v3910_v55, %v3888_v12 }
 0x729   :  { %v3976_v16 = vpop.f32.mrf.mxu2 }
 0x72a   :  { %v3930_v37 = vpop.f32.mrf.mxu0 }
 0x72b   :  { %v3931_v33 = vadd.f32 %v3930_v37, %v3908_v6  ;;  %v6023_v37 = vld [vmem:[%s15316_s14 + $0x10] sm:$0xff] }
 0x72c   :  { %v3953_v61 = vpop.f32.mrf.mxu1 }
 0x72d   :  { %v3954_v28 = vadd.f32 %v3953_v61, %v3931_v33 }
 0x72f   :  { %v3977_v5 = vadd.f32 %v3976_v16, %v3954_v28  ;;  %v6024_v16 = vld [vmem:[%s15316_s14 + $0x18] sm:$0xff] }
 0x731   :  { %v3979_v40 = vpop.f32.mrf.mxu2 }
 0x732   :  { %v3933_v54 = vpop.f32.mrf.mxu0 }
 0x733   :  { %v3934_v35 = vadd.f32 %v3933_v54, %v3911_v26 }
 0x734   :  { %v3956_v25 = vpop.f32.mrf.mxu1 }
 0x735   :  { %v3957_v18 = vadd.f32 %v3956_v25, %v3934_v35 }
 0x737   :  { %v3980_v34 = vadd.f32 %v3979_v40, %v3957_v18 }
 0x739   :  { %v3999_v1 = vpop.f32.mrf.mxu3  ;;  %v4033_v53 = vpop.f32.mrf.mxu2 }
 0x73a   :  { %v4034_v48 = vadd.f32 %v4033_v53, %v4010_v21  ;;  %v4000_v32 = vadd.f32 %v3999_v1, %v3977_v5 }
 0x73c   :  { %v4053_v3 = vpop.f32.mrf.mxu1  ;;  %v4105_v10 = vmul.f32 %v13843_v31, %v4034_v48 }
 0x73d   :  { %v4054_v19 = vadd.f32 %v4053_v3, %v4010_v21 }
 0x73f   :  { %v13850_v46 = vmul.f32 %v13846_v9, %v4054_v19 }
 0x741   :  { %v6767_v58 = vpack.i.bf16 %v13850_v46, %v4105_v10  ;;  %v4002_v8 = vpop.f32.mrf.mxu3 }
 0x742   :  { %v4003_v52 = vadd.f32 %v4002_v8, %v3980_v34 }
 0x743   :  { %6768 = vrot.lane.b32.xlu1 %v6767_v58, %s7314_s2  ;;  %6763 = vrot.lane.b32.xlu2 %v6767_v58, %s7315_s30 }
 0x744   :  { %6758 = vrot.lane.b32.xlu0 %v6767_v58, %s7316_s24  ;;  %4090 = vmatpush.msra.mxu2 %v4003_v52 }
 0x746   :  { %4091 = vmatpush.msra.mxu2 %v4000_v32 }
 0x747   :  { %6014 = vmatmul.msk.f32.vlgmr.msra.gmra.mxu2 %vm4012_vm2, %v13823_v4 }
 0x74b   :  { %6773 = vrot.lane.b32.xlu2 %v6767_v58, %s7310_s25 }
 0x785   :  { %v4073_v29 = vpop.f32.mrf.mxu2 }
 0x786   :  { %v4074_v20 = vadd.f32 %v4073_v29, %v4010_v21 }
 0x788   :  { %v13863_v27 = vmul.f32 %v13860_v23, %v4074_v20 }
 0x78a   :  { %v6782_v38 = vpack.i.bf16 %v13863_v27, %v13850_v46 }
 0x78c   :  { %6783 = vrot.lane.b32.xlu1 %v6782_v38, %s7317_s0  ;;  %6778 = vrot.lane.b32.xlu0 %v6782_v38, %s7309_s1 }
 0x79d   :  { %v13869_v62 = vpop.permute.xlu2 %6763 }
 0x79e   :  { %v6766_v63 = vunpack.i.h.bf16 %v13869_v62  ;;  %v6765_v41 = vunpack.i.l.bf16 %v13869_v62 }
 0x7a0   :  { %v4196_v45 = vsel %vm4193_vm6, %v6765_v41, %v6766_v63 }
 0x7a5   :  { %v13880_v14 = vpop.permute.xlu2 %6773 }
 0x7a6   :  { %v6776_v60 = vunpack.i.h.bf16 %v13880_v14  ;;  %v6775_v24 = vunpack.i.l.bf16 %v13880_v14 }
 0x7a8   :  { %v4170_v22 = vsel %vm1068_vm4, %v6775_v24, %v6776_v60 }
 0x7b5   :  { %v13871_v4 = vpop.permute.xlu1 %6768 }
 0x7b6   :  { %v13873_v49 = vpop.permute.xlu0 %6758  ;;  %v6771_v50 = vunpack.i.h.bf16 %v13871_v4  ;;  %v6770_v13 = vunpack.i.l.bf16 %v13871_v4 }
 0x7b7   :  { %v6761_v15 = vunpack.i.h.bf16 %v13873_v49  ;;  %v6760_v36 = vunpack.i.l.bf16 %v13873_v49 }
 0x7b8   :  { %v4183_v59 = vsel %vm4180_vm7, %v6770_v13, %v6771_v50 }
 0x7b9   :  { %v4209_v11 = vsel %vm4206_vm5, %v6760_v36, %v6761_v15 }
 0x7ba   :  { %4238 = vmatpush.msra.mxu0 %v4209_v11 }
 0x7bc   :  { %4239 = vmatpush.msra.mxu0 %v4196_v45 }
 0x7be   :  { %4240 = vmatpush.msra.mxu0 %v4183_v59 }
 0x7c0   :  { %4241 = vmatpush.msra.mxu0 %v4170_v22 }
 0x7c2   :  { %4242 = vmatpush.msra.mxu0 %v4105_v10 }
 0x7ca   :  { %v4093_v43 = vpop.f32.mrf.mxu2 }
 0x7cb   :  { %v4094_v51 = vadd.f32 %v4093_v43, %v4010_v21 }
 0x7cd   :  { %v13912_v47 = vmul.f32 %v13909_v57, %v4094_v51 }
 0x7cf   :  { %v6787_v30 = vpack.i.bf16 %v13912_v47, %v13863_v27  ;;  %v6812_v2 = vpack.i.bf16 %v4105_v10, %v13912_v47 }
 0x7d1   :  { %6788 = vrot.lane.b32.xlu1 %v6787_v30, %s7316_s24  ;;  %6793 = vrot.lane.b32.xlu2 %v6787_v30, %s7315_s30 }
 0x7d2   :  { %6803 = vrot.lane.b32.xlu0 %v6787_v30, %s7310_s25 }
 0x7d9   :  { %6798 = vrot.lane.b32.xlu1 %v6787_v30, %s7314_s2  ;;  %6813 = vrot.lane.b32.xlu2 %v6812_v2, %s7309_s1 }
 0x7da   :  { %6808 = vrot.lane.b32.xlu0 %v6782_v38, %s7318_s7 }
 0x7e1   :  { %6823 = vrot.lane.b32.xlu1 %v6812_v2, %s7317_s0  ;;  %6818 = vrot.lane.b32.xlu2 %v6782_v38, %s7319_s26 }
 0x7e2   :  { %6828 = vrot.lane.b32.xlu0 %v6812_v2, %s7318_s7 }
 0x7e9   :  { %6833 = vrot.lane.b32.xlu1 %v6812_v2, %s7319_s26  ;;  %4222 = vperm.xlu2 %6199, %v4214_v17  }
 0x7ea   :  { %4217 = vperm.xlu0 %6200, %v4213_v0  }
 0x7f1   :  { %4425 = vperm.xlu2 %6199, %v6024_v16   ;;  %v4211_v16 = vld [vmem:[%s15317_s13] sm:$0xff] }
 0x7f2   :  { %4420 = vperm.xlu0 %6200, %v6023_v37  }
 0x7fe   :  { %v13941_v25 = vpop.permute.xlu1 %6783  ;;  %v6779_v12 = vpop.permute.xlu0 %6778 }
 0x7ff   :  { %v6781_v32 = vunpack.i.h.bf16 %v6779_v12  ;;  %v6780_v29 = vunpack.i.l.bf16 %v6779_v12  ;;  %v6786_v4 = vunpack.i.h.bf16 %v13941_v25  ;;  %v6785_v49 = vunpack.i.l.bf16 %v13941_v25  ;;  %v4212_v12 = vld [vmem:[%s15317_s13 + $0x8] sm:$0xff] }
 0x82b   :  { %v6794_v61 = vpop.permute.xlu2 %6793 }
 0x82c   :  { %v6796_v56 = vunpack.i.h.bf16 %v6794_v61  ;;  %v6795_v26 = vunpack.i.l.bf16 %v6794_v61 }
 0x82e   :  { %v4195_v53 = vsel %vm4193_vm6, %v6766_v63, %v6795_v26  ;;  %v4194_v48 = vsel %vm4193_vm6, %v6795_v26, %v6796_v56  ;;  %v4197_v3 = vsel %vm4193_vm6, %v6796_v56, %v6765_v41  ;;  %v4157_v41 = vsel %vm925_vm3, %v6780_v29, %v6781_v32 }
 0x833   :  { %v6814_v39 = vpop.permute.xlu2 %6813 }
 0x834   :  { %v6816_v55 = vunpack.i.h.bf16 %v6814_v39  ;;  %v6815_v40 = vunpack.i.l.bf16 %v6814_v39 }
 0x836   :  { %v4159_v7 = vsel %vm925_vm3, %v6815_v40, %v6816_v55  ;;  %v4156_v11 = vsel %vm925_vm3, %v6781_v32, %v6815_v40 }
 0x837   :  { %4243 = vmatpush.msra.mxu0 %v4159_v7 }
 0x843   :  { %v6789_v54 = vpop.permute.xlu1 %6788 }
 0x844   :  { %v6791_v42 = vunpack.i.h.bf16 %v6789_v54  ;;  %v6790_v6 = vunpack.i.l.bf16 %v6789_v54  ;;  %v6804_v35 = vpop.permute.xlu0 %6803 }
 0x845   :  { %v6806_v19 = vunpack.i.h.bf16 %v6804_v35  ;;  %v6805_v28 = vunpack.i.l.bf16 %v6804_v35 }
 0x846   :  { %v4208_v1 = vsel %vm4206_vm5, %v6761_v15, %v6790_v6  ;;  %v4207_v21 = vsel %vm4206_vm5, %v6790_v6, %v6791_v42  ;;  %v4210_v33 = vsel %vm4206_vm5, %v6791_v42, %v6760_v36  ;;  %v6819_v15 = vpop.permute.xlu2 %6818 }
 0x847   :  { %4261 = vmatpush.msrb.mxu1 %v4208_v1  ;;  %4284 = vmatpush.msrb.mxu2 %v4207_v21  ;;  %v4169_v20 = vsel %vm1068_vm4, %v6776_v60, %v6805_v28  ;;  %v4168_v38 = vsel %vm1068_vm4, %v6805_v28, %v6806_v19  ;;  %v4171_v62 = vsel %vm1068_vm4, %v6806_v19, %v6775_v24  ;;  %v6821_v43 = vunpack.i.h.bf16 %v6819_v15 }
 0x848   :  { %4307 = vmatpush.msra.mxu3 %v4210_v33  ;;  %v6820_v51 = vunpack.i.l.bf16 %v6819_v15 }
 0x849   :  { %4262 = vmatpush.msrb.mxu1 %v4195_v53  ;;  %4285 = vmatpush.msrb.mxu2 %v4194_v48 }
 0x84a   :  { %4308 = vmatpush.msra.mxu3 %v4197_v3  ;;  %v4119_v61 = vsel %vm4117_vm10, %v6820_v51, %v6821_v43 }
 0x84b   :  { %v6799_v18 = vpop.permute.xlu1 %6798 }
 0x84c   :  { %v6801_v10 = vunpack.i.h.bf16 %v6799_v18  ;;  %v6800_v34 = vunpack.i.l.bf16 %v6799_v18  ;;  %v6809_v58 = vpop.permute.xlu0 %6808 }
 0x84d   :  { %v6810_v60 = vunpack.i.l.bf16 %v6809_v58 }
 0x84e   :  { %v4182_v8 = vsel %vm4180_vm7, %v6771_v50, %v6800_v34  ;;  %v4181_v5 = vsel %vm4180_vm7, %v6800_v34, %v6801_v10  ;;  %v4184_v52 = vsel %vm4180_vm7, %v6801_v10, %v6770_v13  ;;  %v4158_v13 = vsel %vm925_vm3, %v6816_v55, %v6780_v29  ;;  %v4223_v28 = vpop.permute.xlu2 %4222 }
 0x84f   :  { %4263 = vmatpush.msrb.mxu1 %v4182_v8  ;;  %4286 = vmatpush.msrb.mxu2 %v4181_v5 }
 0x850   :  { %4309 = vmatpush.msra.mxu3 %v4184_v52 }
 0x851   :  { %4264 = vmatpush.msrb.mxu1 %v4169_v20  ;;  %4287 = vmatpush.msrb.mxu2 %v4168_v38 }
 0x852   :  { %4310 = vmatpush.msra.mxu3 %v4171_v62 }
 0x853   :  { %v6824_v63 = vpop.permute.xlu1 %6823  ;;  %4265 = vmatpush.msrb.mxu1 %v13850_v46  ;;  %4288 = vmatpush.msrb.mxu2 %v13863_v27  ;;  %v6811_v46 = vunpack.i.h.bf16 %v6809_v58 }
 0x854   :  { %v6826_v36 = vunpack.i.h.bf16 %v6824_v63  ;;  %v6825_v14 = vunpack.i.l.bf16 %v6824_v63  ;;  %v6829_v50 = vpop.permute.xlu0 %6828  ;;  %4311 = vmatpush.msra.mxu3 %v13912_v47  ;;  %v4145_v47 = vsel %vm4143_vm8, %v6785_v49, %v6786_v4 }
 0x855   :  { %v6831_v27 = vunpack.i.h.bf16 %v6829_v50  ;;  %v6830_v24 = vunpack.i.l.bf16 %v6829_v50  ;;  %4266 = vmatpush.msrb.mxu1 %v4158_v13  ;;  %4289 = vmatpush.msrb.mxu2 %v4157_v41  ;;  %v4132_v17 = vsel %vm4130_vm9, %v6810_v60, %v6811_v46 }
 0x856   :  { %4312 = vmatpush.msra.mxu3 %v4156_v11  ;;  %v4147_v45 = vsel %vm4143_vm8, %v6825_v14, %v6826_v36  ;;  %v4146_v59 = vsel %vm4143_vm8, %v6826_v36, %v6785_v49  ;;  %v4144_v22 = vsel %vm4143_vm8, %v6786_v4, %v6825_v14 }
 0x857   :  { %4244 = vmatpush.msra.mxu0 %v4147_v45  ;;  %4267 = vmatpush.msrb.mxu1 %v4146_v59  ;;  %v4134_v30 = vsel %vm4130_vm9, %v6830_v24, %v6831_v27  ;;  %v4133_v2 = vsel %vm4130_vm9, %v6831_v27, %v6810_v60  ;;  %v4131_v0 = vsel %vm4130_vm9, %v6811_v46, %v6830_v24 }
 0x858   :  { %4290 = vmatpush.msrb.mxu2 %v4145_v47  ;;  %4313 = vmatpush.msra.mxu3 %v4144_v22 }
 0x859   :  { %4245 = vmatpush.msra.mxu0 %v4134_v30  ;;  %4268 = vmatpush.msrb.mxu1 %v4133_v2 }
 0x85a   :  { %4291 = vmatpush.msrb.mxu2 %v4132_v17  ;;  %4314 = vmatpush.msra.mxu3 %v4131_v0 }
 0x85b   :  { %v6834_v37 = vpop.permute.xlu1 %6833 }
 0x85c   :  { %v6836_v39 = vunpack.i.h.bf16 %v6834_v37  ;;  %v6835_v55 = vunpack.i.l.bf16 %v6834_v37  ;;  %4292 = vmatpush.msrb.mxu2 %v4119_v61  ;;  %v4218_v54 = vpop.permute.xlu0 %4217 }
 0x85d   :  { %6019 = vmatmul.msk.f32.vlgmr.msrb.gmra.mxu2 %vm2096_vm11, %v4211_v16 }
 0x85e   :  { %v4121_v40 = vsel %vm4117_vm10, %v6835_v55, %v6836_v39  ;;  %v4120_v7 = vsel %vm4117_vm10, %v6836_v39, %v6820_v51  ;;  %v4118_v25 = vsel %vm4117_vm10, %v6821_v43, %v6835_v55  ;;  %v6025_v55 = vld [vmem:[%s15316_s14 + $0x20] sm:$0xff] }
 0x85f   :  { %4246 = vmatpush.msra.mxu0 %v4121_v40  ;;  %4269 = vmatpush.msrb.mxu1 %v4120_v7  ;;  %v6026_v40 = vld [vmem:[%s15316_s14 + $0x28] sm:$0xff]  ;;  %v14085_v7 = vpop.permute.xlu2 %4425 }
 0x860   :  { %4315 = vmatpush.msra.mxu3 %v4118_v25  ;;  %6015 = vmatmul.msk.f32.vlgmr.msra.gmra.mxu0 %vm2096_vm11, %v4211_v16 }
 0x861   :  { %6017 = vmatmul.msk.f32.vlgmr.msrb.gmra.mxu1 %vm2096_vm11, %v4211_v16  ;;  %6021 = vmatmul.msk.f32.vlgmr.msra.gmra.mxu3 %vm2096_vm11, %v4211_v16 }
 0x865   :  { %6020 = vmatmul.msk.f32.gmra.mxu2 %vm2096_vm11, %v4212_v12 }
 0x868   :  { %6016 = vmatmul.msk.f32.gmra.mxu0 %vm2096_vm11, %v4212_v12 }
 0x869   :  { %6018 = vmatmul.msk.f32.gmra.mxu1 %vm2096_vm11, %v4212_v12  ;;  %6022 = vmatmul.msk.f32.gmra.mxu3 %vm2096_vm11, %v4212_v12 }
 0x8dd   :  { %v4248_v56 = vpop.f32.mrf.mxu0 }
 0x8de   :  { %v4249_v26 = vadd.f32 %v4248_v56, %v4218_v54  ;;  %v4271_v42 = vpop.f32.mrf.mxu1 }
 0x8df   :  { %v4272_v6 = vadd.f32 %v4271_v42, %v4218_v54 }
 0x8e0   :  { %v4323_v35 = vmax.f32 %v4249_v26, 0.0  ;;  %v4294_v1 = vpop.f32.mrf.mxu2 }
 0x8e1   :  { %v4324_v21 = vmax.f32 %v4272_v6, 0.0  ;;  %v4295_v33 = vadd.f32 %v4294_v1, %v4218_v54 }
 0x8e2   :  { %v14032_v53 = vmul.f32 %v4323_v35, %v13843_v31 }
 0x8e3   :  { %v14035_v48 = vmul.f32 %v4324_v21, %v13846_v9  ;;  %v4325_v3 = vmax.f32 %v4295_v33, 0.0 }
 0x8e4   :  { %v4351_v18 = vmul.f32 %v14032_v53, %v14032_v53  ;;  %v4317_v19 = vpop.f32.mrf.mxu3 }
 0x8e5   :  { %v4339_v10 = vadd.f32 %v14035_v48, %v14032_v53  ;;  %v4352_v34 = vmul.f32 %v14035_v48, %v14035_v48  ;;  %v14044_v58 = vmul.f32 %v4325_v3, %v13860_v23  ;;  %v4318_v8 = vadd.f32 %v4317_v19, %v4218_v54  ;;  %v4251_v5 = vpop.f32.mrf.mxu0  ;;  %v14089_v54 = vpop.permute.xlu0 %4420 }
 0x8e6   :  { %v4252_v52 = vadd.f32 %v4251_v5, %v4223_v28  ;;  %v4274_v32 = vpop.f32.mrf.mxu1 }
 0x8e7   :  { %v4326_v29 = vmax.f32 %v4318_v8, 0.0  ;;  %v4275_v20 = vadd.f32 %v4274_v32, %v4223_v28  ;;  %v4353_v38 = vmul.f32 %v14044_v58, %v14044_v58  ;;  %v4359_v49 = vadd.f32 %v4352_v34, %v4351_v18 }
 0x8e8   :  { %v4327_v62 = vmax.f32 %v4252_v52, 0.0  ;;  %v4297_v4 = vpop.f32.mrf.mxu2  ;;  %v4340_v36 = vadd.f32 %v4339_v10, %v14044_v58 }
 0x8e9   :  { %v14049_v63 = vmul.f32 %v4326_v29, %v13909_v57  ;;  %v4328_v41 = vmax.f32 %v4275_v20, 0.0  ;;  %v4298_v15 = vadd.f32 %v4297_v4, %v4223_v28  ;;  %v4360_v24 = vadd.f32 %v4359_v49, %v4353_v38 }
 0x8ea   :  { %v14053_v14 = vmul.f32 %v4327_v62, %v13843_v31 }
 0x8eb   :  { %v14056_v50 = vmul.f32 %v4328_v41, %v13846_v9  ;;  %v4329_v13 = vmax.f32 %v4298_v15, 0.0  ;;  %v4341_v11 = vadd.f32 %v4340_v36, %v14049_v63  ;;  %v4354_v46 = vmul.f32 %v14049_v63, %v14049_v63 }
 0x8ec   :  { %v4355_v60 = vmul.f32 %v14053_v14, %v14053_v14  ;;  %v4320_v27 = vpop.f32.mrf.mxu3 }
 0x8ed   :  { %v4356_v45 = vmul.f32 %v14056_v50, %v14056_v50  ;;  %v14066_v59 = vmul.f32 %v4329_v13, %v13860_v23  ;;  %v4321_v22 = vadd.f32 %v4320_v27, %v4223_v28  ;;  %4342 = vadd.xlane.f32.xlu2 %v4341_v11  ;;  %v4361_v43 = vadd.f32 %v4360_v24, %v4354_v46 }
 0x8ee   :  { %v4344_v2 = vadd.f32 %v14056_v50, %v14053_v14 }
 0x8ef   :  { %v4357_v51 = vmul.f32 %v14066_v59, %v14066_v59  ;;  %v4330_v47 = vmax.f32 %v4321_v22, 0.0  ;;  %v4364_v30 = vadd.f32 %v4356_v45, %v4355_v60  ;;  %4362 = vadd.xlane.f32.xlu1 %v4361_v43 }
 0x8f0   :  { %v4345_v37 = vadd.f32 %v4344_v2, %v14066_v59 }
 0x8f1   :  { %v14073_v17 = vmul.f32 %v4330_v47, %v13909_v57  ;;  %v4365_v16 = vadd.f32 %v4364_v30, %v4357_v51 }
 0x8f3   :  { %v4358_v0 = vmul.f32 %v14073_v17, %v14073_v17  ;;  %v4346_v39 = vadd.f32 %v4345_v37, %v14073_v17 }
 0x8f5   :  { %v4366_v61 = vadd.f32 %v4365_v16, %v4358_v0 }
 0x8f7   :  { %4367 = vadd.xlane.f32.xlu0 %v4366_v61  ;;  %4347 = vadd.xlane.f32.xlu1 %v4346_v39 }
 0x905   :  { %4441 = vperm.xlu2 %6199, %v6025_v55  }
 0x910   :  { %4446 = vperm.xlu1 %6201, %v6026_v40  }
 0x960   :  { %v4343_v25 = vpop.xlane.xlu2 %4342 }
 0x961   :  { %v14087_v12 = vmul.f32 0.0025510204, %v4343_v25 }
 0x962   :  { %v4363_v56 = vpop.xlane.xlu1 %4362 }
 0x963   :  { %v4371_v26 = vmul.f32 %v14087_v12, %v14087_v12  ;;  %v4369_v42 = vmul.f32 0.0025510204, %v4363_v56  ;;  %v4378_v62 = vsub.f32 %v14035_v48, %v14087_v12  ;;  %v4379_v4 = vsub.f32 %v14044_v58, %v14087_v12 }
 0x964   :  { %v4380_v49 = vsub.f32 %v14049_v63, %v14087_v12  ;;  %v4377_v61 = vsub.f32 %v14032_v53, %v14087_v12 }
 0x965   :  { %v4373_v6 = vsub.f32 %v4369_v42, %v4371_v26 }
 0x967   :  { %v4375_v35 = vmax.f32 %v4373_v6, 0.0 }
 0x968   :  { %v4442_v45 = vpop.permute.xlu2 %4441 }
 0x969   :  { %v4385_v1 = vadd.f32 1e-05, %v4375_v35 }
 0x96a   :  { %v4368_v21 = vpop.xlane.xlu0 %4367  ;;  %v4348_v33 = vpop.xlane.xlu1 %4347 }
 0x96b   :  { %7213 = vrsqrt.f32 %v4385_v1  ;;  %v14093_v3 = vmul.f32 0.0025510204, %v4348_v33  ;;  %v4370_v18 = vmul.f32 0.0025510204, %v4368_v21  ;;  %vm4393_vm13 = vweird.f32 %v4385_v1 }
 0x96d   :  { %v4372_v19 = vmul.f32 %v14093_v3, %v14093_v3  ;;  %v4381_v47 = vsub.f32 %v14053_v14, %v14093_v3  ;;  %v4382_v2 = vsub.f32 %v14056_v50, %v14093_v3  ;;  %v4383_v0 = vsub.f32 %v14066_v59, %v14093_v3 }
 0x96f   :  { %v4374_v28 = vsub.f32 %v4370_v18, %v4372_v19  ;;  %v4384_v19 = vsub.f32 %v14073_v17, %v14093_v3 }
 0x971   :  { %v7214_v10 = vpop.eup %7213  ;;  %v4376_v34 = vmax.f32 %v4374_v28, 0.0 }
 0x972   :  { %v4388_v8 = vmul.f32 %v7214_v10, %v4385_v1  ;;  %vm4394_vm12 = vweird.f32 %v7214_v10 }
 0x973   :  { %v4386_v5 = vadd.f32 1e-05, %v4376_v34  ;;  %vm4395_vm14 = vmor %vm4393_vm13, %vm4394_vm12 }
 0x974   :  { %v4389_v52 = vmul.f32 %v7214_v10, %v4388_v8 }
 0x975   :  { %7215 = vrsqrt.f32 %v4386_v5  ;;  %vm4403_vm0 = vweird.f32 %v4386_v5 }
 0x976   :  { %v4390_v32 = vmul.f32 0.5, %v4389_v52 }
 0x978   :  { %v4391_v29 = vsub.f32 1.5, %v4390_v32 }
 0x97a   :  { %v4392_v20 = vmul.f32 %v7214_v10, %v4391_v29  ;;  %v4665_v29 = vld [vmem:[%s15318_s16 + $0x10] sm:$0xf] }
 0x97b   :  { %v7216_v38 = vpop.eup %7215 }
 0x97c   :  { %v4396_v41 = vsel %vm4395_vm14, %v7214_v10, %v4392_v20  ;;  %v4398_v15 = vmul.f32 %v7216_v38, %v4386_v5  ;;  %vm4404_vm15 = vweird.f32 %v7216_v38  ;;  %v4663_v20 = vld [vmem:[%s15318_s16] sm:$0xff] }
 0x97d   :  { %v4408_v36 = vmul.f32 %v4396_v41, %v4378_v62  ;;  %v4409_v13 = vmul.f32 %v4396_v41, %v4379_v4  ;;  %v4410_v11 = vmul.f32 %v4396_v41, %v4380_v49  ;;  %vm4405_vm1 = vmor %vm4403_vm0, %vm4404_vm15  ;;  %v4407_v14 = vmul.f32 %v4396_v41, %v4377_v61  ;;  %v6039_v62 = vld [vmem:[%s15318_s16 + $0x18] sm:$0xff]  ;;  %v6042_v4 = vld [vmem:[%s15318_s16 + $0x30] sm:$0xff] }
 0x97e   :  { %v4399_v46 = vmul.f32 %v7216_v38, %v4398_v15 }
 0x97f   :  { %v4429_v60 = vmul.f32 %v14089_v54, %v4408_v36  ;;  %v4430_v27 = vmul.f32 %v14089_v54, %v4409_v13  ;;  %v4431_v24 = vmul.f32 %v14089_v54, %v4410_v11  ;;  %v4428_v6 = vmul.f32 %v14089_v54, %v4407_v14 }
 0x980   :  { %v4400_v48 = vmul.f32 0.5, %v4399_v46 }
 0x981   :  { %v4450_v22 = vadd.f32 %v4442_v45, %v4429_v60  ;;  %v4451_v43 = vadd.f32 %v4442_v45, %v4430_v27  ;;  %v4449_v21 = vadd.f32 %v4442_v45, %v4428_v6  ;;  %v4452_v52 = vadd.f32 %v4442_v45, %v4431_v24 }
 0x982   :  { %v4401_v58 = vsub.f32 1.5, %v4400_v48  ;;  %v4447_v25 = vpop.permute.xlu1 %4446 }
 0x983   :  { %v14107_v63 = vmul.f32 %v4450_v22, %v13846_v9  ;;  %v14110_v51 = vmul.f32 %v4451_v43, %v13860_v23  ;;  %v14143_v54 = vmul.f32 %v4449_v21, %v13843_v31  ;;  %v14167_v3 = vmul.f32 %v4452_v52, %v13909_v57 }
 0x984   :  { %v4402_v30 = vmul.f32 %v7216_v38, %v4401_v58 }
 0x985   :  { %v6867_v16 = vpack.i.bf16 %v14110_v51, %v14107_v63  ;;  %v6852_v28 = vpack.i.bf16 %v14107_v63, %v14143_v54 }
 0x986   :  { %v4406_v37 = vsel %vm4405_vm1, %v7216_v38, %v4402_v30  ;;  %v4664_v38 = vld [vmem:[%s15318_s16 + $0x8] sm:$0xff] }
 0x987   :  { %v4411_v39 = vmul.f32 %v4406_v37, %v4381_v47  ;;  %v4412_v55 = vmul.f32 %v4406_v37, %v4382_v2  ;;  %v4413_v40 = vmul.f32 %v4406_v37, %v4383_v0  ;;  %6868 = vrot.lane.b32.xlu0 %v6867_v16, %s7316_s24  ;;  %6838 = vrot.lane.b32.xlu1 %v6867_v16, %s7315_s30 }
 0x988   :  { %v4414_v10 = vmul.f32 %v4406_v37, %v4384_v19 }
 0x989   :  { %v4433_v50 = vmul.f32 %v14085_v7, %v4412_v55  ;;  %v4434_v59 = vmul.f32 %v14085_v7, %v4413_v40  ;;  %v4432_v56 = vmul.f32 %v14085_v7, %v4411_v39 }
 0x98a   :  { %v4435_v34 = vmul.f32 %v14085_v7, %v4414_v10 }
 0x98b   :  { %v4454_v26 = vadd.f32 %v4447_v25, %v4433_v50  ;;  %v4455_v42 = vadd.f32 %v4447_v25, %v4434_v59  ;;  %v4453_v35 = vadd.f32 %v4447_v25, %v4432_v56 }
 0x98c   :  { %v4456_v8 = vadd.f32 %v4447_v25, %v4435_v34 }
 0x98d   :  { %v14129_v53 = vmul.f32 %v4454_v26, %v13846_v9  ;;  %v14132_v12 = vmul.f32 %v4455_v42, %v13860_v23  ;;  %v14140_v33 = vmul.f32 %v4453_v35, %v13843_v31 }
 0x98e   :  { %v14164_v17 = vmul.f32 %v4456_v8, %v13909_v57 }
 0x98f   :  { %v6882_v1 = vpack.i.bf16 %v14132_v12, %v14129_v53  ;;  %6843 = vrot.lane.b32.xlu1 %v6867_v16, %s7314_s2  ;;  %v6887_v18 = vpack.i.bf16 %v14143_v54, %v14140_v33  ;;  %v6912_v5 = vpack.i.bf16 %v14129_v53, %v14140_v33  ;;  %v6977_v32 = vpack.i.bf16 %v14110_v51, %v14132_v12 }
 0x990   :  { %v6917_v7 = vpack.i.bf16 %v14167_v3, %v14164_v17 }
 0x991   :  { %6883 = vrot.lane.b32.xlu2 %v6882_v1, %s7314_s2  ;;  %6878 = vrot.lane.b32.xlu0 %v6882_v1, %s7315_s30 }
 0x997   :  { %6848 = vrot.lane.b32.xlu1 %v6867_v16, %s7310_s25 }
 0x999   :  { %6893 = vrot.lane.b32.xlu2 %v6882_v1, %s7310_s25  ;;  %6888 = vrot.lane.b32.xlu0 %v6887_v18, %s7315_s30 }
 0x99f   :  { %6853 = vrot.lane.b32.xlu1 %v6852_v28, %s7309_s1 }
 0x9a1   :  { %6903 = vrot.lane.b32.xlu2 %v6887_v18, %s7310_s25  ;;  %6898 = vrot.lane.b32.xlu0 %v6887_v18, %s7314_s2 }
 0x9a7   :  { %6858 = vrot.lane.b32.xlu1 %v6852_v28, %s7317_s0 }
 0x9a9   :  { %6913 = vrot.lane.b32.xlu2 %v6912_v5, %s7317_s0  ;;  %6908 = vrot.lane.b32.xlu0 %v6912_v5, %s7309_s1 }
 0x9af   :  { %6863 = vrot.lane.b32.xlu1 %v6852_v28, %s7318_s7 }
 0x9b1   :  { %6923 = vrot.lane.b32.xlu2 %v6912_v5, %s7318_s7  ;;  %6918 = vrot.lane.b32.xlu0 %v6917_v7, %s7309_s1 }
 0x9b7   :  { %6873 = vrot.lane.b32.xlu1 %v6852_v28, %s7319_s26 }
 0x9b9   :  { %6933 = vrot.lane.b32.xlu2 %v6917_v7, %s7315_s30  ;;  %6928 = vrot.lane.b32.xlu0 %v6917_v7, %s7317_s0 }
 0x9bf   :  { %6943 = vrot.lane.b32.xlu1 %v6912_v5, %s7319_s26 }
 0x9c1   :  { %6948 = vrot.lane.b32.xlu2 %v6917_v7, %s7318_s7  ;;  %6938 = vrot.lane.b32.xlu0 %v6882_v1, %s7316_s24 }
 0x9c7   :  { %6963 = vrot.lane.b32.xlu1 %v6917_v7, %s7319_s26 }
 0x9c9   :  { %6953 = vrot.lane.b32.xlu2 %v6917_v7, %s7314_s2  ;;  %6958 = vrot.lane.b32.xlu0 %v6887_v18, %s7316_s24 }
 0x9cf   :  { %6978 = vrot.lane.b32.xlu1 %v6977_v32, %s7317_s0  ;;  %s7324_s0 = smov 126  }
 0x9d1   :  { %6968 = vrot.lane.b32.xlu2 %v6917_v7, %s7310_s25  ;;  %6973 = vrot.lane.b32.xlu0 %v6977_v32, %s7309_s1 }
 0x9d7   :  { %6993 = vrot.lane.b32.xlu1 %v6977_v32, %s7319_s26 }
 0x9d9   :  { %6983 = vrot.lane.b32.xlu2 %v6977_v32, %s7318_s7  ;;  %6988 = vrot.lane.b32.xlu0 %v6917_v7, %s7316_s24 }
 0x9df   :  { %4678 = vperm.xlu1 %6201, %v4665_v29  }
 0x9e1   :  { %4668 = vperm.xlu2 %6199, %v4663_v20   ;;  %4673 = vperm.xlu0 %6200, %v4664_v38  }
 0x9e9   :  { %5051 = vperm.xlu2 %6199, %v6039_v62   ;;  %5082 = vperm.xlu0 %6200, %v6042_v4  }
 0x9eb   :  { %v14206_v49 = vpop.permute.xlu2 %6883 }
 0x9ec   :  { %v6886_v48 = vunpack.i.h.bf16 %v14206_v49  ;;  %v6885_v22 = vunpack.i.l.bf16 %v14206_v49 }
 0x9ee   :  { %v4604_v37 = vsel %vm4180_vm7, %v6885_v22, %v6886_v48 }
 0x9f3   :  { %v14208_v41 = vpop.permute.xlu2 %6893 }
 0x9f4   :  { %v6896_v2 = vunpack.i.h.bf16 %v14208_v41  ;;  %v6895_v0 = vunpack.i.l.bf16 %v14208_v41 }
 0x9f6   :  { %v4580_v56 = vsel %vm1068_vm4, %v6895_v0, %v6896_v2 }
 0x9f9   :  { %v14210_v15 = vpop.permute.xlu1 %6838  ;;  %v14212_v36 = vpop.permute.xlu0 %6868 }
 0x9fa   :  { %v6841_v60 = vunpack.i.h.bf16 %v14210_v15  ;;  %v6840_v27 = vunpack.i.l.bf16 %v14210_v15 }
 0x9fb   :  { %v14216_v11 = vpop.permute.xlu2 %6903 }
 0x9fc   :  { %v4627_v30 = vsel %vm4193_vm6, %v6840_v27, %v6841_v60  ;;  %v6905_v18 = vunpack.i.l.bf16 %v14216_v11  ;;  %v6906_v10 = vunpack.i.h.bf16 %v14216_v11 }
 0xa01   :  { %v14214_v13 = vpop.permute.xlu1 %6843 }
 0xa02   :  { %v6846_v58 = vunpack.i.h.bf16 %v14214_v13  ;;  %v6845_v47 = vunpack.i.l.bf16 %v14214_v13 }
 0xa03   :  { %v14218_v46 = vpop.permute.xlu0 %6878  ;;  %v14254_v59 = vpop.permute.xlu2 %6913 }
 0xa04   :  { %v6881_v24 = vunpack.i.h.bf16 %v14218_v46  ;;  %v6880_v45 = vunpack.i.l.bf16 %v14218_v46  ;;  %v4603_v39 = vsel %vm4180_vm7, %v6845_v47, %v6846_v58  ;;  %v15812_v20 = vunpack.i.h.bf16 %v14254_v59 }
 0xa05   :  { %v6915_v38 = vunpack.i.l.bf16 %v14254_v59 }
 0xa06   :  { %v4628_v43 = vsel %vm4193_vm6, %v6880_v45, %v6881_v24 }
 0xa07   :  { %4742 = vmatpush.msra.mxu2 %v4628_v43 }
 0xa09   :  { %4743 = vmatpush.msra.mxu2 %v4627_v30  ;;  %v14238_v16 = vpop.permute.xlu1 %6848 }
 0xa0a   :  { %v6851_v55 = vunpack.i.h.bf16 %v14238_v16  ;;  %v6850_v40 = vunpack.i.l.bf16 %v14238_v16  ;;  %v17202_v16 = vunpack.i.h.bf16 %v14212_v36 }
 0xa0b   :  { %v14244_v61 = vpop.permute.xlu0 %6888  ;;  %4744 = vmatpush.msra.mxu2 %v4604_v37  ;;  %v14285_v28 = vpop.permute.xlu2 %6923 }
 0xa0c   :  { %v6891_v14 = vunpack.i.h.bf16 %v14244_v61  ;;  %v6890_v50 = vunpack.i.l.bf16 %v14244_v61  ;;  %v4579_v42 = vsel %vm1068_vm4, %v6850_v40, %v6851_v55  ;;  %v4581_v5 = vsel %vm1068_vm4, %v6906_v10, %v6850_v40 }
 0xa0d   :  { %4745 = vmatpush.msra.mxu2 %v4603_v39  ;;  %v15805_v43 = vunpack.i.h.bf16 %v14285_v28 }
 0xa0e   :  { %v4630_v25 = vsel %vm4193_vm6, %v6890_v50, %v6880_v45  ;;  %v4629_v26 = vsel %vm4193_vm6, %v6891_v14, %v6840_v27 }
 0xa0f   :  { %4690 = vmatpush.msrb.mxu0 %v4630_v25  ;;  %4746 = vmatpush.msra.mxu2 %v4580_v56 }
 0xa11   :  { %4691 = vmatpush.msrb.mxu0 %v4629_v26  ;;  %4747 = vmatpush.msra.mxu2 %v4579_v42  ;;  %v14272_v6 = vpop.permute.xlu1 %6853 }
 0xa12   :  { %v15814_v52 = vunpack.i.h.bf16 %v14272_v6  ;;  %v6855_v7 = vunpack.i.l.bf16 %v14272_v6 }
 0xa13   :  { %v14274_v35 = vpop.permute.xlu0 %6898  ;;  %4748 = vmatpush.msra.mxu2 %v14129_v53 }
 0xa14   :  { %v6901_v1 = vunpack.i.h.bf16 %v14274_v35  ;;  %v6900_v21 = vunpack.i.l.bf16 %v14274_v35  ;;  %v4557_v45 = vsel %vm925_vm3, %v6855_v7, %v15814_v52 }
 0xa15   :  { %4749 = vmatpush.msra.mxu2 %v14107_v63  ;;  %v4582_v63 = vsel %vm1068_vm4, %v6905_v18, %v6895_v0 }
 0xa16   :  { %v4606_v19 = vsel %vm4180_vm7, %v6900_v21, %v6885_v22  ;;  %v4605_v53 = vsel %vm4180_vm7, %v6901_v1, %v6845_v47  ;;  %v14321_v22 = vpop.permute.xlu2 %6933  ;;  %v6925_v47 = vunpack.i.l.bf16 %v14285_v28 }
 0xa17   :  { %4692 = vmatpush.msrb.mxu0 %v4606_v19 }
 0xa18   :  { %v4510_v26 = vsel %vm4130_vm9, %v6925_v47, %v15805_v43 }
 0xa19   :  { %4693 = vmatpush.msrb.mxu0 %v4605_v53  ;;  %v14292_v34 = vpop.permute.xlu1 %6858 }
 0xa1a   :  { %v15806_v4 = vunpack.i.h.bf16 %v14292_v34  ;;  %v6860_v27 = vunpack.i.l.bf16 %v14292_v34 }
 0xa1b   :  { %v14298_v8 = vpop.permute.xlu0 %6908  ;;  %4694 = vmatpush.msrb.mxu0 %v4582_v63 }
 0xa1c   :  { %v15816_v32 = vunpack.i.h.bf16 %v14298_v8  ;;  %v6910_v29 = vunpack.i.l.bf16 %v14298_v8 }
 0xa1d   :  { %4695 = vmatpush.msrb.mxu0 %v4581_v5 }
 0xa1e   :  { %v4558_v62 = vsel %vm925_vm3, %v6910_v29, %v15816_v32  ;;  %v14360_v63 = vpop.permute.xlu2 %6948  ;;  %v14443_v32 = vld [vmem:[%s15319_s15 + $0x10] sm:$0xff] }
 0xa1f   :  { %4696 = vmatpush.msrb.mxu0 %v14140_v33  ;;  %4750 = vmatpush.msra.mxu2 %v4558_v62  ;;  %v4534_v33 = vsel %vm4143_vm8, %v6915_v38, %v15812_v20 }
 0xa21   :  { %4697 = vmatpush.msrb.mxu0 %v14143_v54  ;;  %4751 = vmatpush.msra.mxu2 %v4557_v45  ;;  %v14326_v30 = vpop.permute.xlu1 %6863  ;;  %v4533_v54 = vsel %vm4143_vm8, %v6860_v27, %v15806_v4  ;;  %v15807_v45 = vunpack.i.l.bf16 %v14360_v63 }
 0xa22   :  { %v15804_v37 = vunpack.i.h.bf16 %v14326_v30  ;;  %v6865_v39 = vunpack.i.l.bf16 %v14326_v30 }
 0xa23   :  { %v14332_v0 = vpop.permute.xlu0 %6918  ;;  %4752 = vmatpush.msra.mxu2 %v4534_v33 }
 0xa24   :  { %v15815_v40 = vunpack.i.h.bf16 %v14332_v0  ;;  %v15817_v25 = vunpack.i.l.bf16 %v14332_v0  ;;  %v4509_v19 = vsel %vm4130_vm9, %v6865_v39, %v15804_v37  ;;  %v6870_v37 = vunpack.i.l.bf16 %v14212_v36 }
 0xa25   :  { %4753 = vmatpush.msra.mxu2 %v4533_v54  ;;  %v15818_v54 = vunpack.i.h.bf16 %v14212_v36  ;;  %v17204_v36 = vunpack.i.h.bf16 %v14298_v8 }
 0xa26   :  { %v4560_v56 = vsel %vm925_vm3, %v15817_v25, %v6910_v29  ;;  %v4559_v42 = vsel %vm925_vm3, %v15815_v40, %v6855_v7  ;;  %v6936_v25 = vunpack.i.h.bf16 %v14321_v22 }
 0xa27   :  { %4698 = vmatpush.msrb.mxu0 %v4560_v56  ;;  %4754 = vmatpush.msra.mxu2 %v4510_v26  ;;  %v15810_v56 = vunpack.i.h.bf16 %v14360_v63 }
 0xa29   :  { %4699 = vmatpush.msrb.mxu0 %v4559_v42  ;;  %4755 = vmatpush.msra.mxu2 %v4509_v19  ;;  %v14358_v53 = vpop.permute.xlu1 %6873  ;;  %v4512_v42 = vsel %vm4130_vm9, %v15807_v45, %v6925_v47  ;;  %v4511_v47 = vsel %vm4130_vm9, %v15810_v56, %v6865_v39 }
 0xa2a   :  { %v6875_v19 = vunpack.i.l.bf16 %v14358_v53 }
 0xa2b   :  { %v14362_v5 = vpop.permute.xlu0 %6928 }
 0xa2c   :  { %v15808_v29 = vunpack.i.h.bf16 %v14362_v5  ;;  %v15813_v62 = vunpack.i.l.bf16 %v14362_v5 }
 0xa2e   :  { %v4536_v7 = vsel %vm4143_vm8, %v15813_v62, %v6915_v38  ;;  %v4535_v33 = vsel %vm4143_vm8, %v15808_v29, %v6860_v27  ;;  %v15811_v38 = vunpack.i.h.bf16 %v14358_v53  ;;  %v14407_v29 = vld [vmem:[%s15319_s15] sm:$0xff]  ;;  %v6935_v62 = vunpack.i.l.bf16 %v14321_v22 }
 0xa2f   :  { %4700 = vmatpush.msrb.mxu0 %v4536_v7 }
 0xa30   :  { %v4485_v39 = vsel %vm4117_vm10, %v6875_v19, %v15811_v38  ;;  %v4632_v22 = vsel %vm4193_vm6, %v6935_v62, %v6890_v50  ;;  %v4626_v50 = vsel %vm4193_vm6, %v6881_v24, %v6935_v62  ;;  %v14488_v24 = vld [vmem:[%s15319_s15 + $0x20] sm:$0xf] }
 0xa31   :  { %4701 = vmatpush.msrb.mxu0 %v4535_v33  ;;  %v14377_v26 = vpop.permute.xlu1 %6943 }
 0xa32   :  { %v15809_v7 = vunpack.i.h.bf16 %v14377_v26  ;;  %v6945_v27 = vunpack.i.l.bf16 %v14377_v26 }
 0xa33   :  { %v14387_v33 = vpop.permute.xlu0 %6938  ;;  %4702 = vmatpush.msrb.mxu0 %v4512_v42 }
 0xa34   :  { %v6941_v43 = vunpack.i.h.bf16 %v14387_v33  ;;  %v6940_v4 = vunpack.i.l.bf16 %v14387_v33  ;;  %v4486_v45 = vsel %vm4117_vm10, %v6945_v27, %v15809_v7  ;;  %v4651_v7 = vsel %vm4206_vm5, %v6870_v37, %v15818_v54 }
 0xa35   :  { %4703 = vmatpush.msrb.mxu0 %v4511_v47  ;;  %4756 = vmatpush.msra.mxu2 %v4486_v45  ;;  %v14416_v45 = vld [vmem:[%s15319_s15 + $0x8] sm:$0xff]  ;;  %v6954_v47 = vpop.permute.xlu2 %6953 }
 0xa36   :  { %v4652_v42 = vsel %vm4206_vm5, %v6940_v4, %v6941_v43 }
 0xa37   :  { %4782 = vmatpush.msrb.mxu3 %v4652_v42  ;;  %4757 = vmatpush.msra.mxu2 %v4485_v39 }
 0xa38   :  { %4758 = vmatmul.f32.vlgmr.msra.gmra.mxu2 %v14407_v29 }
 0xa39   :  { %4783 = vmatpush.msrb.mxu3 %v4651_v7  ;;  %v14423_v56 = vpop.permute.xlu1 %6963 }
 0xa3a   :  { %6030 = vmatmul.msk.f32.vlgmr.msrb.gmra.mxu3 %vm4012_vm2, %v14416_v45  ;;  %v6966_v42 = vunpack.i.h.bf16 %v14423_v56  ;;  %v6965_v38 = vunpack.i.l.bf16 %v14423_v56 }
 0xa3b   :  { %v14429_v20 = vpop.permute.xlu0 %6958 }
 0xa3c   :  { %v6960_v39 = vunpack.i.l.bf16 %v14429_v20  ;;  %v6961_v52 = vunpack.i.h.bf16 %v14429_v20  ;;  %v4488_v7 = vsel %vm4117_vm10, %v6965_v38, %v6945_v27  ;;  %v4487_v54 = vsel %vm4117_vm10, %v6966_v42, %v6875_v19  ;;  %v14453_v27 = vld [vmem:[%s15319_s15 + $0x18] sm:$0xff] }
 0xa3d   :  { %4704 = vmatpush.msrb.mxu0 %v4488_v7  ;;  %v6956_v19 = vunpack.i.h.bf16 %v6954_v47 }
 0xa3e   :  { %v4654_v40 = vsel %vm4206_vm5, %v6960_v39, %v6940_v4  ;;  %v6955_v4 = vunpack.i.l.bf16 %v6954_v47 }
 0xa3f   :  { %4730 = vmatpush.msra.mxu1 %v4654_v40  ;;  %4705 = vmatpush.msrb.mxu0 %v4487_v54  ;;  %v4653_v40 = vsel %vm4206_vm5, %v6961_v52, %v6870_v37  ;;  %v6969_v54 = vpop.permute.xlu2 %6968  ;;  %v4631_v37 = vsel %vm4193_vm6, %v6936_v25, %v6891_v14  ;;  %v14501_v14 = vld [vmem:[%s15319_s15 + $0x28] sm:$0xf]  ;;  %v4601_v49 = vsel %vm4180_vm7, %v6846_v58, %v6956_v19 }
 0xa40   :  { %4706 = vmatmul.f32.vlgmr.msrb.gmra.mxu0 %v14407_v29  ;;  %4761 = vmatmul.f32.gmra.mxu2 %v14443_v32  ;;  %v6970_v47 = vunpack.i.l.bf16 %v6969_v54  ;;  %v4608_v46 = vsel %vm4180_vm7, %v6955_v4, %v6900_v21  ;;  %v6971_v61 = vunpack.i.h.bf16 %v6969_v54  ;;  %v4602_v15 = vsel %vm4180_vm7, %v6886_v48, %v6955_v4 }
 0xa41   :  { %4846 = vmatpush.msra.mxu0 %v4632_v22  ;;  %4731 = vmatpush.msra.mxu1 %v4653_v40  ;;  %v4625_v22 = vsel %vm4193_vm6, %v6841_v60, %v6936_v25  ;;  %v4607_v60 = vsel %vm4180_vm7, %v6956_v19, %v6901_v1  ;;  %v6979_v1 = vpop.permute.xlu1 %6978  ;;  %v17205_v4 = vunpack.i.h.bf16 %v14332_v0  ;;  %v17207_v54 = vunpack.i.l.bf16 %v14362_v5 }
 0xa42   :  { %6027 = vmatmul.msk.f32.vlgmr.msra.gmra.mxu1 %vm4012_vm2, %v14416_v45  ;;  %6031 = vmatmul.msk.f32.gmra.mxu3 %vm4012_vm2, %v14453_v27  ;;  %v4584_v48 = vsel %vm1068_vm4, %v6970_v47, %v6905_v18  ;;  %v4578_v13 = vsel %vm1068_vm4, %v6896_v2, %v6970_v47  ;;  %v4583_v58 = vsel %vm1068_vm4, %v6971_v61, %v6906_v10 }
 0xa43   :  { %v6974_v7 = vpop.permute.xlu0 %6973  ;;  %4794 = vmatpush.msrb.mxu1 %v4626_v50  ;;  %4847 = vmatpush.msra.mxu0 %v4631_v37  ;;  %v4577_v41 = vsel %vm1068_vm4, %v6851_v55, %v6971_v61  ;;  %v6980_v55 = vunpack.i.l.bf16 %v6979_v1  ;;  %v17209_v37 = vunpack.i.h.bf16 %v14362_v5  ;;  %v17212_v5 = vunpack.i.h.bf16 %v14285_v28 }
 0xa44   :  { %v6975_v25 = vunpack.i.l.bf16 %v6974_v7  ;;  %v6976_v10 = vunpack.i.h.bf16 %v6974_v7 }
 0xa45   :  { %4795 = vmatpush.msrb.mxu1 %v4625_v22  ;;  %4848 = vmatpush.msra.mxu0 %v4608_v46  ;;  %v4530_v8 = vsel %vm4143_vm8, %v6980_v55, %v17207_v54  ;;  %v17210_v22 = vunpack.i.h.bf16 %v14292_v34  ;;  %v17211_v46 = vunpack.i.l.bf16 %v14360_v63 }
 0xa47   :  { %4796 = vmatpush.msrb.mxu1 %v4602_v15  ;;  %4849 = vmatpush.msra.mxu0 %v4607_v60  ;;  %v6984_v33 = vpop.permute.xlu2 %6983  ;;  %v17213_v60 = vunpack.i.h.bf16 %v14360_v63  ;;  %v17215_v63 = vunpack.i.h.bf16 %v14377_v26 }
 0xa48   :  { %4709 = vmatmul.f32.gmra.mxu0 %v14443_v32  ;;  %4764 = vmatmul.f32.gmra.mxu2 %v14488_v24  ;;  %v6985_v20 = vunpack.i.l.bf16 %v6984_v33  ;;  %v6986_v19 = vunpack.i.h.bf16 %v6984_v33 }
 0xa49   :  { %4797 = vmatpush.msrb.mxu1 %v4601_v49  ;;  %4850 = vmatpush.msra.mxu0 %v4584_v48  ;;  %v17214_v49 = vunpack.i.h.bf16 %v14326_v30 }
 0xa4a   :  { %6028 = vmatmul.msk.f32.gmra.mxu1 %vm4012_vm2, %v14453_v27  ;;  %6032 = vmatmul.msk.f32.gmra.mxu3 %vm4012_vm2, %v14501_v14  ;;  %v4508_v15 = vsel %vm4130_vm9, %v17212_v5, %v6985_v20  ;;  %v4505_v34 = vsel %vm4130_vm9, %v6986_v19, %v17213_v60 }
 0xa4b   :  { %v6989_v35 = vpop.permute.xlu0 %6988  ;;  %4798 = vmatpush.msrb.mxu1 %v4578_v13  ;;  %4851 = vmatpush.msra.mxu0 %v4583_v58  ;;  %v4507_v48 = vsel %vm4130_vm9, %v17214_v49, %v6986_v19 }
 0xa4c   :  { %v6991_v21 = vunpack.i.h.bf16 %v6989_v35  ;;  %v6990_v18 = vunpack.i.l.bf16 %v6989_v35 }
 0xa4d   :  { %4799 = vmatpush.msrb.mxu1 %v4577_v41  ;;  %4852 = vmatpush.msra.mxu0 %v14164_v17 }
 0xa4e   :  { %v4650_v11 = vsel %vm4206_vm5, %v6941_v43, %v6990_v18  ;;  %v4656_v2 = vsel %vm4206_vm5, %v6990_v18, %v6960_v39  ;;  %v4649_v17 = vsel %vm4206_vm5, %v17202_v16, %v6991_v21  ;;  %v17203_v43 = vunpack.i.l.bf16 %v14332_v0  ;;  %v6994_v0 = vpop.permute.xlu1 %6993 }
 0xa4f   :  { %4834 = vmatpush.msra.mxu3 %v4650_v11  ;;  %4886 = vmatpush.msrb.mxu2 %v4656_v2  ;;  %v4556_v39 = vsel %vm925_vm3, %v17204_v36, %v6975_v25  ;;  %v6995_v47 = vunpack.i.l.bf16 %v6994_v0  ;;  %v6996_v61 = vunpack.i.h.bf16 %v6994_v0 }
 0xa50   :  { %4800 = vmatpush.msrb.mxu1 %v14132_v12  ;;  %4853 = vmatpush.msra.mxu0 %v14167_v3  ;;  %v4554_v62 = vsel %vm925_vm3, %v6975_v25, %v17203_v43  ;;  %v4655_v12 = vsel %vm4206_vm5, %v6991_v21, %v6961_v52  ;;  %v6981_v3 = vunpack.i.h.bf16 %v6979_v1  ;;  %v17206_v52 = vunpack.i.h.bf16 %v14272_v6 }
 0xa51   :  { %4712 = vmatmul.f32.gmra.mxu0 %v14488_v24  ;;  %4835 = vmatpush.msra.mxu3 %v4649_v17  ;;  %v17208_v6 = vunpack.i.h.bf16 %v14254_v59  ;;  %v4506_v59 = vsel %vm4130_vm9, %v6985_v20, %v17211_v46  ;;  %v4482_v28 = vsel %vm4117_vm10, %v6995_v47, %v6965_v38  ;;  %v4484_v30 = vsel %vm4117_vm10, %v17215_v63, %v6995_v47 }
 0xa52   :  { %4801 = vmatpush.msrb.mxu1 %v14110_v51  ;;  %4854 = vmatpush.msra.mxu0 %v4554_v62  ;;  %v4553_v51 = vsel %vm925_vm3, %v6976_v10, %v17205_v4  ;;  %v4555_v40 = vsel %vm925_vm3, %v17206_v52, %v6976_v10  ;;  %v4529_v7 = vsel %vm4143_vm8, %v6981_v3, %v17209_v37  ;;  %v17216_v38 = vunpack.i.h.bf16 %v14358_v53  ;;  %v4669_v10 = vpop.permute.xlu2 %4668 }
 0xa53   :  { %4887 = vmatpush.msrb.mxu2 %v4655_v12  ;;  %6029 = vmatmul.msk.f32.gmra.mxu1 %vm4012_vm2, %v14501_v14  ;;  %v4532_v50 = vsel %vm4143_vm8, %v17208_v6, %v6980_v55  ;;  %v4481_v13 = vsel %vm4117_vm10, %v6996_v61, %v6966_v42  ;;  %v4674_v62 = vpop.permute.xlu0 %4673  ;;  %vm4932_vm3 = vcmask 1043456  }
 0xa54   :  { %4802 = vmatpush.msrb.mxu1 %v4556_v39  ;;  %4855 = vmatpush.msra.mxu0 %v4553_v51 }
 0xa55   :  { %6036 = vmatmul.msk.f32.vlgmr.msrb.gmra.mxu2 %vm4012_vm2, %v14416_v45  ;;  %6033 = vmatmul.msk.f32.vlgmr.msra.gmra.mxu3 %vm4012_vm2, %v14416_v45  ;;  %v4531_v45 = vsel %vm4143_vm8, %v17210_v22, %v6981_v3 }
 0xa56   :  { %4803 = vmatpush.msrb.mxu1 %v4555_v40  ;;  %4856 = vmatpush.msra.mxu0 %v4530_v8  ;;  %v14632_v21 = vpop.permute.xlu1 %4678 }
 0xa58   :  { %4804 = vmatpush.msrb.mxu1 %v4532_v50  ;;  %4857 = vmatpush.msra.mxu0 %v4529_v7 }
 0xa5a   :  { %4805 = vmatpush.msrb.mxu1 %v4531_v45  ;;  %4858 = vmatpush.msra.mxu0 %v4506_v59 }
 0xa5c   :  { %4806 = vmatpush.msrb.mxu1 %v4508_v15  ;;  %4859 = vmatpush.msra.mxu0 %v4505_v34 }
 0xa5d   :  { %6037 = vmatmul.msk.f32.gmra.mxu2 %vm4012_vm2, %v14453_v27  ;;  %6034 = vmatmul.msk.f32.gmra.mxu3 %vm4012_vm2, %v14453_v27  ;;  %v4483_v27 = vsel %vm4117_vm10, %v17216_v38, %v6996_v61 }
 0xa5e   :  { %4807 = vmatpush.msrb.mxu1 %v4507_v48  ;;  %4860 = vmatpush.msra.mxu0 %v4482_v28 }
 0xa60   :  { %4808 = vmatpush.msrb.mxu1 %v4484_v30  ;;  %4861 = vmatpush.msra.mxu0 %v4481_v13 }
 0xa61   :  { %4862 = vmatmul.f32.vlgmr.msra.gmra.mxu0 %v14407_v29 }
 0xa62   :  { %4809 = vmatpush.msrb.mxu1 %v4483_v27 }
 0xa63   :  { %4810 = vmatmul.f32.vlgmr.msrb.gmra.mxu1 %v14407_v29 }
 0xa65   :  { %6038 = vmatmul.msk.f32.gmra.mxu2 %vm4012_vm2, %v14501_v14  ;;  %6035 = vmatmul.msk.f32.gmra.mxu3 %vm4012_vm2, %v14501_v14 }
 0xa69   :  { %4865 = vmatmul.f32.gmra.mxu0 %v14443_v32 }
 0xa6b   :  { %4813 = vmatmul.f32.gmra.mxu1 %v14443_v32 }
 0xa71   :  { %4868 = vmatmul.f32.gmra.mxu0 %v14488_v24 }
 0xa73   :  { %4816 = vmatmul.f32.gmra.mxu1 %v14488_v24 }
 0xabb   :  { %v4759_v53 = vpop.f32.mrf.mxu2 }
 0xabc   :  { %v4760_v17 = vadd.f32 %v4759_v53, %v4669_v10 }
 0xabd   :  { %v4785_v56 = vpop.f32.mrf.mxu3  ;;  %v4707_v26 = vpop.f32.mrf.mxu0 }
 0xabe   :  { %v4708_v16 = vadd.f32 %v4707_v26, %v4669_v10  ;;  %v4786_v43 = vadd.f32 %v4785_v56, %v4760_v17 }
 0xabf   :  { %v4733_v42 = vpop.f32.mrf.mxu1 }
 0xac0   :  { %v4734_v55 = vadd.f32 %v4733_v42, %v4708_v16  ;;  %v4899_v36 = vmax.f32 %v4786_v43, 0.0 }
 0xac2   :  { %v4898_v33 = vmax.f32 %v4734_v55, 0.0  ;;  %v14644_v19 = vmul.f32 %v4899_v36, %v13846_v9 }
 0xac3   :  { %v4762_v58 = vpop.f32.mrf.mxu2 }
 0xac4   :  { %v4763_v39 = vadd.f32 %v4762_v58, %v4674_v62  ;;  %v14641_v52 = vmul.f32 %v4898_v33, %v13843_v31  ;;  %v4946_v45 = vmul.f32 %v14644_v19, %v14644_v19  ;;  %v6043_v33 = vld [vmem:[%s15318_s16 + $0x38] sm:$0xff] }
 0xac5   :  { %v4710_v29 = vpop.f32.mrf.mxu0  ;;  %v4788_v35 = vpop.f32.mrf.mxu3 }
 0xac6   :  { %v4711_v12 = vadd.f32 %v4710_v29, %v4674_v62  ;;  %v4789_v6 = vadd.f32 %v4788_v35, %v4763_v39  ;;  %v4945_v7 = vmul.f32 %v14641_v52, %v14641_v52  ;;  %v4922_v15 = vadd.f32 %v14644_v19, %v14641_v52 }
 0xac7   :  { %v4736_v1 = vpop.f32.mrf.mxu1 }
 0xac8   :  { %v4737_v40 = vadd.f32 %v4736_v1, %v4711_v12  ;;  %v4903_v46 = vmax.f32 %v4789_v6, 0.0  ;;  %v4957_v63 = vadd.f32 %v4946_v45, %v4945_v7  ;;  %v6040_v12 = vld [vmem:[%s15318_s16 + $0x20] sm:$0xff] }
 0xaca   :  { %v4902_v47 = vmax.f32 %v4737_v40, 0.0  ;;  %v14665_v53 = vmul.f32 %v4903_v46, %v13846_v9 }
 0xacb   :  { %v4765_v18 = vpop.f32.mrf.mxu2 }
 0xacc   :  { %v4766_v14 = vadd.f32 %v4765_v18, %v14632_v21  ;;  %v14659_v49 = vmul.f32 %v4902_v47, %v13843_v31 }
 0xacd   :  { %v4791_v41 = vpop.f32.mrf.mxu3 }
 0xace   :  { %v4713_v25 = vpop.f32.mrf.mxu0  ;;  %v14636_v11 = vadd.f32 %v4791_v41, %v4766_v14  ;;  %v4949_v35 = vmul.f32 %v14659_v49, %v14659_v49  ;;  %v4950_v14 = vmul.f32 %v14665_v53, %v14665_v53 }
 0xacf   :  { %v4714_v32 = vadd.f32 %v4713_v25, %v14632_v21  ;;  %v4927_v25 = vadd.f32 %v14665_v53, %v14659_v49 }
 0xad0   :  { %v4739_v24 = vpop.f32.mrf.mxu1  ;;  %v4962_v16 = vadd.f32 %v4950_v14, %v4949_v35  ;;  %v5083_v35 = vpop.permute.xlu0 %5082 }
 0xad1   :  { %v14638_v2 = vadd.f32 %v4739_v24, %v4714_v32 }
 0xad3   :  { %v4906_v40 = vmax.f32 %v14638_v2, 0.0 }
 0xad8   :  { %v4889_v3 = vpop.f32.mrf.mxu2  ;;  %v4837_v51 = vpop.f32.mrf.mxu3 }
 0xade   :  { %v4863_v4 = vpop.f32.mrf.mxu0 }
 0xadf   :  { %v4864_v20 = vadd.f32 %v4863_v4, %v4669_v10 }
 0xae0   :  { %v4811_v54 = vpop.f32.mrf.mxu1  ;;  %v4892_v5 = vpop.f32.mrf.mxu2 }
 0xae1   :  { %v4812_v8 = vadd.f32 %v4811_v54, %v4669_v10  ;;  %v4890_v0 = vadd.f32 %v4889_v3, %v4864_v20  ;;  %v4840_v28 = vpop.f32.mrf.mxu3  ;;  %v6041_v3 = vld [vmem:[%s15318_s16 + $0x28] sm:$0xf] }
 0xae3   :  { %v4901_v50 = vmax.f32 %v4890_v0, 0.0  ;;  %v4838_v37 = vadd.f32 %v4837_v51, %v4812_v8  ;;  %v4907_v0 = vmax.f32 %v14636_v11, 0.0 }
 0xae5   :  { %v4900_v22 = vmax.f32 %v4838_v37, 0.0  ;;  %v14651_v59 = vmul.f32 %v4901_v50, %v13909_v57  ;;  %v14702_v50 = vmul.f32 %v4906_v40, %v13843_v31  ;;  %v14705_v7 = vmul.f32 %v4907_v0, %v13846_v9 }
 0xae6   :  { %v4866_v61 = vpop.f32.mrf.mxu0 }
 0xae7   :  { %v14656_v60 = vmul.f32 %v4900_v22, %v13860_v23  ;;  %v4867_v34 = vadd.f32 %v4866_v61, %v4674_v62  ;;  %v4948_v56 = vmul.f32 %v14651_v59, %v14651_v59  ;;  %v4933_v2 = vsel %vm4932_vm3, %v14702_v50, 0.0 }
 0xae8   :  { %v4814_v48 = vpop.f32.mrf.mxu1  ;;  %v4895_v8 = vpop.f32.mrf.mxu2 }
 0xae9   :  { %v4947_v30 = vmul.f32 %v14656_v60, %v14656_v60  ;;  %v4815_v13 = vadd.f32 %v4814_v48, %v4674_v62  ;;  %v4893_v38 = vadd.f32 %v4892_v5, %v4867_v34  ;;  %v4923_v27 = vadd.f32 %v4922_v15, %v14656_v60  ;;  %v4843_v4 = vpop.f32.mrf.mxu3 }
 0xaea   :  { %v4953_v5 = vmul.f32 %v14702_v50, %v14702_v50  ;;  %v4954_v34 = vmul.f32 %v14705_v7, %v14705_v7 }
 0xaeb   :  { %v4905_v26 = vmax.f32 %v4893_v38, 0.0  ;;  %v4841_v42 = vadd.f32 %v4840_v28, %v4815_v13  ;;  %v4924_v58 = vadd.f32 %v4923_v27, %v14651_v59  ;;  %v4958_v29 = vadd.f32 %v4957_v63, %v4947_v30 }
 0xaec   :  { %v4967_v63 = vsel %vm4932_vm3, %v4953_v5, 0.0  ;;  %v4968_v30 = vsel %vm4932_vm3, %v4954_v34, 0.0 }
 0xaed   :  { %v4904_v1 = vmax.f32 %v4841_v42, 0.0  ;;  %4925 = vadd.xlane.f32.xlu2 %v4924_v58  ;;  %v4959_v18 = vadd.f32 %v4958_v29, %v4948_v56  ;;  %v14677_v41 = vmul.f32 %v4905_v26, %v13909_v57  ;;  %v4969_v38 = vadd.f32 %v4968_v30, %v4967_v63  ;;  %v6044_v58 = vld [vmem:[%s15318_s16 + $0x40] sm:$0xf]  ;;  %v5052_v29 = vpop.permute.xlu2 %5051 }
 0xaee   :  { %v4869_v51 = vpop.f32.mrf.mxu0 }
 0xaef   :  { %v14680_v32 = vmul.f32 %v4904_v1, %v13860_v23  ;;  %4960 = vadd.xlane.f32.xlu0 %v4959_v18  ;;  %v4952_v55 = vmul.f32 %v14677_v41, %v14677_v41  ;;  %v4870_v54 = vadd.f32 %v4869_v51, %v14632_v21 }
 0xaf0   :  { %v4817_v36 = vpop.f32.mrf.mxu1 }
 0xaf1   :  { %v4951_v24 = vmul.f32 %v14680_v32, %v14680_v32  ;;  %v4928_v10 = vadd.f32 %v4927_v25, %v14680_v32  ;;  %v4818_v39 = vadd.f32 %v4817_v36, %v14632_v21  ;;  %v4896_v37 = vadd.f32 %v4895_v8, %v4870_v54 }
 0xaf2   :  { %v4934_v21 = vsel %vm4932_vm3, %v14705_v7, 0.0 }
 0xaf3   :  { %v4929_v17 = vadd.f32 %v4928_v10, %v14677_v41  ;;  %v4963_v43 = vadd.f32 %v4962_v16, %v4951_v24  ;;  %v4844_v20 = vadd.f32 %v4843_v4, %v4818_v39  ;;  %v4909_v22 = vmax.f32 %v4896_v37, 0.0 }
 0xaf4   :  { %v4935_v45 = vadd.f32 %v4934_v21, %v4933_v2 }
 0xaf5   :  { %4930 = vadd.xlane.f32.xlu1 %v4929_v17  ;;  %v4964_v62 = vadd.f32 %v4963_v43, %v4952_v55  ;;  %v4908_v6 = vmax.f32 %v4844_v20, 0.0  ;;  %v14717_v46 = vmul.f32 %v4909_v22, %v13909_v57 }
 0xaf7   :  { %4965 = vadd.xlane.f32.xlu2 %v4964_v62  ;;  %v14708_v47 = vmul.f32 %v4908_v6, %v13860_v23  ;;  %v4938_v15 = vsel %vm4932_vm3, %v14717_v46, 0.0  ;;  %v4956_v27 = vmul.f32 %v14717_v46, %v14717_v46 }
 0xaf9   :  { %v4936_v11 = vsel %vm4932_vm3, %v14708_v47, 0.0  ;;  %v4955_v48 = vmul.f32 %v14708_v47, %v14708_v47  ;;  %v4972_v26 = vsel %vm4932_vm3, %v4956_v27, 0.0 }
 0xafa   :  { %v4937_v61 = vadd.f32 %v4936_v11, %v4935_v45 }
 0xafb   :  { %v4970_v13 = vsel %vm4932_vm3, %v4955_v48, 0.0 }
 0xafc   :  { %v4939_v28 = vadd.f32 %v4938_v15, %v4937_v61  ;;  %v4971_v56 = vadd.f32 %v4970_v13, %v4969_v38 }
 0xafe   :  { %v4973_v42 = vadd.f32 %v4972_v26, %v4971_v56 }
 0xb03   :  { %5087 = vperm.xlu0 %6200, %v6043_v33  }
 0xb0e   :  { %5056 = vperm.xlu1 %6201, %v6040_v12  }
 0xb0f   :  { %5061 = vperm.xlu2 %6199, %v6041_v3  }
 0xb2d   :  { %4940 = vadd.xlane.f32.xlu0 %v4939_v28 }
 0xb38   :  { %4974 = vadd.xlane.f32.xlu1 %v4973_v42 }
 0xb41   :  { %5092 = vperm.xlu0 %6200, %v6044_v58  }
 0xb60   :  { %v4926_v1 = vpop.xlane.xlu2 %4925 }
 0xb61   :  { %v4942_v18 = vmul.f32 0.0025510204, %v4926_v1 }
 0xb62   :  { %v4961_v14 = vpop.xlane.xlu0 %4960 }
 0xb63   :  { %v4976_v25 = vmul.f32 0.0025510204, %v4961_v14  ;;  %v4979_v24 = vmul.f32 %v4942_v18, %v4942_v18  ;;  %v4988_v6 = vsub.f32 %v14641_v52, %v4942_v18  ;;  %v4989_v2 = vsub.f32 %v14644_v19, %v4942_v18 }
 0xb64   :  { %v4990_v22 = vsub.f32 %v14656_v60, %v4942_v18  ;;  %v4991_v21 = vsub.f32 %v14651_v59, %v4942_v18 }
 0xb65   :  { %v4982_v10 = vsub.f32 %v4976_v25, %v4979_v24 }
 0xb67   :  { %v4985_v16 = vmax.f32 %v4982_v10, 0.0 }
 0xb68   :  { %v4931_v17 = vpop.xlane.xlu1 %4930 }
 0xb69   :  { %v14736_v55 = vmul.f32 0.0025510204, %v4931_v17  ;;  %v5000_v43 = vadd.f32 1e-05, %v4985_v16 }
 0xb6a   :  { %v4966_v62 = vpop.xlane.xlu2 %4965 }
 0xb6b   :  { %v4980_v33 = vmul.f32 %v14736_v55, %v14736_v55  ;;  %v4977_v12 = vmul.f32 0.0025510204, %v4966_v62  ;;  %7217 = vrsqrt.f32 %v5000_v43  ;;  %vm5009_vm9 = vweird.f32 %v5000_v43 }
 0xb6c   :  { %v4992_v59 = vsub.f32 %v14659_v49, %v14736_v55  ;;  %v4993_v60 = vsub.f32 %v14665_v53, %v14736_v55  ;;  %v4994_v17 = vsub.f32 %v14680_v32, %v14736_v55 }
 0xb6d   :  { %v4983_v3 = vsub.f32 %v4977_v12, %v4980_v33 }
 0xb6f   :  { %v4986_v36 = vmax.f32 %v4983_v3, 0.0 }
 0xb71   :  { %v5001_v39 = vadd.f32 1e-05, %v4986_v36  ;;  %v7218_v4 = vpop.eup %7217 }
 0xb72   :  { %v5004_v51 = vmul.f32 %v7218_v4, %v5000_v43  ;;  %vm5010_vm8 = vweird.f32 %v7218_v4  ;;  %v4995_v43 = vsub.f32 %v14677_v41, %v14736_v55 }
 0xb73   :  { %7219 = vrsqrt.f32 %v5001_v39  ;;  %vm5011_vm10 = vmor %vm5009_vm9, %vm5010_vm8  ;;  %vm5019_vm13 = vweird.f32 %v5001_v39  ;;  %vm5467_vm8 = vcmp.lt.s32.totalorder %v16267_v44, 119  ;;  %vm5460_vm9 = vcmp.lt.s32.totalorder %v16267_v44, 120 }
 0xb74   :  { %v5005_v20 = vmul.f32 %v7218_v4, %v5004_v51 }
 0xb75   :  { %v5088_v62 = vpop.permute.xlu0 %5087 }
 0xb76   :  { %v5006_v40 = vmul.f32 0.5, %v5005_v20 }
 0xb78   :  { %v5007_v8 = vsub.f32 1.5, %v5006_v40 }
 0xb79   :  { %v7220_v54 = vpop.eup %7219 }
 0xb7a   :  { %v5014_v0 = vmul.f32 %v7220_v54, %v5001_v39  ;;  %v5008_v37 = vmul.f32 %v7218_v4, %v5007_v8  ;;  %vm5020_vm12 = vweird.f32 %v7220_v54 }
 0xb7b   :  { %vm5021_vm14 = vmor %vm5019_vm13, %vm5020_vm12  ;;  %vm5446_vm12 = vcmp.lt.s32.totalorder %v16267_v44, 126 }
 0xb7c   :  { %v5015_v11 = vmul.f32 %v7220_v54, %v5014_v0  ;;  %v5012_v45 = vsel %vm5011_vm10, %v7218_v4, %v5008_v37  ;;  %vm5453_vm10 = vcmp.lt.s32.totalorder %v16267_v44, 121 }
 0xb7d   :  { %v5033_v61 = vmul.f32 %v5012_v45, %v4988_v6  ;;  %v5034_v5 = vmul.f32 %v5012_v45, %v4989_v2  ;;  %v5035_v15 = vmul.f32 %v5012_v45, %v4990_v22  ;;  %v5036_v34 = vmul.f32 %v5012_v45, %v4991_v21 }
 0xb7e   :  { %v5016_v48 = vmul.f32 0.5, %v5015_v11 }
 0xb7f   :  { %v5064_v28 = vmul.f32 %v5052_v29, %v5033_v61  ;;  %v5065_v63 = vmul.f32 %v5052_v29, %v5034_v5  ;;  %v5066_v30 = vmul.f32 %v5052_v29, %v5035_v15  ;;  %v5067_v52 = vmul.f32 %v5052_v29, %v5036_v34 }
 0xb80   :  { %v5017_v13 = vsub.f32 1.5, %v5016_v48  ;;  %v5057_v14 = vpop.permute.xlu1 %5056 }
 0xb81   :  { %v5095_v38 = vadd.f32 %v5083_v35, %v5064_v28  ;;  %v5096_v19 = vadd.f32 %v5083_v35, %v5065_v63  ;;  %v5097_v42 = vadd.f32 %v5083_v35, %v5066_v30  ;;  %v5098_v58 = vadd.f32 %v5083_v35, %v5067_v52 }
 0xb82   :  { %v5018_v27 = vmul.f32 %v7220_v54, %v5017_v13 }
 0xb83   :  { %v14749_v56 = vmul.f32 %v5095_v38, %v13843_v31  ;;  %v14752_v26 = vmul.f32 %v5096_v19, %v13846_v9  ;;  %v14757_v53 = vmul.f32 %v5097_v42, %v13860_v23  ;;  %v14760_v10 = vmul.f32 %v5098_v58, %v13909_v57 }
 0xb84   :  { %v5022_v29 = vsel %vm5021_vm14, %v7220_v54, %v5018_v27 }
 0xb85   :  { %v5037_v1 = vmul.f32 %v5022_v29, %v4992_v59  ;;  %v5038_v18 = vmul.f32 %v5022_v29, %v4993_v60  ;;  %v5119_v25 = vmax.f32 %v14749_v56, 0.0  ;;  %v5120_v49 = vmax.f32 %v14752_v26, 0.0 }
 0xb86   :  { %v5039_v33 = vmul.f32 %v5022_v29, %v4994_v17  ;;  %v5040_v12 = vmul.f32 %v5022_v29, %v4995_v43  ;;  %v5121_v39 = vmax.f32 %v14757_v53, 0.0  ;;  %v5122_v4 = vmax.f32 %v14760_v10, 0.0 }
 0xb87   :  { %v5068_v24 = vmul.f32 %v5057_v14, %v5037_v1  ;;  %v5069_v16 = vmul.f32 %v5057_v14, %v5038_v18  ;;  %v7007_v35 = vpack.i.bf16 %v5120_v49, %v5119_v25 }
 0xb88   :  { %v5070_v51 = vmul.f32 %v5057_v14, %v5039_v33  ;;  %v5071_v32 = vmul.f32 %v5057_v14, %v5040_v12  ;;  %v7022_v55 = vpack.i.bf16 %v5122_v4, %v5121_v39 }
 0xb89   :  { %7008 = vrot.lane.b32.xlu0 %v7007_v35, %s7316_s24  ;;  %7003 = vrot.lane.b32.xlu2 %v7007_v35, %s7315_s30  ;;  %v5099_v3 = vadd.f32 %v5088_v62, %v5068_v24  ;;  %v5100_v36 = vadd.f32 %v5088_v62, %v5069_v16  ;;  %v5062_v16 = vpop.permute.xlu2 %5061 }
 0xb8a   :  { %6998 = vrot.lane.b32.xlu1 %v7007_v35, %s7310_s25  ;;  %v5101_v40 = vadd.f32 %v5088_v62, %v5070_v51  ;;  %v5102_v54 = vadd.f32 %v5088_v62, %v5071_v32  ;;  %v6163_v35 = vld [vmem:[%s15320_s5 + $0x38] sm:$0xff]  }
 0xb8b   :  { %v14776_v20 = vmul.f32 %v5099_v3, %v13843_v31  ;;  %v14779_v41 = vmul.f32 %v5100_v36, %v13846_v9  ;;  %v6091_v33 = vunpack.c.l.bf16 %v6163_v35 }
 0xb8c   :  { %v14791_v6 = vmul.f32 %v5101_v40, %v13860_v23  ;;  %v14794_v37 = vmul.f32 %v5102_v54, %v13909_v57 }
 0xb8d   :  { %v5123_v8 = vmax.f32 %v14776_v20, 0.0  ;;  %v5124_v0 = vmax.f32 %v14779_v41, 0.0 }
 0xb8e   :  { %v5125_v22 = vmax.f32 %v14791_v6, 0.0  ;;  %v5126_v21 = vmax.f32 %v14794_v37, 0.0 }
 0xb8f   :  { %v7037_v2 = vpack.i.bf16 %v5124_v0, %v5123_v8 }
 0xb90   :  { %v7052_v11 = vpack.i.bf16 %v5126_v21, %v5125_v22 }
 0xb91   :  { %7023 = vrot.lane.b32.xlu0 %v7022_v55, %s7316_s24  ;;  %7018 = vrot.lane.b32.xlu2 %v7022_v55, %s7315_s30 }
 0xb92   :  { %7013 = vrot.lane.b32.xlu1 %v7022_v55, %s7310_s25 }
 0xb99   :  { %7038 = vrot.lane.b32.xlu0 %v7037_v2, %s7316_s24  ;;  %7033 = vrot.lane.b32.xlu2 %v7037_v2, %s7315_s30 }
 0xb9a   :  { %7028 = vrot.lane.b32.xlu1 %v7037_v2, %s7310_s25 }
 0xba0   :  { %v4941_v45 = vpop.xlane.xlu0 %4940 }
 0xba1   :  { %7053 = vrot.lane.b32.xlu0 %v7052_v11, %s7316_s24  ;;  %7048 = vrot.lane.b32.xlu2 %v7052_v11, %s7315_s30  ;;  %v4944_v61 = vmul.f32 0.0025510204, %v4941_v45 }
 0xba2   :  { %7043 = vrot.lane.b32.xlu1 %v7052_v11, %s7310_s25 }
 0xba3   :  { %v4981_v34 = vmul.f32 %v4944_v61, %v4944_v61  ;;  %v4996_v59 = vsub.f32 %v14702_v50, %v4944_v61  ;;  %v4997_v60 = vsub.f32 %v14705_v7, %v4944_v61  ;;  %v4998_v42 = vsub.f32 %v14708_v47, %v4944_v61  ;;  %v6162_v7 = vld [vmem:[%s15320_s5 + $0x30] sm:$0xff]  }
 0xba4   :  { %v4999_v58 = vsub.f32 %v14717_v46, %v4944_v61  ;;  %v6092_v46 = vunpack.c.h.bf16 %v6163_v35  ;;  %v6088_v51 = vunpack.c.h.bf16 %v6162_v7  ;;  %v6087_v54 = vunpack.c.l.bf16 %v6162_v7  ;;  %v6161_v61 = vld [vmem:[%s15320_s5 + $0x28] sm:$0xff]  }
 0xba6   :  { %5275 = vmatpush.msrb.mxu3 %v6092_v46  ;;  %5327 = vmatpush.msra.mxu2 %v6092_v46 }
 0xba8   :  { %5276 = vmatpush.msrb.mxu3 %v6091_v33  ;;  %5328 = vmatpush.msra.mxu2 %v6091_v33 }
 0xbaa   :  { %5277 = vmatpush.msrb.mxu3 %v6088_v51  ;;  %5329 = vmatpush.msra.mxu2 %v6088_v51 }
 0xbab   :  { %v4975_v5 = vpop.xlane.xlu1 %4974 }
 0xbac   :  { %v4978_v15 = vmul.f32 0.0025510204, %v4975_v5  ;;  %5278 = vmatpush.msrb.mxu3 %v6087_v54  ;;  %5330 = vmatpush.msra.mxu2 %v6087_v54 }
 0xbae   :  { %v4984_v48 = vsub.f32 %v4978_v15, %v4981_v34  ;;  %v6084_v15 = vunpack.c.h.bf16 %v6161_v61 }
 0xbb0   :  { %v4987_v28 = vmax.f32 %v4984_v48, 0.0  ;;  %v6170_v48 = vld [vmem:[%s15320_s5 + $0x70] sm:$0xff]   ;;  %5279 = vmatpush.msrb.mxu3 %v6084_v15  ;;  %5331 = vmatpush.msra.mxu2 %v6084_v15 }
 0xbb2   :  { %v5002_v63 = vadd.f32 1e-05, %v4987_v28 }
 0xbb3   :  { %v5093_v47 = vpop.permute.xlu0 %5092 }
 0xbb4   :  { %7221 = vrsqrt.f32 %v5002_v63  ;;  %vm5029_vm0 = vweird.f32 %v5002_v63 }
 0xbba   :  { %v7222_v30 = vpop.eup %7221 }
 0xbbb   :  { %v5024_v52 = vmul.f32 %v7222_v30, %v5002_v63  ;;  %vm5030_vm15 = vweird.f32 %v7222_v30 }
 0xbbc   :  { %vm5031_vm1 = vmor %vm5029_vm0, %vm5030_vm15 }
 0xbbd   :  { %v5025_v13 = vmul.f32 %v7222_v30, %v5024_v52 }
 0xbbf   :  { %v5026_v38 = vmul.f32 0.5, %v5025_v13  ;;  %v6120_v13 = vunpack.c.h.bf16 %v6170_v48 }
 0xbc1   :  { %v5027_v19 = vsub.f32 1.5, %v5026_v38 }
 0xbc3   :  { %v5028_v27 = vmul.f32 %v7222_v30, %v5027_v19  ;;  %v6119_v19 = vunpack.c.l.bf16 %v6170_v48 }
 0xbc5   :  { %v5032_v29 = vsel %vm5031_vm1, %v7222_v30, %v5028_v27  ;;  %v6159_v27 = vld [vmem:[%s15320_s5 + $0x18] sm:$0xff]  }
 0xbc6   :  { %v5041_v1 = vmul.f32 %v5032_v29, %v4996_v59  ;;  %v5042_v18 = vmul.f32 %v5032_v29, %v4997_v60  ;;  %v5043_v14 = vmul.f32 %v5032_v29, %v4998_v42  ;;  %v5044_v24 = vmul.f32 %v5032_v29, %v4999_v58  ;;  %v6169_v59 = vld [vmem:[%s15320_s5 + $0x68] sm:$0xff]   ;;  %v6158_v29 = vld [vmem:[%s15320_s5 + $0x10] sm:$0xff]  }
 0xbc7   :  { %v6076_v42 = vunpack.c.h.bf16 %v6159_v27  ;;  %v6116_v58 = vunpack.c.h.bf16 %v6169_v59  ;;  %v6071_v35 = vunpack.c.l.bf16 %v6158_v29 }
 0xbc8   :  { %v5072_v17 = vmul.f32 %v5062_v16, %v5041_v1  ;;  %v5073_v43 = vmul.f32 %v5062_v16, %v5042_v18  ;;  %v5074_v62 = vmul.f32 %v5062_v16, %v5043_v14  ;;  %v5075_v50 = vmul.f32 %v5062_v16, %v5044_v24  ;;  %v6168_v18 = vld [vmem:[%s15320_s5 + $0x60] sm:$0xff]  }
 0xbc9   :  { %v6075_v1 = vunpack.c.l.bf16 %v6159_v27  ;;  %v6115_v14 = vunpack.c.l.bf16 %v6169_v59  ;;  %v6072_v24 = vunpack.c.h.bf16 %v6158_v29  ;;  %v6112_v16 = vunpack.c.h.bf16 %v6168_v18 }
 0xbca   :  { %v5103_v12 = vadd.f32 %v5093_v47, %v5072_v17  ;;  %v5104_v3 = vadd.f32 %v5093_v47, %v5073_v43  ;;  %v5105_v36 = vadd.f32 %v5093_v47, %v5074_v62  ;;  %v5106_v32 = vadd.f32 %v5093_v47, %v5075_v50  ;;  %v6157_v43 = vld [vmem:[%s15320_s5 + $0x8] sm:$0xff]   ;;  %v6167_v62 = vld [vmem:[%s15320_s5 + $0x58] sm:$0xff]   ;;  %v5380_v50 = vld [vmem:[%s15321_s18] sm:$0xff] }
 0xbcb   :  { %v6111_v17 = vunpack.c.l.bf16 %v6168_v18  ;;  %v6068_v7 = vunpack.c.h.bf16 %v6157_v43  ;;  %v6108_v47 = vunpack.c.h.bf16 %v6167_v62  ;;  %v6067_v46 = vunpack.c.l.bf16 %v6157_v43 }
 0xbcc   :  { %v14823_v55 = vmul.f32 %v5103_v12, %v13843_v31  ;;  %v14826_v40 = vmul.f32 %v5104_v3, %v13846_v9  ;;  %v14831_v45 = vmul.f32 %v5105_v36, %v13860_v23  ;;  %v6171_v31 = vld [vmem:[%s15320_s5 + $0x78] sm:$0xff]   ;;  %v14840_v9 = vmul.f32 %v5106_v32, %v13909_v57  ;;  %v6160_v23 = vld [vmem:[%s15320_s5 + $0x20] sm:$0xff]   ;;  %v6166_v3 = vld [vmem:[%s15320_s5 + $0x50] sm:$0xff]  }
 0xbcd   :  { %v6124_v34 = vunpack.c.h.bf16 %v6171_v31  ;;  %v6083_v57 = vunpack.c.l.bf16 %v6161_v61  ;;  %v6123_v28 = vunpack.c.l.bf16 %v6171_v31  ;;  %v6080_v63 = vunpack.c.h.bf16 %v6160_v23  ;;  %v6062_v12 = vld [vmem:[%s15320_s5] sm:$0xff]   ;;  %v6165_v61 = vld [vmem:[%s15320_s5 + $0x48] sm:$0xff]  }
 0xbce   :  { %v5127_v2 = vmax.f32 %v14823_v55, 0.0  ;;  %v5128_v11 = vmax.f32 %v14826_v40, 0.0  ;;  %v5129_v30 = vmax.f32 %v14831_v45, 0.0  ;;  %v5130_v52 = vmax.f32 %v14840_v9, 0.0 }
 0xbcf   :  { %5301 = vmatpush.msra.mxu1 %v6124_v34  ;;  %5353 = vmatpush.msrb.mxu0 %v6124_v34  ;;  %v6079_v38 = vunpack.c.l.bf16 %v6160_v23  ;;  %v6107_v33 = vunpack.c.l.bf16 %v6167_v62  ;;  %v6064_v36 = vunpack.c.h.bf16 %v6062_v12  ;;  %v6104_v51 = vunpack.c.h.bf16 %v6166_v3  ;;  %v6164_v23 = vld [vmem:[%s15320_s5 + $0x40] sm:$0xff]  }
 0xbd0   :  { %v7067_v5 = vpack.i.bf16 %v5128_v11, %v5127_v2  ;;  %5280 = vmatpush.msrb.mxu3 %v6083_v57  ;;  %5332 = vmatpush.msra.mxu2 %v6083_v57  ;;  %v7082_v60 = vpack.i.bf16 %v5130_v52, %v5129_v30  ;;  %v6063_v32 = vunpack.c.l.bf16 %v6062_v12  ;;  %v6103_v54 = vunpack.c.l.bf16 %v6166_v3 }
 0xbd1   :  { %5302 = vmatpush.msra.mxu1 %v6123_v28  ;;  %5354 = vmatpush.msrb.mxu0 %v6123_v28  ;;  %v6100_v31 = vunpack.c.h.bf16 %v6165_v61  ;;  %v6096_v15 = vunpack.c.h.bf16 %v6164_v23  ;;  %v6095_v34 = vunpack.c.l.bf16 %v6164_v23 }
 0xbd2   :  { %7068 = vrot.lane.b32.xlu0 %v7067_v5, %s7316_s24  ;;  %7063 = vrot.lane.b32.xlu2 %v7067_v5, %s7315_s30 }
 0xbd3   :  { %7058 = vrot.lane.b32.xlu1 %v7067_v5, %s7310_s25  ;;  %5281 = vmatpush.msrb.mxu3 %v6080_v63  ;;  %v6099_v5 = vunpack.c.l.bf16 %v6165_v61 }
 0xbd4   :  { %5303 = vmatpush.msra.mxu1 %v6120_v13  ;;  %5355 = vmatpush.msrb.mxu0 %v6120_v13 }
 0xbd5   :  { %5282 = vmatpush.msrb.mxu3 %v6079_v38  ;;  %5333 = vmatpush.msra.mxu2 %v6080_v63 }
 0xbd6   :  { %5304 = vmatpush.msra.mxu1 %v6119_v19  ;;  %5356 = vmatpush.msrb.mxu0 %v6119_v19 }
 0xbd7   :  { %5283 = vmatpush.msrb.mxu3 %v6076_v42  ;;  %5334 = vmatpush.msra.mxu2 %v6079_v38 }
 0xbd8   :  { %5305 = vmatpush.msra.mxu1 %v6116_v58  ;;  %5357 = vmatpush.msrb.mxu0 %v6116_v58 }
 0xbd9   :  { %5284 = vmatpush.msrb.mxu3 %v6075_v1  ;;  %5335 = vmatpush.msra.mxu2 %v6076_v42 }
 0xbda   :  { %7083 = vrot.lane.b32.xlu0 %v7082_v60, %s7316_s24  ;;  %7078 = vrot.lane.b32.xlu2 %v7082_v60, %s7315_s30 }
 0xbdb   :  { %7073 = vrot.lane.b32.xlu1 %v7082_v60, %s7310_s25  ;;  %5306 = vmatpush.msra.mxu1 %v6115_v14 }
 0xbdc   :  { %5358 = vmatpush.msrb.mxu0 %v6115_v14  ;;  %5285 = vmatpush.msrb.mxu3 %v6072_v24 }
 0xbdd   :  { %5307 = vmatpush.msra.mxu1 %v6112_v16  ;;  %5336 = vmatpush.msra.mxu2 %v6075_v1 }
 0xbde   :  { %5359 = vmatpush.msrb.mxu0 %v6112_v16  ;;  %5286 = vmatpush.msrb.mxu3 %v6071_v35 }
 0xbdf   :  { %5308 = vmatpush.msra.mxu1 %v6111_v17  ;;  %5337 = vmatpush.msra.mxu2 %v6072_v24 }
 0xbe0   :  { %5360 = vmatpush.msrb.mxu0 %v6111_v17  ;;  %5287 = vmatpush.msrb.mxu3 %v6068_v7 }
 0xbe1   :  { %5309 = vmatpush.msra.mxu1 %v6108_v47  ;;  %5338 = vmatpush.msra.mxu2 %v6071_v35 }
 0xbe2   :  { %5361 = vmatpush.msrb.mxu0 %v6108_v47  ;;  %5288 = vmatpush.msrb.mxu3 %v6067_v46 }
 0xbe3   :  { %5383 = vperm.xlu1 %6201, %v5380_v50   ;;  %5310 = vmatpush.msra.mxu1 %v6107_v33  ;;  %v7004_v48 = vpop.permute.xlu2 %7003 }
 0xbe4   :  { %5362 = vmatpush.msrb.mxu0 %v6107_v33  ;;  %5289 = vmatpush.msrb.mxu3 %v6064_v36  ;;  %v7006_v57 = vunpack.i.h.bf16 %v7004_v48  ;;  %v7005_v28 = vunpack.i.l.bf16 %v7004_v48 }
 0xbe5   :  { %5311 = vmatpush.msra.mxu1 %v6104_v51  ;;  %5339 = vmatpush.msra.mxu2 %v6068_v7 }
 0xbe6   :  { %5363 = vmatpush.msrb.mxu0 %v6104_v51  ;;  %5290 = vmatpush.msrb.mxu3 %v6063_v32  ;;  %v5209_v42 = vsel %vm4193_vm6, %v7005_v28, %v7006_v57 }
 0xbe7   :  { %5312 = vmatpush.msra.mxu1 %v6103_v54  ;;  %5340 = vmatpush.msra.mxu2 %v6067_v46 }
 0xbe8   :  { %5364 = vmatpush.msrb.mxu0 %v6103_v54 }
 0xbe9   :  { %5313 = vmatpush.msra.mxu1 %v6100_v31  ;;  %5341 = vmatpush.msra.mxu2 %v6064_v36 }
 0xbea   :  { %5365 = vmatpush.msrb.mxu0 %v6100_v31 }
 0xbeb   :  { %5314 = vmatpush.msra.mxu1 %v6099_v5  ;;  %5342 = vmatpush.msra.mxu2 %v6063_v32  ;;  %v7019_v63 = vpop.permute.xlu2 %7018 }
 0xbec   :  { %5366 = vmatpush.msrb.mxu0 %v6099_v5  ;;  %v7021_v14 = vunpack.i.h.bf16 %v7019_v63  ;;  %v7020_v24 = vunpack.i.l.bf16 %v7019_v63 }
 0xbed   :  { %5315 = vmatpush.msra.mxu1 %v6096_v15 }
 0xbee   :  { %5367 = vmatpush.msrb.mxu0 %v6096_v15  ;;  %v5203_v7 = vsel %vm4193_vm6, %v7020_v24, %v7021_v14  ;;  %v5206_v47 = vsel %vm4193_vm6, %v7006_v57, %v7020_v24  ;;  %v5212_v56 = vsel %vm4193_vm6, %v7021_v14, %v7005_v28 }
 0xbef   :  { %5316 = vmatpush.msra.mxu1 %v6095_v34 }
 0xbf0   :  { %5368 = vmatpush.msrb.mxu0 %v6095_v34 }
 0xbf3   :  { %v7034_v17 = vpop.permute.xlu2 %7033 }
 0xbf4   :  { %v7036_v34 = vunpack.i.h.bf16 %v7034_v17  ;;  %v7035_v48 = vunpack.i.l.bf16 %v7034_v17 }
 0xbf6   :  { %v5210_v26 = vsel %vm4193_vm6, %v7035_v48, %v7036_v34 }
 0xbfb   :  { %v7009_v13 = vpop.permute.xlu0 %7008 }
 0xbfc   :  { %v7011_v38 = vunpack.i.h.bf16 %v7009_v13  ;;  %v7010_v19 = vunpack.i.l.bf16 %v7009_v13  ;;  %v6999_v27 = vpop.permute.xlu1 %6998 }
 0xbfd   :  { %v7001_v59 = vunpack.i.h.bf16 %v6999_v27  ;;  %v7000_v60 = vunpack.i.l.bf16 %v6999_v27 }
 0xbfe   :  { %v5245_v58 = vsel %vm4206_vm5, %v7010_v19, %v7011_v38 }
 0xbff   :  { %v5251_v29 = vmax.f32 %v5209_v42, %v5245_v58  ;;  %v5161_v1 = vsel %vm1068_vm4, %v7000_v60, %v7001_v59 }
 0xc00   :  { %v5167_v18 = vmax.f32 %v5119_v25, %v5161_v1 }
 0xc02   :  { %v5263_v16 = vmax.f32 %v5167_v18, %v5251_v29 }
 0xc03   :  { %v7024_v35 = vpop.permute.xlu0 %7023 }
 0xc04   :  { %v7026_v43 = vunpack.i.h.bf16 %v7024_v35  ;;  %v7025_v62 = vunpack.i.l.bf16 %v7024_v35  ;;  %v7014_v50 = vpop.permute.xlu1 %7013  ;;  %5291 = vmatmul.f32.vlgmr.msrb.gmra.mxu3 %v5263_v16 }
 0xc05   :  { %v7016_v46 = vunpack.i.h.bf16 %v7014_v50  ;;  %v7015_v33 = vunpack.i.l.bf16 %v7014_v50 }
 0xc06   :  { %v5239_v25 = vsel %vm4206_vm5, %v7025_v62, %v7026_v43  ;;  %v5242_v12 = vsel %vm4206_vm5, %v7011_v38, %v7025_v62  ;;  %v5248_v3 = vsel %vm4206_vm5, %v7026_v43, %v7010_v19 }
 0xc07   :  { %v5252_v36 = vmax.f32 %v5206_v47, %v5242_v12  ;;  %v5253_v51 = vmax.f32 %v5203_v7, %v5239_v25  ;;  %v5254_v32 = vmax.f32 %v5212_v56, %v5248_v3  ;;  %v5155_v54 = vsel %vm1068_vm4, %v7015_v33, %v7016_v46 }
 0xc08   :  { %v5158_v61 = vsel %vm1068_vm4, %v7001_v59, %v7015_v33  ;;  %v5164_v31 = vsel %vm1068_vm4, %v7016_v46, %v7000_v60  ;;  %v5169_v5 = vmax.f32 %v5121_v39, %v5155_v54 }
 0xc09   :  { %v5168_v23 = vmax.f32 %v5120_v49, %v5158_v61  ;;  %v5170_v15 = vmax.f32 %v5122_v4, %v5164_v31  ;;  %v7049_v49 = vpop.permute.xlu2 %7048 }
 0xc0a   :  { %v5265_v57 = vmax.f32 %v5169_v5, %v5253_v51  ;;  %v7051_v42 = vunpack.i.h.bf16 %v7049_v49  ;;  %v7050_v58 = vunpack.i.l.bf16 %v7049_v49 }
 0xc0b   :  { %v5264_v28 = vmax.f32 %v5168_v23, %v5252_v36  ;;  %v5266_v63 = vmax.f32 %v5170_v15, %v5254_v32  ;;  %v7039_v13 = vpop.permute.xlu0 %7038 }
 0xc0c   :  { %v7041_v38 = vunpack.i.h.bf16 %v7039_v13  ;;  %v7040_v19 = vunpack.i.l.bf16 %v7039_v13  ;;  %v7029_v27 = vpop.permute.xlu1 %7028  ;;  %5343 = vmatmul.f32.vlgmr.msra.gmra.mxu2 %v5265_v57  ;;  %v5204_v16 = vsel %vm4193_vm6, %v7050_v58, %v7051_v42  ;;  %v5207_v35 = vsel %vm4193_vm6, %v7036_v34, %v7050_v58 }
 0xc0d   :  { %v7031_v59 = vunpack.i.h.bf16 %v7029_v27  ;;  %v7030_v60 = vunpack.i.l.bf16 %v7029_v27  ;;  %5317 = vmatmul.f32.vlgmr.msra.gmra.mxu1 %v5264_v28  ;;  %5369 = vmatmul.f32.vlgmr.msrb.gmra.mxu0 %v5266_v63  ;;  %v5213_v20 = vsel %vm4193_vm6, %v7051_v42, %v7035_v48 }
 0xc0e   :  { %v5246_v53 = vsel %vm4206_vm5, %v7040_v19, %v7041_v38 }
 0xc0f   :  { %v5162_v10 = vsel %vm1068_vm4, %v7030_v60, %v7031_v59  ;;  %v5255_v39 = vmax.f32 %v5210_v26, %v5246_v53 }
 0xc10   :  { %v5171_v4 = vmax.f32 %v5123_v8, %v5162_v10 }
 0xc12   :  { %v5267_v29 = vmax.f32 %v5171_v4, %v5255_v39 }
 0xc13   :  { %v7054_v1 = vpop.permute.xlu0 %7053 }
 0xc14   :  { %v7056_v18 = vunpack.i.h.bf16 %v7054_v1  ;;  %v7055_v14 = vunpack.i.l.bf16 %v7054_v1  ;;  %v7044_v24 = vpop.permute.xlu1 %7043  ;;  %5294 = vmatmul.f32.gmra.mxu3 %v5267_v29 }
 0xc15   :  { %v7046_v17 = vunpack.i.h.bf16 %v7044_v24  ;;  %v7045_v43 = vunpack.i.l.bf16 %v7044_v24 }
 0xc16   :  { %v5240_v8 = vsel %vm4206_vm5, %v7055_v14, %v7056_v18  ;;  %v5243_v62 = vsel %vm4206_vm5, %v7041_v38, %v7055_v14  ;;  %v5249_v50 = vsel %vm4206_vm5, %v7056_v18, %v7040_v19 }
 0xc17   :  { %v5156_v7 = vsel %vm1068_vm4, %v7045_v43, %v7046_v17  ;;  %v5159_v47 = vsel %vm1068_vm4, %v7031_v59, %v7045_v43  ;;  %v5165_v46 = vsel %vm1068_vm4, %v7046_v17, %v7030_v60  ;;  %v5256_v33 = vmax.f32 %v5207_v35, %v5243_v62 }
 0xc18   :  { %v5172_v56 = vmax.f32 %v5124_v0, %v5159_v47  ;;  %v5173_v25 = vmax.f32 %v5125_v22, %v5156_v7  ;;  %v5257_v12 = vmax.f32 %v5204_v16, %v5240_v8  ;;  %v5174_v3 = vmax.f32 %v5126_v21, %v5165_v46 }
 0xc19   :  { %v5258_v36 = vmax.f32 %v5213_v20, %v5249_v50 }
 0xc1a   :  { %v5268_v51 = vmax.f32 %v5172_v56, %v5256_v33  ;;  %v5269_v32 = vmax.f32 %v5173_v25, %v5257_v12  ;;  %v5379_v56 = vld [vmem:[%s15322_s17] sm:$0xff]  ;;  %s7320_s17 = smov 114  }
 0xc1b   :  { %v5270_v54 = vmax.f32 %v5174_v3, %v5258_v36 }
 0xc1c   :  { %5320 = vmatmul.f32.gmra.mxu1 %v5268_v51  ;;  %5346 = vmatmul.f32.gmra.mxu2 %v5269_v32 }
 0xc1d   :  { %5372 = vmatmul.f32.gmra.mxu0 %v5270_v54 }
 0xc2c   :  { %v7064_v61 = vpop.permute.xlu2 %7063 }
 0xc2d   :  { %v7066_v31 = vunpack.i.h.bf16 %v7064_v61  ;;  %v7065_v5 = vunpack.i.l.bf16 %v7064_v61 }
 0xc2f   :  { %v5211_v37 = vsel %vm4193_vm6, %v7065_v5, %v7066_v31 }
 0xc34   :  { %v7079_v21 = vpop.permute.xlu2 %7078 }
 0xc35   :  { %v7081_v63 = vunpack.i.h.bf16 %v7079_v21  ;;  %v7080_v13 = vunpack.i.l.bf16 %v7079_v21 }
 0xc37   :  { %v5205_v26 = vsel %vm4193_vm6, %v7080_v13, %v7081_v63  ;;  %v5208_v49 = vsel %vm4193_vm6, %v7066_v31, %v7080_v13  ;;  %v5214_v55 = vsel %vm4193_vm6, %v7081_v63, %v7065_v5 }
 0xc44   :  { %v7069_v23 = vpop.permute.xlu0 %7068 }
 0xc45   :  { %v7071_v41 = vunpack.i.h.bf16 %v7069_v23  ;;  %v7070_v0 = vunpack.i.l.bf16 %v7069_v23  ;;  %v7059_v15 = vpop.permute.xlu1 %7058 }
 0xc46   :  { %v7061_v6 = vunpack.i.h.bf16 %v7059_v15  ;;  %v7060_v22 = vunpack.i.l.bf16 %v7059_v15  ;;  %v6054_v15 = vld [vmem:[%s15323_s20 + $0x18] sm:$0xff] }
 0xc47   :  { %v5247_v34 = vsel %vm4206_vm5, %v7070_v0, %v7071_v41 }
 0xc48   :  { %v5163_v48 = vsel %vm1068_vm4, %v7060_v22, %v7061_v6  ;;  %v5259_v57 = vmax.f32 %v5211_v37, %v5247_v34 }
 0xc49   :  { %v5175_v28 = vmax.f32 %v5127_v2, %v5163_v48 }
 0xc4b   :  { %v5271_v38 = vmax.f32 %v5175_v28, %v5259_v57 }
 0xc4c   :  { %v7084_v19 = vpop.permute.xlu0 %7083 }
 0xc4d   :  { %v7086_v27 = vunpack.i.h.bf16 %v7084_v19  ;;  %v7085_v59 = vunpack.i.l.bf16 %v7084_v19  ;;  %v7074_v60 = vpop.permute.xlu1 %7073  ;;  %5297 = vmatmul.f32.gmra.mxu3 %v5271_v38 }
 0xc4e   :  { %v7076_v53 = vunpack.i.h.bf16 %v7074_v60  ;;  %v7075_v10 = vunpack.i.l.bf16 %v7074_v60 }
 0xc4f   :  { %v5241_v2 = vsel %vm4206_vm5, %v7085_v59, %v7086_v27  ;;  %v5244_v39 = vsel %vm4206_vm5, %v7071_v41, %v7085_v59  ;;  %v5250_v4 = vsel %vm4206_vm5, %v7086_v27, %v7070_v0  ;;  %vm5386_vm5 = vcmask 162816   ;;  %v5492_v41 = vld [vmem:[%s15323_s20 + $0x8] sm:$0xff]  ;;  %v5491_v0 = vld [vmem:[%s15323_s20] sm:$0xff] }
 0xc50   :  { %v5157_v42 = vsel %vm1068_vm4, %v7075_v10, %v7076_v53  ;;  %v5160_v58 = vsel %vm1068_vm4, %v7061_v6, %v7075_v10  ;;  %v5166_v29 = vsel %vm1068_vm4, %v7076_v53, %v7060_v22  ;;  %v5260_v1 = vmax.f32 %v5208_v49, %v5244_v39 }
 0xc51   :  { %v5176_v18 = vmax.f32 %v5128_v11, %v5160_v58  ;;  %v5177_v14 = vmax.f32 %v5129_v30, %v5157_v42  ;;  %v5261_v24 = vmax.f32 %v5205_v26, %v5241_v2  ;;  %v5178_v16 = vmax.f32 %v5130_v52, %v5166_v29 }
 0xc52   :  { %v5262_v35 = vmax.f32 %v5214_v55, %v5250_v4 }
 0xc53   :  { %v5272_v17 = vmax.f32 %v5176_v18, %v5260_v1  ;;  %v5273_v43 = vmax.f32 %v5177_v14, %v5261_v24 }
 0xc54   :  { %v5274_v20 = vmax.f32 %v5178_v16, %v5262_v35 }
 0xc55   :  { %5323 = vmatmul.f32.gmra.mxu1 %v5272_v17  ;;  %5349 = vmatmul.f32.gmra.mxu2 %v5273_v43  ;;  %v5384_v32 = vpop.permute.xlu1 %5383 }
 0xc56   :  { %5375 = vmatmul.f32.gmra.mxu0 %v5274_v20 }
 0xc87   :  { %v5292_v8 = vpop.f32.mrf.mxu3 }
 0xc8a   :  { %v5318_v62 = vpop.f32.mrf.mxu1  ;;  %v5370_v50 = vpop.f32.mrf.mxu0 }
 0xc8b   :  { %v5319_v52 = vadd.f32 %v5318_v62, %v5292_v8 }
 0xc8f   :  { %v5344_v7 = vpop.f32.mrf.mxu2 }
 0xc90   :  { %v5371_v51 = vadd.f32 %v5370_v50, %v5344_v7 }
 0xc97   :  { %v5295_v40 = vpop.f32.mrf.mxu3 }
 0xc99   :  { %v5321_v11 = vpop.f32.mrf.mxu1 }
 0xc9a   :  { %v5373_v47 = vpop.f32.mrf.mxu0  ;;  %v5322_v9 = vadd.f32 %v5321_v11, %v5295_v40  ;;  %v5489_v11 = vld [vmem:[%s15324_s19] sm:$0xff] }
 0xc9f   :  { %v5347_v45 = vpop.f32.mrf.mxu2 }
 0xca0   :  { %v5374_v36 = vadd.f32 %v5373_v47, %v5347_v45  ;;  %v5490_v47 = vld [vmem:[%s15324_s19 + $0x8] sm:$0xff]  ;;  %v77_v45 = vld [vmem:[%s15325_s3] sm:$0x3] }
 0xcd0   :  { %v5298_v30 = vpop.f32.mrf.mxu3 }
 0xcd2   :  { %v5324_v46 = vpop.f32.mrf.mxu1 }
 0xcd3   :  { %v5325_v33 = vadd.f32 %v5324_v46, %v5298_v30  ;;  %v5376_v25 = vpop.f32.mrf.mxu0 }
 0xcd5   :  { %6045 = vmatpush.msk.msra.mxu3 %vm4932_vm3, %v5325_v33 }
 0xcd7   :  { %5410 = vmatpush.msra.mxu3 %v5322_v9 }
 0xcd8   :  { %v5350_v12 = vpop.f32.mrf.mxu2 }
 0xcd9   :  { %v5377_v3 = vadd.f32 %v5376_v25, %v5350_v12  ;;  %5411 = vmatpush.msra.mxu3 %v5319_v52  ;;  %v15073_v52 = vperm.slane %v77_v45, 0  ;;  %v15075_v25 = vperm.slane %v77_v45, 1 }
 0xcda   :  { %6046 = vmatmul.msk.f32.vlgmr.msra.gmra.mxu3 %vm5386_vm5, %v5379_v56 }
 0xcdb   :  { %6047 = vmatpush.msk.msrb.mxu1 %vm4932_vm3, %v5377_v3  ;;  %vm5474_vm3 = vcmp.lt.s32.totalorder %v16267_v44, 114  ;;  %v6174_v44 = vld [vmem:[%s15328_s6 + $0x18] sm:$0xff]  }
 0xcdd   :  { %5430 = vmatpush.msrb.mxu1 %v5374_v36 }
 0xcdf   :  { %5431 = vmatpush.msrb.mxu1 %v5371_v51 }
 0xce0   :  { %6048 = vmatmul.msk.f32.vlgmr.msrb.gmra.mxu1 %vm5386_vm5, %v5379_v56 }
 0xd5d   :  { %v5413_v54 = vpop.f32.mrf.mxu3  ;;  %v5433_v61 = vpop.f32.mrf.mxu1 }
 0xd5e   :  { %v14998_v31 = vadd.f32 %v5413_v54, %v5384_v32  ;;  %v15000_v5 = vadd.f32 %v5433_v61, %v5384_v32 }
 0xd60   :  { %v7097_v23 = vpack.i.bf16 %v15000_v5, %v14998_v31 }
 0xd62   :  { %7098 = vrot.lane.b32.xlu1 %v7097_v23, %s7320_s17  ;;  %7093 = vrot.lane.b32.xlu0 %v7097_v23, %s7314_s2 }
 0xd63   :  { %7088 = vrot.lane.b32.xlu2 %v7097_v23, %s7315_s30 }
 0xd6a   :  { %7113 = vrot.lane.b32.xlu1 %v7097_v23, %s7321_s10  ;;  %7108 = vrot.lane.b32.xlu0 %v7097_v23, %s7322_s11 }
 0xd6b   :  { %7103 = vrot.lane.b32.xlu2 %v7097_v23, %s7323_s27 }
 0xd72   :  { %5500 = vperm.xlu1 %6201, %v5492_v41   ;;  %7123 = vrot.lane.b32.xlu0 %v7097_v23, %s7310_s25 }
 0xd73   :  { %7118 = vrot.lane.b32.xlu2 %v7097_v23, %s7324_s0 }
 0xd7b   :  { %5495 = vperm.xlu2 %6199, %v5491_v0  }
 0xd83   :  { %5634 = vperm.xlu2 %6199, %v6054_v15  }
 0xdbd   :  { %v7089_v6 = vpop.permute.xlu2 %7088 }
 0xdbe   :  { %v7091_v22 = vunpack.i.h.bf16 %v7089_v6  ;;  %v7090_v37 = vunpack.i.l.bf16 %v7089_v6 }
 0xdc0   :  { %v5487_v21 = vsel %vm4193_vm6, %v7090_v37, %v7091_v22  ;;  %v5488_v34 = vsel %vm4193_vm6, %v7091_v22, %v7090_v37 }
 0xdc1   :  { %5516 = vmatpush.msrb.mxu2 %v5487_v21  ;;  %5539 = vmatpush.msrb.mxu3 %v5488_v34 }
 0xdc5   :  { %v7104_v48 = vpop.permute.xlu2 %7103 }
 0xdc6   :  { %v7106_v27 = vunpack.i.h.bf16 %v7104_v48  ;;  %v7105_v59 = vunpack.i.l.bf16 %v7104_v48 }
 0xdc8   :  { %v5468_v55 = vsel %vm5467_vm8, %v7105_v59, %v7106_v27  ;;  %v5469_v2 = vsel %vm5467_vm8, %v7106_v27, %v7105_v59 }
 0xdcd   :  { %v7119_v10 = vpop.permute.xlu2 %7118 }
 0xdce   :  { %v7121_v18 = vunpack.i.h.bf16 %v7119_v10  ;;  %v7120_v14 = vunpack.i.l.bf16 %v7119_v10 }
 0xdd0   :  { %v5447_v43 = vsel %vm5446_vm12, %v7120_v14, %v7121_v18  ;;  %v5448_v20 = vsel %vm5446_vm12, %v7121_v18, %v7120_v14 }
 0xdd4   :  { %v7099_v57 = vpop.permute.xlu1 %7098  ;;  %v7094_v28 = vpop.permute.xlu0 %7093 }
 0xdd5   :  { %v7101_v63 = vunpack.i.h.bf16 %v7099_v57  ;;  %v7100_v13 = vunpack.i.l.bf16 %v7099_v57  ;;  %v7096_v38 = vunpack.i.h.bf16 %v7094_v28  ;;  %v7095_v19 = vunpack.i.l.bf16 %v7094_v28  ;;  %v5496_v30 = vpop.permute.xlu2 %5495 }
 0xdd7   :  { %v5481_v60 = vsel %vm4180_vm7, %v7095_v19, %v7096_v38  ;;  %v5482_v26 = vsel %vm4180_vm7, %v7096_v38, %v7095_v19  ;;  %v5475_v49 = vsel %vm5474_vm3, %v7100_v13, %v7101_v63  ;;  %v5476_v53 = vsel %vm5474_vm3, %v7101_v63, %v7100_v13  ;;  %v6053_v63 = vld [vmem:[%s15323_s20 + $0x10] sm:$0xff]  ;;  %v6056_v13 = vld [vmem:[%s15323_s20 + $0x28] sm:$0xff]  ;;  %v6055_v38 = vld [vmem:[%s15323_s20 + $0x20] sm:$0xff] }
 0xdd8   :  { %5517 = vmatpush.msrb.mxu2 %v5481_v60  ;;  %5540 = vmatpush.msrb.mxu3 %v5482_v26 }
 0xdda   :  { %5518 = vmatpush.msrb.mxu2 %v5475_v49  ;;  %5541 = vmatpush.msrb.mxu3 %v5476_v53 }
 0xddc   :  { %v7114_v39 = vpop.permute.xlu1 %7113  ;;  %v7109_v4 = vpop.permute.xlu0 %7108  ;;  %5519 = vmatpush.msrb.mxu2 %v5468_v55  ;;  %5542 = vmatpush.msrb.mxu3 %v5469_v2 }
 0xddd   :  { %v7116_v42 = vunpack.i.h.bf16 %v7114_v39  ;;  %v7115_v58 = vunpack.i.l.bf16 %v7114_v39  ;;  %v7111_v29 = vunpack.i.h.bf16 %v7109_v4  ;;  %v7110_v1 = vunpack.i.l.bf16 %v7109_v4  ;;  %v5635_v59 = vpop.permute.xlu2 %5634 }
 0xddf   :  { %v5461_v24 = vsel %vm5460_vm9, %v7110_v1, %v7111_v29  ;;  %v5462_v16 = vsel %vm5460_vm9, %v7111_v29, %v7110_v1  ;;  %v5454_v35 = vsel %vm5453_vm10, %v7115_v58, %v7116_v42  ;;  %v5455_v17 = vsel %vm5453_vm10, %v7116_v42, %v7115_v58 }
 0xde0   :  { %5520 = vmatpush.msrb.mxu2 %v5461_v24  ;;  %5543 = vmatpush.msrb.mxu3 %v5462_v16 }
 0xde2   :  { %5521 = vmatpush.msrb.mxu2 %v5454_v35  ;;  %5544 = vmatpush.msrb.mxu3 %v5455_v17 }
 0xde4   :  { %v7124_v8 = vpop.permute.xlu0 %7123  ;;  %5522 = vmatpush.msrb.mxu2 %v5447_v43  ;;  %5545 = vmatpush.msrb.mxu3 %v5448_v20  ;;  %v5501_v32 = vpop.permute.xlu1 %5500 }
 0xde5   :  { %v7126_v62 = vunpack.i.h.bf16 %v7124_v8  ;;  %v7125_v50 = vunpack.i.l.bf16 %v7124_v8 }
 0xde7   :  { %v5440_v7 = vsel %vm1068_vm4, %v7125_v50, %v7126_v62  ;;  %v5441_v40 = vsel %vm1068_vm4, %v7126_v62, %v7125_v50 }
 0xde8   :  { %5523 = vmatpush.msrb.mxu2 %v5440_v7  ;;  %5546 = vmatpush.msrb.mxu3 %v5441_v40 }
 0xdea   :  { %5524 = vmatpush.msrb.mxu2 %v14998_v31  ;;  %5547 = vmatpush.msrb.mxu3 %v15000_v5 }
 0xdeb   :  { %6049 = vmatmul.msk.f32.vlgmr.msrb.gmra.mxu2 %vm2096_vm11, %v5489_v11  ;;  %6051 = vmatmul.msk.f32.vlgmr.msrb.gmra.mxu3 %vm2096_vm11, %v5489_v11 }
 0xdf3   :  { %6050 = vmatmul.msk.f32.gmra.mxu2 %vm2096_vm11, %v5490_v47  ;;  %6052 = vmatmul.msk.f32.gmra.mxu3 %vm2096_vm11, %v5490_v47 }
 0xe6e   :  { %v5526_v46 = vpop.f32.mrf.mxu2  ;;  %v5549_v33 = vpop.f32.mrf.mxu3 }
 0xe6f   :  { %v5527_v9 = vadd.f32 %v5526_v46, %v5496_v30  ;;  %v5550_v56 = vadd.f32 %v5549_v33, %v5496_v30 }
 0xe71   :  { %v5555_v12 = vmax.f32 %v5527_v9, 0.0  ;;  %v5556_v3 = vmax.f32 %v5550_v56, 0.0 }
 0xe73   :  { %v15078_v36 = vmul.f32 %v15073_v52, %v5555_v12  ;;  %v15081_v51 = vmul.f32 %v15075_v25, %v5556_v3 }
 0xe75   :  { %v5568_v54 = vadd.f32 %v15081_v51, %v15078_v36  ;;  %v5576_v61 = vmul.f32 %v15078_v36, %v15078_v36  ;;  %v5577_v31 = vmul.f32 %v15081_v51, %v15081_v51 }
 0xe76   :  { %v5529_v5 = vpop.f32.mrf.mxu2  ;;  %v5552_v23 = vpop.f32.mrf.mxu3 }
 0xe77   :  { %v5530_v41 = vadd.f32 %v5529_v5, %v5501_v32  ;;  %v5553_v0 = vadd.f32 %v5552_v23, %v5501_v32  ;;  %5569 = vadd.xlane.f32.xlu1 %v5568_v54  ;;  %v5580_v15 = vadd.f32 %v5577_v31, %v5576_v61 }
 0xe79   :  { %v5557_v6 = vmax.f32 %v5530_v41, 0.0  ;;  %v5558_v22 = vmax.f32 %v5553_v0, 0.0  ;;  %5581 = vadd.xlane.f32.xlu0 %v5580_v15 }
 0xe7b   :  { %v15090_v37 = vmul.f32 %v15073_v52, %v5557_v6  ;;  %v15093_v21 = vmul.f32 %v15075_v25, %v5558_v22 }
 0xe7d   :  { %v5578_v34 = vmul.f32 %v15090_v37, %v15090_v37  ;;  %v5579_v48 = vmul.f32 %v15093_v21, %v15093_v21  ;;  %v5571_v28 = vadd.f32 %v15093_v21, %v15090_v37 }
 0xe7f   :  { %v5583_v57 = vadd.f32 %v5579_v48, %v5578_v34 }
 0xe81   :  { %5584 = vadd.xlane.f32.xlu2 %v5583_v57  ;;  %5572 = vadd.xlane.f32.xlu0 %v5571_v28 }
 0xe90   :  { %5629 = vperm.xlu1 %6201, %v6053_v63  }
 0xe95   :  { %5651 = vperm.xlu0 %6200, %v6056_v13  }
 0xe99   :  { %5646 = vperm.xlu2 %6199, %v6055_v38  }
 0xeea   :  { %v5570_v19 = vpop.xlane.xlu1 %5569 }
 0xeeb   :  { %v5574_v27 = vmul.f32 0.02, %v5570_v19 }
 0xeec   :  { %v5582_v60 = vpop.xlane.xlu0 %5581 }
 0xeed   :  { %v5586_v26 = vmul.f32 0.02, %v5582_v60  ;;  %v5588_v49 = vmul.f32 %v5574_v27, %v5574_v27  ;;  %v5594_v8 = vsub.f32 %v15078_v36, %v5574_v27  ;;  %v5595_v62 = vsub.f32 %v15081_v51, %v5574_v27 }
 0xeef   :  { %v5590_v53 = vsub.f32 %v5586_v26, %v5588_v49 }
 0xef1   :  { %v5592_v10 = vmax.f32 %v5590_v53, 0.0 }
 0xef3   :  { %v5598_v55 = vadd.f32 1e-05, %v5592_v10 }
 0xef4   :  { %v5585_v2 = vpop.xlane.xlu2 %5584  ;;  %v5573_v39 = vpop.xlane.xlu0 %5572 }
 0xef5   :  { %7223 = vrsqrt.f32 %v5598_v55  ;;  %v5575_v4 = vmul.f32 0.02, %v5573_v39  ;;  %v5587_v42 = vmul.f32 0.02, %v5585_v2  ;;  %vm5606_vm13 = vweird.f32 %v5598_v55 }
 0xef7   :  { %v5589_v58 = vmul.f32 %v5575_v4, %v5575_v4  ;;  %v5596_v51 = vsub.f32 %v15090_v37, %v5575_v4  ;;  %v5597_v61 = vsub.f32 %v15093_v21, %v5575_v4 }
 0xef9   :  { %v5591_v29 = vsub.f32 %v5587_v42, %v5589_v58 }
 0xefb   :  { %v7224_v1 = vpop.eup %7223  ;;  %v5593_v18 = vmax.f32 %v5591_v29, 0.0 }
 0xefc   :  { %v5601_v14 = vmul.f32 %v7224_v1, %v5598_v55  ;;  %vm5607_vm11 = vweird.f32 %v7224_v1  ;;  %v5647_v33 = vpop.permute.xlu2 %5646 }
 0xefd   :  { %v5599_v24 = vadd.f32 1e-05, %v5593_v18  ;;  %vm5608_vm14 = vmor %vm5606_vm13, %vm5607_vm11 }
 0xefe   :  { %v5602_v16 = vmul.f32 %v7224_v1, %v5601_v14 }
 0xeff   :  { %7225 = vrsqrt.f32 %v5599_v24  ;;  %vm5616_vm0 = vweird.f32 %v5599_v24 }
 0xf00   :  { %v5603_v35 = vmul.f32 0.5, %v5602_v16 }
 0xf02   :  { %v5604_v17 = vsub.f32 1.5, %v5603_v35  ;;  %v5630_v47 = vpop.permute.xlu1 %5629 }
 0xf04   :  { %v5605_v43 = vmul.f32 %v7224_v1, %v5604_v17 }
 0xf05   :  { %v7226_v20 = vpop.eup %7225 }
 0xf06   :  { %v5611_v50 = vmul.f32 %v7226_v20, %v5599_v24  ;;  %v5609_v7 = vsel %vm5608_vm14, %v7224_v1, %v5605_v43  ;;  %vm5617_vm15 = vweird.f32 %v7226_v20 }
 0xf07   :  { %v5620_v40 = vmul.f32 %v5609_v7, %v5594_v8  ;;  %v5621_v11 = vmul.f32 %v5609_v7, %v5595_v62  ;;  %vm5618_vm1 = vmor %vm5616_vm0, %vm5617_vm15  ;;  %v5652_v6 = vpop.permute.xlu0 %5651 }
 0xf08   :  { %v5612_v45 = vmul.f32 %v7226_v20, %v5611_v50 }
 0xf09   :  { %v5637_v30 = vmul.f32 %v5630_v47, %v5620_v40  ;;  %v5638_v46 = vmul.f32 %v5630_v47, %v5621_v11 }
 0xf0a   :  { %v5613_v9 = vmul.f32 0.5, %v5612_v45  ;;  %v5759_v45 = vld [vmem:[%s15327_s21 + $0x8] sm:$0xff] }
 0xf0b   :  { %v5654_v56 = vadd.f32 %v5647_v33, %v5637_v30  ;;  %v5655_v12 = vadd.f32 %v5647_v33, %v5638_v46 }
 0xf0c   :  { %v5614_v3 = vsub.f32 1.5, %v5613_v9 }
 0xf0d   :  { %v15113_v32 = vmul.f32 %v5654_v56, %v15073_v52  ;;  %v15116_v36 = vmul.f32 %v5655_v12, %v15075_v25 }
 0xf0e   :  { %v5615_v54 = vmul.f32 %v7226_v20, %v5614_v3 }
 0xf0f   :  { %v7137_v31 = vpack.i.bf16 %v15116_v36, %v15113_v32 }
 0xf10   :  { %v5619_v5 = vsel %vm5618_vm1, %v7226_v20, %v5615_v54 }
 0xf11   :  { %v5622_v23 = vmul.f32 %v5619_v5, %v5596_v51  ;;  %v5623_v41 = vmul.f32 %v5619_v5, %v5597_v61  ;;  %7138 = vrot.lane.b32.xlu2 %v7137_v31, %s7323_s27  ;;  %7133 = vrot.lane.b32.xlu1 %v7137_v31, %s7320_s17 }
 0xf12   :  { %7128 = vrot.lane.b32.xlu0 %v7137_v31, %s7314_s2 }
 0xf13   :  { %v5639_v0 = vmul.f32 %v5635_v59, %v5622_v23  ;;  %v5640_v15 = vmul.f32 %v5635_v59, %v5623_v41 }
 0xf15   :  { %v5656_v22 = vadd.f32 %v5652_v6, %v5639_v0  ;;  %v5657_v37 = vadd.f32 %v5652_v6, %v5640_v15  ;;  %v5761_v6 = vld [vmem:[%s15327_s21 + $0x18] sm:$0x3] }
 0xf17   :  { %v15126_v21 = vmul.f32 %v5656_v22, %v15073_v52  ;;  %v15129_v34 = vmul.f32 %v5657_v37, %v15075_v25  ;;  %v5763_v52 = vld [vmem:[%s15326_s22 + $0x8] sm:$0x3]  ;;  %v5762_v25 = vld [vmem:[%s15326_s22] sm:$0xff] }
 0xf19   :  { %v7147_v48 = vpack.i.bf16 %v15129_v34, %v15126_v21 }
 0xf1b   :  { %7148 = vrot.lane.b32.xlu2 %v7147_v48, %s7320_s17  ;;  %7143 = vrot.lane.b32.xlu1 %v7147_v48, %s7314_s2 }
 0xf1c   :  { %7168 = vrot.lane.b32.xlu0 %v7147_v48, %s7323_s27 }
 0xf23   :  { %7153 = vrot.lane.b32.xlu2 %v7137_v31, %s7322_s11  ;;  %7158 = vrot.lane.b32.xlu1 %v7137_v31, %s7315_s30 }
 0xf24   :  { %7178 = vrot.lane.b32.xlu0 %v7147_v48, %s7315_s30 }
 0xf2b   :  { %7163 = vrot.lane.b32.xlu2 %v7137_v31, %s7321_s10  ;;  %7173 = vrot.lane.b32.xlu1 %v7147_v48, %s7322_s11 }
 0xf2c   :  { %7183 = vrot.lane.b32.xlu0 %v7147_v48, %s7321_s10 }
 0xf33   :  { %7198 = vrot.lane.b32.xlu2 %v7147_v48, %s7310_s25  ;;  %7193 = vrot.lane.b32.xlu1 %v7147_v48, %s7324_s0 }
 0xf34   :  { %7188 = vrot.lane.b32.xlu0 %v7137_v31, %s7324_s0 }
 0xf3b   :  { %5771 = vperm.xlu2 %6199, %v5763_v52   ;;  %7203 = vrot.lane.b32.xlu1 %v7137_v31, %s7310_s25  ;;  %v15221_v52 = vld [vmem:[%s15328_s6 + $0x38] sm:$0xff]  }
 0xf3c   :  { %5766 = vperm.xlu0 %6200, %v5762_v25  }
 0xf6b   :  { %v15152_v57 = vpop.permute.xlu2 %7138 }
 0xf6c   :  { %v7141_v18 = vunpack.i.h.bf16 %v15152_v57  ;;  %v7140_v14 = vunpack.i.l.bf16 %v15152_v57 }
 0xf6e   :  { %v5718_v40 = vsel %vm5467_vm8, %v7140_v14, %v7141_v18  ;;  %v5720_v57 = vsel %vm5467_vm8, %v7141_v18, %v7140_v14 }
 0xf75   :  { %v7149_v63 = vpop.permute.xlu2 %7148 }
 0xf76   :  { %v7151_v49 = vunpack.i.h.bf16 %v7149_v63  ;;  %v7150_v53 = vunpack.i.l.bf16 %v7149_v63  ;;  %v15229_v63 = vld [vmem:[%s15328_s6 + $0x30] sm:$0xff]  }
 0xf78   :  { %v5731_v29 = vsel %vm5474_vm3, %v7150_v53, %v7151_v49  ;;  %v5733_v31 = vsel %vm5474_vm3, %v7151_v49, %v7150_v53 }
 0xf7d   :  { %v15158_v10 = vpop.permute.xlu2 %7153 }
 0xf7e   :  { %v7156_v46 = vunpack.i.h.bf16 %v15158_v10  ;;  %v7155_v9 = vunpack.i.l.bf16 %v15158_v10 }
 0xf80   :  { %v5706_v15 = vsel %vm5460_vm9, %v7155_v9, %v7156_v46 }
 0xf83   :  { %v15154_v28 = vpop.permute.xlu1 %7133 }
 0xf84   :  { %v7129_v13 = vpop.permute.xlu0 %7128  ;;  %v7136_v2 = vunpack.i.h.bf16 %v15154_v28  ;;  %v7135_v39 = vunpack.i.l.bf16 %v15154_v28  ;;  %v6156_v28 = vunpack.c.h.bf16 %v15221_v52 }
 0xf85   :  { %v7131_v19 = vunpack.i.h.bf16 %v7129_v13  ;;  %v7130_v27 = vunpack.i.l.bf16 %v7129_v13  ;;  %v15180_v7 = vpop.permute.xlu2 %7163 }
 0xf86   :  { %v5730_v16 = vsel %vm5474_vm3, %v7135_v39, %v7136_v2  ;;  %v7166_v23 = vunpack.i.h.bf16 %v15180_v7  ;;  %v7165_v41 = vunpack.i.l.bf16 %v15180_v7  ;;  %v5732_v0 = vsel %vm5474_vm3, %v7136_v2, %v7135_v39  ;;  %5872 = vmatpush.msra.mxu3 %v6156_v28  ;;  %v6176_v39 = vld [vmem:[%s15328_s6 + $0x28] sm:$0xff]  }
 0xf87   :  { %v5742_v4 = vsel %vm4180_vm7, %v7130_v27, %v7131_v19  ;;  %v5744_v51 = vsel %vm4180_vm7, %v7131_v19, %v7130_v27  ;;  %v6152_v2 = vunpack.c.h.bf16 %v15229_v63  ;;  %v6148_v18 = vunpack.c.h.bf16 %v6176_v39 }
 0xf88   :  { %v5694_v27 = vsel %vm5453_vm10, %v7165_v41, %v7166_v23 }
 0xf8d   :  { %v7144_v38 = vpop.permute.xlu1 %7143  ;;  %v15212_v22 = vpop.permute.xlu2 %7198 }
 0xf8e   :  { %v7146_v59 = vunpack.i.h.bf16 %v7144_v38  ;;  %v7145_v60 = vunpack.i.l.bf16 %v7144_v38  ;;  %v15156_v26 = vpop.permute.xlu0 %7168  ;;  %v7200_v53 = vunpack.i.l.bf16 %v15212_v22 }
 0xf8f   :  { %v7171_v42 = vunpack.i.h.bf16 %v15156_v26  ;;  %v7170_v58 = vunpack.i.l.bf16 %v15156_v26 }
 0xf90   :  { %v5743_v55 = vsel %vm4180_vm7, %v7145_v60, %v7146_v59  ;;  %v5745_v30 = vsel %vm4180_vm7, %v7146_v59, %v7145_v60  ;;  %v6155_v59 = vunpack.c.l.bf16 %v15221_v52  ;;  %v7201_v60 = vunpack.i.h.bf16 %v15212_v22 }
 0xf91   :  { %5780 = vmatpush.msra.mxu0 %v5743_v55  ;;  %v5719_v8 = vsel %vm5467_vm8, %v7170_v58, %v7171_v42  ;;  %v5721_v37 = vsel %vm5467_vm8, %v7171_v42, %v7170_v58  ;;  %v6151_v58 = vunpack.c.l.bf16 %v15229_v63 }
 0xf92   :  { %5873 = vmatpush.msra.mxu3 %v6155_v59 }
 0xf93   :  { %5781 = vmatpush.msra.mxu0 %v5742_v4  ;;  %v5708_v4 = vsel %vm5460_vm9, %v7156_v46, %v7155_v9  ;;  %v6172_v46 = vld [vmem:[%s15328_s6 + $0x8] sm:$0xff]  }
 0xf94   :  { %5874 = vmatpush.msra.mxu3 %v6152_v2  ;;  %v6131_v9 = vunpack.c.l.bf16 %v6172_v46 }
 0xf95   :  { %v7159_v1 = vpop.permute.xlu1 %7158  ;;  %5782 = vmatpush.msra.mxu0 %v5731_v29 }
 0xf96   :  { %v7179_v24 = vpop.permute.xlu0 %7178  ;;  %v7161_v35 = vunpack.i.h.bf16 %v7159_v1  ;;  %v7160_v17 = vunpack.i.l.bf16 %v7159_v1  ;;  %v5671_v1 = vsel %vm1068_vm4, %v7200_v53, %v7201_v60  ;;  %5875 = vmatpush.msra.mxu3 %v6151_v58 }
 0xf97   :  { %v7181_v43 = vunpack.i.h.bf16 %v7179_v24  ;;  %v7180_v20 = vunpack.i.l.bf16 %v7179_v24  ;;  %5783 = vmatpush.msra.mxu0 %v5730_v16  ;;  %v6175_v24 = vld [vmem:[%s15328_s6 + $0x20] sm:$0xff]  }
 0xf98   :  { %v5754_v11 = vsel %vm4193_vm6, %v7160_v17, %v7161_v35  ;;  %v5756_v47 = vsel %vm4193_vm6, %v7161_v35, %v7160_v17  ;;  %v5696_v17 = vsel %vm5453_vm10, %v7166_v23, %v7165_v41  ;;  %5876 = vmatpush.msra.mxu3 %v6148_v18  ;;  %v6143_v7 = vunpack.c.l.bf16 %v6175_v24 }
 0xf99   :  { %5784 = vmatpush.msra.mxu0 %v5719_v8  ;;  %v5755_v62 = vsel %vm4193_vm6, %v7180_v20, %v7181_v43  ;;  %v5757_v50 = vsel %vm4193_vm6, %v7181_v43, %v7180_v20  ;;  %v6147_v43 = vunpack.c.l.bf16 %v6176_v39  ;;  %vm5931_vm6 = vcmask 9216  }
 0xf9a   :  { %5817 = vmatpush.msra.mxu1 %v5755_v62  ;;  %5863 = vmatpush.msra.mxu2 %v5757_v50  ;;  %v6144_v62 = vunpack.c.h.bf16 %v6175_v24 }
 0xf9b   :  { %5785 = vmatpush.msra.mxu0 %v5718_v40  ;;  %5877 = vmatpush.msra.mxu3 %v6147_v43  ;;  %v5758_v40 = vld [vmem:[%s15327_s21] sm:$0xff] }
 0xf9c   :  { %5818 = vmatpush.msra.mxu1 %v5754_v11  ;;  %5864 = vmatpush.msra.mxu2 %v5756_v47  ;;  %v5673_v11 = vsel %vm1068_vm4, %v7201_v60, %v7200_v53 }
 0xf9d   :  { %v7174_v33 = vpop.permute.xlu1 %7173  ;;  %6059 = vmatmul.msk.f32.vlgmr.msra.gmra.mxu2 %vm4012_vm2, %v5759_v45  ;;  %6057 = vmatmul.msk.f32.vlgmr.msra.gmra.mxu1 %vm4012_vm2, %v5759_v45 }
 0xf9e   :  { %5826 = vmatpush.msrb.mxu1 %v5745_v30  ;;  %v7176_v56 = vunpack.i.h.bf16 %v7174_v33  ;;  %v7175_v12 = vunpack.i.l.bf16 %v7174_v33  ;;  %v7184_v3 = vpop.permute.xlu0 %7183  ;;  %5878 = vmatpush.msra.mxu3 %v6144_v62  ;;  %v6132_v33 = vunpack.c.h.bf16 %v6172_v46 }
 0xf9f   :  { %v7186_v54 = vunpack.i.h.bf16 %v7184_v3  ;;  %v7185_v61 = vunpack.i.l.bf16 %v7184_v3 }
 0xfa0   :  { %5827 = vmatpush.msrb.mxu1 %v5744_v51  ;;  %v5707_v5 = vsel %vm5460_vm9, %v7175_v12, %v7176_v56  ;;  %v5709_v10 = vsel %vm5460_vm9, %v7176_v56, %v7175_v12  ;;  %5879 = vmatpush.msra.mxu3 %v6143_v7  ;;  %v6126_v56 = vld [vmem:[%s15328_s6] sm:$0xff]  }
 0xfa1   :  { %5786 = vmatpush.msra.mxu0 %v5707_v5  ;;  %v5695_v48 = vsel %vm5453_vm10, %v7185_v61, %v7186_v54  ;;  %v5697_v29 = vsel %vm5453_vm10, %v7186_v54, %v7185_v61  ;;  %v6128_v12 = vunpack.c.h.bf16 %v6126_v56  ;;  %v6127_v3 = vunpack.c.l.bf16 %v6126_v56 }
 0xfa2   :  { %5828 = vmatpush.msrb.mxu1 %v5733_v31 }
 0xfa3   :  { %5787 = vmatpush.msra.mxu0 %v5706_v15 }
 0xfa4   :  { %5829 = vmatpush.msrb.mxu1 %v5732_v0 }
 0xfa5   :  { %v7194_v25 = vpop.permute.xlu1 %7193  ;;  %5788 = vmatpush.msra.mxu0 %v5695_v48  ;;  %6058 = vmatmul.msk.f32.gmra.mxu1 %vm4012_vm2, %v5761_v6 }
 0xfa6   :  { %5830 = vmatpush.msrb.mxu1 %v5721_v37  ;;  %v7196_v13 = vunpack.i.h.bf16 %v7194_v25  ;;  %v7195_v38 = vunpack.i.l.bf16 %v7194_v25  ;;  %v7189_v19 = vpop.permute.xlu0 %7188  ;;  %6060 = vmatmul.msk.f32.gmra.mxu2 %vm4012_vm2, %v5761_v6  ;;  %v5772_v6 = vpop.permute.xlu2 %5771  ;;  %vm5929_vm2 = vcmask 15360  }
 0xfa7   :  { %v7191_v26 = vunpack.i.h.bf16 %v7189_v19  ;;  %v7190_v49 = vunpack.i.l.bf16 %v7189_v19  ;;  %5789 = vmatpush.msra.mxu0 %v5694_v27 }
 0xfa8   :  { %5831 = vmatpush.msrb.mxu1 %v5720_v57  ;;  %v5683_v55 = vsel %vm5446_vm12, %v7195_v38, %v7196_v13  ;;  %v5685_v20 = vsel %vm5446_vm12, %v7196_v13, %v7195_v38 }
 0xfa9   :  { %5790 = vmatpush.msra.mxu0 %v5683_v55  ;;  %v5682_v42 = vsel %vm5446_vm12, %v7190_v49, %v7191_v26  ;;  %v5684_v50 = vsel %vm5446_vm12, %v7191_v26, %v7190_v49 }
 0xfaa   :  { %5832 = vmatpush.msrb.mxu1 %v5709_v10 }
 0xfab   :  { %5791 = vmatpush.msra.mxu0 %v5682_v42 }
 0xfac   :  { %5833 = vmatpush.msrb.mxu1 %v5708_v4 }
 0xfad   :  { %v7204_v14 = vpop.permute.xlu1 %7203  ;;  %5792 = vmatpush.msra.mxu0 %v5671_v1 }
 0xfae   :  { %5834 = vmatpush.msrb.mxu1 %v5697_v29  ;;  %v7206_v16 = vunpack.i.h.bf16 %v7204_v14  ;;  %v7205_v35 = vunpack.i.l.bf16 %v7204_v14  ;;  %v5767_v61 = vpop.permute.xlu0 %5766 }
 0xfb0   :  { %5835 = vmatpush.msrb.mxu1 %v5696_v17  ;;  %v5670_v8 = vsel %vm1068_vm4, %v7205_v35, %v7206_v16  ;;  %v5672_v47 = vsel %vm1068_vm4, %v7206_v16, %v7205_v35  ;;  %vm5926_vm4 = vcmask 7168  }
 0xfb1   :  { %5793 = vmatpush.msra.mxu0 %v5670_v8 }
 0xfb2   :  { %5836 = vmatpush.msrb.mxu1 %v5685_v20 }
 0xfb3   :  { %5794 = vmatpush.msra.mxu0 %v15126_v21  ;;  %v5760_v21 = vld [vmem:[%s15327_s21 + $0x10] sm:$0x3] }
 0xfb4   :  { %5837 = vmatpush.msrb.mxu1 %v5684_v50 }
 0xfb5   :  { %5795 = vmatpush.msra.mxu0 %v15113_v32  ;;  %v6173_v32 = vld [vmem:[%s15328_s6 + $0x10] sm:$0xff]  }
 0xfb6   :  { %5838 = vmatpush.msrb.mxu1 %v5673_v11  ;;  %5796 = vmatmul.f32.vlgmr.msra.gmra.mxu0 %v5758_v40  ;;  %v6136_v45 = vunpack.c.h.bf16 %v6173_v32  ;;  %v6135_v30 = vunpack.c.l.bf16 %v6173_v32 }
 0xfb7   :  { %5895 = vmatpush.msrb.mxu0 %v6156_v28 }
 0xfb8   :  { %5839 = vmatpush.msrb.mxu1 %v5672_v47 }
 0xfb9   :  { %5896 = vmatpush.msrb.mxu0 %v6155_v59 }
 0xfba   :  { %5840 = vmatpush.msrb.mxu1 %v15129_v34  ;;  %v6139_v34 = vunpack.c.l.bf16 %v6174_v44 }
 0xfbb   :  { %5897 = vmatpush.msrb.mxu0 %v6152_v2 }
 0xfbc   :  { %5841 = vmatpush.msrb.mxu1 %v15116_v36  ;;  %v6140_v36 = vunpack.c.h.bf16 %v6174_v44 }
 0xfbd   :  { %5842 = vmatmul.f32.vlgmr.msrb.gmra.mxu1 %v5758_v40  ;;  %5898 = vmatpush.msrb.mxu0 %v6151_v58 }
 0xfbe   :  { %5799 = vmatmul.f32.gmra.mxu0 %v5760_v21  ;;  %5880 = vmatpush.msra.mxu3 %v6140_v36 }
 0xfbf   :  { %5899 = vmatpush.msrb.mxu0 %v6148_v18 }
 0xfc0   :  { %5881 = vmatpush.msra.mxu3 %v6139_v34 }
 0xfc1   :  { %5900 = vmatpush.msrb.mxu0 %v6147_v43 }
 0xfc2   :  { %5882 = vmatpush.msra.mxu3 %v6136_v45 }
 0xfc3   :  { %5901 = vmatpush.msrb.mxu0 %v6144_v62 }
 0xfc4   :  { %5883 = vmatpush.msra.mxu3 %v6135_v30 }
 0xfc5   :  { %5845 = vmatmul.f32.gmra.mxu1 %v5760_v21  ;;  %5902 = vmatpush.msrb.mxu0 %v6143_v7 }
 0xfc6   :  { %5884 = vmatpush.msra.mxu3 %v6132_v33 }
 0xfc7   :  { %5903 = vmatpush.msrb.mxu0 %v6140_v36 }
 0xfc8   :  { %5885 = vmatpush.msra.mxu3 %v6131_v9 }
 0xfc9   :  { %5904 = vmatpush.msrb.mxu0 %v6139_v34 }
 0xfca   :  { %5886 = vmatpush.msra.mxu3 %v6128_v12 }
 0xfcb   :  { %5905 = vmatpush.msrb.mxu0 %v6136_v45 }
 0xfcc   :  { %5887 = vmatpush.msra.mxu3 %v6127_v3 }
 0xfcd   :  { %5906 = vmatpush.msrb.mxu0 %v6135_v30 }
 0xfcf   :  { %5907 = vmatpush.msrb.mxu0 %v6132_v33 }
 0xfd1   :  { %5908 = vmatpush.msrb.mxu0 %v6131_v9 }
 0xfd3   :  { %5909 = vmatpush.msrb.mxu0 %v6128_v12 }
 0xfd5   :  { %5910 = vmatpush.msrb.mxu0 %v6127_v3 }
0x101a   :  { %v5820_v51 = vpop.f32.mrf.mxu1 }
0x1020   :  { %v5866_v41 = vpop.f32.mrf.mxu2 }
0x1022   :  { %v5823_v54 = vpop.f32.mrf.mxu1 }
0x1029   :  { %v5869_v57 = vpop.f32.mrf.mxu2 }
0x1033   :  { %v5797_v31 = vpop.f32.mrf.mxu0 }
0x1034   :  { %v5798_v5 = vadd.f32 %v5797_v31, %v5767_v61 }
0x1036   :  { %v5821_v23 = vadd.f32 %v5820_v51, %v5798_v5 }
0x1038   :  { %5888 = vmatmul.f32.vlgmr.msra.gmra.mxu3 %v5821_v23 }
0x103a   :  { %v5843_v0 = vpop.f32.mrf.mxu1 }
0x103b   :  { %v5844_v15 = vadd.f32 %v5843_v0, %v5767_v61  ;;  %v5800_v22 = vpop.f32.mrf.mxu0 }
0x103c   :  { %v5801_v48 = vadd.f32 %v5800_v22, %v5772_v6 }
0x103d   :  { %v5867_v37 = vadd.f32 %v5866_v41, %v5844_v15 }
0x103e   :  { %v5824_v52 = vadd.f32 %v5823_v54, %v5801_v48 }
0x103f   :  { %5911 = vmatmul.f32.vlgmr.msrb.gmra.mxu0 %v5867_v37 }
0x1040   :  { %5891 = vmatmul.f32.gmra.mxu3 %v5824_v52 }
0x1042   :  { %v5846_v25 = vpop.f32.mrf.mxu1 }
0x1043   :  { %v5847_v28 = vadd.f32 %v5846_v25, %v5772_v6 }
0x1045   :  { %v5870_v63 = vadd.f32 %v5869_v57, %v5847_v28 }
0x1047   :  { %5914 = vmatmul.f32.gmra.mxu0 %v5870_v63 }
0x10bb   :  { %v5889_v19 = vpop.f32.mrf.mxu3 }
0x10bc   :  { %v5912_v13 = vpop.f32.mrf.mxu0 }
0x10bd   :  { %5920 = vrot.lane.b32.xlu1 %v5912_v13, %s7309_s1 }
0x10c3   :  { %v5892_v60 = vpop.f32.mrf.mxu3 }
0x10c4   :  { %v5915_v38 = vpop.f32.mrf.mxu0 }
0x10c5   :  { %5922 = vrot.lane.b32.xlu0 %v5915_v38, %s7309_s1 }
0x112f   :  { %v5921_v27 = vpop.permute.xlu1 %5920 }
0x1130   :  { %v5927_v59 = vsel %vm5926_vm4, %v5889_v19, %v5921_v27 }
0x1131   :  { %v5930_v53 = vsel %vm5929_vm2, %v5927_v59, -inf }
0x1137   :  { %v5923_v26 = vpop.permute.xlu0 %5922 }
0x1138   :  { %v5928_v49 = vsel %vm5926_vm4, %v5892_v60, %v5923_v26 }
0x1139   :  { %v5932_v10 = vsel %vm5931_vm6, %v5928_v49, -inf }
0x113a   :  { %v5933_v55 = vmax.f32 %v5930_v53, %v5932_v10 }
0x113c   :  { %v5934_v2 = vrot.slane %v5933_v55, 4 }
0x113e   :  { %v5935_v39 = vmax.f32 %v5933_v55, %v5934_v2 }
0x1140   :  { %v5936_v4 = vrot.slane %v5935_v39, 2 }
0x1142   :  { %v5937_v42 = vmax.f32 %v5935_v39, %v5936_v4 }
0x1144   :  { %v5938_v58 = vrot.slane %v5937_v42, 1 }
0x1146   :  { %v5939_v29 = vmax.f32 %v5937_v42, %v5938_v58 }
0x1148   :  { %v5940_v1 = vsub.f32 %v5927_v59, %v5939_v29  ;;  %v5941_v18 = vsub.f32 %v5928_v49, %v5939_v29 }
0x114a   :  { %v5942_v14 = vmul.f32 1.442695, %v5940_v1  ;;  %v5944_v24 = vmul.f32 1.442695, %v5941_v18 }
0x114c   :  { %7227 = vpow2.f32 %v5942_v14 }
0x114d   :  { %7229 = vpow2.f32 %v5944_v24 }
0x1152   :  { %v7228_v16 = vpop.eup %7227 }
0x1153   :  { %v7230_v35 = vpop.eup %7229  ;;  %v5946_v17 = vsel %vm5929_vm2, %v7228_v16, 0.0 }
0x1154   :  { %v5947_v43 = vsel %vm5931_vm6, %v7230_v35, 0.0 }
0x1155   :  { %v5948_v20 = vadd.f32 %v5947_v43, %v5946_v17 }
0x1157   :  { %v5949_v8 = vrot.slane %v5948_v20, 4 }
0x1159   :  { %v5950_v62 = vadd.f32 %v5949_v8, %v5948_v20 }
0x115b   :  { %v5951_v50 = vrot.slane %v5950_v62, 2 }
0x115d   :  { %v5952_v7 = vadd.f32 %v5951_v50, %v5950_v62 }
0x115f   :  { %v5953_v40 = vrot.slane %v5952_v7, 1 }
0x1161   :  { %v5954_v11 = vadd.f32 %v5953_v40, %v5952_v7 }
0x1163   :  { %7231 = vlog2.f32 %v5954_v11 }
0x1169   :  { %v7232_v47 = vpop.eup %7231 }
0x116a   :  { %v5956_v21 = vmul.f32 0.6931472, %v7232_v47 }
0x116c   :  { %v5957_v44 = vsub.f32 %v5940_v1, %v5956_v21  ;;  %v5958_v32 = vsub.f32 %v5941_v18, %v5956_v21 }
0x116e   :  { %5959 = vst.msk [vmem:[%s15329_s23] sm:$0xff] %vm5929_vm2, %v5957_v44 }
0x116f   :  { %5960 = vst.msk [vmem:[%s15329_s23 + $0x8] sm:$0x3] %vm5931_vm6, %v5958_v32 }

</bundles_post_ra>
